<compile_context>
chip_gen: v6e
topology: v6e:2x2x1
jax: 0.10.0
libtpu: 0.0.40
codegen_flags: <defaults>
</compile_context>

<pallas_src>
import functools
import math

import jax
import jax.numpy as jnp
from jax.experimental import pallas as pl
from jax.experimental.pallas import tpu as pltpu


def interact_kernel(pf_ref, ps_ref, dist_ref, x_ref, mu_ref,
                    w_env_ref, w_self_ref, b_self_ref, out_ref,
                    *, inv_sigma, cut_coef, rcut, n_dist, mxu_dtype,
                    approx_recip, gather_mode):
    tile_p = dist_ref.shape[0]
    n_atoms = x_ref.shape[0]
    f_out_pad = out_ref.shape[2]

    x = x_ref[...]                                     # (A, F_in), already mxu_dtype

    is_first_tile = pl.program_id(1) == 0
    is_core0 = pl.program_id(0) == 0

    # ---- first pair tile of this partial: initialise the VMEM accumulator ----
    @pl.when(jnp.logical_and(is_first_tile, is_core0))
    def _init_self():
        # Self interaction (Linear) only lands in partial 0.
        out_ref[0] = (jnp.dot(x, w_self_ref[...],
                              preferred_element_type=jnp.float32)
                      + b_self_ref[...])

    @pl.when(jnp.logical_and(is_first_tile, jnp.logical_not(is_core0)))
    def _init_zero():
        out_ref[0] = jnp.zeros(out_ref.shape[1:], out_ref.dtype)

    # ---- sensitivities: inverse-distance Gaussians * cos^2 hard cutoff ------
    d = dist_ref[...]                                  # (tp, 1) f32
    inv_d = pl.reciprocal(jnp.maximum(d, 1e-10), approx=approx_recip)
    z = (inv_d - mu_ref[...]) * inv_sigma              # (tp, D)
    gauss = jnp.exp(-0.5 * z * z)
    cut = jnp.cos(cut_coef * d) ** 2                   # cut_coef = pi/(2*rcut)
    cut = jnp.where(d < rcut, cut, 0.0)                # padded pairs -> 0
    sense = gauss * cut                                # (tp, D) f32

    # ---- gather sender features: direct row gather (preferred) --------------
    if gather_mode == "take":
        idx = ps_ref[...][:, 0]                        # (tp,) int32
        gathered = jnp.take(x, idx, axis=0, mode="clip")          # (tp, F_in)
    else:
        # Fallback: one-hot matmul on the MXU (always lowers).
        atom_ids_l = jax.lax.broadcasted_iota(jnp.int32, (tile_p, n_atoms), 1)
        sel_second = (atom_ids_l == ps_ref[...]).astype(mxu_dtype)   # (tp, A)
        gathered = jnp.dot(sel_second, x,
                           preferred_element_type=jnp.float32).astype(mxu_dtype)

    # ---- env contribution per sensitivity channel (no concatenate) ----------
    # y[p, o] = sum_d sense[p, d] * (gathered @ W_d)[p, o], accumulated in f32.
    y = jnp.zeros((tile_p, f_out_pad), jnp.float32)
    for di in range(n_dist):
        z_d = jnp.dot(gathered, w_env_ref[di],
                      preferred_element_type=jnp.float32)          # (tp, F_out_pad)
        y = y + sense[:, di:di + 1] * z_d

    # ---- scatter-add to receiver atoms: single one-hot matmul (kept f32) ----
    # sel_first[a, p] = (a == pair_first[p]); padded pairs (pf == n_atoms)
    # match no row and contribute nothing.
    atom_ids_s = jax.lax.broadcasted_iota(jnp.int32, (n_atoms, tile_p), 0)
    sel_first = (atom_ids_s == pf_ref[...]).astype(jnp.float32)     # (A, tp)
    out_ref[0] = out_ref[0] + jnp.dot(sel_first, y,
                                      preferred_element_type=jnp.float32)


def interact_layer(in_features, pair_first, pair_second, dist_pairs, params, *,
                   sigma, rcut, tile_pairs=256, num_partials=1,
                   mxu_dtype=jnp.float32, approx_recip=False,
                   gather_mode="take"):
    n_atoms, nf_in = (int(s) for s in in_features.shape)
    n_pairs = int(dist_pairs.shape[0])
    n_dist, nf_out, _ = (int(s) for s in params["int_weights"].shape)

    # Lane-dense output: pad nf_out up to a multiple of 128 (sliced back below).
    # TODO(synk): for production nf_out >= 128 on v6e/v7x, pad to a multiple of
    # 256 to fully fill the MXU N dimension.
    f_out_pad = ((nf_out + 127) // 128) * 128

    # Pad the pair list to a multiple of (tile_pairs * num_partials).
    chunk = tile_pairs * num_partials
    p_pad = ((max(n_pairs, 1) + chunk - 1) // chunk) * chunk
    pad = p_pad - n_pairs
    pf = jnp.pad(pair_first.astype(jnp.int32), (0, pad),
                 constant_values=n_atoms).reshape(1, p_pad)
    ps = jnp.pad(pair_second.astype(jnp.int32), (0, pad),
                 constant_values=0).reshape(p_pad, 1)
    d = jnp.pad(dist_pairs.astype(jnp.float32), (0, pad),
                constant_values=2.0 * float(rcut)).reshape(p_pad, 1)

    # int_weights (D, F_out, F_in) -> (D, F_in, F_out_pad), matching torch's
    # permute(0, 2, 1); zero-padded on F_out.
    w_env = jnp.transpose(params["int_weights"], (0, 2, 1))
    w_env = jnp.pad(w_env, ((0, 0), (0, 0), (0, f_out_pad - nf_out))).astype(mxu_dtype)
    w_self = jnp.pad(params["self_w"].T,
                     ((0, 0), (0, f_out_pad - nf_out))).astype(mxu_dtype)
    b_self = jnp.pad(params["self_b"], (0, f_out_pad - nf_out)
                     ).reshape(1, f_out_pad).astype(jnp.float32)
    mu = params["mu_inv"].reshape(1, n_dist).astype(jnp.float32)
    # Cast features ONCE in XLA (hoisted out of the per-tile kernel body).
    x = in_features.astype(mxu_dtype)

    tiles_per_partial = p_pad // chunk
    kernel = functools.partial(
        interact_kernel,
        inv_sigma=float(1.0 / sigma),
        cut_coef=float(math.pi / (2.0 * rcut)),
        rcut=float(rcut), n_dist=n_dist,
        mxu_dtype=mxu_dtype, approx_recip=bool(approx_recip),
        gather_mode=gather_mode)

    in_specs = [
        pl.BlockSpec((1, tile_pairs),
                     lambda c, j: (0, c * tiles_per_partial + j)),     # pair_first
        pl.BlockSpec((tile_pairs, 1),
                     lambda c, j: (c * tiles_per_partial + j, 0)),     # pair_second
        pl.BlockSpec((tile_pairs, 1),
                     lambda c, j: (c * tiles_per_partial + j, 0)),     # dist
        pl.BlockSpec((n_atoms, nf_in), lambda c, j: (0, 0)),           # features
        pl.BlockSpec((1, n_dist), lambda c, j: (0, 0)),                # mu
        pl.BlockSpec((n_dist, nf_in, f_out_pad), lambda c, j: (0, 0, 0)),  # env W
        pl.BlockSpec((nf_in, f_out_pad), lambda c, j: (0, 0)),         # self W
        pl.BlockSpec((1, f_out_pad), lambda c, j: (0, 0)),             # self b
    ]
    # TODO(synk): grid-invariant blocks (features / weights / bias) could be
    # single-buffered via pipeline_mode=pl.Buffered(1) to halve their VMEM
    # footprint once verified on the target toolchain.
    out_specs = pl.BlockSpec((1, n_atoms, f_out_pad), lambda c, j: (c, 0, 0))

    # VMEM limit with headroom below physical capacity:
    #   v7x (64 MiB/core)  -> ~48 MiB;  v5e/v6e (128 MiB) -> ~96 MiB.
    try:
        vmem_cap = int(pltpu.get_tpu_info().vmem_capacity_bytes)
    except Exception:
        vmem_cap = 64 * 1024 * 1024      # conservative fallback (safe on v7x)
    vmem_limit = min(int(vmem_cap * 3 // 4), 100 * 1024 * 1024)

    n_tiles = num_partials * tiles_per_partial
    gather_flops = 0 if gather_mode == "take" else 2 * tile_pairs * n_atoms * nf_in
    flops = int(
        2 * n_atoms * nf_in * f_out_pad                                # self part
        + n_tiles * (gather_flops
                     + 2 * tile_pairs * n_dist * nf_in * f_out_pad     # env matmuls
                     + 2 * n_atoms * tile_pairs * f_out_pad))          # scatter matmul
    cost = pl.CostEstimate(
        flops=flops,
        transcendentals=int(p_pad * (n_dist + 2)),
        bytes_accessed=int(x.size * x.dtype.itemsize + p_pad * 12
                           + w_env.size * w_env.dtype.itemsize
                           + w_self.size * w_self.dtype.itemsize
                           + f_out_pad * 4
                           + num_partials * n_atoms * f_out_pad * 4))

    partials = pl.pallas_call(
        kernel,
        out_shape=jax.ShapeDtypeStruct((num_partials, n_atoms, f_out_pad),
                                       jnp.float32),
        grid=(num_partials, tiles_per_partial),
        in_specs=in_specs,
        out_specs=out_specs,
        compiler_params=pltpu.CompilerParams(
            dimension_semantics=("parallel", "arbitrary"),
            vmem_limit_bytes=vmem_limit),
        cost_estimate=cost,
    )(pf, ps, d, x, mu, w_env, w_self, b_self)

    # Sum per-core partial accumulators (num_partials=2 on v7x) and strip pad.
    return jnp.sum(partials, axis=0)[:, :nf_out]


if __name__ == "__main__":
    key = jax.random.PRNGKey(0)
    n_atoms, nf_in, nf_out, n_dist, n_pairs = 32, 16, 8, 4, 300
    mind_soft, maxd_soft, hard_cutoff = 0.85, 5.0, 5.5

    k = jax.random.split(key, 6)
    in_features = jax.random.normal(k[0], (n_atoms, nf_in), jnp.float32)
    pair_first = jax.random.randint(k[1], (n_pairs,), 0, n_atoms, dtype=jnp.int32)
    pair_second = jax.random.randint(k[2], (n_pairs,), 0, n_atoms, dtype=jnp.int32)
    dist_pairs = jax.random.uniform(k[3], (n_pairs,), jnp.float32, 1.0, 5.0)

    # deterministic synthetic parameters (xavier-normal-ish std)
    std_int = (2.0 / (nf_out * nf_in + n_dist * nf_in)) ** 0.5
    int_weights = std_int * jax.random.normal(k[4], (n_dist, nf_out, nf_in), jnp.float32)
    std_self = (2.0 / (nf_in + nf_out)) ** 0.5
    self_w = std_self * jax.random.normal(k[5], (nf_out, nf_in), jnp.float32)
    self_b = jnp.linspace(-0.1, 0.1, nf_out, dtype=jnp.float32)

    # sensitivity parameters (inverse-distance space), deterministic
    mu_inv = jnp.linspace(1.0 / maxd_soft, 1.0 / mind_soft, n_dist, dtype=jnp.float32)
    sigma = float((1.0 / mind_soft - 1.0 / maxd_soft) / n_dist)

    params = dict(int_weights=int_weights, self_w=self_w, self_b=self_b, mu_inv=mu_inv)

    # ---- pure-JAX reference (mirrors the PyTorch forward) ----
    hp = jax.lax.Precision.HIGHEST
    dd = dist_pairs[:, None]
    sense_ref = jnp.exp(-0.5 * ((1.0 / dd - mu_inv[None, :]) / sigma) ** 2)
    cut_ref = jnp.where(dd < hard_cutoff,
                        jnp.cos(jnp.pi / 2.0 * dd / hard_cutoff) ** 2, 0.0)
    sense_ref = sense_ref * cut_ref                                    # (P, D)
    gathered_ref = in_features[pair_second]                            # (P, F_in)
    prod = sense_ref[:, :, None] * gathered_ref[:, None, :]            # (P, D, F_in)
    env = jnp.zeros((n_atoms, n_dist, nf_in), jnp.float32).at[pair_first].add(prod)
    env = env.reshape(n_atoms, n_dist * nf_in)
    w_rs = jnp.transpose(int_weights, (0, 2, 1)).reshape(n_dist * nf_in, nf_out)
    ref = (jnp.dot(env, w_rs, precision=hp)
           + jnp.dot(in_features, self_w.T, precision=hp) + self_b[None, :])

    # Demo uses f32 MXU operands + exact reciprocal for a tight check.
    # On v6e/v7x production runs pass mxu_dtype=jnp.bfloat16, approx_recip=True,
    # and num_partials=2 on v7x (two TensorCores).
    def run(gather_mode):
        out = interact_layer(
            in_features, pair_first, pair_second, dist_pairs, params,
            sigma=sigma, rcut=hard_cutoff, tile_pairs=256, num_partials=1,
            mxu_dtype=jnp.float32, approx_recip=False, gather_mode=gather_mode)
        out = jax.block_until_ready(out)
        err = float(jnp.max(jnp.abs(out - ref)))
        assert jnp.allclose(out, ref, atol=2e-3, rtol=2e-3), (gather_mode, err)
        return out

    try:
        out = run("take")       # preferred: direct in-kernel row gather
    except Exception:
        out = run("onehot")     # fallback: MXU one-hot gather (always lowers)

    print("KERNEL_OK")
</pallas_src>

<mosaic_0001>
module attributes {stable_mosaic.version = 11 : i64} {
  func.func @interact_kernel(%arg0: i32, %arg1: i32, %arg2: memref<1x256xi32, #tpu.memory_space<vmem>>, %arg3: memref<256x1xi32, #tpu.memory_space<vmem>>, %arg4: memref<256x1xf32, #tpu.memory_space<vmem>>, %arg5: memref<32x16xf32, #tpu.memory_space<vmem>>, %arg6: memref<1x4xf32, #tpu.memory_space<vmem>>, %arg7: memref<4x16x128xf32, #tpu.memory_space<vmem>>, %arg8: memref<16x128xf32, #tpu.memory_space<vmem>>, %arg9: memref<1x128xf32, #tpu.memory_space<vmem>>, %arg10: memref<1x32x128xf32, #tpu.memory_space<vmem>>) attributes {dimension_semantics = [#tpu.dimension_semantics<parallel>, #tpu.dimension_semantics<arbitrary>], iteration_bounds = array<i64: 1, 2>, scalar_prefetch = 0 : i64, scratch_operands = 0 : i64, tpu.core_type = #tpu.core_type<tc>, window_params = [{transform_indices = @transform_0, window_bounds = array<i64: 1, 256>}, {transform_indices = @transform_1, window_bounds = array<i64: 256, 1>}, {transform_indices = @transform_2, window_bounds = array<i64: 256, 1>}, {pipeline_mode = #tpu.pipeline_mode<synchronous>, transform_indices = @transform_3, window_bounds = array<i64: 32, 16>}, {pipeline_mode = #tpu.pipeline_mode<synchronous>, transform_indices = @transform_4, window_bounds = array<i64: 1, 4>}, {pipeline_mode = #tpu.pipeline_mode<synchronous>, transform_indices = @transform_5, window_bounds = array<i64: 4, 16, 128>}, {pipeline_mode = #tpu.pipeline_mode<synchronous>, transform_indices = @transform_6, window_bounds = array<i64: 16, 128>}, {pipeline_mode = #tpu.pipeline_mode<synchronous>, transform_indices = @transform_7, window_bounds = array<i64: 1, 128>}, {transform_indices = @transform_8, window_bounds = array<i64: 1, 32, 128>}]} {
    %c0 = arith.constant 0 : index
    %c0_0 = arith.constant 0 : index
    %0 = vector.load %arg5[%c0, %c0_0] : memref<32x16xf32, #tpu.memory_space<vmem>>, vector<32x16xf32>
    %c0_i32 = arith.constant 0 : i32
    %1 = arith.cmpi eq, %arg1, %c0_i32 : i32
    %c0_i32_1 = arith.constant 0 : i32
    %2 = arith.cmpi eq, %arg0, %c0_i32_1 : i32
    %3 = arith.andi %1, %2 : i1
    %4 = arith.extui %3 : i1 to i32
    %c0_i32_2 = arith.constant 0 : i32
    %5 = arith.cmpi ne, %4, %c0_i32_2 : i32
    scf.if %5 {
      %c0_39 = arith.constant 0 : index
      %c0_40 = arith.constant 0 : index
      %83 = vector.load %arg8[%c0_39, %c0_40] : memref<16x128xf32, #tpu.memory_space<vmem>>, vector<16x128xf32>
      %cst_41 = arith.constant dense<0.000000e+00> : vector<32x128xf32>
      %84 = tpu.matmul %0, %83, %cst_41 {dimension_numbers = #tpu.dot_dimension_numbers<[1], [0], [0], [1], [0, 0, 1, 1], [], []>} : vector<32x16xf32>, vector<16x128xf32>, vector<32x128xf32> -> vector<32x128xf32>
      %c0_42 = arith.constant 0 : index
      %c0_43 = arith.constant 0 : index
      %85 = vector.load %arg9[%c0_42, %c0_43] : memref<1x128xf32, #tpu.memory_space<vmem>>, vector<1x128xf32>
      %86 = vector.broadcast %85 : vector<1x128xf32> to vector<32x128xf32>
      %87 = arith.addf %84, %86 : vector<32x128xf32>
      %c0_44 = arith.constant 0 : index
      %c0_45 = arith.constant 0 : index
      %c0_46 = arith.constant 0 : index
      %88 = vector.load %arg10[%c0_44, %c0_45, %c0_46] : memref<1x32x128xf32, #tpu.memory_space<vmem>>, vector<1x32x128xf32>
      %89 = vector.shape_cast %88 : vector<1x32x128xf32> to vector<32x128xf32>
      %90 = vector.shape_cast %87 : vector<32x128xf32> to vector<1x32x128xf32>
      tpu.vector_store %arg10[%c0_44, %c0_45, %c0_46], %90 {strides = array<i32>} : memref<1x32x128xf32, #tpu.memory_space<vmem>>, vector<1x32x128xf32>,
    } else {
    }
    %true = arith.constant true
    %6 = arith.xori %2, %true : i1
    %7 = arith.andi %1, %6 : i1
    %8 = arith.extui %7 : i1 to i32
    %c0_i32_3 = arith.constant 0 : i32
    %9 = arith.cmpi ne, %8, %c0_i32_3 : i32
    scf.if %9 {
      %cst_39 = arith.constant 0.000000e+00 : f32
      %83 = vector.broadcast %cst_39 : f32 to vector<32x128xf32>
      %c0_40 = arith.constant 0 : index
      %c0_41 = arith.constant 0 : index
      %c0_42 = arith.constant 0 : index
      %84 = vector.load %arg10[%c0_40, %c0_41, %c0_42] : memref<1x32x128xf32, #tpu.memory_space<vmem>>, vector<1x32x128xf32>
      %85 = vector.shape_cast %84 : vector<1x32x128xf32> to vector<32x128xf32>
      %86 = vector.shape_cast %83 : vector<32x128xf32> to vector<1x32x128xf32>
      tpu.vector_store %arg10[%c0_40, %c0_41, %c0_42], %86 {strides = array<i32>} : memref<1x32x128xf32, #tpu.memory_space<vmem>>, vector<1x32x128xf32>,
    } else {
    }
    %c0_4 = arith.constant 0 : index
    %c0_5 = arith.constant 0 : index
    %10 = vector.load %arg4[%c0_4, %c0_5] : memref<256x1xf32, #tpu.memory_space<vmem>>, vector<256x1xf32>
    %cst = arith.constant 1.000000e-10 : f32
    %11 = vector.broadcast %cst : f32 to vector<256x1xf32>
    %12 = arith.maximumf %10, %11 : vector<256x1xf32>
    %13 = tpu.reciprocal %12 : vector<256x1xf32> -> vector<256x1xf32>
    %c0_6 = arith.constant 0 : index
    %c0_7 = arith.constant 0 : index
    %14 = vector.load %arg6[%c0_6, %c0_7] : memref<1x4xf32, #tpu.memory_space<vmem>>, vector<1x4xf32>
    %15 = vector.broadcast %13 : vector<256x1xf32> to vector<256x4xf32>
    %16 = vector.broadcast %14 : vector<1x4xf32> to vector<256x4xf32>
    %17 = arith.subf %15, %16 : vector<256x4xf32>
    %cst_8 = arith.constant 4.09638548 : f32
    %18 = vector.broadcast %cst_8 : f32 to vector<256x4xf32>
    %19 = arith.mulf %17, %18 : vector<256x4xf32>
    %cst_9 = arith.constant -5.000000e-01 : f32
    %20 = vector.broadcast %cst_9 : f32 to vector<256x4xf32>
    %21 = arith.mulf %20, %19 : vector<256x4xf32>
    %22 = arith.mulf %21, %19 : vector<256x4xf32>
    %23 = math.exp %22 : vector<256x4xf32>
    %cst_10 = arith.constant 0.285599321 : f32
    %24 = vector.broadcast %cst_10 : f32 to vector<256x1xf32>
    %25 = arith.mulf %24, %10 : vector<256x1xf32>
    %26 = math.cos %25 : vector<256x1xf32>
    %27 = arith.mulf %26, %26 : vector<256x1xf32>
    %cst_11 = arith.constant 5.500000e+00 : f32
    %28 = vector.broadcast %cst_11 : f32 to vector<256x1xf32>
    %29 = arith.cmpf olt, %10, %28 : vector<256x1xf32>
    %cst_12 = arith.constant 0.000000e+00 : f32
    %30 = vector.broadcast %cst_12 : f32 to vector<256x1xf32>
    %31 = arith.select %29, %27, %30 : vector<256x1xi1>, vector<256x1xf32>
    %32 = vector.broadcast %31 : vector<256x1xf32> to vector<256x4xf32>
    %33 = arith.mulf %23, %32 : vector<256x4xf32>
    %34 = tpu.iota {dimensions = array<i32: 1>} : vector<256x32xi32>
    %c0_13 = arith.constant 0 : index
    %c0_14 = arith.constant 0 : index
    %35 = vector.load %arg3[%c0_13, %c0_14] : memref<256x1xi32, #tpu.memory_space<vmem>>, vector<256x1xi32>
    %36 = vector.broadcast %35 : vector<256x1xi32> to vector<256x32xi32>
    %37 = arith.cmpi eq, %34, %36 : vector<256x32xi32>
    %38 = arith.extui %37 : vector<256x32xi1> to vector<256x32xi32>
    %39 = arith.sitofp %38 : vector<256x32xi32> to vector<256x32xf32>
    %cst_15 = arith.constant dense<0.000000e+00> : vector<256x16xf32>
    %40 = tpu.matmul %39, %0, %cst_15 {dimension_numbers = #tpu.dot_dimension_numbers<[1], [0], [0], [1], [0, 0, 1, 1], [], []>} : vector<256x32xf32>, vector<32x16xf32>, vector<256x16xf32> -> vector<256x16xf32>
    %cst_16 = arith.constant 0.000000e+00 : f32
    %41 = vector.broadcast %cst_16 : f32 to vector<256x128xf32>
    %c0_17 = arith.constant 0 : index
    %c0_18 = arith.constant 0 : index
    %c0_19 = arith.constant 0 : index
    %42 = vector.load %arg7[%c0_17, %c0_18, %c0_19] : memref<4x16x128xf32, #tpu.memory_space<vmem>>, vector<1x16x128xf32>
    %43 = vector.shape_cast %42 : vector<1x16x128xf32> to vector<16x128xf32>
    %cst_20 = arith.constant dense<0.000000e+00> : vector<256x128xf32>
    %44 = tpu.matmul %40, %43, %cst_20 {dimension_numbers = #tpu.dot_dimension_numbers<[1], [0], [0], [1], [0, 0, 1, 1], [], []>} : vector<256x16xf32>, vector<16x128xf32>, vector<256x128xf32> -> vector<256x128xf32>
    %45 = vector.extract_strided_slice %33 {offsets = [0, 0], sizes = [256, 1], strides = [1, 1]} : vector<256x4xf32> to vector<256x1xf32>
    %46 = vector.broadcast %45 : vector<256x1xf32> to vector<256x128xf32>
    %47 = arith.mulf %46, %44 : vector<256x128xf32>
    %48 = arith.addf %41, %47 : vector<256x128xf32>
    %c1 = arith.constant 1 : index
    %c0_21 = arith.constant 0 : index
    %c0_22 = arith.constant 0 : index
    %49 = vector.load %arg7[%c1, %c0_21, %c0_22] : memref<4x16x128xf32, #tpu.memory_space<vmem>>, vector<1x16x128xf32>
    %50 = vector.shape_cast %49 : vector<1x16x128xf32> to vector<16x128xf32>
    %cst_23 = arith.constant dense<0.000000e+00> : vector<256x128xf32>
    %51 = tpu.matmul %40, %50, %cst_23 {dimension_numbers = #tpu.dot_dimension_numbers<[1], [0], [0], [1], [0, 0, 1, 1], [], []>} : vector<256x16xf32>, vector<16x128xf32>, vector<256x128xf32> -> vector<256x128xf32>
    %52 = vector.extract_strided_slice %33 {offsets = [0, 1], sizes = [256, 1], strides = [1, 1]} : vector<256x4xf32> to vector<256x1xf32>
    %53 = vector.broadcast %52 : vector<256x1xf32> to vector<256x128xf32>
    %54 = arith.mulf %53, %51 : vector<256x128xf32>
    %55 = arith.addf %48, %54 : vector<256x128xf32>
    %c2 = arith.constant 2 : index
    %c0_24 = arith.constant 0 : index
    %c0_25 = arith.constant 0 : index
    %56 = vector.load %arg7[%c2, %c0_24, %c0_25] : memref<4x16x128xf32, #tpu.memory_space<vmem>>, vector<1x16x128xf32>
    %57 = vector.shape_cast %56 : vector<1x16x128xf32> to vector<16x128xf32>
    %cst_26 = arith.constant dense<0.000000e+00> : vector<256x128xf32>
    %58 = tpu.matmul %40, %57, %cst_26 {dimension_numbers = #tpu.dot_dimension_numbers<[1], [0], [0], [1], [0, 0, 1, 1], [], []>} : vector<256x16xf32>, vector<16x128xf32>, vector<256x128xf32> -> vector<256x128xf32>
    %59 = vector.extract_strided_slice %33 {offsets = [0, 2], sizes = [256, 1], strides = [1, 1]} : vector<256x4xf32> to vector<256x1xf32>
    %60 = vector.broadcast %59 : vector<256x1xf32> to vector<256x128xf32>
    %61 = arith.mulf %60, %58 : vector<256x128xf32>
    %62 = arith.addf %55, %61 : vector<256x128xf32>
    %c3 = arith.constant 3 : index
    %c0_27 = arith.constant 0 : index
    %c0_28 = arith.constant 0 : index
    %63 = vector.load %arg7[%c3, %c0_27, %c0_28] : memref<4x16x128xf32, #tpu.memory_space<vmem>>, vector<1x16x128xf32>
    %64 = vector.shape_cast %63 : vector<1x16x128xf32> to vector<16x128xf32>
    %cst_29 = arith.constant dense<0.000000e+00> : vector<256x128xf32>
    %65 = tpu.matmul %40, %64, %cst_29 {dimension_numbers = #tpu.dot_dimension_numbers<[1], [0], [0], [1], [0, 0, 1, 1], [], []>} : vector<256x16xf32>, vector<16x128xf32>, vector<256x128xf32> -> vector<256x128xf32>
    %66 = vector.extract_strided_slice %33 {offsets = [0, 3], sizes = [256, 1], strides = [1, 1]} : vector<256x4xf32> to vector<256x1xf32>
    %67 = vector.broadcast %66 : vector<256x1xf32> to vector<256x128xf32>
    %68 = arith.mulf %67, %65 : vector<256x128xf32>
    %69 = arith.addf %62, %68 : vector<256x128xf32>
    %70 = tpu.iota {dimensions = array<i32: 0>} : vector<32x256xi32>
    %c0_30 = arith.constant 0 : index
    %c0_31 = arith.constant 0 : index
    %71 = vector.load %arg2[%c0_30, %c0_31] : memref<1x256xi32, #tpu.memory_space<vmem>>, vector<1x256xi32>
    %72 = vector.broadcast %71 : vector<1x256xi32> to vector<32x256xi32>
    %73 = arith.cmpi eq, %70, %72 : vector<32x256xi32>
    %74 = arith.extui %73 : vector<32x256xi1> to vector<32x256xi32>
    %75 = arith.sitofp %74 : vector<32x256xi32> to vector<32x256xf32>
    %c0_32 = arith.constant 0 : index
    %c0_33 = arith.constant 0 : index
    %c0_34 = arith.constant 0 : index
    %76 = vector.load %arg10[%c0_32, %c0_33, %c0_34] : memref<1x32x128xf32, #tpu.memory_space<vmem>>, vector<1x32x128xf32>
    %77 = vector.shape_cast %76 : vector<1x32x128xf32> to vector<32x128xf32>
    %cst_35 = arith.constant dense<0.000000e+00> : vector<32x128xf32>
    %78 = tpu.matmul %75, %69, %cst_35 {dimension_numbers = #tpu.dot_dimension_numbers<[1], [0], [0], [1], [0, 0, 1, 1], [], []>} : vector<32x256xf32>, vector<256x128xf32>, vector<32x128xf32> -> vector<32x128xf32>
    %79 = arith.addf %77, %78 : vector<32x128xf32>
    %c0_36 = arith.constant 0 : index
    %c0_37 = arith.constant 0 : index
    %c0_38 = arith.constant 0 : index
    %80 = vector.load %arg10[%c0_36, %c0_37, %c0_38] : memref<1x32x128xf32, #tpu.memory_space<vmem>>, vector<1x32x128xf32>
    %81 = vector.shape_cast %80 : vector<1x32x128xf32> to vector<32x128xf32>
    %82 = vector.shape_cast %79 : vector<32x128xf32> to vector<1x32x128xf32>
    tpu.vector_store %arg10[%c0_36, %c0_37, %c0_38], %82 {strides = array<i32>} : memref<1x32x128xf32, #tpu.memory_space<vmem>>, vector<1x32x128xf32>,
    return
  }
  func.func @transform_0(%arg0: i32, %arg1: i32) -> (i32, i32) {
    %c2_i32 = arith.constant 2 : i32
    %0 = arith.muli %arg0, %c2_i32 : i32
    %1 = arith.addi %0, %arg1 : i32
    %c0_i32 = arith.constant 0 : i32
    %c0_i32_0 = arith.constant 0 : i32
    return %c0_i32, %1 : i32, i32
  }
  func.func @transform_1(%arg0: i32, %arg1: i32) -> (i32, i32) {
    %c2_i32 = arith.constant 2 : i32
    %0 = arith.muli %arg0, %c2_i32 : i32
    %1 = arith.addi %0, %arg1 : i32
    %c0_i32 = arith.constant 0 : i32
    %c0_i32_0 = arith.constant 0 : i32
    return %1, %c0_i32 : i32, i32
  }
  func.func @transform_2(%arg0: i32, %arg1: i32) -> (i32, i32) {
    %c2_i32 = arith.constant 2 : i32
    %0 = arith.muli %arg0, %c2_i32 : i32
    %1 = arith.addi %0, %arg1 : i32
    %c0_i32 = arith.constant 0 : i32
    %c0_i32_0 = arith.constant 0 : i32
    return %1, %c0_i32 : i32, i32
  }
  func.func @transform_3(%arg0: i32, %arg1: i32) -> (i32, i32) {
    %c0_i32 = arith.constant 0 : i32
    %c0_i32_0 = arith.constant 0 : i32
    %c0_i32_1 = arith.constant 0 : i32
    return %c0_i32, %c0_i32_0 : i32, i32
  }
  func.func @transform_4(%arg0: i32, %arg1: i32) -> (i32, i32) {
    %c0_i32 = arith.constant 0 : i32
    %c0_i32_0 = arith.constant 0 : i32
    %c0_i32_1 = arith.constant 0 : i32
    return %c0_i32, %c0_i32_0 : i32, i32
  }
  func.func @transform_5(%arg0: i32, %arg1: i32) -> (i32, i32, i32) {
    %c0_i32 = arith.constant 0 : i32
    %c0_i32_0 = arith.constant 0 : i32
    %c0_i32_1 = arith.constant 0 : i32
    %c0_i32_2 = arith.constant 0 : i32
    return %c0_i32, %c0_i32_0, %c0_i32_1 : i32, i32, i32
  }
  func.func @transform_6(%arg0: i32, %arg1: i32) -> (i32, i32) {
    %c0_i32 = arith.constant 0 : i32
    %c0_i32_0 = arith.constant 0 : i32
    %c0_i32_1 = arith.constant 0 : i32
    return %c0_i32, %c0_i32_0 : i32, i32
  }
  func.func @transform_7(%arg0: i32, %arg1: i32) -> (i32, i32) {
    %c0_i32 = arith.constant 0 : i32
    %c0_i32_0 = arith.constant 0 : i32
    %c0_i32_1 = arith.constant 0 : i32
    return %c0_i32, %c0_i32_0 : i32, i32
  }
  func.func @transform_8(%arg0: i32, %arg1: i32) -> (i32, i32, i32) {
    %c0_i32 = arith.constant 0 : i32
    %c0_i32_0 = arith.constant 0 : i32
    %c0_i32_1 = arith.constant 0 : i32
    return %arg0, %c0_i32, %c0_i32_0 : i32, i32, i32
  }
}

</mosaic_0001>

<bundles_post_ra>
// kernel: tpu_custom_call.1
= control target key start
LH: loop header
LB: loop body
LE: loop exit
PB: predicated region body
PF: predicated region fallthrough
CT: control target
= control target key end

     0   :  { %13 = vsyncpa [#allocation3], 0  ;;  %s8646_s27 = smov 0   ;;  %s8648_s28 = smov 0   ;;  %s13356_s0 = inlined_call_operand.vmem [shape: s32[1,512], index: 0, kind: input, shape index: {}]   ;;  %s13357_s1 = inlined_call_operand.vmem [shape: s32[512,1], index: 1, kind: input, shape index: {}]   ;;  %s13358_s2 = inlined_call_operand.vmem [shape: f32[512,1], index: 2, kind: input, shape index: {}]   ;;  %s13359_s3 = inlined_call_operand.vmem [shape: f32[32,16], index: 3, kind: input, shape index: {}]   ;;  %s13360_s4 = inlined_call_operand.vmem [shape: f32[1,4], index: 4, kind: input, shape index: {}]   ;;  %s13361_s5 = inlined_call_operand.vmem [shape: f32[4,16,128], index: 5, kind: input, shape index: {}]   ;;  %s13362_s6 = inlined_call_operand.vmem [shape: f32[16,128], index: 6, kind: input, shape index: {}]   ;;  %s13363_s7 = inlined_call_operand.vmem [shape: f32[1,128], index: 7, kind: input, shape index: {}]   ;;  %s13364_s8 = inlined_call_operand.hbm [shape: f32[1,32,128], index: 8, kind: output, shape index: {}]  }
   0x1   :  { %s8650_s29 = smov 0  }
   0x2 LB: > { %s7169_s30 = sadd.s32 4294967295, %s8584_s29   ;;  %s28_s9 = sadd.s32 1, %s8580_s28  ;;  %s8584_s29 = sphi %s8650_s29, %s19_s29   ;;  %s8580_s28 = sphi %s8648_s28, %s13746_s28   ;;  %s8576_s27 = sphi %s8646_s27, %s13745_s27  }
   0x3   : > { %p29_p0 = scmp.ge.s32.totalorder %s28_s9, 2  ;;  %p7172_p1 = scmp.ge.s32.totalorder %s8584_s29, 1 }
   0x4   : > { %p321_p2 = scmp.lt.s32.totalorder %s8584_s29, 3 }
   0x5   : > { %s13748_s9 = smov (%p29_p0, %s28_s9), 0 }
   0x6   : > { %p322_p3 = pnand %p7172_p1, %p321_p2 }
   0x8   : > { %325 = sbr.rel (%p322_p3) target bundleno = 1825 (0x721), region = 52 }
   0xd   : > { %s7173_s10 = sshll.u32 %s8576_s27, 1  ;;  %s7174_s11 = sshll.u32 %s8576_s27, 5  ;;  %v8668_v0 = vld [vmem:[%s13359_s3] sm:$0xff]  ;;  %v8673_v1 = vld [vmem:[%s13359_s3 + $0x8] sm:$0xff]  ;;  %v396_v2 = vld [vmem:[%s13359_s3 + $0x10] sm:$0xff] }
   0xe   : > { %p368_p4 = scmp.lt.s32.totalorder %s7173_s10, 3  ;;  %p377_p5 = scmp.lt.s32.totalorder %s7174_s11, 63  ;;  %v397_v3 = vld [vmem:[%s13359_s3 + $0x18] sm:$0xff] }
   0xf   : > { %p398_p6 = scmp.eq.s32.totalorder %s8576_s27, 0 }
  0x10   : > { %s13750_s10 = smov (!%p368_p4, %s7173_s10), 3  ;;  %s13752_s11 = smov (!%p377_p5, %s7174_s11), 63  ;;  %v405_v4 = vld [vmem:[%s13362_s6 + $0x8] sm:$0xff] (%p398_p6)  ;;  %v404_v5 = vld [vmem:[%s13362_s6] sm:$0xff] (%p398_p6)  ;;  %vm413_vm0 = vcmask (%p398_p6), 130048  }
  0x11   : > { %s370_s22 = scalar_lea.vmem %s13356_s0, %s13750_s10  ;;  %s7175_s23 = sshll.u32 %s13752_s11, 3  ;;  %7754 = vmatprep.subr.mxu0 (%p398_p6), %v405_v4  ;;  %8028 = vmatprep.subr.mxu1 (%p398_p6), %v405_v4  ;;  %v7179_v6 = vld [vmem:[%s13363_s7] ss:$0 sm:$0xff] (%p398_p6) }
  0x12   : > { %s8690_s26 = scalar_lea.vmem %s13357_s1, %s7175_s23  ;;  %s8695_s14 = scalar_lea.vmem %s13358_s2, %s7175_s23  ;;  %7755 = vmatpush3.msra.mxu0 (%p398_p6), %v405_v4  ;;  %8030 = vmatpush3.msra.mxu1 (%p398_p6), %v405_v4 }
  0x13   : > { %403 = sbr.rel (!%p398_p6) target bundleno = 220 (0xdc), region = 56  ;;  %7756 = vmatprep.subr.mxu0 (%p398_p6), %v404_v5  ;;  %8029 = vmatprep.subr.mxu1 (%p398_p6), %v404_v5 }
  0x14   : > { %7757 = vmatpush3.msra.mxu0 (%p398_p6), %v404_v5  ;;  %8031 = vmatpush3.msra.mxu1 (%p398_p6), %v404_v5 }
  0x15   : > { %7758 = vmatprep.mubr.msk.f32.mxu0 (%p398_p6), %vm413_vm0, %v8668_v0  ;;  %7761 = vmatprep.mubr.msk.f32.mxu1 (%p398_p6), %vm413_vm0, %v396_v2 }
  0x16   : > { %7759 = vmatmul.mubr.msk.f32.vlgmr.msra.gmra.mxu0 (%p398_p6), %vm413_vm0, %v8673_v1  ;;  %7762 = vmatmul.mubr.msk.f32.vlgmr.msra.gmra.mxu1 (%p398_p6), %vm413_vm0, %v397_v3 }
  0xd6   : > { %v7760_v7 = vpop.f32.mrf.mxu0  ;;  %v7763_v8 = vpop.f32.mrf.mxu1 }
  0xd7   : > { %v498_v9 = vadd.f32 %v7760_v7, %v7179_v6  ;;  %v508_v10 = vadd.f32 %v7763_v8, %v7179_v6 }
  0xd8   : > { %v492_v11 = vpop.f32.mrf.mxu0  ;;  %v502_v12 = vpop.f32.mrf.mxu1 }
  0xd9   : > { %512 = vst [vmem:[#allocation2 + $0x8] sm:$0xff] %v498_v9  ;;  %514 = vst [vmem:[#allocation2 + $0x18] sm:$0xff] %v508_v10  ;;  %v493_v13 = vadd.f32 %v7179_v6, %v492_v11  ;;  %v503_v14 = vadd.f32 %v7179_v6, %v502_v12 }
  0xdb   : > { %511 = vst [vmem:[#allocation2] sm:$0xff] %v493_v13  ;;  %513 = vst [vmem:[#allocation2 + $0x10] sm:$0xff] %v503_v14 }
  0xdc PF: > { %v4599_v15 = vld [vmem:[%s8690_s26 + $0x10] sm:$0xff]  ;;  %v4597_v16 = vld [vmem:[%s8690_s26] sm:$0xff]  ;;  %7764 = vmatprep.subr.mxu0 %v397_v3  ;;  %v8586_v17 = vmov 0   ;;  %v4598_v20 = vld [vmem:[%s8690_s26 + $0x8] sm:$0xff]  ;;  %s8598_s10 = smov [#allocation2]   ;;  %p13332_p7 = scmp.eq.s32.totalorder %s7169_s30, 1 }
  0xdd   : > { %8210 = vset.pattern.permute.xlu0 %v8586_v17  ;;  %8209 = vset.pattern.permute.xlu1 %v8586_v17  ;;  %v524_v18 = vld [vmem:[%s8695_s14] sm:$0xff]  ;;  %v525_v22 = vld [vmem:[%s8695_s14 + $0x8] sm:$0xff]  ;;  %v4603_v24 = vld [vmem:[%s8690_s26 + $0x30] sm:$0xff] }
  0xde   : > { %4636 = vperm.xlu0 %8210, %v4599_v15   ;;  %4630 = vperm.xlu1 %8209, %v4597_v16   ;;  %v4601_v19 = vld [vmem:[%s8690_s26 + $0x20] sm:$0xff]  ;;  %v556_v21 = vmax.f32 %v524_v18, 1e-10  ;;  %v557_v23 = vmax.f32 %v525_v22, 1e-10  ;;  %v4600_v25 = vld [vmem:[%s8690_s26 + $0x18] sm:$0xff] }
  0xdf   : > { %7765 = vmatpush3.msra.mxu0 %v397_v3  ;;  %v4602_v26 = vld [vmem:[%s8690_s26 + $0x28] sm:$0xff]  ;;  %v8721_v27 = vmul.f32 0.28559932, %v525_v22  ;;  %v4604_v28 = vld [vmem:[%s8690_s26 + $0x38] sm:$0xff]  ;;  %v8729_v31 = vld [vmem:[%s8695_s14 + $0x10] sm:$0xff] }
  0xe0   : > { %7766 = vmatprep.subr.mxu0 %v396_v2  ;;  %8246 = vrcp.f32 %v556_v21  ;;  %v8725_v29 = vld [vmem:[%s8695_s14 + $0x18] sm:$0xff]  ;;  %v558_v33 = vmax.f32 %v8729_v31, 1e-10  ;;  %v8733_v34 = vld [vmem:[%s8695_s14 + $0x28] sm:$0xff]  ;;  %v528_v38 = vld [vmem:[%s8695_s14 + $0x20] sm:$0xff] }
  0xe1   : > { %7767 = vmatpush3.msra.mxu0 %v396_v2  ;;  %8248 = vrcp.f32 %v557_v23  ;;  %v559_v30 = vmax.f32 %v8725_v29, 1e-10  ;;  %v1117_v35 = vand.u32 2139095040, %v8721_v27  ;;  %v4606_v36 = vld [vmem:[%s8690_s26 + $0x48] sm:$0xff]  ;;  %v561_v37 = vmax.f32 %v8733_v34, 1e-10 }
  0xe2   : > { %4642 = vperm.xlu0 %8210, %v4601_v19   ;;  %4633 = vperm.xlu1 %8209, %v4598_v20   ;;  %v560_v40 = vmax.f32 %v528_v38, 1e-10  ;;  %v531_v41 = vld [vmem:[%s8695_s14 + $0x38] sm:$0xff]  ;;  %v530_v44 = vld [vmem:[%s8695_s14 + $0x30] sm:$0xff]  ;;  %v4605_v45 = vld [vmem:[%s8690_s26 + $0x40] sm:$0xff] }
  0xe3   : > { %7768 = vmatprep.subr.mxu0 %v8673_v1  ;;  %v4608_v42 = vld [vmem:[%s8690_s26 + $0x58] sm:$0xff]  ;;  %8250 = vrcp.f32 %v559_v30  ;;  %v563_v43 = vmax.f32 %v531_v41, 1e-10  ;;  %v562_v46 = vmax.f32 %v530_v44, 1e-10  ;;  %v533_v47 = vld [vmem:[%s8695_s14 + $0x48] sm:$0xff] }
  0xe4   : > { %7769 = vmatpush3.msra.mxu0 %v8673_v1  ;;  %8252 = vrcp.f32 %v558_v33  ;;  %v13366_v48 = vand.u32 2147483647, %v8721_v27  ;;  %v1118_v49 = vshrl.u32 %v1117_v35, 23  ;;  %v565_v50 = vmax.f32 %v533_v47, 1e-10  ;;  %v532_v51 = vld [vmem:[%s8695_s14 + $0x40] sm:$0xff] }
  0xe5   : > { %7770 = vmatprep.subr.mxu0 %v8668_v0  ;;  %8254 = vrcp.f32 %v561_v37  ;;  %v535_v52 = vld [vmem:[%s8695_s14 + $0x58] sm:$0xff]  ;;  %v8747_v53 = vmul.f32 0.28559932, %v524_v18  ;;  %v564_v54 = vmax.f32 %v532_v51, 1e-10  ;;  %v534_v56 = vld [vmem:[%s8695_s14 + $0x50] sm:$0xff] }
  0xe6   : > { %4648 = vperm.xlu0 %8210, %v4603_v24   ;;  %4639 = vperm.xlu1 %8209, %v4600_v25   ;;  %8256 = vrcp.f32 %v560_v40  ;;  %v567_v55 = vmax.f32 %v535_v52, 1e-10  ;;  %v537_v57 = vld [vmem:[%s8695_s14 + $0x68] sm:$0xff]  ;;  %v566_v58 = vmax.f32 %v534_v56, 1e-10  ;;  %v536_v60 = vld [vmem:[%s8695_s14 + $0x60] sm:$0xff] }
  0xe7   : > { %7771 = vmatpush3.msra.mxu0 %v8668_v0  ;;  %8258 = vrcp.f32 %v563_v43  ;;  %v569_v59 = vmax.f32 %v537_v57, 1e-10  ;;  %v539_v61 = vld [vmem:[%s8695_s14 + $0x78] sm:$0xff]  ;;  %v4607_v62 = vld [vmem:[%s8690_s26 + $0x50] sm:$0xff]  ;;  %v568_v63 = vmax.f32 %v536_v60, 1e-10 }
  0xe8   : > { %8260 = vrcp.f32 %v562_v46  ;;  %v571_v0 = vmax.f32 %v539_v61, 1e-10  ;;  %v538_v1 = vld [vmem:[%s8695_s14 + $0x70] sm:$0xff]  ;;  %v4610_v2 = vld [vmem:[%s8690_s26 + $0x68] sm:$0xff]  ;;  %v8760_v5 = vld [vmem:[%s8695_s14 + $0x80] sm:$0xff]  ;;  %v7189_v6 = vadd.s32 4294967169, %v1118_v49 }
  0xe9   : > { %8262 = vrcp.f32 %v565_v50  ;;  %v570_v3 = vmax.f32 %v538_v1, 1e-10  ;;  %v8757_v4 = vld [vmem:[%s8695_s14 + $0x88] sm:$0xff]  ;;  %v572_v8 = vmax.f32 %v8760_v5, 1e-10  ;;  %v8765_v9 = vld [vmem:[%s8695_s14 + $0x98] sm:$0xff] }
  0xea   : > { %4645 = vperm.xlu1 %8209, %v4602_v26   ;;  %8264 = vrcp.f32 %v564_v54  ;;  %v573_v7 = vmax.f32 %v8757_v4, 1e-10  ;;  %v1014_v10 = vand.u32 2139095040, %v8747_v53  ;;  %v4612_v11 = vld [vmem:[%s8690_s26 + $0x78] sm:$0xff]  ;;  %v575_v12 = vmax.f32 %v8765_v9, 1e-10 }
  0xeb   : > { %8266 = vrcp.f32 %v567_v55  ;;  %v8771_v13 = vld [vmem:[%s8695_s14 + $0x90] sm:$0xff]  ;;  %v8774_v14 = vld [vmem:[%s8695_s14 + $0xa8] sm:$0xff]  ;;  %v1124_v15 = vadd.s32 1, %v7189_v6  ;;  %v4609_v16 = vld [vmem:[%s8690_s26 + $0x60] sm:$0xff]  ;;  %v13367_v41 = vand.u32 2147483647, %v8747_v53 }
  0xec   : > { %8268 = vrcp.f32 %v566_v58  ;;  %v574_v17 = vmax.f32 %v8771_v13, 1e-10  ;;  %v577_v18 = vmax.f32 %v8774_v14, 1e-10  ;;  %v8780_v19 = vld [vmem:[%s8695_s14 + $0xa0] sm:$0xff]  ;;  %v8783_v20 = vld [vmem:[%s8695_s14 + $0xb8] sm:$0xff] }
  0xed   : > { %v8247_v32 = vpop.eup %8246  ;;  %8270 = vrcp.f32 %v569_v59  ;;  %v8788_v24 = vld [vmem:[%s8695_s14 + $0xb0] sm:$0xff]  ;;  %vm1125_vm1 = vcmp.gt.s32.totalorder %v1124_v15, 0  ;;  %v8792_v26 = vld [vmem:[%s8695_s14 + $0xc8] sm:$0xff]  ;;  %v8799_v35 = vld [vmem:[%s8695_s14 + $0xd8] sm:$0xff]  ;;  %v13370_v46 = vmov 683565275  }
  0xee   : > { %4651 = vperm.xlu1 %8209, %v4604_v28   ;;  %623 = vperm.xlu0 %8210, %v8247_v32   ;;  %v8249_v39 = vpop.eup %8248  ;;  %8272 = vrcp.f32 %v568_v63  ;;  %v8795_v28 = vld [vmem:[%s8695_s14 + $0xc0] sm:$0xff]  ;;  %v1126_v30 = vsel %vm1125_vm1, %v1124_v15, 0  ;;  %v1015_v32 = vshrl.u32 %v1014_v10, 23  ;;  %v4614_v43 = vld [vmem:[%s8690_s26 + $0x88] sm:$0xff]  ;;  %v13368_v49 = vmov 2475754826  }
  0xef   : > { %8274 = vrcp.f32 %v571_v0  ;;  %v1128_v37 = vand.u32 31, %v1126_v30  ;;  %v8811_v44 = vshrl.u32 %v1126_v30, 5  ;;  %v4611_v52 = vld [vmem:[%s8690_s26 + $0x70] sm:$0xff]  ;;  %v13372_v54 = vmov 2131351028   ;;  %v4616_v30 = vld [vmem:[%s8690_s26 + $0x98] sm:$0xff] }
  0xf0   : > { %v8803_v38 = vpop.eup %8250  ;;  %8276 = vrcp.f32 %v570_v3  ;;  %v13374_v56 = vmov 2102212464   ;;  %v8591_v58 = vmov 920167782   ;;  %v7185_v60 = vadd.s32 4294967169, %v1015_v32 }
  0xf1   : > { %v1131_v47 = vshll.u32 %v13370_v46, %v1128_v37  ;;  %v1134_v50 = vshll.u32 %v13368_v49, %v1128_v37  ;;  %v1137_v55 = vshll.u32 %v13372_v54, %v1128_v37  ;;  %v1140_v57 = vshll.u32 %v13374_v56, %v1128_v37 }
  0xf2   : > { %4657 = vperm.xlu1 %8209, %v4606_v36   ;;  %628 = vperm.xlu0 %8210, %v8249_v39   ;;  %v1121_v36 = vand.u32 8388607, %v13366_v48  ;;  %v1143_v59 = vshll.u32 %v8591_v58, %v1128_v37  ;;  %v8826_v1 = vmul.f32 0.28559932, %v8725_v29  ;;  %vm1146_vm2 = vcmp.lt.s32.totalorder %v8811_v44, 1 }
  0xf3   : > { %v1021_v39 = vadd.s32 1, %v7185_v60  ;;  %8278 = vrcp.f32 %v573_v7  ;;  %vm1148_vm3 = vcmp.lt.s32.totalorder %v8811_v44, 3  ;;  %vm1149_vm4 = vcmp.lt.s32.totalorder %v8811_v44, 4 }
  0xf4   : > { %vm1147_vm5 = vcmp.lt.s32.totalorder %v8811_v44, 2  ;;  %v4617_v44 = vld [vmem:[%s8690_s26 + $0xa0] sm:$0xff]  ;;  %8280 = vrcp.f32 %v572_v8 }
  0xf5   : > { %vm1022_vm6 = vcmp.gt.s32.totalorder %v1021_v39, 0  ;;  %8282 = vrcp.f32 %v575_v12 }
  0xf6   : > { %4663 = vperm.xlu1 %8209, %v4608_v42   ;;  %4654 = vperm.xlu0 %8210, %v4605_v45   ;;  %v8808_v42 = vpop.eup %8252  ;;  %v1129_v45 = vsub.s32 32, %v1128_v37  ;;  %8284 = vrcp.f32 %v574_v17  ;;  %v8981_v17 = vld [vmem:[%s8695_s14 + $0xd0] sm:$0xff] }
  0xf7   : > { %v8815_v51 = vpop.eup %8254  ;;  %8286 = vrcp.f32 %v577_v18  ;;  %v8995_v18 = vld [vmem:[%s8695_s14 + $0xe0] sm:$0xff] }
  0xf8   : > { %v8821_v61 = vpop.eup %8256  ;;  %v1132_v63 = vshrl.u32 %v13368_v49, %v1129_v45  ;;  %v1135_v0 = vshrl.u32 %v13372_v54, %v1129_v45  ;;  %v1130_v3 = vshrl.u32 %v13370_v46, %v1129_v45  ;;  %v1138_v6 = vshrl.u32 %v13374_v56, %v1129_v45 }
  0xf9   : > { %v1141_v10 = vshrl.u32 %v8591_v58, %v1129_v45 }
  0xfa   : > { %4669 = vperm.xlu1 %8209, %v4610_v2   ;;  %4660 = vperm.xlu0 %8210, %v4607_v62   ;;  %v1122_v62 = vor.u32 8388608, %v1121_v36  ;;  %v8828_v2 = vpop.eup %8258  ;;  %v1133_v32 = vor.u32 %v1132_v63, %v1131_v47  ;;  %v1136_v29 = vor.u32 %v1135_v0, %v1134_v50  ;;  %v1018_v36 = vand.u32 8388607, %v13367_v41 }
  0xfb   : > { %v1139_v21 = vor.u32 %v1138_v6, %v1137_v55  ;;  %v1142_v40 = vor.u32 %v1141_v10, %v1140_v57  ;;  %v4618_v57 = vld [vmem:[%s8690_s26 + $0xa8] sm:$0xff]  ;;  %v1323_v63 = vand.u32 2139095040, %v8826_v1 }
  0xfc   : > { %v8849_v47 = vshll.u32 %v1122_v62, 8  ;;  %v1154_v4 = vsel %vm1146_vm2, %v1133_v32, %v1136_v29 }
  0xfd   : > { %v1151_v55 = vsel %vm1149_vm4, %v1139_v21, 2102212464  ;;  %v1155_v60 = vsel %vm1149_vm4, %v1142_v40, 920167782  ;;  %v1158_v62 = vsel %vm1146_vm2, %v1136_v29, %v1139_v21 }
  0xfe   : > { %4675 = vperm.xlu1 %8209, %v4612_v11   ;;  %4666 = vperm.xlu0 %8210, %v4609_v16   ;;  %v13377_v11 = vmov 1326507024   ;;  %v8834_v16 = vpop.eup %8260  ;;  %v1156_v6 = vsel %vm1148_vm3, %v1139_v21, %v1155_v60 }
  0xff   : > { %v1144_v15 = vshrl.u32 %v13377_v11, %v1129_v45  ;;  %v8840_v37 = vpop.eup %8262 }
 0x100   : > { %v8843_v45 = vpop.eup %8264 }
 0x101   : > { %v1145_v48 = vor.u32 %v1144_v15, %v1143_v59  ;;  %v8851_v50 = vpop.eup %8266  ;;  %v1152_v59 = vsel %vm1148_vm3, %v1136_v29, %v1151_v55  ;;  %v1019_v15 = vor.u32 8388608, %v1018_v36  ;;  %v1157_v29 = vsel %vm1147_vm5, %v1154_v4, %v1156_v6  ;;  %v4620_v4 = vld [vmem:[%s8690_s26 + $0xb8] sm:$0xff] }
 0x102   : > { %4681 = vperm.xlu1 %8209, %v4614_v43   ;;  %4672 = vperm.xlu0 %8210, %v4611_v52   ;;  %v4613_v43 = vld [vmem:[%s8690_s26 + $0x80] sm:$0xff]  ;;  %v1150_v52 = vsel %vm1146_vm2, %v1130_v3, %v1133_v32  ;;  %v8860_v7 = vpop.eup %8268  ;;  %v4615_v3 = vld [vmem:[%s8690_s26 + $0x90] sm:$0xff]  ;;  %v1023_v55 = vsel %vm1022_vm6, %v1021_v39, 0  ;;  %v8890_v36 = vmul.u32.u64.low %v8849_v47, %v1157_v29  ;;  %v8891_v60 = vmul.u32.u64.high %v8849_v47, %v1157_v29, %v8890_v36 }
 0x103   : > { %v8870_v0 = vpop.eup %8270  ;;  %v1159_v10 = vsel %vm1149_vm4, %v1145_v48, 1326507024  ;;  %v1153_v32 = vsel %vm1147_vm5, %v1150_v52, %v1152_v59  ;;  %v8894_v41 = vshrl.u32 %v1023_v55, 5  ;;  %v1025_v59 = vand.u32 31, %v1023_v55 }
 0x104   : > { %v8908_v6 = vshll.u32 %v1019_v15, 8  ;;  %vm1116_vm2 = vcmp.lt.s32.totalorder %v8721_v27, 0 }
 0x105   : > { %vm1043_vm7 = vcmp.lt.s32.totalorder %v8894_v41, 1  ;;  %v1031_v29 = vshll.u32 %v13368_v49, %v1025_v59  ;;  %vm1045_vm8 = vcmp.lt.s32.totalorder %v8894_v41, 3  ;;  %v1034_v5 = vshll.u32 %v13372_v54, %v1025_v59 }
 0x106   : > { %4687 = vperm.xlu1 %8209, %v4616_v30   ;;  %4678 = vperm.xlu0 %8210, %v4613_v43   ;;  %v8877_v30 = vpop.eup %8272  ;;  %v1160_v43 = vsel %vm1148_vm3, %v1142_v40, %v1159_v10  ;;  %v1028_v10 = vshll.u32 %v13370_v46, %v1025_v59  ;;  %v1037_v8 = vshll.u32 %v13374_v56, %v1025_v59  ;;  %vm1046_vm10 = vcmp.lt.s32.totalorder %v8894_v41, 4 }
 0x107   : > { %v8885_v21 = vpop.eup %8274  ;;  %v1161_v48 = vsel %vm1147_vm5, %v1158_v62, %v1160_v43  ;;  %v1169_v62 = vmul.u32 %v8849_v47, %v1153_v32  ;;  %v4622_v32 = vld [vmem:[%s8690_s26 + $0xc8] sm:$0xff]  ;;  %v1040_v55 = vshll.u32 %v8591_v58, %v1025_v59  ;;  %vm1044_vm11 = vcmp.lt.s32.totalorder %v8894_v41, 2 }
 0x108   : > { %v8896_v52 = vpop.eup %8276  ;;  %v8900_v40 = vmul.u32.u64.low %v8849_v47, %v1161_v48  ;;  %v8901_v39 = vmul.u32.u64.high %v8849_v47, %v1161_v48, %v8900_v40  ;;  %v4619_v48 = vld [vmem:[%s8690_s26 + $0xb0] sm:$0xff]  ;;  %v8984_v41 = vld [vmem:[%s8695_s14 + $0xe8] sm:$0xff]  ;;  %vm1013_vm5 = vcmp.lt.s32.totalorder %v8747_v53, 0 }
 0x10a   : > { %4693 = vperm.xlu1 %8209, %v4618_v57   ;;  %4684 = vperm.xlu0 %8210, %v4615_v3   ;;  %v1324_v57 = vshrl.u32 %v1323_v63, 23  ;;  %v1026_v3 = vsub.s32 32, %v1025_v59  ;;  %v1172_v63 = vadd.s32 1, %v8891_v60  ;;  %vm1171_vm9 = vc.u32 %v8901_v39, %v8890_v36 }
 0x10c   : > { %v7197_v47 = vadd.s32 4294967169, %v1324_v57  ;;  %v1027_v15 = vshrl.u32 %v13370_v46, %v1026_v3  ;;  %v1029_v43 = vshrl.u32 %v13368_v49, %v1026_v3  ;;  %v1032_v40 = vshrl.u32 %v13372_v54, %v1026_v3  ;;  %v8929_v49 = vpop.eup %8278 }
 0x10d   : > { %v1035_v33 = vshrl.u32 %v13374_v56, %v1026_v3  ;;  %v1038_v57 = vshrl.u32 %v8591_v58, %v1026_v3  ;;  %v1041_v23 = vshrl.u32 %v13377_v11, %v1026_v3  ;;  %v4621_v3 = vld [vmem:[%s8690_s26 + $0xc0] sm:$0xff]  ;;  %v8976_v13 = vpop.eup %8280 }
 0x10e   : > { %4699 = vperm.xlu1 %8209, %v4620_v4   ;;  %4690 = vperm.xlu0 %8210, %v4617_v44   ;;  %v1173_v4 = vsel %vm1171_vm9, %v1172_v63, %v8891_v60  ;;  %v1030_v25 = vor.u32 %v1029_v43, %v1028_v10  ;;  %v1033_v59 = vor.u32 %v1032_v40, %v1031_v29  ;;  %v1330_v60 = vadd.s32 1, %v7197_v47  ;;  %v4624_v63 = vld [vmem:[%s8690_s26 + $0xd8] sm:$0xff] }
 0x10f   : > { %v1174_v44 = vadd.s32 %v1173_v4, %v1169_v62  ;;  %v1036_v46 = vor.u32 %v1035_v33, %v1034_v5  ;;  %v1039_v22 = vor.u32 %v1038_v57, %v1037_v8  ;;  %v1042_v56 = vor.u32 %v1041_v23, %v1040_v55 }
 0x110   : > { %v1047_v62 = vsel %vm1043_vm7, %v1027_v15, %v1030_v25  ;;  %v1051_v29 = vsel %vm1043_vm7, %v1030_v25, %v1033_v59  ;;  %vm1331_vm12 = vcmp.gt.s32.totalorder %v1330_v60, 0  ;;  %v4626_v15 = vld [vmem:[%s8690_s26 + $0xe8] sm:$0xff]  ;;  %v13376_v40 = vand.u32 2147483647, %v8826_v1 }
 0x111   : > { %v1175_v54 = vadd.s32 536870912, %v1174_v44  ;;  %v1048_v10 = vsel %vm1046_vm10, %v1036_v46, 2102212464  ;;  %v1052_v33 = vsel %vm1046_vm10, %v1039_v22, 920167782  ;;  %v1055_v5 = vsel %vm1043_vm7, %v1033_v59, %v1036_v46 }
 0x112   : > { %4705 = vperm.xlu1 %8209, %v4622_v32   ;;  %4696 = vperm.xlu0 %8210, %v4619_v48   ;;  %v1049_v8 = vsel %vm1045_vm8, %v1033_v59, %v1048_v10  ;;  %v1053_v47 = vsel %vm1045_vm8, %v1036_v46, %v1052_v33  ;;  %v1056_v32 = vsel %vm1046_vm10, %v1042_v56, 1326507024  ;;  %v4623_v56 = vld [vmem:[%s8690_s26 + $0xd0] sm:$0xff]  ;;  %v1332_v57 = vsel %vm1331_vm12, %v1330_v60, 0 }
 0x113   : > { %v8944_v23 = vshrl.u32 %v1175_v54, 30  ;;  %v1054_v25 = vsel %vm1044_vm11, %v1051_v29, %v1053_v47  ;;  %v1057_v54 = vsel %vm1045_vm8, %v1039_v22, %v1056_v32  ;;  %v1050_v9 = vsel %vm1044_vm11, %v1047_v62, %v1049_v8  ;;  %v9036_v32 = vpop.eup %8282 }
 0x114   : > { %v1058_v12 = vsel %vm1044_vm11, %v1055_v5, %v1057_v54  ;;  %v8972_v22 = vmul.u32.u64.low %v8908_v6, %v1054_v25  ;;  %v8973_v48 = vmul.u32.u64.high %v8908_v6, %v1054_v25, %v8972_v22  ;;  %v13419_v59 = vmax.f32 %v8780_v19, 1e-10  ;;  %v4625_v19 = vld [vmem:[%s8690_s26 + $0xe0] sm:$0xff]  ;;  %v9007_v5 = vld [vmem:[%s8695_s14 + $0xf8] sm:$0xff]  ;;  %v9040_v14 = vpop.eup %8284 }
 0x115   : > { %v1177_v46 = vshll.u32 %v8944_v23, 30  ;;  %v8968_v43 = vmul.u32.u64.low %v8908_v6, %v1058_v12  ;;  %v8969_v55 = vmul.u32.u64.high %v8908_v6, %v1058_v12, %v8968_v43  ;;  %v1334_v62 = vand.u32 31, %v1332_v57 }
 0x116   : > { %4711 = vperm.xlu1 %8209, %v4624_v63   ;;  %4702 = vperm.xlu0 %8210, %v4621_v3   ;;  %8288 = vrcp.f32 %v13419_v59  ;;  %v4628_v3 = vld [vmem:[%s8690_s26 + $0xf8] sm:$0xff]  ;;  %v1066_v29 = vmul.u32 %v8908_v6, %v1050_v9  ;;  %v13421_v33 = vmax.f32 %v8788_v24, 1e-10  ;;  %v1069_v8 = vadd.s32 1, %v8973_v48 }
 0x117   : > { %v8986_v4 = vsub.s32 %v1174_v44, %v1177_v46  ;;  %v13420_v44 = vmax.f32 %v8783_v20, 1e-10  ;;  %vm1068_vm13 = vc.u32 %v8969_v55, %v8972_v22  ;;  %v1335_v20 = vsub.s32 32, %v1334_v62 }
 0x118   : > { %v13422_v47 = vmax.f32 %v8792_v26, 1e-10  ;;  %v1327_v24 = vand.u32 8388607, %v13376_v40  ;;  %v1170_v25 = vadd.s32 %v8890_v36, %v8901_v39  ;;  %v1070_v54 = vsel %vm1068_vm13, %v1069_v8, %v8973_v48 }
 0x119   : > { %8290 = vrcp.f32 %v13420_v44  ;;  %v1180_v60 = vsub.s32 0, %v8986_v4  ;;  %v13424_v9 = vmov 2475754826   ;;  %v13425_v59 = vmov 2131351028  }
 0x11a   : > { %4717 = vperm.xlu1 %8209, %v4626_v15   ;;  %4708 = vperm.xlu0 %8210, %v4623_v56   ;;  %8292 = vrcp.f32 %v13421_v33  ;;  %v13423_v15 = vmov 683565275   ;;  %v1338_v12 = vshrl.u32 %v13424_v9, %v1335_v20  ;;  %v1071_v56 = vadd.s32 %v1070_v54, %v1066_v29 }
 0x11b   : > { %8294 = vrcp.f32 %v13422_v47  ;;  %v7190_v6 = vmin.u32 %v1180_v60, %v8986_v4  ;;  %v1337_v46 = vshll.u32 %v13423_v15, %v1334_v62  ;;  %v1340_v43 = vshll.u32 %v13424_v9, %v1334_v62  ;;  %v4627_v60 = vld [vmem:[%s8690_s26 + $0xf0] sm:$0xff] }
 0x11c   : > { %v1341_v44 = vshrl.u32 %v13425_v59, %v1335_v20  ;;  %v9026_v33 = vshrl.u32 %v1332_v57, 5  ;;  %v13426_v47 = vmov 2102212464   ;;  %v1072_v8 = vadd.s32 536870912, %v1071_v56 }
 0x11d   : > { %v1182_v26 = vclz %v7190_v6  ;;  %v1344_v36 = vshrl.u32 %v13426_v47, %v1335_v20  ;;  %v1346_v39 = vshll.u32 %v13426_v47, %v1334_v62  ;;  %v1328_v40 = vor.u32 8388608, %v1327_v24 }
 0x11e   : > { %4723 = vperm.xlu1 %8209, %v4628_v3   ;;  %4714 = vperm.xlu0 %8210, %v4625_v19   ;;  %v1343_v3 = vshll.u32 %v13425_v59, %v1334_v62  ;;  %v1347_v19 = vshrl.u32 %v8591_v58, %v1335_v20  ;;  %v1336_v29 = vshrl.u32 %v13423_v15, %v1335_v20  ;;  %v9038_v10 = vshrl.u32 %v1072_v8, 30  ;;  %v9049_v8 = vpop.eup %8286 }
 0x11f   : > { %v7191_v48 = vadd.s32 4294967294, %v1182_v26  ;;  %v1339_v6 = vor.u32 %v1338_v12, %v1337_v46  ;;  %v1349_v57 = vshll.u32 %v8591_v58, %v1334_v62  ;;  %v1350_v54 = vshrl.u32 %v13377_v11, %v1335_v20  ;;  %v9045_v46 = vld [vmem:[%s8695_s14 + $0xf0] sm:$0xff] }
 0x120   : > { %v1342_v26 = vor.u32 %v1341_v44, %v1340_v43  ;;  %v1345_v24 = vor.u32 %v1344_v36, %v1343_v3  ;;  %vm1352_vm15 = vcmp.lt.s32.totalorder %v9026_v33, 1  ;;  %vm1355_vm0 = vcmp.lt.s32.totalorder %v9026_v33, 4 }
 0x121   : > { %vm7192_vm14 = vcmp.lt.s32.totalorder %v7191_v48, 0  ;;  %v13427_v43 = vmax.f32 %v8795_v28, 1e-10  ;;  %v586_v44 = vmax.f32 %v9045_v46, 1e-10  ;;  %v1351_v3 = vor.u32 %v1350_v54, %v1349_v57 }
 0x122   : > { %638 = vperm.xlu1 %8209, %v8803_v38   ;;  %4720 = vperm.xlu0 %8210, %v4627_v60   ;;  %v1185_v63 = vsel %vm7192_vm14, 0, %v7191_v48  ;;  %v1348_v38 = vor.u32 %v1347_v19, %v1346_v39  ;;  %v1074_v60 = vshll.u32 %v9038_v10, 30  ;;  %vm1354_vm1 = vcmp.lt.s32.totalorder %v9026_v33, 3 }
 0x123   : > { %v1186_v62 = vsub.s32 32, %v1185_v63  ;;  %v1187_v20 = vshll.u32 %v8986_v4, %v1185_v63  ;;  %v1190_v12 = vsub.s32 4294967266, %v1185_v63  ;;  %8296 = vrcp.f32 %v13427_v43  ;;  %v9056_v36 = vpop.eup %8288 }
 0x124   : > { %v9060_v39 = vsub.s32 %v1071_v56, %v1074_v60  ;;  %vm1353_vm3 = vcmp.lt.s32.totalorder %v9026_v33, 2  ;;  %v1360_v48 = vsel %vm1352_vm15, %v1339_v6, %v1342_v26  ;;  %v1361_v19 = vsel %vm1355_vm0, %v1348_v38, 920167782 }
 0x125   : > { %v1188_v4 = vshrl.u32 %v1170_v25, %v1186_v62  ;;  %v1191_v63 = vadd.s32 127, %v1190_v12  ;;  %v13428_v25 = vand.u32 2147483647, %v8721_v27  ;;  %v1356_v60 = vsel %vm1352_vm15, %v1336_v29, %v1339_v6 }
 0x126   : > { %648 = vperm.xlu1 %8209, %v8815_v51   ;;  %633 = vperm.xlu0 %8210, %v8808_v42   ;;  %v1357_v51 = vsel %vm1355_vm0, %v1345_v24, 2102212464  ;;  %v9064_v28 = vpop.eup %8290  ;;  %v9071_v42 = vshll.u32 %v1328_v40, 8  ;;  %v1077_v12 = vsub.s32 0, %v9060_v39  ;;  %v1364_v11 = vsel %vm1352_vm15, %v1342_v26, %v1345_v24 }
 0x127   : > { %v9073_v57 = vpop.eup %8292  ;;  %vm9077_vm4 = vcmp.le.f32.partialorder %v13428_v25, 0.7853982  ;;  %v1189_v54 = vor.u32 %v1188_v4, %v1187_v20  ;;  %v1192_v62 = vshll.u32 %v1191_v63, 23  ;;  %v1358_v40 = vsel %vm1354_vm1, %v1342_v26, %v1357_v51 }
 0x128   : > { %v9084_v43 = vpop.eup %8294  ;;  %v1362_v25 = vsel %vm1354_vm1, %v1345_v24, %v1361_v19  ;;  %v1365_v20 = vsel %vm1355_vm0, %v1351_v3, 1326507024  ;;  %v7186_v6 = vmin.u32 %v1077_v12, %v9060_v39  ;;  %v13431_v63 = vmax.f32 %v8799_v35, 1e-10 }
 0x129   : > { %v1193_v4 = vor.u32 4788187, %v1192_v62  ;;  %v1196_v29 = vcvt.s32.f32 %v1189_v54  ;;  %v1200_v51 = vsub.s32 4, %v8944_v23  ;;  %v1366_v26 = vsel %vm1354_vm1, %v1348_v38, %v1365_v20 }
 0x12a   : > { %658 = vperm.xlu1 %8209, %v8828_v2   ;;  %643 = vperm.xlu0 %8210, %v8821_v61   ;;  %v1363_v2 = vsel %vm1353_vm3, %v1360_v48, %v1362_v25  ;;  %8298 = vrcp.f32 %v13431_v63  ;;  %v9105_v24 = vmul.f32 0.28559932, %v8729_v31  ;;  %v1079_v61 = vclz %v7186_v6 }
 0x12b   : > { %v1194_v3 = vand.u32 2147483647, %v1193_v4  ;;  %v1359_v19 = vsel %vm1353_vm3, %v1356_v60, %v1358_v40  ;;  %v1367_v54 = vsel %vm1353_vm3, %v1364_v11, %v1366_v26  ;;  %v13432_v31 = vmax.f32 %v8981_v17, 1e-10 }
 0x12c   : > { %v9113_v35 = vmul.u32.u64.low %v9071_v42, %v1367_v54  ;;  %v9114_v48 = vmul.u32.u64.high %v9071_v42, %v1367_v54, %v9113_v35  ;;  %v9117_v62 = vmul.u32.u64.low %v9071_v42, %v1363_v2  ;;  %v9118_v38 = vmul.u32.u64.high %v9071_v42, %v1363_v2, %v9117_v62 }
 0x12d   : > { %8300 = vrcp.f32 %v13432_v31  ;;  %v1197_v12 = vmul.f32 %v1196_v29, %v1194_v3  ;;  %v7187_v11 = vadd.s32 4294967294, %v1079_v61  ;;  %v1201_v33 = vsel %vm1116_vm2, %v1200_v51, %v8944_v23 }
 0x12e   : > { %668 = vperm.xlu1 %8209, %v8840_v37   ;;  %653 = vperm.xlu0 %8210, %v8834_v16   ;;  %v13433_v37 = vmax.f32 %v8984_v41, 1e-10  ;;  %v1067_v60 = vadd.s32 %v8972_v22, %v8969_v55  ;;  %v1220_v40 = vand.u32 2139095040, %v9105_v24  ;;  %v1097_v17 = vsub.s32 4, %v9038_v10 }
 0x12f   : > { %v1198_v16 = vxor.u32 2147483648, %v1197_v12  ;;  %vm7188_vm6 = vcmp.lt.s32.totalorder %v7187_v11, 0  ;;  %v1375_v25 = vmul.u32 %v9071_v42, %v1359_v19  ;;  %vm1377_vm7 = vc.u32 %v9114_v48, %v9117_v62 }
 0x130   : > { %8302 = vrcp.f32 %v13433_v37  ;;  %v1082_v20 = vsel %vm7188_vm6, 0, %v7187_v11  ;;  %v1378_v41 = vadd.s32 1, %v9118_v38  ;;  %v1217_v23 = vand.u32 2147483647, %v9105_v24  ;;  %v9140_v4 = vpop.eup %8296 }
 0x131   : > { %v1199_v55 = vsel %vm1116_vm2, %v1198_v16, %v1197_v12  ;;  %v1083_v22 = vsub.s32 32, %v1082_v20  ;;  %v1084_v42 = vshll.u32 %v9060_v39, %v1082_v20  ;;  %v1087_v29 = vsub.s32 4294967266, %v1082_v20 }
 0x132   : > { %678 = vperm.xlu1 %8209, %v8851_v50   ;;  %663 = vperm.xlu0 %8210, %v8843_v45   ;;  %v1202_v50 = vsel %vm9077_vm4, %v8721_v27, %v1199_v55  ;;  %v1379_v6 = vsel %vm1377_vm7, %v1378_v41, %v9118_v38  ;;  %v1221_v2 = vshrl.u32 %v1220_v40, 23  ;;  %v9151_v63 = vmul.f32 0.28559932, %v8733_v34 }
 0x133   : > { %8304 = vcosq.f32 %v1202_v50  ;;  %v1085_v51 = vshrl.u32 %v1067_v60, %v1083_v22  ;;  %v1088_v45 = vadd.s32 127, %v1087_v29  ;;  %v1380_v26 = vadd.s32 %v1379_v6, %v1375_v25 }
 0x134   : > { %v1203_v39 = vsel %vm9077_vm4, 0, %v1201_v33  ;;  %8306 = vsinq.f32 %v1202_v50  ;;  %v7193_v3 = vadd.s32 4294967169, %v1221_v2  ;;  %v1224_v61 = vand.u32 8388607, %v1217_v23 }
 0x135   : > { %v1086_v19 = vor.u32 %v1085_v51, %v1084_v42  ;;  %v1089_v54 = vshll.u32 %v1088_v45, 23  ;;  %v1098_v34 = vsel %vm1013_vm5, %v1097_v17, %v9038_v10  ;;  %v1381_v35 = vadd.s32 536870912, %v1380_v26 }
 0x136   : > { %688 = vperm.xlu1 %8209, %v8870_v0   ;;  %673 = vperm.xlu0 %8210, %v8860_v7   ;;  %v13434_v38 = vmax.f32 %v8995_v18, 1e-10  ;;  %v13435_v0 = vand.u32 2147483647, %v8747_v53  ;;  %v1227_v31 = vadd.s32 1, %v7193_v3  ;;  %v1529_v12 = vand.u32 2139095040, %v9151_v63 }
 0x137   : > { %v9171_v7 = vpop.eup %8298  ;;  %v9173_v11 = vand.u32 3, %v1203_v39  ;;  %v1090_v37 = vor.u32 4788187, %v1089_v54  ;;  %v1093_v33 = vcvt.s32.f32 %v1086_v19  ;;  %v9175_v10 = vshrl.u32 %v1381_v35, 30 }
 0x138   : > { %8308 = vrcp.f32 %v13434_v38  ;;  %vm9166_vm8 = vcmp.le.f32.partialorder %v13435_v0, 0.7853982  ;;  %v13438_v18 = vmax.f32 %v9007_v5, 1e-10  ;;  %v1225_v40 = vor.u32 8388608, %v1224_v61 }
 0x139   : > { %v1100_v60 = vsel %vm9166_vm8, 0, %v1098_v34  ;;  %vm1228_vm9 = vcmp.gt.s32.totalorder %v1227_v31, 0  ;;  %v1091_v16 = vand.u32 2147483647, %v1090_v37  ;;  %v1383_v17 = vshll.u32 %v9175_v10, 30 }
 0x13a   : > { %698 = vperm.xlu1 %8209, %v8885_v21   ;;  %8310 = vrcp.f32 %v13438_v18  ;;  %683 = vperm.xlu0 %8210, %v8877_v30   ;;  %v1229_v25 = vsel %vm1228_vm9, %v1227_v31, 0  ;;  %v1526_v20 = vand.u32 2147483647, %v9151_v63  ;;  %v9185_v41 = vpop.eup %8300  ;;  %v13439_v55 = vlaneseq }
 0x13b   : > { %8312 = vrcp.f32 %v586_v44  ;;  %v1231_v5 = vand.u32 31, %v1229_v25  ;;  %v1530_v22 = vshrl.u32 %v1529_v12, 23  ;;  %vm1208_vm10 = vcmp.lt.s32.totalorder %v9173_v11, 2 }
 0x13c   : > { %v9188_v21 = vand.u32 127, %v13439_v55  ;;  %vm1209_vm11 = vcmp.eq.s32.totalorder %v9173_v11, 0  ;;  %v1094_v30 = vmul.f32 %v1093_v33, %v1091_v16  ;;  %v9196_v29 = vsub.s32 %v1380_v26, %v1383_v17 }
 0x13d   : > { %v9192_v42 = vpop.eup %8302  ;;  %vm1212_vm12 = vcmp.eq.s32.totalorder %v9173_v11, 2  ;;  %v9200_v50 = vand.u32 3, %v1100_v60  ;;  %v9204_v46 = vadd.s32 %v9117_v62, %v9114_v48  ;;  %v1232_v44 = vsub.s32 32, %v1231_v5 }
 0x13e   : > { %708 = vperm.xlu1 %8209, %v8929_v49   ;;  %693 = vperm.xlu0 %8210, %v8896_v52   ;;  %v1095_v6 = vxor.u32 2147483648, %v1094_v30  ;;  %v1386_v2 = vsub.s32 0, %v9196_v29  ;;  %v9208_v51 = vshll.u32 %v1225_v40, 8  ;;  %v9212_v45 = vand.u32 8388607, %v1526_v20 }
 0x13f   : > { %v1406_v49 = vsub.s32 4, %v9175_v10  ;;  %v9215_v26 = vshrl.u32 %v1229_v25, 5  ;;  %v1234_v39 = vshll.u32 %v13423_v15, %v1231_v5  ;;  %v9218_v48 = vadd.s32 4294967169, %v1530_v22 }
 0x140   : > { %vm1206_vm13 = vweird.f32 %v8721_v27  ;;  %v1096_v52 = vsel %vm1013_vm5, %v1095_v6, %v1094_v30  ;;  %v7198_v62 = vmin.u32 %v1386_v2, %v9196_v29  ;;  %v1237_v3 = vshll.u32 %v13424_v9, %v1231_v5  ;;  %v8305_v19 = vpop.eup %8304 }
 0x141   : > { %v1240_v61 = vshll.u32 %v13425_v59, %v1231_v5  ;;  %v1099_v54 = vsel %vm9166_vm8, %v8747_v53, %v1096_v52  ;;  %v1233_v34 = vshrl.u32 %v13423_v15, %v1232_v44  ;;  %v1235_v35 = vshrl.u32 %v13424_v9, %v1232_v44  ;;  %v8307_v0 = vpop.eup %8306 }
 0x142   : > { %718 = vperm.xlu1 %8209, %v9036_v32   ;;  %v1238_v38 = vshrl.u32 %v13425_v59, %v1232_v44  ;;  %703 = vperm.xlu0 %8210, %v8976_v13   ;;  %v1213_v31 = vxor.u32 2147483648, %v8305_v19  ;;  %8314 = vcosq.f32 %v1099_v54  ;;  %v1388_v12 = vclz %v7198_v62 }
 0x143   : > { %v1241_v37 = vshrl.u32 %v13426_v47, %v1232_v44  ;;  %v1210_v33 = vxor.u32 2147483648, %v8307_v0  ;;  %8316 = vsinq.f32 %v1099_v54  ;;  %v1243_v32 = vshll.u32 %v13426_v47, %v1231_v5 }
 0x144   : > { %v1244_v56 = vshrl.u32 %v8591_v58, %v1232_v44  ;;  %v1214_v60 = vsel %vm1212_vm12, %v1213_v31, %v8307_v0  ;;  %v7199_v40 = vadd.s32 4294967294, %v1388_v12  ;;  %v1246_v16 = vshll.u32 %v8591_v58, %v1231_v5 }
 0x145   : > { %v9237_v18 = vpop.eup %8308  ;;  %v13440_v13 = vmov 1326507024   ;;  %v1211_v25 = vsel %vm1209_vm11, %v8305_v19, %v1210_v33  ;;  %v1236_v22 = vor.u32 %v1235_v35, %v1234_v39  ;;  %v1239_v30 = vor.u32 %v1238_v38, %v1237_v3  ;;  %v8502_v35 = vld [vmem:[%s8695_s14 + $0x8] sm:$0xff] }
 0x146   : > { %v1247_v17 = vshrl.u32 %v13440_v13, %v1232_v44  ;;  %728 = vperm.xlu1 %8209, %v9049_v8   ;;  %v1245_v6 = vor.u32 %v1244_v56, %v1243_v32  ;;  %713 = vperm.xlu0 %8210, %v9040_v14   ;;  %vm1322_vm14 = vcmp.lt.s32.totalorder %v8826_v1, 0  ;;  %vm7200_vm15 = vcmp.lt.s32.totalorder %v7199_v40, 0 }
 0x147   : > { %v9246_v2 = vpop.eup %8310  ;;  %v1242_v52 = vor.u32 %v1241_v37, %v1240_v61  ;;  %vm1249_vm0 = vcmp.lt.s32.totalorder %v9215_v26, 1  ;;  %vm1250_vm1 = vcmp.lt.s32.totalorder %v9215_v26, 2  ;;  %v1215_v8 = vsel %vm1208_vm10, %v1211_v25, %v1214_v60 }
 0x148   : > { %vm1109_vm2 = vcmp.eq.s32.totalorder %v9200_v50, 2  ;;  %v1391_v5 = vsel %vm7200_vm15, 0, %v7199_v40  ;;  %v1248_v44 = vor.u32 %v1247_v17, %v1246_v16  ;;  %vm1252_vm3 = vcmp.lt.s32.totalorder %v9215_v26, 4  ;;  %v9256_v39 = vpop.eup %8312 }
 0x149   : > { %vm1106_vm4 = vcmp.eq.s32.totalorder %v9200_v50, 0  ;;  %v1392_v14 = vsub.s32 32, %v1391_v5  ;;  %v1393_v62 = vshll.u32 %v9196_v29, %v1391_v5  ;;  %v1396_v3 = vsub.s32 4294967266, %v1391_v5 }
 0x14a   : > { %vm1251_vm5 = vcmp.lt.s32.totalorder %v9215_v26, 3  ;;  %738 = vperm.xlu1 %8209, %v9064_v28   ;;  %vm1105_vm6 = vcmp.lt.s32.totalorder %v9200_v50, 2  ;;  %v13441_v11 = vand.u32 2147483647, %v8826_v1  ;;  %v1253_v19 = vsel %vm1249_vm0, %v1233_v34, %v1236_v22  ;;  %723 = vperm.xlu0 %8210, %v9056_v36  }
 0x14b   : > { %v1254_v54 = vsel %vm1252_vm3, %v1242_v52, 2102212464  ;;  %v1257_v29 = vsel %vm1249_vm0, %v1236_v22, %v1239_v30  ;;  %v1258_v28 = vsel %vm1252_vm3, %v1245_v6, 920167782  ;;  %vm4340_vm8 = vcmp.lt.f32.partialorder %v8502_v35, 5.5 }
 0x14c   : > { %vm9265_vm7 = vcmp.le.f32.partialorder %v13441_v11, 0.7853982  ;;  %vm1103_vm9 = vweird.f32 %v8747_v53  ;;  %v1394_v38 = vshrl.u32 %v9204_v46, %v1392_v14  ;;  %v1397_v0 = vadd.s32 127, %v1396_v3 }
 0x14d   : > { %v1255_v34 = vsel %vm1251_vm5, %v1239_v30, %v1254_v54  ;;  %v1261_v31 = vsel %vm1249_vm0, %v1239_v30, %v1242_v52  ;;  %v1216_v12 = vsel %vm1206_vm13, nan, %v1215_v8  ;;  %v1259_v37 = vsel %vm1251_vm5, %v1242_v52, %v1258_v28  ;;  %v9317_v52 = vld [vmem:[%s8695_s14 + $0x20] sm:$0xff] }
 0x14e   : > { %v1262_v36 = vsel %vm1252_vm3, %v1248_v44, 1326507024  ;;  %v1536_v33 = vadd.s32 1, %v9218_v48  ;;  %v1395_v32 = vor.u32 %v1394_v38, %v1393_v62  ;;  %v1398_v46 = vshll.u32 %v1397_v0, 23  ;;  %748 = vperm.xlu1 %8209, %v9084_v43   ;;  %733 = vperm.xlu0 %8210, %v9073_v57  }
 0x14f   : > { %v1260_v56 = vsel %vm1250_vm1, %v1257_v29, %v1259_v37  ;;  %v1263_v60 = vsel %vm1251_vm5, %v1245_v6, %v1262_v36  ;;  %v1256_v27 = vsel %vm1250_vm1, %v1253_v19, %v1255_v34  ;;  %v8315_v6 = vpop.eup %8314  ;;  %v1407_v43 = vsel %vm1322_vm14, %v1406_v49, %v9175_v10 }
 0x150   : > { %v1264_v40 = vsel %vm1250_vm1, %v1261_v31, %v1263_v60  ;;  %v9302_v16 = vmul.u32.u64.low %v9208_v51, %v1260_v56  ;;  %v9303_v48 = vmul.u32.u64.high %v9208_v51, %v1260_v56, %v9302_v16  ;;  %v1399_v17 = vor.u32 4788187, %v1398_v46  ;;  %v8317_v8 = vpop.eup %8316 }
 0x151   : > { %v1402_v25 = vcvt.s32.f32 %v1395_v32  ;;  %v9307_v22 = vmul.u32.u64.low %v9208_v51, %v1264_v40  ;;  %v9308_v30 = vmul.u32.u64.high %v9208_v51, %v1264_v40, %v9307_v22  ;;  %v1534_v26 = vor.u32 8388608, %v9212_v45 }
 0x152   : > { %vm1537_vm10 = vcmp.gt.s32.totalorder %v1536_v33, 0  ;;  %v9320_v57 = vmul.f32 0.28559932, %v9317_v52  ;;  %vm4821_vm11 = vcmask 261120   ;;  %v1110_v5 = vxor.u32 2147483648, %v8315_v6  ;;  %758 = vperm.xlu1 %8209, %v9171_v7   ;;  %743 = vperm.xlu0 %8210, %v9140_v4   ;;  %v8504_v7 = vld [vmem:[%s8695_s14] sm:$0xff] }
 0x153   : > { %v1400_v44 = vand.u32 2147483647, %v1399_v17  ;;  %v1272_v14 = vmul.u32 %v9208_v51, %v1256_v27  ;;  %v1538_v62 = vsel %vm1537_vm10, %v1536_v33, 0  ;;  %v4308_v3 = vmul.f32 %v1216_v12, %v1216_v12 }
 0x154   : > { %v1107_v10 = vxor.u32 2147483648, %v8317_v8  ;;  %v1275_v45 = vadd.s32 1, %v9303_v48  ;;  %v1540_v49 = vand.u32 31, %v1538_v62  ;;  %v1111_v11 = vsel %vm1109_vm2, %v1110_v5, %v8317_v8 }
 0x155   : > { %v1403_v19 = vmul.f32 %v1402_v25, %v1400_v44  ;;  %v1409_v54 = vsel %vm9265_vm7, 0, %v1407_v43  ;;  %vm1274_vm12 = vc.u32 %v9308_v30, %v9302_v16  ;;  %vm4339_vm13 = vcmp.lt.f32.partialorder %v8504_v7, 5.5 }
 0x156   : > { %v1108_v51 = vsel %vm1106_vm4, %v8315_v6, %v1107_v10  ;;  %v1276_v29 = vsel %vm1274_vm12, %v1275_v45, %v9303_v48  ;;  %v1541_v28 = vsub.s32 32, %v1540_v49  ;;  %v9337_v34 = vshll.u32 %v1534_v26, 8  ;;  %768 = vperm.xlu1 %8209, %v9192_v42   ;;  %753 = vperm.xlu0 %8210, %v9185_v41  }
 0x157   : > { %v1112_v4 = vsel %vm1105_vm6, %v1108_v51, %v1111_v11  ;;  %v1404_v38 = vxor.u32 2147483648, %v1403_v19  ;;  %v1277_v0 = vadd.s32 %v1276_v29, %v1272_v14  ;;  %v4372_v31 = vsel %vm4340_vm8, %v4308_v3, 0.0 }
 0x158   : > { %v1113_v12 = vsel %vm1103_vm9, nan, %v1112_v4  ;;  %v9343_v37 = vand.u32 3, %v1409_v54  ;;  %v1426_v36 = vand.u32 2139095040, %v9320_v57  ;;  %v9350_v33 = vadd.s32 %v9302_v16, %v9308_v30 }
 0x159   : > { %v1405_v50 = vsel %vm1322_vm14, %v1404_v38, %v1403_v19  ;;  %v1278_v32 = vadd.s32 536870912, %v1277_v0  ;;  %v9352_v46 = vshrl.u32 %v1538_v62, 5  ;;  %v1543_v42 = vshll.u32 %v13423_v15, %v1540_v49  ;;  %v4637_v41 = vpop.permute.xlu0 %4636  ;;  %v4631_v60 = vpop.permute.xlu1 %4630 }
 0x15a   : > { %v1408_v53 = vsel %vm9265_vm7, %v8826_v1, %v1405_v50  ;;  %v1544_v35 = vshrl.u32 %v13424_v9, %v1541_v28  ;;  %v1546_v56 = vshll.u32 %v13424_v9, %v1540_v49  ;;  %v4307_v27 = vmul.f32 %v1113_v12, %v1113_v12  ;;  %778 = vperm.xlu1 %8209, %v9246_v2  }
 0x15b   : > { %8318 = vcosq.f32 %v1408_v53  ;;  %v9360_v40 = vshrl.u32 %v1278_v32, 30  ;;  %v1547_v16 = vshrl.u32 %v13425_v59, %v1541_v28  ;;  %vm4725_vm14 = vcmp.eq.s32.totalorder %v9188_v21, %v4631_v60  ;;  %763 = vperm.xlu0 %8210, %v9237_v18  }
 0x15c   : > { %8320 = vsinq.f32 %v1408_v53  ;;  %v1542_v61 = vshrl.u32 %v13423_v15, %v1541_v28  ;;  %v1552_v48 = vshll.u32 %v13426_v47, %v1540_v49  ;;  %v8593_v17 = vmov 0.0  }
 0x15d   : > { %v7313_v25 = vsel %vm4725_vm14, 1.0, %v8593_v17  ;;  %v1280_v22 = vshll.u32 %v9360_v40, 30  ;;  %v1549_v30 = vshll.u32 %v13425_v59, %v1540_v49  ;;  %v1550_v6 = vshrl.u32 %v13426_v47, %v1541_v28  ;;  %v4643_v18 = vpop.permute.xlu0 %4642  ;;  %v4634_v8 = vpop.permute.xlu1 %4633 }
 0x15e   : > { %vm4727_vm15 = vcmp.eq.s32.totalorder %v9188_v21, %v4637_v41  ;;  %7772 = vmatprep.mubr.msk.f32.mxu0 %vm4821_vm11, %v7313_v25  ;;  %v1553_v2 = vshrl.u32 %v8591_v58, %v1541_v28  ;;  %v1555_v43 = vshll.u32 %v8591_v58, %v1540_v49  ;;  %v1556_v26 = vshrl.u32 %v13440_v13, %v1541_v28 }
 0x15f   : > { %v4371_v5 = vsel %vm4339_vm13, %v4307_v27, 0.0  ;;  %v9378_v44 = vsub.s32 %v1277_v0, %v1280_v22  ;;  %v1545_v14 = vor.u32 %v1544_v35, %v1543_v42  ;;  %v1548_v62 = vor.u32 %v1547_v16, %v1546_v56  ;;  %4410 = vperm.xlu1 %8209, %v4372_v31   ;;  %773 = vperm.xlu0 %8210, %v9256_v39  }
 0x160   : > { %vm4729_vm0 = vcmp.eq.s32.totalorder %v9188_v21, %v4643_v18  ;;  %vm4726_vm1 = vcmp.eq.s32.totalorder %v9188_v21, %v4634_v8  ;;  %vm1418_vm2 = vcmp.eq.s32.totalorder %v9343_v37, 2  ;;  %v1554_v3 = vor.u32 %v1553_v2, %v1552_v48 }
 0x161   : > { %vm1558_vm3 = vcmp.lt.s32.totalorder %v9352_v46, 1  ;;  %v7315_v10 = vsel %vm4727_vm15, 1.0, %v8593_v17  ;;  %v7314_v45 = vsel %vm4726_vm1, 1.0, %v8593_v17  ;;  %vm1415_vm4 = vcmp.eq.s32.totalorder %v9343_v37, 0  ;;  %v4649_v54 = vpop.permute.xlu0 %4648  ;;  %v4640_v51 = vpop.permute.xlu1 %4639 }
 0x162   : > { %v1283_v49 = vsub.s32 0, %v9378_v44  ;;  %v1551_v11 = vor.u32 %v1550_v6, %v1549_v30  ;;  %7773 = vmatmul.mubr.msk.f32.vlgmr.msra.gmra.mxu0 %vm4821_vm11, %v7314_v45  ;;  %vm1414_vm5 = vcmp.lt.s32.totalorder %v9343_v37, 2  ;;  %v1557_v19 = vor.u32 %v1556_v26, %v1555_v43 }
 0x163   : > { %vm1559_vm6 = vcmp.lt.s32.totalorder %v9352_v46, 2  ;;  %vm1560_vm7 = vcmp.lt.s32.totalorder %v9352_v46, 3  ;;  %vm1561_vm8 = vcmp.lt.s32.totalorder %v9352_v46, 4  ;;  %v7317_v39 = vsel %vm4729_vm0, 1.0, %v8593_v17  ;;  %7775 = vmatprep.mubr.msk.f32.mxu0 %vm4821_vm11, %v7315_v10  ;;  %4405 = vperm.xlu0 %8210, %v4371_v5  }
 0x164   : > { %vm1412_vm9 = vweird.f32 %v8826_v1  ;;  %v7194_v7 = vmin.u32 %v1283_v49, %v9378_v44  ;;  %v1562_v29 = vsel %vm1558_vm3, %v1542_v61, %v1545_v14  ;;  %v1566_v28 = vsel %vm1558_vm3, %v1545_v14, %v1548_v62 }
 0x165   : > { %vm4731_vm10 = vcmp.eq.s32.totalorder %v9188_v21, %v4649_v54  ;;  %vm4728_vm12 = vcmp.eq.s32.totalorder %v9188_v21, %v4640_v51  ;;  %v1563_v4 = vsel %vm1561_vm8, %v1551_v11, 2102212464  ;;  %v1567_v38 = vsel %vm1561_vm8, %v1554_v3, 920167782  ;;  %v4646_v56 = vpop.permute.xlu1 %4645  ;;  %v8505_v54 = vld [vmem:[%s8695_s14 + $0x18] sm:$0xff] }
 0x166   : > { %v7319_v0 = vsel %vm4731_vm10, 1.0, %v8593_v17  ;;  %v7316_v31 = vsel %vm4728_vm12, 1.0, %v8593_v17  ;;  %v1285_v12 = vclz %v7194_v7  ;;  %v1564_v50 = vsel %vm1560_vm7, %v1548_v62, %v1563_v4 }
 0x167   : > { %7776 = vmatmul.mubr.msk.f32.gmra.mxu0 %vm4821_vm11, %v7316_v31  ;;  %v1565_v32 = vsel %vm1559_vm6, %v1562_v29, %v1564_v50  ;;  %v1568_v53 = vsel %vm1560_vm7, %v1551_v11, %v1567_v38  ;;  %v1570_v42 = vsel %vm1558_vm3, %v1548_v62, %v1551_v11  ;;  %v1571_v35 = vsel %vm1561_vm8, %v1557_v19, 1326507024 }
 0x168   : > { %7778 = vmatprep.mubr.msk.f32.mxu0 %vm4821_vm11, %v7317_v39  ;;  %v7195_v41 = vadd.s32 4294967294, %v1285_v12  ;;  %v1569_v60 = vsel %vm1559_vm6, %v1566_v28, %v1568_v53  ;;  %v1572_v27 = vsel %vm1560_vm7, %v1554_v3, %v1571_v35  ;;  %v1581_v16 = vmul.u32 %v9337_v34, %v1565_v32  ;;  %v8319_v61 = vpop.eup %8318 }
 0x169   : > { %vm4730_vm13 = vcmp.eq.s32.totalorder %v9188_v21, %v4646_v56  ;;  %v1573_v48 = vsel %vm1559_vm6, %v1570_v42, %v1572_v27  ;;  %v9435_v25 = vmul.u32.u64.low %v9337_v34, %v1569_v60  ;;  %v9436_v22 = vmul.u32.u64.high %v9337_v34, %v1569_v60, %v9435_v25  ;;  %v8321_v30 = vpop.eup %8320  ;;  %v4652_v10 = vpop.permute.xlu1 %4651 }
 0x16a   : > { %v1419_v6 = vxor.u32 2147483648, %v8319_v61  ;;  %v7318_v2 = vsel %vm4730_vm13, 1.0, %v8593_v17  ;;  %vm7196_vm14 = vcmp.lt.s32.totalorder %v7195_v41, 0  ;;  %v1427_v43 = vshrl.u32 %v1426_v36, 23 }
 0x16b   : > { %v1416_v26 = vxor.u32 2147483648, %v8321_v30  ;;  %v1288_v18 = vsel %vm7196_vm14, 0, %v7195_v41  ;;  %v9442_v8 = vmul.u32.u64.low %v9337_v34, %v1573_v48  ;;  %v9443_v5 = vmul.u32.u64.high %v9337_v34, %v1573_v48, %v9442_v8  ;;  %7779 = vmatmul.mubr.msk.f32.gmra.mxu0 %vm4821_vm11, %v7318_v2 }
 0x16c   : > { %v1420_v46 = vsel %vm1418_vm2, %v1419_v6, %v8321_v30  ;;  %v1289_v14 = vsub.s32 32, %v1288_v18  ;;  %v1290_v62 = vshll.u32 %v9378_v44, %v1288_v18  ;;  %v1293_v3 = vsub.s32 4294967266, %v1288_v18  ;;  %7781 = vmatprep.mubr.msk.f32.mxu0 %vm4821_vm11, %v7319_v0 }
 0x16d   : > { %v1417_v36 = vsel %vm1415_vm4, %v8319_v61, %v1416_v26  ;;  %v1584_v45 = vadd.s32 1, %v9436_v22  ;;  %vm4732_vm15 = vcmp.eq.s32.totalorder %v9188_v21, %v4652_v10  ;;  %v7201_v34 = vadd.s32 4294967169, %v1427_v43 }
 0x16e   : > { %v1421_v49 = vsel %vm1414_vm5, %v1417_v36, %v1420_v46  ;;  %v1291_v11 = vshrl.u32 %v9350_v33, %v1289_v14  ;;  %v1294_v19 = vadd.s32 127, %v1293_v3  ;;  %v1303_v44 = vsub.s32 4, %v9360_v40 }
 0x16f   : > { %v1422_v39 = vsel %vm1412_vm9, nan, %v1421_v49  ;;  %vm4342_vm0 = vcmp.lt.f32.partialorder %v8505_v54, 5.5  ;;  %vm1583_vm1 = vc.u32 %v9443_v5, %v9435_v25  ;;  %v7320_v51 = vsel %vm4732_vm15, 1.0, %v8593_v17 }
 0x170   : > { %v4310_v7 = vmul.f32 %v1422_v39, %v1422_v39  ;;  %v1292_v29 = vor.u32 %v1291_v11, %v1290_v62  ;;  %v1295_v28 = vshll.u32 %v1294_v19, 23  ;;  %v1585_v37 = vsel %vm1583_vm1, %v1584_v45, %v9436_v22  ;;  %7782 = vmatmul.mubr.msk.f32.gmra.mxu0 %vm4821_vm11, %v7320_v51  ;;  %v9506_v19 = vld [vmem:[%s8695_s14 + $0x38] sm:$0xff] }
 0x171   : > { %vm1219_vm2 = vcmp.lt.s32.totalorder %v9105_v24, 0  ;;  %v1586_v33 = vadd.s32 %v1585_v37, %v1581_v16  ;;  %v1433_v4 = vadd.s32 1, %v7201_v34  ;;  %vm9471_vm3 = vcmp.le.f32.partialorder %v1217_v23, 0.7853982 }
 0x172   : > { %v4374_v38 = vsel %vm4342_vm0, %v4310_v7, 0.0  ;;  %v1296_v1 = vor.u32 4788187, %v1295_v28  ;;  %v1299_v0 = vcvt.s32.f32 %v1292_v29  ;;  %v1304_v31 = vsel %vm1219_vm2, %v1303_v44, %v9360_v40 }
 0x173   : > { %4420 = vperm.xlu1 %8209, %v4374_v38   ;;  %v1587_v50 = vadd.s32 536870912, %v1586_v33  ;;  %vm1434_vm4 = vcmp.gt.s32.totalorder %v1433_v4, 0  ;;  %v1423_v53 = vand.u32 2147483647, %v9320_v57  ;;  %v1306_v35 = vsel %vm9471_vm3, 0, %v1304_v31 }
 0x174   : > { %v1297_v32 = vand.u32 2147483647, %v1296_v1  ;;  %v1435_v42 = vsel %vm1434_vm4, %v1433_v4, 0  ;;  %v9481_v16 = vand.u32 3, %v1306_v35  ;;  %v1582_v48 = vadd.s32 %v9435_v25, %v9443_v5 }
 0x175   : > { %v9478_v56 = vshrl.u32 %v1587_v50, 30  ;;  %v1437_v41 = vand.u32 31, %v1435_v42  ;;  %v1430_v61 = vand.u32 8388607, %v1423_v53  ;;  %v1436_v5 = vshrl.u32 %v1435_v42, 5 }
 0x176   : > { %v1300_v40 = vmul.f32 %v1299_v0, %v1297_v32  ;;  %v9509_v44 = vmul.f32 0.28559932, %v9506_v19  ;;  %vm1311_vm10 = vcmp.lt.s32.totalorder %v9481_v16, 2  ;;  %vm1315_vm12 = vcmp.eq.s32.totalorder %v9481_v16, 2 }
 0x177   : > { %v1589_v60 = vshll.u32 %v9478_v56, 30  ;;  %v1438_v27 = vsub.s32 32, %v1437_v41  ;;  %v1440_v30 = vshll.u32 %v13423_v15, %v1437_v41  ;;  %v1443_v6 = vshll.u32 %v13424_v9, %v1437_v41 }
 0x178   : > { %v1301_v23 = vxor.u32 2147483648, %v1300_v40  ;;  %v1446_v18 = vshll.u32 %v13425_v59, %v1437_v41  ;;  %v1431_v14 = vor.u32 8388608, %v1430_v61  ;;  %v1449_v3 = vshll.u32 %v13426_v47, %v1437_v41 }
 0x179   : > { %v9486_v22 = vsub.s32 %v1586_v33, %v1589_v60  ;;  %v1441_v43 = vshrl.u32 %v13424_v9, %v1438_v27  ;;  %v1444_v26 = vshrl.u32 %v13425_v59, %v1438_v27  ;;  %v1447_v46 = vshrl.u32 %v13426_v47, %v1438_v27 }
 0x17a   : > { %v1302_v2 = vsel %vm1219_vm2, %v1301_v23, %v1300_v40  ;;  %v1439_v62 = vshrl.u32 %v13423_v15, %v1438_v27  ;;  %v1450_v49 = vshrl.u32 %v8591_v58, %v1438_v27  ;;  %v1452_v11 = vshll.u32 %v8591_v58, %v1437_v41 }
 0x17b   : > { %v1305_v25 = vsel %vm9471_vm3, %v9105_v24, %v1302_v2  ;;  %v1592_v8 = vsub.s32 0, %v9486_v22  ;;  %v1442_v36 = vor.u32 %v1441_v43, %v1440_v30  ;;  %v1445_v45 = vor.u32 %v1444_v26, %v1443_v6 }
 0x17c   : > { %8322 = vcosq.f32 %v1305_v25  ;;  %v1448_v34 = vor.u32 %v1447_v46, %v1446_v18  ;;  %v1453_v54 = vshrl.u32 %v13440_v13, %v1438_v27  ;;  %vm1455_vm5 = vcmp.lt.s32.totalorder %v1436_v5, 1 }
 0x17d   : > { %8324 = vsinq.f32 %v1305_v25  ;;  %v7206_v10 = vmin.u32 %v1592_v8, %v9486_v22  ;;  %vm1456_vm6 = vcmp.lt.s32.totalorder %v1436_v5, 2  ;;  %v1451_v51 = vor.u32 %v1450_v49, %v1449_v3 }
 0x17e   : > { %vm1457_vm7 = vcmp.lt.s32.totalorder %v1436_v5, 3  ;;  %vm1458_vm8 = vcmp.lt.s32.totalorder %v1436_v5, 4  ;;  %v1459_v7 = vsel %vm1455_vm5, %v1439_v62, %v1442_v36  ;;  %v1454_v28 = vor.u32 %v1453_v54, %v1452_v11 }
 0x17f   : > { %v1594_v39 = vclz %v7206_v10  ;;  %v1460_v37 = vsel %vm1458_vm8, %v1448_v34, 2102212464  ;;  %v1463_v33 = vsel %vm1455_vm5, %v1442_v36, %v1445_v45  ;;  %v1464_v38 = vsel %vm1458_vm8, %v1451_v51, 920167782 }
 0x180   : > { %v1461_v4 = vsel %vm1457_vm7, %v1445_v45, %v1460_v37  ;;  %v1467_v1 = vsel %vm1455_vm5, %v1445_v45, %v1448_v34  ;;  %v1471_v0 = vshll.u32 %v1431_v14, 8  ;;  %v1465_v31 = vsel %vm1457_vm7, %v1448_v34, %v1464_v38  ;;  %v8507_v37 = vld [vmem:[%s8695_s14 + $0x10] sm:$0xff] }
 0x181   : > { %v7207_v29 = vadd.s32 4294967294, %v1594_v39  ;;  %v1468_v12 = vsel %vm1458_vm8, %v1454_v28, 1326507024  ;;  %v1735_v50 = vand.u32 2139095040, %v9509_v44  ;;  %v1462_v42 = vsel %vm1456_vm6, %v1459_v7, %v1461_v4 }
 0x182   : > { %v1466_v35 = vsel %vm1456_vm6, %v1463_v33, %v1465_v31  ;;  %v1469_v41 = vsel %vm1457_vm7, %v1451_v51, %v1468_v12  ;;  %v1478_v46 = vmul.u32 %v1471_v0, %v1462_v42  ;;  %vm1312_vm13 = vcmp.eq.s32.totalorder %v9481_v16, 0 }
 0x183   : > { %vm7208_vm9 = vcmp.lt.s32.totalorder %v7207_v29, 0  ;;  %v1470_v23 = vsel %vm1456_vm6, %v1467_v1, %v1469_v41  ;;  %v9523_v6 = vmul.u32.u64.low %v1471_v0, %v1466_v35  ;;  %v9524_v2 = vmul.u32.u64.high %v1471_v0, %v1466_v35, %v9523_v6 }
 0x184   : > { %v1597_v32 = vsel %vm7208_vm9, 0, %v7207_v29  ;;  %v9520_v61 = vmul.u32.u64.low %v1471_v0, %v1470_v23  ;;  %v9521_v30 = vmul.u32.u64.high %v1471_v0, %v1470_v23, %v9520_v61  ;;  %v1736_v18 = vshrl.u32 %v1735_v50, 23 }
 0x185   : > { %v1598_v40 = vsub.s32 32, %v1597_v32  ;;  %v1599_v60 = vshll.u32 %v9486_v22, %v1597_v32  ;;  %v1602_v27 = vsub.s32 4294967266, %v1597_v32  ;;  %vm1309_vm15 = vweird.f32 %v9105_v24 }
 0x186   : > { %v7213_v5 = vadd.s32 4294967169, %v1736_v18  ;;  %vm1480_vm14 = vc.u32 %v9521_v30, %v9523_v6  ;;  %v1732_v11 = vand.u32 2147483647, %v9509_v44  ;;  %vm4341_vm1 = vcmp.lt.f32.partialorder %v8507_v37, 5.5 }
 0x187   : > { %v1600_v43 = vshrl.u32 %v1582_v48, %v1598_v40  ;;  %v1603_v26 = vadd.s32 127, %v1602_v27  ;;  %v1481_v48 = vadd.s32 1, %v9524_v2  ;;  %vm9543_vm2 = vcmp.le.f32.partialorder %v1526_v20, 0.7853982 }
 0x188   : > { %v1742_v45 = vadd.s32 1, %v7213_v5  ;;  %vm1528_vm3 = vcmp.lt.s32.totalorder %v9151_v63, 0  ;;  %v1612_v16 = vsub.s32 4, %v9478_v56  ;;  %v1739_v12 = vand.u32 8388607, %v1732_v11 }
 0x189   : > { %v8323_v25 = vpop.eup %8322  ;;  %v1601_v8 = vor.u32 %v1600_v43, %v1599_v60  ;;  %v1604_v22 = vshll.u32 %v1603_v26, 23  ;;  %v1482_v49 = vsel %vm1480_vm14, %v1481_v48, %v9524_v2  ;;  %vm1425_vm8 = vcmp.lt.s32.totalorder %v9320_v57, 0 }
 0x18a   : > { %v8325_v14 = vpop.eup %8324  ;;  %v1316_v62 = vxor.u32 2147483648, %v8323_v25  ;;  %v1483_v51 = vadd.s32 %v1482_v49, %v1478_v46  ;;  %vm1743_vm0 = vcmp.gt.s32.totalorder %v1742_v45, 0  ;;  %v1740_v43 = vor.u32 8388608, %v1739_v12 }
 0x18b   : > { %v1313_v3 = vxor.u32 2147483648, %v8325_v14  ;;  %v1605_v10 = vor.u32 4788187, %v1604_v22  ;;  %v1608_v36 = vcvt.s32.f32 %v1601_v8  ;;  %v1744_v29 = vsel %vm1743_vm0, %v1742_v45, 0 }
 0x18c   : > { %v1317_v34 = vsel %vm1315_vm12, %v1316_v62, %v8325_v14  ;;  %v1484_v24 = vadd.s32 536870912, %v1483_v51  ;;  %v1746_v1 = vand.u32 31, %v1744_v29  ;;  %v1745_v32 = vshrl.u32 %v1744_v29, 5 }
 0x18d   : > { %v1314_v39 = vsel %vm1312_vm13, %v8323_v25, %v1313_v3  ;;  %v1606_v54 = vand.u32 2147483647, %v1605_v10  ;;  %v1613_v18 = vsel %vm1528_vm3, %v1612_v16, %v9478_v56  ;;  %vm1618_vm9 = vweird.f32 %v9151_v63  ;;  %v9587_v16 = vld [vmem:[%s8695_s14 + $0x30] sm:$0xff] }
 0x18e   : > { %v1318_v7 = vsel %vm1311_vm10, %v1314_v39, %v1317_v34  ;;  %v9549_v31 = vshrl.u32 %v1484_v24, 30  ;;  %v1747_v42 = vsub.s32 32, %v1746_v1  ;;  %v1749_v35 = vshll.u32 %v13423_v15, %v1746_v1 }
 0x18f   : > { %v1319_v28 = vsel %vm1309_vm15, nan, %v1318_v7  ;;  %v1609_v33 = vmul.f32 %v1608_v36, %v1606_v54  ;;  %v1752_v40 = vshll.u32 %v13424_v9, %v1746_v1  ;;  %v1755_v60 = vshll.u32 %v13425_v59, %v1746_v1 }
 0x190   : > { %v4309_v4 = vmul.f32 %v1319_v28, %v1319_v28  ;;  %v1486_v41 = vshll.u32 %v9549_v31, 30  ;;  %v1750_v23 = vshrl.u32 %v13424_v9, %v1747_v42  ;;  %v1753_v61 = vshrl.u32 %v13425_v59, %v1747_v42 }
 0x191   : > { %v1610_v0 = vxor.u32 2147483648, %v1609_v33  ;;  %v1756_v26 = vshrl.u32 %v13426_v47, %v1747_v42  ;;  %vm1764_vm4 = vcmp.lt.s32.totalorder %v1745_v32, 1  ;;  %v1758_v5 = vshll.u32 %v13426_v47, %v1746_v1 }
 0x192   : > { %v4373_v50 = vsel %vm4341_vm1, %v4309_v4, 0.0  ;;  %v9564_v2 = vsub.s32 %v1483_v51, %v1486_v41  ;;  %v1751_v25 = vor.u32 %v1750_v23, %v1749_v35  ;;  %v1754_v22 = vor.u32 %v1753_v61, %v1752_v40 }
 0x193   : > { %4415 = vperm.xlu0 %8210, %v4373_v50   ;;  %v1611_v20 = vsel %vm1528_vm3, %v1610_v0, %v1609_v33  ;;  %v1757_v46 = vor.u32 %v1756_v26, %v1755_v60  ;;  %v1748_v14 = vshrl.u32 %v13423_v15, %v1747_v42  ;;  %v1759_v62 = vshrl.u32 %v8591_v58, %v1747_v42 }
 0x194   : > { %v1614_v27 = vsel %vm9543_vm2, %v9151_v63, %v1611_v20  ;;  %v1489_v8 = vsub.s32 0, %v9564_v2  ;;  %v1761_v48 = vshll.u32 %v8591_v58, %v1746_v1  ;;  %v1762_v3 = vshrl.u32 %v13440_v13, %v1747_v42  ;;  %v9627_v63 = vld [vmem:[%s8695_s14 + $0x48] sm:$0xff] }
 0x195   : > { %8326 = vcosq.f32 %v1614_v27  ;;  %v1615_v56 = vsel %vm9543_vm2, 0, %v1613_v18  ;;  %vm1765_vm5 = vcmp.lt.s32.totalorder %v1745_v32, 2  ;;  %v1780_v36 = vshll.u32 %v1740_v43, 8 }
 0x196   : > { %8328 = vsinq.f32 %v1614_v27  ;;  %v7202_v10 = vmin.u32 %v1489_v8, %v9564_v2  ;;  %v1760_v45 = vor.u32 %v1759_v62, %v1758_v5  ;;  %v1763_v34 = vor.u32 %v1762_v3, %v1761_v48 }
 0x197   : > { %vm1766_vm6 = vcmp.lt.s32.totalorder %v1745_v32, 3  ;;  %vm1767_vm7 = vcmp.lt.s32.totalorder %v1745_v32, 4  ;;  %v1772_v54 = vsel %vm1764_vm4, %v1751_v25, %v1754_v22  ;;  %v1776_v51 = vsel %vm1764_vm4, %v1754_v22, %v1757_v46 }
 0x198   : > { %v1491_v49 = vclz %v7202_v10  ;;  %v1769_v39 = vsel %vm1767_vm7, %v1757_v46, 2102212464  ;;  %v1768_v7 = vsel %vm1764_vm4, %v1748_v14, %v1751_v25  ;;  %v1773_v29 = vsel %vm1767_vm7, %v1760_v45, 920167782 }
 0x199   : > { %v1777_v28 = vsel %vm1767_vm7, %v1763_v34, 1326507024  ;;  %v1770_v33 = vsel %vm1766_vm6, %v1754_v22, %v1769_v39  ;;  %v1774_v24 = vsel %vm1766_vm6, %v1757_v46, %v1773_v29  ;;  %v1619_v38 = vand.u32 3, %v1615_v56 }
 0x19a   : > { %v7203_v37 = vadd.s32 4294967294, %v1491_v49  ;;  %v1778_v4 = vsel %vm1766_vm6, %v1760_v45, %v1777_v28  ;;  %v1775_v1 = vsel %vm1765_vm5, %v1772_v54, %v1774_v24  ;;  %v9590_v12 = vmul.f32 0.28559932, %v9587_v16 }
 0x19b   : > { %v1779_v0 = vsel %vm1765_vm5, %v1776_v51, %v1778_v4  ;;  %v1479_v50 = vadd.s32 %v9523_v6, %v9521_v30  ;;  %v1771_v41 = vsel %vm1765_vm5, %v1768_v7, %v1770_v33  ;;  %v1509_v43 = vsub.s32 4, %v9549_v31  ;;  %v8509_v51 = vld [vmem:[%s8695_s14 + $0x28] sm:$0xff] }
 0x19c   : > { %vm7204_vm10 = vcmp.lt.s32.totalorder %v7203_v37, 0  ;;  %v9594_v42 = vmul.u32.u64.low %v1780_v36, %v1779_v0  ;;  %v9595_v35 = vmul.u32.u64.high %v1780_v36, %v1779_v0, %v9594_v42  ;;  %vm1620_vm12 = vcmp.lt.s32.totalorder %v1619_v38, 2 }
 0x19d   : > { %v1494_v20 = vsel %vm7204_vm10, 0, %v7203_v37  ;;  %v9598_v40 = vmul.u32.u64.low %v1780_v36, %v1775_v1  ;;  %v9599_v60 = vmul.u32.u64.high %v1780_v36, %v1775_v1, %v9598_v40  ;;  %vm1621_vm13 = vcmp.eq.s32.totalorder %v1619_v38, 0 }
 0x19e   : > { %v1495_v27 = vsub.s32 32, %v1494_v20  ;;  %v1496_v23 = vshll.u32 %v9564_v2, %v1494_v20  ;;  %v1499_v61 = vsub.s32 4294967266, %v1494_v20  ;;  %vm1624_vm14 = vcmp.eq.s32.totalorder %v1619_v38, 2 }
 0x19f   : > { %v1632_v30 = vand.u32 2139095040, %v9590_v12  ;;  %v1787_v8 = vmul.u32 %v1780_v36, %v1771_v41  ;;  %vm1789_vm15 = vc.u32 %v9595_v35, %v9598_v40  ;;  %v1790_v2 = vadd.s32 1, %v9599_v60 }
 0x1a0   : > { %v1497_v25 = vshrl.u32 %v1479_v50, %v1495_v27  ;;  %v1500_v32 = vadd.s32 127, %v1499_v61  ;;  %v1510_v48 = vsel %vm1425_vm8, %v1509_v43, %v9549_v31  ;;  %v1629_v10 = vand.u32 2147483647, %v9590_v12 }
 0x1a1   : > { %v1633_v46 = vshrl.u32 %v1632_v30, 23  ;;  %v1791_v56 = vsel %vm1789_vm15, %v1790_v2, %v9599_v60  ;;  %vm4344_vm0 = vcmp.lt.f32.partialorder %v8509_v51, 5.5  ;;  %vm9618_vm1 = vcmp.le.f32.partialorder %v1423_v53, 0.7853982 }
 0x1a2   : > { %v8327_v26 = vpop.eup %8326  ;;  %v1498_v14 = vor.u32 %v1497_v25, %v1496_v23  ;;  %v1501_v62 = vshll.u32 %v1500_v32, 23  ;;  %v1792_v39 = vadd.s32 %v1791_v56, %v1787_v8  ;;  %v1512_v33 = vsel %vm9618_vm1, 0, %v1510_v48 }
 0x1a3   : > { %v8329_v6 = vpop.eup %8328  ;;  %v1625_v18 = vxor.u32 2147483648, %v8327_v26  ;;  %v7209_v36 = vadd.s32 4294967169, %v1633_v46  ;;  %v1636_v24 = vand.u32 8388607, %v1629_v10  ;;  %v9630_v4 = vmul.f32 0.28559932, %v9627_v63 }
 0x1a4   : > { %v1622_v22 = vxor.u32 2147483648, %v8329_v6  ;;  %v1502_v34 = vor.u32 4788187, %v1501_v62  ;;  %v1505_v49 = vcvt.s32.f32 %v1498_v14  ;;  %v1793_v37 = vadd.s32 536870912, %v1792_v39 }
 0x1a5   : > { %v1626_v5 = vsel %vm1624_vm14, %v1625_v18, %v8329_v6  ;;  %v1639_v7 = vadd.s32 1, %v7209_v36  ;;  %v9634_v20 = vand.u32 3, %v1512_v33  ;;  %v9637_v41 = vadd.s32 %v9598_v40, %v9595_v35 }
 0x1a6   : > { %v1623_v3 = vsel %vm1621_vm13, %v8327_v26, %v1622_v22  ;;  %v1503_v28 = vand.u32 2147483647, %v1502_v34  ;;  %v9632_v53 = vshrl.u32 %v1793_v37, 30  ;;  %v1637_v27 = vor.u32 8388608, %v1636_v24 }
 0x1a7   : > { %v1627_v45 = vsel %vm1620_vm12, %v1623_v3, %v1626_v5  ;;  %vm1640_vm2 = vcmp.gt.s32.totalorder %v1639_v7, 0  ;;  %v1941_v43 = vand.u32 2139095040, %v9630_v4  ;;  %v1938_v3 = vand.u32 2147483647, %v9630_v4 }
 0x1a8   : > { %v1628_v54 = vsel %vm1618_vm9, nan, %v1627_v45  ;;  %v1506_v1 = vmul.f32 %v1505_v49, %v1503_v28  ;;  %v1641_v0 = vsel %vm1640_vm2, %v1639_v7, 0  ;;  %v1795_v60 = vshll.u32 %v9632_v53, 30 }
 0x1a9   : > { %v4312_v31 = vmul.f32 %v1628_v54, %v1628_v54  ;;  %v1643_v50 = vand.u32 31, %v1641_v0  ;;  %v1642_v6 = vshrl.u32 %v1641_v0, 5  ;;  %v9659_v48 = vshll.u32 %v1637_v27, 8 }
 0x1aa   : > { %v1507_v42 = vxor.u32 2147483648, %v1506_v1  ;;  %v9644_v30 = vsub.s32 %v1792_v39, %v1795_v60  ;;  %v1942_v56 = vshrl.u32 %v1941_v43, 23  ;;  %vm1515_vm7 = vweird.f32 %v9320_v57 }
 0x1ab   : > { %v4376_v38 = vsel %vm4344_vm0, %v4312_v31, 0.0  ;;  %v1644_v23 = vsub.s32 32, %v1643_v50  ;;  %v1646_v61 = vshll.u32 %v13423_v15, %v1643_v50  ;;  %v1649_v18 = vshll.u32 %v13424_v9, %v1643_v50 }
 0x1ac   : > { %4430 = vperm.xlu1 %8209, %v4376_v38   ;;  %v1508_v26 = vsel %vm1425_vm8, %v1507_v42, %v1506_v1  ;;  %v1652_v25 = vshll.u32 %v13425_v59, %v1643_v50  ;;  %v1655_v32 = vshll.u32 %v13426_v47, %v1643_v50  ;;  %v1798_v8 = vsub.s32 0, %v9644_v30 }
 0x1ad   : > { %v1511_v35 = vsel %vm9618_vm1, %v9320_v57, %v1508_v26  ;;  %v1647_v40 = vshrl.u32 %v13424_v9, %v1644_v23  ;;  %v1645_v22 = vshrl.u32 %v13423_v15, %v1644_v23  ;;  %v1650_v2 = vshrl.u32 %v13425_v59, %v1644_v23 }
 0x1ae   : > { %8330 = vcosq.f32 %v1511_v35  ;;  %v1653_v5 = vshrl.u32 %v13426_v47, %v1644_v23  ;;  %v1656_v14 = vshrl.u32 %v8591_v58, %v1644_v23  ;;  %v7214_v62 = vmin.u32 %v1798_v8, %v9644_v30 }
 0x1af   : > { %8332 = vsinq.f32 %v1511_v35  ;;  %v1648_v46 = vor.u32 %v1647_v40, %v1646_v61  ;;  %v1651_v36 = vor.u32 %v1650_v2, %v1649_v18  ;;  %v1658_v49 = vshll.u32 %v8591_v58, %v1643_v50 }
 0x1b0   : > { %v1654_v45 = vor.u32 %v1653_v5, %v1652_v25  ;;  %v1657_v34 = vor.u32 %v1656_v14, %v1655_v32  ;;  %v1800_v39 = vclz %v7214_v62  ;;  %v1659_v54 = vshrl.u32 %v13440_v13, %v1644_v23  ;;  %v9694_v62 = vpop.permute.xlu0 %623 }
 0x1b1   : > { %vm1661_vm3 = vcmp.lt.s32.totalorder %v1642_v6, 1  ;;  %vm1662_vm4 = vcmp.lt.s32.totalorder %v1642_v6, 2  ;;  %vm1663_vm5 = vcmp.lt.s32.totalorder %v1642_v6, 3  ;;  %vm1664_vm6 = vcmp.lt.s32.totalorder %v1642_v6, 4 }
 0x1b2   : > { %v1665_v51 = vsel %vm1661_vm3, %v1645_v22, %v1648_v46  ;;  %v1669_v7 = vsel %vm1661_vm3, %v1648_v46, %v1651_v36  ;;  %v7215_v31 = vadd.s32 4294967294, %v1800_v39  ;;  %v1660_v29 = vor.u32 %v1659_v54, %v1658_v49 }
 0x1b3   : > { %v1666_v28 = vsel %vm1664_vm6, %v1654_v45, 2102212464  ;;  %v1670_v37 = vsel %vm1664_vm6, %v1657_v34, 920167782  ;;  %v1673_v38 = vsel %vm1661_vm3, %v1651_v36, %v1654_v45  ;;  %v7221_v1 = vadd.s32 4294967169, %v1942_v56 }
 0x1b4   : > { %v1667_v33 = vsel %vm1663_vm5, %v1651_v36, %v1666_v28  ;;  %v1671_v24 = vsel %vm1663_vm5, %v1654_v45, %v1670_v37  ;;  %vm1734_vm8 = vcmp.lt.s32.totalorder %v9509_v44, 0  ;;  %vm7216_vm9 = vcmp.lt.s32.totalorder %v7215_v31, 0 }
 0x1b5   : > { %v1668_v0 = vsel %vm1662_vm4, %v1665_v51, %v1667_v33  ;;  %v1672_v50 = vsel %vm1662_vm4, %v1669_v7, %v1671_v24  ;;  %v1674_v42 = vsel %vm1664_vm6, %v1660_v29, 1326507024  ;;  %v1803_v60 = vsel %vm7216_vm9, 0, %v7215_v31 }
 0x1b6   : > { %v1675_v27 = vsel %vm1663_vm5, %v1657_v34, %v1674_v42  ;;  %v9675_v23 = vmul.u32.u64.low %v9659_v48, %v1672_v50  ;;  %v9676_v61 = vmul.u32.u64.high %v9659_v48, %v1672_v50, %v9675_v23  ;;  %v1804_v43 = vsub.s32 32, %v1803_v60 }
 0x1b7   : > { %v1805_v26 = vshll.u32 %v9644_v30, %v1803_v60  ;;  %v1808_v18 = vsub.s32 4294967266, %v1803_v60  ;;  %v1676_v35 = vsel %vm1662_vm4, %v1673_v38, %v1675_v27  ;;  %vm1518_vm10 = vcmp.eq.s32.totalorder %v9634_v20, 0  ;;  %v9718_v27 = vpop.permute.xlu0 %628 }
 0x1b8   : > { %vm4343_vm12 = vcmp.lt.f32.partialorder %v9317_v52, 5.5  ;;  %v9684_v40 = vmul.u32.u64.low %v9659_v48, %v1676_v35  ;;  %v9685_v25 = vmul.u32.u64.high %v9659_v48, %v1676_v35, %v9684_v40  ;;  %v1948_v32 = vadd.s32 1, %v7221_v1 }
 0x1b9   : > { %vm1521_vm13 = vcmp.eq.s32.totalorder %v9634_v20, 2  ;;  %v1806_v8 = vshrl.u32 %v9637_v41, %v1804_v43  ;;  %v1809_v22 = vadd.s32 127, %v1808_v18  ;;  %v1945_v30 = vand.u32 8388607, %v1938_v3 }
 0x1ba   : > { %v1818_v6 = vsub.s32 4, %v9632_v53  ;;  %v1684_v46 = vmul.u32 %v9659_v48, %v1668_v0  ;;  %v1687_v5 = vadd.s32 1, %v9676_v61  ;;  %vm1949_vm14 = vcmp.gt.s32.totalorder %v1948_v32, 0 }
 0x1bb   : > { %v8331_v2 = vpop.eup %8330  ;;  %v1807_v36 = vor.u32 %v1806_v8, %v1805_v26  ;;  %v1810_v45 = vshll.u32 %v1809_v22, 23  ;;  %v1950_v34 = vsel %vm1949_vm14, %v1948_v32, 0  ;;  %vm1517_vm15 = vcmp.lt.s32.totalorder %v9634_v20, 2 }
 0x1bc   : > { %v8333_v14 = vpop.eup %8332  ;;  %v1522_v56 = vxor.u32 2147483648, %v8331_v2  ;;  %vm9699_vm0 = vcmp.le.f32.partialorder %v1732_v11, 0.7853982  ;;  %vm1686_vm1 = vc.u32 %v9685_v25, %v9675_v23  ;;  %v1819_v11 = vsel %vm1734_vm8, %v1818_v6, %v9632_v53 }
 0x1bd   : > { %v1519_v41 = vxor.u32 2147483648, %v8333_v14  ;;  %v1811_v39 = vor.u32 4788187, %v1810_v45  ;;  %v1814_v54 = vcvt.s32.f32 %v1807_v36  ;;  %v1688_v51 = vsel %vm1686_vm1, %v1687_v5, %v9676_v61  ;;  %v4658_v45 = vpop.permute.xlu1 %4657 }
 0x1be   : > { %v1523_v48 = vsel %vm1521_vm13, %v1522_v56, %v8333_v14  ;;  %v1689_v31 = vadd.s32 %v1688_v51, %v1684_v46  ;;  %v1952_v29 = vand.u32 31, %v1950_v34  ;;  %v1946_v33 = vor.u32 8388608, %v1945_v30 }
 0x1bf   : > { %v1520_v7 = vsel %vm1518_vm10, %v8331_v2, %v1519_v41  ;;  %v1812_v37 = vand.u32 2147483647, %v1811_v39  ;;  %v1951_v24 = vshrl.u32 %v1950_v34, 5  ;;  %v1821_v60 = vsel %vm9699_vm0, 0, %v1819_v11 }
 0x1c0   : > { %v1524_v28 = vsel %vm1517_vm15, %v1520_v7, %v1523_v48  ;;  %v1690_v1 = vadd.s32 536870912, %v1689_v31  ;;  %v1953_v0 = vsub.s32 32, %v1952_v29  ;;  %v1955_v50 = vshll.u32 %v13423_v15, %v1952_v29  ;;  %v4655_v48 = vpop.permute.xlu0 %4654 }
 0x1c1   : > { %v1525_v38 = vsel %vm1515_vm7, nan, %v1524_v28  ;;  %v1815_v20 = vmul.f32 %v1814_v54, %v1812_v37  ;;  %v1958_v53 = vshll.u32 %v13424_v9, %v1952_v29  ;;  %v1961_v26 = vshll.u32 %v13425_v59, %v1952_v29 }
 0x1c2   : > { %v4311_v42 = vmul.f32 %v1525_v38, %v1525_v38  ;;  %v9721_v61 = vshrl.u32 %v1690_v1, 30  ;;  %v1956_v43 = vshrl.u32 %v13424_v9, %v1953_v0  ;;  %v1959_v57 = vshrl.u32 %v13425_v59, %v1953_v0 }
 0x1c3   : > { %v1816_v35 = vxor.u32 2147483648, %v1815_v20  ;;  %v1962_v40 = vshrl.u32 %v13426_v47, %v1953_v0  ;;  %v1964_v32 = vshll.u32 %v13426_v47, %v1952_v29  ;;  %vm1970_vm2 = vcmp.lt.s32.totalorder %v1951_v24, 1 }
 0x1c4   : > { %v4375_v18 = vsel %vm4343_vm12, %v4311_v42, 0.0  ;;  %v1692_v8 = vshll.u32 %v9721_v61, 30  ;;  %v1957_v22 = vor.u32 %v1956_v43, %v1955_v50  ;;  %v9731_v30 = vshll.u32 %v1946_v33, 8 }
 0x1c5   : > { %4425 = vperm.xlu0 %8210, %v4375_v18   ;;  %v1817_v2 = vsel %vm1734_vm8, %v1816_v35, %v1815_v20  ;;  %v1960_v6 = vor.u32 %v1959_v57, %v1958_v53  ;;  %v1965_v46 = vshrl.u32 %v8591_v58, %v1953_v0  ;;  %v1967_v52 = vshll.u32 %v8591_v58, %v1952_v29 }
 0x1c6   : > { %v1820_v5 = vsel %vm9699_vm0, %v9509_v44, %v1817_v2  ;;  %v9740_v14 = vsub.s32 %v1689_v31, %v1692_v8  ;;  %v1954_v56 = vshrl.u32 %v13423_v15, %v1953_v0  ;;  %v1968_v36 = vshrl.u32 %v13440_v13, %v1953_v0 }
 0x1c7   : > { %8334 = vcosq.f32 %v1820_v5  ;;  %v1963_v34 = vor.u32 %v1962_v40, %v1961_v26  ;;  %v1966_v41 = vor.u32 %v1965_v46, %v1964_v32  ;;  %vm1973_vm3 = vcmp.lt.s32.totalorder %v1951_v24, 4  ;;  %v9774_v40 = vld [vmem:[%s8695_s14 + $0x40] sm:$0xff] }
 0x1c8   : > { %8336 = vsinq.f32 %v1820_v5  ;;  %v1695_v39 = vsub.s32 0, %v9740_v14  ;;  %v1969_v54 = vor.u32 %v1968_v36, %v1967_v52  ;;  %vm1972_vm4 = vcmp.lt.s32.totalorder %v1951_v24, 3 }
 0x1c9   : > { %vm1971_vm5 = vcmp.lt.s32.totalorder %v1951_v24, 2  ;;  %v1975_v49 = vsel %vm1973_vm3, %v1963_v34, 2102212464  ;;  %v1978_v51 = vsel %vm1970_vm2, %v1957_v22, %v1960_v6  ;;  %v1979_v7 = vsel %vm1973_vm3, %v1966_v41, 920167782 }
 0x1ca   : > { %vm4734_vm6 = vcmp.eq.s32.totalorder %v9188_v21, %v4658_v45  ;;  %v7210_v11 = vmin.u32 %v1695_v39, %v9740_v14  ;;  %v1974_v31 = vsel %vm1970_vm2, %v1954_v56, %v1957_v22  ;;  %vm4733_vm7 = vcmp.eq.s32.totalorder %v9188_v21, %v4655_v48 }
 0x1cb   : > { %v1976_v29 = vsel %vm1972_vm4, %v1960_v6, %v1975_v49  ;;  %v1980_v28 = vsel %vm1972_vm4, %v1963_v34, %v1979_v7  ;;  %v1982_v37 = vsel %vm1970_vm2, %v1960_v6, %v1963_v34  ;;  %v1983_v33 = vsel %vm1973_vm3, %v1969_v54, 1326507024  ;;  %v9798_v7 = vld [vmem:[%s8695_s14 + $0x58] sm:$0xff] }
 0x1cc   : > { %v1825_v38 = vand.u32 3, %v1821_v60  ;;  %v1697_v1 = vclz %v7210_v11  ;;  %v1981_v0 = vsel %vm1971_vm5, %v1978_v51, %v1980_v28  ;;  %v1984_v50 = vsel %vm1972_vm4, %v1966_v41, %v1983_v33 }
 0x1cd   : > { %v1977_v42 = vsel %vm1971_vm5, %v1974_v31, %v1976_v29  ;;  %v1985_v20 = vsel %vm1971_vm5, %v1982_v37, %v1984_v50  ;;  %v9761_v53 = vmul.u32.u64.low %v9731_v30, %v1981_v0  ;;  %v9762_v43 = vmul.u32.u64.high %v9731_v30, %v1981_v0, %v9761_v53 }
 0x1ce   : > { %v7211_v57 = vadd.s32 4294967294, %v1697_v1  ;;  %v9766_v26 = vmul.u32.u64.low %v9731_v30, %v1985_v20  ;;  %v9767_v18 = vmul.u32.u64.high %v9731_v30, %v1985_v20, %v9766_v26  ;;  %v7321_v60 = vsel %vm4733_vm7, 1.0, %v8593_v17  ;;  %v4664_v20 = vpop.permute.xlu1 %4663 }
 0x1cf   : > { %v7322_v35 = vsel %vm4734_vm6, 1.0, %v8593_v17  ;;  %v9777_v24 = vmul.f32 0.28559932, %v9774_v40  ;;  %7784 = vmatprep.mubr.msk.f32.mxu0 %vm4821_vm11, %v7321_v60  ;;  %vm1824_vm8 = vweird.f32 %v9509_v44  ;;  %vm1631_vm9 = vcmp.lt.s32.totalorder %v9590_v12, 0 }
 0x1d0   : > { %v1685_v32 = vadd.s32 %v9675_v23, %v9685_v25  ;;  %vm7212_vm10 = vcmp.lt.s32.totalorder %v7211_v57, 0  ;;  %7785 = vmatmul.mubr.msk.f32.gmra.mxu0 %vm4821_vm11, %v7322_v35  ;;  %v1715_v22 = vsub.s32 4, %v9721_v61  ;;  %v1993_v2 = vmul.u32 %v9731_v30, %v1977_v42 }
 0x1d1   : > { %v1700_v8 = vsel %vm7212_vm10, 0, %v7211_v57  ;;  %v1996_v6 = vadd.s32 1, %v9762_v43  ;;  %vm1826_vm12 = vcmp.lt.s32.totalorder %v1825_v38, 2  ;;  %vm1827_vm13 = vcmp.eq.s32.totalorder %v1825_v38, 0 }
 0x1d2   : > { %v1701_v46 = vsub.s32 32, %v1700_v8  ;;  %v1702_v52 = vshll.u32 %v9740_v14, %v1700_v8  ;;  %v1705_v5 = vsub.s32 4294967266, %v1700_v8  ;;  %vm1995_vm14 = vc.u32 %v9767_v18, %v9761_v53 }
 0x1d3   : > { %v1835_v23 = vand.u32 2147483647, %v9777_v24  ;;  %v1838_v25 = vand.u32 2139095040, %v9777_v24  ;;  %vm1830_vm15 = vcmp.eq.s32.totalorder %v1825_v38, 2  ;;  %v1997_v45 = vsel %vm1995_vm14, %v1996_v6, %v9762_v43 }
 0x1d4   : > { %v8335_v56 = vpop.eup %8334  ;;  %v1703_v36 = vshrl.u32 %v1685_v32, %v1701_v46  ;;  %v1706_v30 = vadd.s32 127, %v1705_v5  ;;  %v1716_v14 = vsel %vm1631_vm9, %v1715_v22, %v9721_v61  ;;  %v1998_v48 = vadd.s32 %v1997_v45, %v1993_v2 }
 0x1d5   : > { %v8337_v34 = vpop.eup %8336  ;;  %v1831_v41 = vxor.u32 2147483648, %v8335_v56  ;;  %v1839_v39 = vshrl.u32 %v1838_v25, 23  ;;  %v9801_v11 = vmul.f32 0.28559932, %v9798_v7  ;;  %v1842_v37 = vand.u32 8388607, %v1835_v23 }
 0x1d6   : > { %v1828_v54 = vxor.u32 2147483648, %v8337_v34  ;;  %v1704_v49 = vor.u32 %v1703_v36, %v1702_v52  ;;  %v1707_v51 = vshll.u32 %v1706_v30, 23  ;;  %v1999_v29 = vadd.s32 536870912, %v1998_v48 }
 0x1d7   : > { %v1832_v31 = vsel %vm1830_vm15, %v1831_v41, %v8337_v34  ;;  %v7217_v28 = vadd.s32 4294967169, %v1839_v39  ;;  %vm4346_vm0 = vcmp.lt.f32.partialorder %v9506_v19, 5.5  ;;  %vm9810_vm1 = vcmp.le.f32.partialorder %v1629_v10, 0.7853982 }
 0x1d8   : > { %v1829_v33 = vsel %vm1827_vm13, %v8335_v56, %v1828_v54  ;;  %v1708_v61 = vor.u32 4788187, %v1707_v51  ;;  %v1711_v1 = vcvt.s32.f32 %v1704_v49  ;;  %v9814_v42 = vshrl.u32 %v1999_v29, 30 }
 0x1d9   : > { %v1833_v0 = vsel %vm1826_vm12, %v1829_v33, %v1832_v31  ;;  %v1845_v43 = vadd.s32 1, %v7217_v28  ;;  %v1718_v60 = vsel %vm9810_vm1, 0, %v1716_v14  ;;  %v2147_v38 = vand.u32 2139095040, %v9801_v11 }
 0x1da   : > { %v1834_v57 = vsel %vm1824_vm8, nan, %v1833_v0  ;;  %v1709_v26 = vand.u32 2147483647, %v1708_v61  ;;  %v2001_v32 = vshll.u32 %v9814_v42, 30  ;;  %v1843_v10 = vor.u32 8388608, %v1842_v37 }
 0x1db   : > { %v4314_v35 = vmul.f32 %v1834_v57, %v1834_v57  ;;  %vm1846_vm2 = vcmp.gt.s32.totalorder %v1845_v43, 0  ;;  %vm4736_vm3 = vcmp.eq.s32.totalorder %v9188_v21, %v4664_v20  ;;  %v2148_v2 = vshrl.u32 %v2147_v38, 23 }
 0x1dc   : > { %v1712_v8 = vmul.f32 %v1711_v1, %v1709_v26  ;;  %v1847_v22 = vsel %vm1846_vm2, %v1845_v43, 0  ;;  %v9825_v6 = vsub.s32 %v1998_v48, %v2001_v32  ;;  %v9829_v5 = vand.u32 3, %v1718_v60  ;;  %v4661_v48 = vpop.permute.xlu0 %4660 }
 0x1dd   : > { %v4378_v44 = vsel %vm4346_vm0, %v4314_v35, 0.0  ;;  %v9827_v46 = vshrl.u32 %v1847_v22, 5  ;;  %v1849_v25 = vand.u32 31, %v1847_v22  ;;  %v1994_v56 = vadd.s32 %v9761_v53, %v9767_v18 }
 0x1de   : > { %4440 = vperm.xlu1 %8209, %v4378_v44   ;;  %v1713_v52 = vxor.u32 2147483648, %v1712_v8  ;;  %v2004_v36 = vsub.s32 0, %v9825_v6  ;;  %v9835_v30 = vsel %vm4736_vm3, 1.0, %v8593_v17  ;;  %v9837_v45 = vshll.u32 %v1843_v10, 8 }
 0x1df   : > { %v1850_v34 = vsub.s32 32, %v1849_v25  ;;  %v1852_v41 = vshll.u32 %v13423_v15, %v1849_v25  ;;  %v7229_v14 = vadd.s32 4294967169, %v2148_v2  ;;  %v1855_v18 = vshll.u32 %v13424_v9, %v1849_v25 }
 0x1e0   : > { %v1714_v19 = vsel %vm1631_vm9, %v1713_v52, %v1712_v8  ;;  %v7222_v53 = vmin.u32 %v2004_v36, %v9825_v6  ;;  %vm1867_vm4 = vcmp.lt.s32.totalorder %v9827_v46, 1  ;;  %vm1868_vm5 = vcmp.lt.s32.totalorder %v9827_v46, 2 }
 0x1e1   : > { %v1717_v39 = vsel %vm9810_vm1, %v9590_v12, %v1714_v19  ;;  %v1851_v54 = vshrl.u32 %v13423_v15, %v1850_v34  ;;  %v1853_v49 = vshrl.u32 %v13424_v9, %v1850_v34  ;;  %v1856_v31 = vshrl.u32 %v13425_v59, %v1850_v34 }
 0x1e2   : > { %8338 = vcosq.f32 %v1717_v39  ;;  %v2006_v51 = vclz %v7222_v53  ;;  %v1858_v29 = vshll.u32 %v13425_v59, %v1849_v25  ;;  %vm4735_vm6 = vcmp.eq.s32.totalorder %v9188_v21, %v4661_v48 }
 0x1e3   : > { %8340 = vsinq.f32 %v1717_v39  ;;  %v1854_v28 = vor.u32 %v1853_v49, %v1852_v41  ;;  %v1859_v37 = vshrl.u32 %v13426_v47, %v1850_v34  ;;  %v1861_v33 = vshll.u32 %v13426_v47, %v1849_v25 }
 0x1e4   : > { %v1862_v61 = vshrl.u32 %v8591_v58, %v1850_v34  ;;  %v7223_v1 = vadd.s32 4294967294, %v2006_v51  ;;  %v1857_v0 = vor.u32 %v1856_v31, %v1855_v18  ;;  %v1864_v50 = vshll.u32 %v8591_v58, %v1849_v25 }
 0x1e5   : > { %v1865_v20 = vshrl.u32 %v13440_v13, %v1850_v34  ;;  %v1860_v43 = vor.u32 %v1859_v37, %v1858_v29  ;;  %vm1869_vm7 = vcmp.lt.s32.totalorder %v9827_v46, 3  ;;  %vm1870_vm8 = vcmp.lt.s32.totalorder %v9827_v46, 4 }
 0x1e6   : > { %v1863_v57 = vor.u32 %v1862_v61, %v1861_v33  ;;  %vm1727_vm9 = vcmp.eq.s32.totalorder %v9829_v5, 2  ;;  %vm7224_vm10 = vcmp.lt.s32.totalorder %v7223_v1, 0  ;;  %v1871_v60 = vsel %vm1867_vm4, %v1851_v54, %v1854_v28 }
 0x1e7   : > { %v1866_v26 = vor.u32 %v1865_v20, %v1864_v50  ;;  %v1875_v38 = vsel %vm1867_vm4, %v1854_v28, %v1857_v0  ;;  %v2009_v35 = vsel %vm7224_vm10, 0, %v7223_v1  ;;  %v1872_v32 = vsel %vm1870_vm8, %v1860_v43, 2102212464 }
 0x1e8   : > { %v1876_v10 = vsel %vm1870_vm8, %v1863_v57, 920167782  ;;  %v1879_v8 = vsel %vm1867_vm4, %v1857_v0, %v1860_v43  ;;  %v2010_v22 = vsub.s32 32, %v2009_v35  ;;  %v2011_v2 = vshll.u32 %v9825_v6, %v2009_v35 }
 0x1e9   : > { %v2014_v44 = vsub.s32 4294967266, %v2009_v35  ;;  %v1873_v52 = vsel %vm1869_vm7, %v1857_v0, %v1872_v32  ;;  %vm1721_vm12 = vweird.f32 %v9590_v12  ;;  %vm1940_vm13 = vcmp.lt.s32.totalorder %v9630_v4, 0 }
 0x1ea   : > { %v1877_v25 = vsel %vm1869_vm7, %v1860_v43, %v1876_v10  ;;  %v1880_v36 = vsel %vm1870_vm8, %v1866_v26, 1326507024  ;;  %v2144_v19 = vand.u32 2147483647, %v9801_v11  ;;  %v2154_v34 = vadd.s32 1, %v7229_v14 }
 0x1eb   : > { %v2012_v41 = vshrl.u32 %v1994_v56, %v2010_v22  ;;  %v2015_v39 = vadd.s32 127, %v2014_v44  ;;  %v1878_v6 = vsel %vm1868_vm5, %v1875_v38, %v1877_v25  ;;  %v1881_v53 = vsel %vm1869_vm7, %v1863_v57, %v1880_v36 }
 0x1ec   : > { %v1874_v18 = vsel %vm1868_vm5, %v1871_v60, %v1873_v52  ;;  %v1882_v54 = vsel %vm1868_vm5, %v1879_v8, %v1881_v53  ;;  %v9891_v49 = vmul.u32.u64.low %v9837_v45, %v1878_v6  ;;  %v9892_v51 = vmul.u32.u64.high %v9837_v45, %v1878_v6, %v9891_v49 }
 0x1ed   : > { %vm4345_vm14 = vcmp.lt.f32.partialorder %v9587_v16, 5.5  ;;  %vm9898_vm15 = vcmp.le.f32.partialorder %v1938_v3, 0.7853982  ;;  %v2013_v14 = vor.u32 %v2012_v41, %v2011_v2  ;;  %v2016_v31 = vshll.u32 %v2015_v39, 23 }
 0x1ee   : > { %v9903_v29 = vmul.u32.u64.low %v9837_v45, %v1882_v54  ;;  %v9904_v28 = vmul.u32.u64.high %v9837_v45, %v1882_v54, %v9903_v29  ;;  %v2024_v46 = vsub.s32 4, %v9814_v42  ;;  %v9909_v37 = vand.u32 8388607, %v2144_v19 }
 0x1ef   : > { %vm2155_vm0 = vcmp.gt.s32.totalorder %v2154_v34, 0  ;;  %v7323_v3 = vsel %vm4735_vm6, 1.0, %v8593_v17  ;;  %v8339_v33 = vpop.eup %8338  ;;  %v2017_v61 = vor.u32 4788187, %v2016_v31  ;;  %v2020_v1 = vcvt.s32.f32 %v2013_v14 }
 0x1f0   : > { %v1890_v0 = vmul.u32 %v9837_v45, %v1874_v18  ;;  %v2156_v50 = vsel %vm2155_vm0, %v2154_v34, 0  ;;  %7787 = vmatprep.mubr.msk.f32.mxu0 %vm4821_vm11, %v7323_v3  ;;  %v8341_v20 = vpop.eup %8340  ;;  %vm1724_vm1 = vcmp.eq.s32.totalorder %v9829_v5, 0  ;;  %v1728_v43 = vxor.u32 2147483648, %v8339_v33 }
 0x1f1   : > { %v1893_v57 = vadd.s32 1, %v9892_v51  ;;  %v2158_v26 = vand.u32 31, %v2156_v50  ;;  %7788 = vmatmul.mubr.msk.f32.gmra.mxu0 %vm4821_vm11, %v9835_v30  ;;  %vm1723_vm2 = vcmp.lt.s32.totalorder %v9829_v5, 2  ;;  %v1725_v48 = vxor.u32 2147483648, %v8341_v20 }
 0x1f2   : > { %v2018_v60 = vand.u32 2147483647, %v2017_v61  ;;  %vm1892_vm3 = vc.u32 %v9904_v28, %v9891_v49  ;;  %v1729_v45 = vsel %vm1727_vm9, %v1728_v43, %v8341_v20  ;;  %v2152_v35 = vor.u32 8388608, %v9909_v37 }
 0x1f3   : > { %v1894_v38 = vsel %vm1892_vm3, %v1893_v57, %v9892_v51  ;;  %v2159_v32 = vsub.s32 32, %v2158_v26  ;;  %v1726_v10 = vsel %vm1724_vm1, %v8339_v33, %v1725_v48  ;;  %v2025_v30 = vsel %vm1940_vm13, %v2024_v46, %v9814_v42 }
 0x1f4   : > { %v2021_v8 = vmul.f32 %v2020_v1, %v2018_v60  ;;  %v1895_v22 = vadd.s32 %v1894_v38, %v1890_v0  ;;  %v1730_v2 = vsel %vm1723_vm2, %v1726_v10, %v1729_v45  ;;  %v2161_v44 = vshll.u32 %v13423_v15, %v2158_v26 }
 0x1f5   : > { %v2162_v52 = vshrl.u32 %v13424_v9, %v2159_v32  ;;  %v2164_v5 = vshll.u32 %v13424_v9, %v2158_v26  ;;  %v1731_v25 = vsel %vm1721_vm12, nan, %v1730_v2  ;;  %v2165_v41 = vshrl.u32 %v13425_v59, %v2159_v32  ;;  %v9960_v2 = vld [vmem:[%s8695_s14 + $0x50] sm:$0xff] }
 0x1f6   : > { %v2022_v36 = vxor.u32 2147483648, %v2021_v8  ;;  %v1896_v34 = vadd.s32 536870912, %v1895_v22  ;;  %v4313_v39 = vmul.f32 %v1731_v25, %v1731_v25  ;;  %v2157_v6 = vshrl.u32 %v2156_v50, 5 }
 0x1f7   : > { %v2167_v53 = vshll.u32 %v13425_v59, %v2158_v26  ;;  %v2168_v42 = vshrl.u32 %v13426_v47, %v2159_v32  ;;  %v2170_v51 = vshll.u32 %v13426_v47, %v2158_v26  ;;  %v2171_v12 = vshrl.u32 %v8591_v58, %v2159_v32 }
 0x1f8   : > { %v2023_v18 = vsel %vm1940_vm13, %v2022_v36, %v2021_v8  ;;  %v9940_v54 = vshrl.u32 %v1896_v34, 30  ;;  %v4377_v14 = vsel %vm4345_vm14, %v4313_v39, 0.0  ;;  %v2160_v29 = vshrl.u32 %v13423_v15, %v2159_v32 }
 0x1f9   : > { %v2026_v31 = vsel %vm9898_vm15, %v9630_v4, %v2023_v18  ;;  %v2173_v46 = vshll.u32 %v8591_v58, %v2158_v26  ;;  %4435 = vperm.xlu0 %8210, %v4377_v14   ;;  %v2163_v3 = vor.u32 %v2162_v52, %v2161_v44  ;;  %v2166_v33 = vor.u32 %v2165_v41, %v2164_v5 }
 0x1fa   : > { %8342 = vcosq.f32 %v2026_v31  ;;  %v1898_v37 = vshll.u32 %v9940_v54, 30  ;;  %v2169_v61 = vor.u32 %v2168_v42, %v2167_v53  ;;  %v2172_v1 = vor.u32 %v2171_v12, %v2170_v51 }
 0x1fb   : > { %8344 = vsinq.f32 %v2026_v31  ;;  %v2174_v16 = vshrl.u32 %v13440_v13, %v2159_v32  ;;  %v2027_v0 = vsel %vm9898_vm15, 0, %v2025_v30  ;;  %vm2176_vm4 = vcmp.lt.s32.totalorder %v2157_v6, 1 }
 0x1fc   : > { %v9955_v50 = vsub.s32 %v1895_v22, %v1898_v37  ;;  %vm2179_vm5 = vcmp.lt.s32.totalorder %v2157_v6, 4  ;;  %vm2178_vm6 = vcmp.lt.s32.totalorder %v2157_v6, 3  ;;  %v2192_v57 = vshll.u32 %v2152_v35, 8 }
 0x1fd   : > { %v2175_v20 = vor.u32 %v2174_v16, %v2173_v46  ;;  %v2181_v43 = vsel %vm2179_vm5, %v2169_v61, 2102212464  ;;  %vm2177_vm7 = vcmp.lt.s32.totalorder %v2157_v6, 2  ;;  %v2180_v48 = vsel %vm2176_vm4, %v2160_v29, %v2163_v3 }
 0x1fe   : > { %v1901_v26 = vsub.s32 0, %v9955_v50  ;;  %v2182_v60 = vsel %vm2178_vm6, %v2166_v33, %v2181_v43  ;;  %v2184_v45 = vsel %vm2176_vm4, %v2163_v3, %v2166_v33  ;;  %v2185_v38 = vsel %vm2179_vm5, %v2172_v1, 920167782 }
 0x1ff   : > { %v2188_v32 = vsel %vm2176_vm4, %v2166_v33, %v2169_v61  ;;  %v2189_v10 = vsel %vm2179_vm5, %v2175_v20, 1326507024  ;;  %v2031_v8 = vand.u32 3, %v2027_v0  ;;  %v2186_v30 = vsel %vm2178_vm6, %v2169_v61, %v2185_v38 }
 0x200   : > { %v7218_v56 = vmin.u32 %v1901_v26, %v9955_v50  ;;  %v2190_v22 = vsel %vm2178_vm6, %v2172_v1, %v2189_v10  ;;  %v9963_v44 = vmul.f32 0.28559932, %v9960_v2  ;;  %v2183_v52 = vsel %vm2177_vm7, %v2180_v48, %v2182_v60  ;;  %v4670_v1 = vpop.permute.xlu1 %4669 }
 0x201   : > { %v2187_v5 = vsel %vm2177_vm7, %v2184_v45, %v2186_v30  ;;  %v2191_v25 = vsel %vm2177_vm7, %v2188_v32, %v2190_v22  ;;  %vm2030_vm8 = vweird.f32 %v9630_v4  ;;  %vm2032_vm9 = vcmp.lt.s32.totalorder %v2031_v8, 2 }
 0x202   : > { %v1903_v35 = vclz %v7218_v56  ;;  %v9968_v36 = vmul.u32.u64.low %v2192_v57, %v2191_v25  ;;  %v9969_v34 = vmul.u32.u64.high %v2192_v57, %v2191_v25, %v9968_v36  ;;  %v2044_v42 = vand.u32 2139095040, %v9963_v44  ;;  %v4667_v56 = vpop.permute.xlu0 %4666 }
 0x203   : > { %v9971_v41 = vmul.u32.u64.low %v2192_v57, %v2187_v5  ;;  %v9972_v39 = vmul.u32.u64.high %v2192_v57, %v2187_v5, %v9971_v41  ;;  %vm2033_vm10 = vcmp.eq.s32.totalorder %v2031_v8, 0  ;;  %vm2036_vm12 = vcmp.eq.s32.totalorder %v2031_v8, 2 }
 0x204   : > { %v7219_v53 = vadd.s32 4294967294, %v1903_v35  ;;  %vm4348_vm13 = vcmp.lt.f32.partialorder %v9627_v63, 5.5  ;;  %vm1837_vm14 = vcmp.lt.s32.totalorder %v9777_v24, 0  ;;  %v1891_v6 = vadd.s32 %v9891_v49, %v9904_v28  ;;  %v10000_v35 = vld [vmem:[%s8695_s14 + $0x68] sm:$0xff] }
 0x205   : > { %v2199_v18 = vmul.u32 %v2192_v57, %v2183_v52  ;;  %v2045_v51 = vshrl.u32 %v2044_v42, 23  ;;  %v1921_v31 = vsub.s32 4, %v9940_v54  ;;  %vm2201_vm0 = vc.u32 %v9969_v34, %v9971_v41 }
 0x206   : > { %vm7220_vm15 = vcmp.lt.s32.totalorder %v7219_v53, 0  ;;  %v2202_v29 = vadd.s32 1, %v9972_v39  ;;  %v2041_v16 = vand.u32 2147483647, %v9963_v44  ;;  %vm4738_vm1 = vcmp.eq.s32.totalorder %v9188_v21, %v4670_v1 }
 0x207   : > { %v8343_v12 = vpop.eup %8342  ;;  %v1906_v14 = vsel %vm7220_vm15, 0, %v7219_v53  ;;  %v7225_v0 = vadd.s32 4294967169, %v2045_v51  ;;  %vm10009_vm3 = vcmp.le.f32.partialorder %v1835_v23, 0.7853982  ;;  %vm4737_vm4 = vcmp.eq.s32.totalorder %v9188_v21, %v4667_v56 }
 0x208   : > { %v8345_v46 = vpop.eup %8344  ;;  %v2037_v37 = vxor.u32 2147483648, %v8343_v12  ;;  %v1907_v3 = vsub.s32 32, %v1906_v14  ;;  %v1908_v33 = vshll.u32 %v9955_v50, %v1906_v14  ;;  %v1911_v61 = vsub.s32 4294967266, %v1906_v14 }
 0x209   : > { %v2034_v49 = vxor.u32 2147483648, %v8345_v46  ;;  %v2203_v28 = vsel %vm2201_vm0, %v2202_v29, %v9972_v39  ;;  %v1922_v50 = vsel %vm1837_vm14, %v1921_v31, %v9940_v54  ;;  %v2051_v60 = vadd.s32 1, %v7225_v0 }
 0x20a   : > { %v2038_v20 = vsel %vm2036_vm12, %v2037_v37, %v8345_v46  ;;  %v1909_v43 = vshrl.u32 %v1891_v6, %v1907_v3  ;;  %v1912_v57 = vadd.s32 127, %v1911_v61  ;;  %v2204_v26 = vadd.s32 %v2203_v28, %v2199_v18 }
 0x20b   : > { %v2035_v48 = vsel %vm2033_vm10, %v8343_v12, %v2034_v49  ;;  %v2048_v22 = vand.u32 8388607, %v2041_v16  ;;  %vm2052_vm2 = vcmp.gt.s32.totalorder %v2051_v60, 0  ;;  %v10003_v54 = vmul.f32 0.28559932, %v10000_v35 }
 0x20c   : > { %v2039_v45 = vsel %vm2032_vm9, %v2035_v48, %v2038_v20  ;;  %v1910_v38 = vor.u32 %v1909_v43, %v1908_v33  ;;  %v1913_v32 = vshll.u32 %v1912_v57, 23  ;;  %v2205_v10 = vadd.s32 536870912, %v2204_v26 }
 0x20d   : > { %v2040_v30 = vsel %vm2030_vm8, nan, %v2039_v45  ;;  %v2053_v4 = vsel %vm2052_vm2, %v2051_v60, 0  ;;  %v1924_v42 = vsel %vm10009_vm3, 0, %v1922_v50  ;;  %v7326_v23 = vsel %vm4738_vm1, 1.0, %v8593_v17 }
 0x20e   : > { %v4316_v52 = vmul.f32 %v2040_v30, %v2040_v30  ;;  %v1914_v5 = vor.u32 4788187, %v1913_v32  ;;  %v1917_v8 = vcvt.s32.f32 %v1910_v38  ;;  %v10005_v25 = vshrl.u32 %v2205_v10, 30 }
 0x20f   : > { %v2049_v18 = vor.u32 8388608, %v2048_v22  ;;  %v2055_v51 = vand.u32 31, %v2053_v4  ;;  %v2353_v31 = vand.u32 2139095040, %v10003_v54  ;;  %v7325_v63 = vsel %vm4737_vm4, 1.0, %v8593_v17 }
 0x210   : > { %v4380_v39 = vsel %vm4348_vm13, %v4316_v52, 0.0  ;;  %v1915_v53 = vand.u32 2147483647, %v1914_v5  ;;  %v2207_v6 = vshll.u32 %v10005_v25, 30  ;;  %v10026_v29 = vand.u32 3, %v1924_v42  ;;  %7790 = vmatprep.mubr.msk.f32.mxu0 %vm4821_vm11, %v7325_v63 }
 0x211   : > { %4450 = vperm.xlu1 %8209, %v4380_v39   ;;  %v2056_v46 = vsub.s32 32, %v2055_v51  ;;  %v2058_v37 = vshll.u32 %v13423_v15, %v2055_v51  ;;  %v2061_v3 = vshll.u32 %v13424_v9, %v2055_v51  ;;  %v2200_v61 = vadd.s32 %v9971_v41, %v9969_v34  ;;  %7791 = vmatmul.mubr.msk.f32.gmra.mxu0 %vm4821_vm11, %v7326_v23 }
 0x212   : > { %v1918_v12 = vmul.f32 %v1917_v8, %v1915_v53  ;;  %v10022_v14 = vsub.s32 %v2204_v26, %v2207_v6  ;;  %v2064_v49 = vshll.u32 %v13425_v59, %v2055_v51  ;;  %v10039_v43 = vshll.u32 %v2049_v18, 8 }
 0x213   : > { %v2059_v28 = vshrl.u32 %v13424_v9, %v2056_v46  ;;  %v2062_v0 = vshrl.u32 %v13425_v59, %v2056_v46  ;;  %v2065_v20 = vshrl.u32 %v13426_v47, %v2056_v46  ;;  %v2054_v34 = vshrl.u32 %v2053_v4, 5 }
 0x214   : > { %v1919_v33 = vxor.u32 2147483648, %v1918_v12  ;;  %v2210_v1 = vsub.s32 0, %v10022_v14  ;;  %v2354_v41 = vshrl.u32 %v2353_v31, 23  ;;  %v2057_v50 = vshrl.u32 %v13423_v15, %v2056_v46 }
 0x215   : > { %v2060_v60 = vor.u32 %v2059_v28, %v2058_v37  ;;  %v2063_v45 = vor.u32 %v2062_v0, %v2061_v3  ;;  %v2066_v32 = vor.u32 %v2065_v20, %v2064_v49  ;;  %v2067_v10 = vshll.u32 %v13426_v47, %v2055_v51 }
 0x216   : > { %v1920_v57 = vsel %vm1837_vm14, %v1919_v33, %v1918_v12  ;;  %v7230_v26 = vmin.u32 %v2210_v1, %v10022_v14  ;;  %v2068_v56 = vshrl.u32 %v8591_v58, %v2056_v46  ;;  %v2070_v30 = vshll.u32 %v8591_v58, %v2055_v51 }
 0x217   : > { %v1923_v48 = vsel %vm10009_vm3, %v9777_v24, %v1920_v57  ;;  %v2071_v22 = vshrl.u32 %v13440_v13, %v2056_v46  ;;  %vm2073_vm5 = vcmp.lt.s32.totalorder %v2054_v34, 1  ;;  %vm2074_vm6 = vcmp.lt.s32.totalorder %v2054_v34, 2 }
 0x218   : > { %8346 = vcosq.f32 %v1923_v48  ;;  %v2212_v38 = vclz %v7230_v26  ;;  %vm2075_vm7 = vcmp.lt.s32.totalorder %v2054_v34, 3  ;;  %v2069_v5 = vor.u32 %v2068_v56, %v2067_v10 }
 0x219   : > { %8348 = vsinq.f32 %v1923_v48  ;;  %v2072_v8 = vor.u32 %v2071_v22, %v2070_v30  ;;  %vm2076_vm8 = vcmp.lt.s32.totalorder %v2054_v34, 4  ;;  %v2077_v36 = vsel %vm2073_vm5, %v2057_v50, %v2060_v60 }
 0x21a   : > { %v7231_v52 = vadd.s32 4294967294, %v2212_v38  ;;  %v2078_v4 = vsel %vm2076_vm8, %v2066_v32, 2102212464  ;;  %v2081_v39 = vsel %vm2073_vm5, %v2060_v60, %v2063_v45  ;;  %v2085_v53 = vsel %vm2073_vm5, %v2063_v45, %v2066_v32 }
 0x21b   : > { %v2079_v6 = vsel %vm2075_vm7, %v2063_v45, %v2078_v4  ;;  %v2082_v23 = vsel %vm2076_vm8, %v2069_v5, 920167782  ;;  %v2086_v18 = vsel %vm2076_vm8, %v2072_v8, 1326507024  ;;  %v2350_v63 = vand.u32 2147483647, %v10003_v54 }
 0x21c   : > { %vm7232_vm9 = vcmp.lt.s32.totalorder %v7231_v52, 0  ;;  %v2080_v46 = vsel %vm2074_vm6, %v2077_v36, %v2079_v6  ;;  %v2083_v37 = vsel %vm2075_vm7, %v2066_v32, %v2082_v23  ;;  %v2087_v3 = vsel %vm2075_vm7, %v2069_v5, %v2086_v18 }
 0x21d   : > { %v2215_v42 = vsel %vm7232_vm9, 0, %v7231_v52  ;;  %v7237_v33 = vadd.s32 4294967169, %v2354_v41  ;;  %v2084_v28 = vsel %vm2074_vm6, %v2081_v39, %v2083_v37  ;;  %v2088_v0 = vsel %vm2074_vm6, %v2085_v53, %v2087_v3 }
 0x21e   : > { %v2216_v51 = vsub.s32 32, %v2215_v42  ;;  %v2217_v12 = vshll.u32 %v10022_v14, %v2215_v42  ;;  %v2220_v31 = vsub.s32 4294967266, %v2215_v42  ;;  %vm1927_vm10 = vweird.f32 %v9777_v24 }
 0x21f   : > { %v10061_v20 = vmul.u32.u64.low %v10039_v43, %v2088_v0  ;;  %v10062_v57 = vmul.u32.u64.high %v10039_v43, %v2088_v0, %v10061_v20  ;;  %v10065_v14 = vmul.u32.u64.low %v10039_v43, %v2084_v28  ;;  %v10066_v26 = vmul.u32.u64.high %v10039_v43, %v2084_v28, %v10065_v14 }
 0x220   : > { %v2218_v1 = vshrl.u32 %v2200_v61, %v2216_v51  ;;  %v2221_v49 = vadd.s32 127, %v2220_v31  ;;  %v2360_v60 = vadd.s32 1, %v7237_v33  ;;  %vm1933_vm12 = vcmp.eq.s32.totalorder %v10026_v29, 2  ;;  %v10125_v61 = vld [vmem:[%s8695_s14 + $0x60] sm:$0xff] }
 0x221   : > { %vm4347_vm13 = vcmp.lt.f32.partialorder %v9774_v40, 5.5  ;;  %vm10074_vm14 = vcmp.le.f32.partialorder %v2144_v19, 0.7853982  ;;  %vm2146_vm15 = vcmp.lt.s32.totalorder %v9801_v11, 0  ;;  %v2096_v45 = vmul.u32 %v10039_v43, %v2080_v46 }
 0x222   : > { %v2219_v48 = vor.u32 %v2218_v1, %v2217_v12  ;;  %v2222_v50 = vshll.u32 %v2221_v49, 23  ;;  %vm2361_vm0 = vcmp.gt.s32.totalorder %v2360_v60, 0  ;;  %vm2098_vm1 = vc.u32 %v10062_v57, %v10065_v14 }
 0x223   : > { %v2099_v32 = vadd.s32 1, %v10066_v26  ;;  %v2357_v10 = vand.u32 8388607, %v2350_v63  ;;  %v2362_v19 = vsel %vm2361_vm0, %v2360_v60, 0  ;;  %vm1930_vm2 = vcmp.eq.s32.totalorder %v10026_v29, 0 }
 0x224   : > { %v2223_v34 = vor.u32 4788187, %v2222_v50  ;;  %v2226_v41 = vcvt.s32.f32 %v2219_v48  ;;  %v2364_v52 = vand.u32 31, %v2362_v19  ;;  %vm1929_vm3 = vcmp.lt.s32.totalorder %v10026_v29, 2 }
 0x225   : > { %v8347_v38 = vpop.eup %8346  ;;  %v2230_v5 = vsub.s32 4, %v10005_v25  ;;  %v2100_v8 = vsel %vm2098_vm1, %v2099_v32, %v10066_v26  ;;  %v2358_v6 = vor.u32 8388608, %v2357_v10  ;;  %v2363_v23 = vshrl.u32 %v2362_v19, 5 }
 0x226   : > { %v8349_v56 = vpop.eup %8348  ;;  %v1934_v30 = vxor.u32 2147483648, %v8347_v38  ;;  %v2224_v22 = vand.u32 2147483647, %v2223_v34  ;;  %v2101_v39 = vadd.s32 %v2100_v8, %v2096_v45  ;;  %v2365_v53 = vsub.s32 32, %v2364_v52 }
 0x227   : > { %v1931_v43 = vxor.u32 2147483648, %v8349_v56  ;;  %v2367_v18 = vshll.u32 %v13423_v15, %v2364_v52  ;;  %v2370_v46 = vshll.u32 %v13424_v9, %v2364_v52  ;;  %v2373_v33 = vshll.u32 %v13425_v59, %v2364_v52 }
 0x228   : > { %v1935_v36 = vsel %vm1933_vm12, %v1934_v30, %v8349_v56  ;;  %v2227_v4 = vmul.f32 %v2226_v41, %v2224_v22  ;;  %v2102_v31 = vadd.s32 536870912, %v2101_v39  ;;  %v2368_v3 = vshrl.u32 %v13424_v9, %v2365_v53 }
 0x229   : > { %v1932_v42 = vsel %vm1930_vm2, %v8347_v38, %v1931_v43  ;;  %v2371_v29 = vshrl.u32 %v13425_v59, %v2365_v53  ;;  %v2374_v0 = vshrl.u32 %v13426_v47, %v2365_v53  ;;  %v2231_v20 = vsel %vm2146_vm15, %v2230_v5, %v10005_v25 }
 0x22a   : > { %v1936_v51 = vsel %vm1929_vm3, %v1932_v42, %v1935_v36  ;;  %v2228_v12 = vxor.u32 2147483648, %v2227_v4  ;;  %v10100_v28 = vshrl.u32 %v2102_v31, 30  ;;  %v2369_v26 = vor.u32 %v2368_v3, %v2367_v18  ;;  %v4676_v3 = vpop.permute.xlu1 %4675 }
 0x22b   : > { %v1937_v37 = vsel %vm1927_vm10, nan, %v1936_v51  ;;  %v2376_v48 = vshll.u32 %v13426_v47, %v2364_v52  ;;  %v2372_v34 = vor.u32 %v2371_v29, %v2370_v46  ;;  %v2377_v41 = vshrl.u32 %v8591_v58, %v2365_v53 }
 0x22c   : > { %v4315_v1 = vmul.f32 %v1937_v37, %v1937_v37  ;;  %v2229_v49 = vsel %vm2146_vm15, %v2228_v12, %v2227_v4  ;;  %v2104_v60 = vshll.u32 %v10100_v28, 30  ;;  %v2379_v25 = vshll.u32 %v8591_v58, %v2364_v52 }
 0x22d   : > { %v2232_v24 = vsel %vm10074_vm14, %v9801_v11, %v2229_v49  ;;  %v2380_v45 = vshrl.u32 %v13440_v13, %v2365_v53  ;;  %v2366_v32 = vshrl.u32 %v13423_v15, %v2365_v53  ;;  %v2375_v10 = vor.u32 %v2374_v0, %v2373_v33 }
 0x22e   : > { %v4379_v50 = vsel %vm4347_vm13, %v4315_v1, 0.0  ;;  %8350 = vcosq.f32 %v2232_v24  ;;  %v10116_v38 = vsub.s32 %v2101_v39, %v2104_v60  ;;  %vm2382_vm4 = vcmp.lt.s32.totalorder %v2363_v23, 1 }
 0x22f   : > { %4445 = vperm.xlu0 %8210, %v4379_v50   ;;  %8352 = vsinq.f32 %v2232_v24  ;;  %v2233_v40 = vsel %vm10074_vm14, 0, %v2231_v20  ;;  %v2378_v19 = vor.u32 %v2377_v41, %v2376_v48  ;;  %v2381_v56 = vor.u32 %v2380_v45, %v2379_v25 }
 0x230   : > { %vm2043_vm5 = vcmp.lt.s32.totalorder %v9963_v44, 0  ;;  %v2107_v30 = vsub.s32 0, %v10116_v38  ;;  %vm2384_vm6 = vcmp.lt.s32.totalorder %v2363_v23, 3  ;;  %vm2385_vm7 = vcmp.lt.s32.totalorder %v2363_v23, 4 }
 0x231   : > { %v2398_v22 = vshll.u32 %v2358_v6, 8  ;;  %vm2383_vm8 = vcmp.lt.s32.totalorder %v2363_v23, 2  ;;  %v2387_v52 = vsel %vm2385_vm7, %v2375_v10, 2102212464  ;;  %v2390_v43 = vsel %vm2382_vm4, %v2369_v26, %v2372_v34 }
 0x232   : > { %v2391_v5 = vsel %vm2385_vm7, %v2378_v19, 920167782  ;;  %v7226_v8 = vmin.u32 %v2107_v30, %v10116_v38  ;;  %v2386_v36 = vsel %vm2382_vm4, %v2366_v32, %v2369_v26  ;;  %v2394_v4 = vsel %vm2382_vm4, %v2372_v34, %v2375_v10 }
 0x233   : > { %v10128_v39 = vmul.f32 0.28559932, %v10125_v61  ;;  %v2237_v53 = vand.u32 3, %v2233_v40  ;;  %v2388_v42 = vsel %vm2384_vm6, %v2372_v34, %v2387_v52  ;;  %v2392_v18 = vsel %vm2384_vm6, %v2375_v10, %v2391_v5 }
 0x234   : > { %v2395_v51 = vsel %vm2385_vm7, %v2381_v56, 1326507024  ;;  %vm2236_vm9 = vweird.f32 %v9801_v11  ;;  %vm10135_vm10 = vcmp.le.f32.partialorder %v2041_v16, 0.7853982  ;;  %v2109_v12 = vclz %v7226_v8  ;;  %v10165_v56 = vld [vmem:[%s8695_s14 + $0x78] sm:$0xff] }
 0x235   : > { %v2127_v31 = vsub.s32 4, %v10100_v28  ;;  %v2393_v46 = vsel %vm2383_vm8, %v2390_v43, %v2392_v18  ;;  %v2396_v37 = vsel %vm2384_vm6, %v2378_v19, %v2395_v51  ;;  %v2389_v29 = vsel %vm2383_vm8, %v2386_v36, %v2388_v42 }
 0x236   : > { %v2397_v33 = vsel %vm2383_vm8, %v2394_v4, %v2396_v37  ;;  %v10144_v1 = vmul.u32.u64.low %v2398_v22, %v2393_v46  ;;  %v10145_v49 = vmul.u32.u64.high %v2398_v22, %v2393_v46, %v10144_v1  ;;  %v7227_v16 = vadd.s32 4294967294, %v2109_v12 }
 0x237   : > { %v10148_v0 = vmul.u32.u64.low %v2398_v22, %v2397_v33  ;;  %v10149_v20 = vmul.u32.u64.high %v2398_v22, %v2397_v33, %v10148_v0  ;;  %v2250_v24 = vand.u32 2139095040, %v10128_v39  ;;  %vm2238_vm12 = vcmp.lt.s32.totalorder %v2237_v53, 2 }
 0x238   : > { %vm2239_vm13 = vcmp.eq.s32.totalorder %v2237_v53, 0  ;;  %vm2242_vm14 = vcmp.eq.s32.totalorder %v2237_v53, 2  ;;  %vm4350_vm15 = vcmp.lt.f32.partialorder %v9798_v7, 5.5  ;;  %vm4740_vm0 = vcmp.eq.s32.totalorder %v9188_v21, %v4676_v3 }
 0x239   : > { %v2097_v23 = vadd.s32 %v10065_v14, %v10062_v57  ;;  %vm7228_vm1 = vcmp.lt.s32.totalorder %v7227_v16, 0  ;;  %v2247_v26 = vand.u32 2147483647, %v10128_v39  ;;  %v2251_v48 = vshrl.u32 %v2250_v24, 23 }
 0x23a   : > { %v2112_v60 = vsel %vm7228_vm1, 0, %v7227_v16  ;;  %v2128_v34 = vsel %vm2043_vm5, %v2127_v31, %v10100_v28  ;;  %v2405_v41 = vmul.u32 %v2398_v22, %v2389_v29  ;;  %v2408_v25 = vadd.s32 1, %v10145_v49 }
 0x23b   : > { %v8351_v50 = vpop.eup %8350  ;;  %v2113_v10 = vsub.s32 32, %v2112_v60  ;;  %v2114_v40 = vshll.u32 %v10116_v38, %v2112_v60  ;;  %v2117_v57 = vsub.s32 4294967266, %v2112_v60  ;;  %vm2407_vm2 = vc.u32 %v10149_v20, %v10144_v1 }
 0x23c   : > { %v8353_v45 = vpop.eup %8352  ;;  %v2243_v32 = vxor.u32 2147483648, %v8351_v50  ;;  %v7233_v19 = vadd.s32 4294967169, %v2251_v48  ;;  %v10168_v30 = vmul.f32 0.28559932, %v10165_v56  ;;  %v2409_v43 = vsel %vm2407_vm2, %v2408_v25, %v10145_v49 }
 0x23d   : > { %v2240_v14 = vxor.u32 2147483648, %v8353_v45  ;;  %v2115_v22 = vshrl.u32 %v2097_v23, %v2113_v10  ;;  %v2118_v52 = vadd.s32 127, %v2117_v57  ;;  %v2130_v38 = vsel %vm10135_vm10, 0, %v2128_v34 }
 0x23e   : > { %v2244_v28 = vsel %vm2242_vm14, %v2243_v32, %v8353_v45  ;;  %v2410_v8 = vadd.s32 %v2409_v43, %v2405_v41  ;;  %v2257_v36 = vadd.s32 1, %v7233_v19  ;;  %v2254_v51 = vand.u32 8388607, %v2247_v26 }
 0x23f   : > { %v2241_v5 = vsel %vm2239_vm13, %v8351_v50, %v2240_v14  ;;  %v2116_v42 = vor.u32 %v2115_v22, %v2114_v40  ;;  %v2119_v18 = vshll.u32 %v2118_v52, 23  ;;  %v2559_v46 = vand.u32 2139095040, %v10168_v30 }
 0x240   : > { %v2245_v4 = vsel %vm2238_vm12, %v2241_v5, %v2244_v28  ;;  %v2411_v31 = vadd.s32 536870912, %v2410_v8  ;;  %vm2258_vm3 = vcmp.gt.s32.totalorder %v2257_v36, 0  ;;  %v10188_v11 = vsel %vm4740_vm0, 1.0, %v8593_v17 }
 0x241   : > { %v2246_v12 = vsel %vm2236_vm9, nan, %v2245_v4  ;;  %v2120_v29 = vor.u32 4788187, %v2119_v18  ;;  %v2123_v33 = vcvt.s32.f32 %v2116_v42  ;;  %v2259_v49 = vsel %vm2258_vm3, %v2257_v36, 0 }
 0x242   : > { %v4318_v37 = vmul.f32 %v2246_v12, %v2246_v12  ;;  %v10181_v16 = vshrl.u32 %v2411_v31, 30  ;;  %v2261_v53 = vand.u32 31, %v2259_v49  ;;  %v10190_v23 = vand.u32 3, %v2130_v38 }
 0x243   : > { %v2121_v24 = vand.u32 2147483647, %v2120_v29  ;;  %v2255_v50 = vor.u32 8388608, %v2254_v51  ;;  %v2556_v25 = vand.u32 2147483647, %v10168_v30  ;;  %v2560_v7 = vshrl.u32 %v2559_v46, 23 }
 0x244   : > { %v4382_v0 = vsel %vm4350_vm15, %v4318_v37, 0.0  ;;  %v2413_v48 = vshll.u32 %v10181_v16, 30  ;;  %v2262_v60 = vsub.s32 32, %v2261_v53  ;;  %v2264_v41 = vshll.u32 %v13423_v15, %v2261_v53 }
 0x245   : > { %4460 = vperm.xlu1 %8209, %v4382_v0   ;;  %v2124_v34 = vmul.f32 %v2123_v33, %v2121_v24  ;;  %v2267_v3 = vshll.u32 %v13424_v9, %v2261_v53  ;;  %v2270_v10 = vshll.u32 %v13425_v59, %v2261_v53  ;;  %v2273_v19 = vshll.u32 %v13426_v47, %v2261_v53 }
 0x246   : > { %v10195_v45 = vsub.s32 %v2410_v8, %v2413_v48  ;;  %v2265_v32 = vshrl.u32 %v13424_v9, %v2262_v60  ;;  %v2268_v57 = vshrl.u32 %v13425_v59, %v2262_v60  ;;  %v2271_v14 = vshrl.u32 %v13426_v47, %v2262_v60 }
 0x247   : > { %v2125_v40 = vxor.u32 2147483648, %v2124_v34  ;;  %v2260_v22 = vshrl.u32 %v2259_v49, 5  ;;  %v2274_v52 = vshrl.u32 %v8591_v58, %v2262_v60  ;;  %v10205_v43 = vshll.u32 %v2255_v50, 8 }
 0x248   : > { %v2416_v28 = vsub.s32 0, %v10195_v45  ;;  %v2263_v38 = vshrl.u32 %v13423_v15, %v2262_v60  ;;  %v2276_v8 = vshll.u32 %v8591_v58, %v2261_v53  ;;  %v7245_v36 = vadd.s32 4294967169, %v2560_v7 }
 0x249   : > { %v2126_v5 = vsel %vm2043_vm5, %v2125_v40, %v2124_v34  ;;  %v2266_v18 = vor.u32 %v2265_v32, %v2264_v41  ;;  %v2269_v51 = vor.u32 %v2268_v57, %v2267_v3  ;;  %v2272_v12 = vor.u32 %v2271_v14, %v2270_v10  ;;  %v4673_v14 = vpop.permute.xlu0 %4672 }
 0x24a   : > { %v2129_v4 = vsel %vm10135_vm10, %v9963_v44, %v2126_v5  ;;  %v7238_v42 = vmin.u32 %v2416_v28, %v10195_v45  ;;  %v2275_v31 = vor.u32 %v2274_v52, %v2273_v19  ;;  %v2277_v46 = vshrl.u32 %v13440_v13, %v2262_v60 }
 0x24b   : > { %8354 = vcosq.f32 %v2129_v4  ;;  %vm2279_vm4 = vcmp.lt.s32.totalorder %v2260_v22, 1  ;;  %vm2280_vm5 = vcmp.lt.s32.totalorder %v2260_v22, 2  ;;  %vm2281_vm6 = vcmp.lt.s32.totalorder %v2260_v22, 3 }
 0x24c   : > { %8356 = vsinq.f32 %v2129_v4  ;;  %v2418_v37 = vclz %v7238_v42  ;;  %v2278_v29 = vor.u32 %v2277_v46, %v2276_v8  ;;  %vm2282_vm7 = vcmp.lt.s32.totalorder %v2260_v22, 4 }
 0x24d   : > { %v2283_v33 = vsel %vm2279_vm4, %v2263_v38, %v2266_v18  ;;  %vm2352_vm8 = vcmp.lt.s32.totalorder %v10003_v54, 0  ;;  %v2284_v49 = vsel %vm2282_vm7, %v2272_v12, 2102212464  ;;  %v2287_v53 = vsel %vm2279_vm4, %v2266_v18, %v2269_v51 }
 0x24e   : > { %v7239_v6 = vadd.s32 4294967294, %v2418_v37  ;;  %v2288_v0 = vsel %vm2282_vm7, %v2275_v31, 920167782  ;;  %v2285_v24 = vsel %vm2281_vm6, %v2269_v51, %v2284_v49  ;;  %v2291_v50 = vsel %vm2279_vm4, %v2269_v51, %v2272_v12 }
 0x24f   : > { %v2289_v48 = vsel %vm2281_vm6, %v2272_v12, %v2288_v0  ;;  %v2292_v34 = vsel %vm2282_vm7, %v2278_v29, 1326507024  ;;  %v2406_v60 = vadd.s32 %v10144_v1, %v10149_v20  ;;  %vm10222_vm10 = vcmp.le.f32.partialorder %v2350_v63, 0.7853982 }
 0x250   : > { %vm7240_vm9 = vcmp.lt.s32.totalorder %v7239_v6, 0  ;;  %v2290_v41 = vsel %vm2280_vm5, %v2287_v53, %v2289_v48  ;;  %v2293_v7 = vsel %vm2281_vm6, %v2275_v31, %v2292_v34  ;;  %v2286_v28 = vsel %vm2280_vm5, %v2283_v33, %v2285_v24 }
 0x251   : > { %v2421_v3 = vsel %vm7240_vm9, 0, %v7239_v6  ;;  %v2294_v10 = vsel %vm2280_vm5, %v2291_v50, %v2293_v7  ;;  %v10228_v40 = vmul.u32.u64.low %v10205_v43, %v2290_v41  ;;  %v10229_v57 = vmul.u32.u64.high %v10205_v43, %v2290_v41, %v10228_v40 }
 0x252   : > { %v2422_v1 = vsub.s32 32, %v2421_v3  ;;  %v2423_v20 = vshll.u32 %v10195_v45, %v2421_v3  ;;  %v2426_v19 = vsub.s32 4294967266, %v2421_v3  ;;  %vm2133_vm12 = vweird.f32 %v9963_v44 }
 0x253   : > { %v2436_v63 = vsub.s32 4, %v10181_v16  ;;  %v10237_v52 = vmul.u32.u64.low %v10205_v43, %v2294_v10  ;;  %v10238_v5 = vmul.u32.u64.high %v10205_v43, %v2294_v10, %v10237_v52  ;;  %v2566_v38 = vadd.s32 1, %v7245_v36 }
 0x254   : > { %v2424_v8 = vshrl.u32 %v2406_v60, %v2422_v1  ;;  %v2427_v4 = vadd.s32 127, %v2426_v19  ;;  %v10242_v42 = vand.u32 8388607, %v2556_v25  ;;  %vm4739_vm13 = vcmp.eq.s32.totalorder %v9188_v21, %v4673_v14 }
 0x255   : > { %v2302_v45 = vmul.u32 %v10205_v43, %v2286_v28  ;;  %v2305_v22 = vadd.s32 1, %v10229_v57  ;;  %vm2567_vm14 = vcmp.gt.s32.totalorder %v2566_v38, 0  ;;  %v7327_v18 = vsel %vm4739_vm13, 1.0, %v8593_v17 }
 0x256   : > { %vm2135_vm15 = vcmp.lt.s32.totalorder %v10190_v23, 2  ;;  %vm4349_vm0 = vcmp.lt.f32.partialorder %v9960_v2, 5.5  ;;  %v2425_v36 = vor.u32 %v2424_v8, %v2423_v20  ;;  %v2428_v51 = vshll.u32 %v2427_v4, 23  ;;  %7793 = vmatprep.mubr.msk.f32.mxu0 %vm4821_vm11, %v7327_v18 }
 0x257   : > { %v2568_v12 = vsel %vm2567_vm14, %v2566_v38, 0  ;;  %vm2136_vm1 = vcmp.eq.s32.totalorder %v10190_v23, 0  ;;  %v2437_v43 = vsel %vm2352_vm8, %v2436_v63, %v10181_v16  ;;  %vm2304_vm2 = vc.u32 %v10238_v5, %v10228_v40  ;;  %7794 = vmatmul.mubr.msk.f32.gmra.mxu0 %vm4821_vm11, %v10188_v11 }
 0x258   : > { %v2570_v31 = vand.u32 31, %v2568_v12  ;;  %v8355_v46 = vpop.eup %8354  ;;  %vm2139_vm3 = vcmp.eq.s32.totalorder %v10190_v23, 2  ;;  %v2429_v37 = vor.u32 4788187, %v2428_v51  ;;  %v2432_v29 = vcvt.s32.f32 %v2425_v36 }
 0x259   : > { %v2306_v33 = vsel %vm2304_vm2, %v2305_v22, %v10229_v57  ;;  %v8357_v6 = vpop.eup %8356  ;;  %v2140_v49 = vxor.u32 2147483648, %v8355_v46  ;;  %v2564_v0 = vor.u32 8388608, %v10242_v42  ;;  %v2439_v50 = vsel %vm10222_vm10, 0, %v2437_v43 }
 0x25a   : > { %v2307_v53 = vadd.s32 %v2306_v33, %v2302_v45  ;;  %v2571_v16 = vsub.s32 32, %v2570_v31  ;;  %v2137_v24 = vxor.u32 2147483648, %v8357_v6  ;;  %v2430_v48 = vand.u32 2147483647, %v2429_v37  ;;  %v10302_v33 = vld [vmem:[%s8695_s14 + $0x70] sm:$0xff] }
 0x25b   : > { %v10264_v34 = vshrl.u32 %v2568_v12, 5  ;;  %v2141_v11 = vsel %vm2139_vm3, %v2140_v49, %v8357_v6  ;;  %v2573_v41 = vshll.u32 %v13423_v15, %v2570_v31  ;;  %v2576_v57 = vshll.u32 %v13424_v9, %v2570_v31 }
 0x25c   : > { %v2308_v60 = vadd.s32 536870912, %v2307_v53  ;;  %v2574_v7 = vshrl.u32 %v13424_v9, %v2571_v16  ;;  %v2138_v3 = vsel %vm2136_vm1, %v8355_v46, %v2137_v24  ;;  %v2433_v10 = vmul.f32 %v2432_v29, %v2430_v48 }
 0x25d   : > { %v2577_v14 = vshrl.u32 %v13425_v59, %v2571_v16  ;;  %v2142_v1 = vsel %vm2135_vm15, %v2138_v3, %v2141_v11  ;;  %v2579_v19 = vshll.u32 %v13425_v59, %v2570_v31  ;;  %v2580_v28 = vshrl.u32 %v13426_v47, %v2571_v16 }
 0x25e   : > { %v10274_v20 = vshrl.u32 %v2308_v60, 30  ;;  %v2143_v63 = vsel %vm2133_vm12, nan, %v2142_v1  ;;  %v2434_v52 = vxor.u32 2147483648, %v2433_v10  ;;  %v2572_v38 = vshrl.u32 %v13423_v15, %v2571_v16 }
 0x25f   : > { %v2582_v8 = vshll.u32 %v13426_v47, %v2570_v31  ;;  %v4317_v4 = vmul.f32 %v2143_v63, %v2143_v63  ;;  %v2575_v45 = vor.u32 %v2574_v7, %v2573_v41  ;;  %v2583_v23 = vshrl.u32 %v8591_v58, %v2571_v16 }
 0x260   : > { %v2310_v42 = vshll.u32 %v10274_v20, 30  ;;  %v2435_v22 = vsel %vm2352_vm8, %v2434_v52, %v2433_v10  ;;  %v2578_v18 = vor.u32 %v2577_v14, %v2576_v57  ;;  %v2585_v36 = vshll.u32 %v8591_v58, %v2570_v31 }
 0x261   : > { %v2586_v44 = vshrl.u32 %v13440_v13, %v2571_v16  ;;  %v4381_v51 = vsel %vm4349_vm0, %v4317_v4, 0.0  ;;  %v2438_v12 = vsel %vm10222_vm10, %v10003_v54, %v2435_v22  ;;  %v2581_v46 = vor.u32 %v2580_v28, %v2579_v19 }
 0x262   : > { %v10293_v43 = vsub.s32 %v2307_v53, %v2310_v42  ;;  %4455 = vperm.xlu0 %8210, %v4381_v51   ;;  %8358 = vcosq.f32 %v2438_v12  ;;  %v2584_v37 = vor.u32 %v2583_v23, %v2582_v8  ;;  %vm2588_vm4 = vcmp.lt.s32.totalorder %v10264_v34, 1 }
 0x263   : > { %v2587_v29 = vor.u32 %v2586_v44, %v2585_v36  ;;  %8360 = vsinq.f32 %v2438_v12  ;;  %v10296_v31 = vand.u32 3, %v2439_v50  ;;  %vm2590_vm5 = vcmp.lt.s32.totalorder %v10264_v34, 3 }
 0x264   : > { %v2313_v2 = vsub.s32 0, %v10293_v43  ;;  %vm2591_vm6 = vcmp.lt.s32.totalorder %v10264_v34, 4  ;;  %v2604_v32 = vshll.u32 %v2564_v0, 8  ;;  %v10305_v6 = vmul.f32 0.28559932, %v10302_v33 }
 0x265   : > { %vm2589_vm7 = vcmp.lt.s32.totalorder %v10264_v34, 2  ;;  %v2592_v53 = vsel %vm2588_vm4, %v2572_v38, %v2575_v45  ;;  %v2596_v16 = vsel %vm2588_vm4, %v2575_v45, %v2578_v18  ;;  %v2593_v24 = vsel %vm2591_vm6, %v2581_v46, 2102212464  ;;  %v4682_v34 = vpop.permute.xlu1 %4681 }
 0x266   : > { %v7234_v49 = vmin.u32 %v2313_v2, %v10293_v43  ;;  %v2597_v48 = vsel %vm2591_vm6, %v2584_v37, 920167782  ;;  %v2600_v50 = vsel %vm2588_vm4, %v2578_v18, %v2581_v46  ;;  %v2601_v11 = vsel %vm2591_vm6, %v2587_v29, 1326507024 }
 0x267   : > { %v2594_v41 = vsel %vm2590_vm5, %v2578_v18, %v2593_v24  ;;  %v2598_v0 = vsel %vm2590_vm5, %v2581_v46, %v2597_v48  ;;  %v2602_v7 = vsel %vm2590_vm5, %v2584_v37, %v2601_v11  ;;  %vm2249_vm8 = vcmp.lt.s32.totalorder %v10128_v39, 0 }
 0x268   : > { %v2315_v60 = vclz %v7234_v49  ;;  %v2599_v3 = vsel %vm2589_vm7, %v2596_v16, %v2598_v0  ;;  %v2603_v10 = vsel %vm2589_vm7, %v2600_v50, %v2602_v7  ;;  %vm10322_vm9 = vcmp.le.f32.partialorder %v2247_v26, 0.7853982 }
 0x269   : > { %v10326_v1 = vmul.u32.u64.low %v2604_v32, %v2603_v10  ;;  %v10327_v19 = vmul.u32.u64.high %v2604_v32, %v2603_v10, %v10326_v1  ;;  %vm2442_vm10 = vweird.f32 %v10003_v54  ;;  %v2595_v28 = vsel %vm2589_vm7, %v2592_v53, %v2594_v41 }
 0x26a   : > { %v7235_v14 = vadd.s32 4294967294, %v2315_v60  ;;  %v10332_v63 = vmul.u32.u64.low %v2604_v32, %v2599_v3  ;;  %v10333_v52 = vmul.u32.u64.high %v2604_v32, %v2599_v3, %v10332_v63  ;;  %v2456_v38 = vand.u32 2139095040, %v10305_v6 }
 0x26b   : > { %vm2444_vm12 = vcmp.lt.s32.totalorder %v10296_v31, 2  ;;  %v2303_v26 = vadd.s32 %v10228_v40, %v10238_v5  ;;  %v2333_v8 = vsub.s32 4, %v10274_v20  ;;  %vm2445_vm14 = vcmp.eq.s32.totalorder %v10296_v31, 0 }
 0x26c   : > { %vm7236_vm13 = vcmp.lt.s32.totalorder %v7235_v14, 0  ;;  %vm2448_vm15 = vcmp.eq.s32.totalorder %v10296_v31, 2  ;;  %v2457_v42 = vshrl.u32 %v2456_v38, 23  ;;  %v2611_v18 = vmul.u32 %v2604_v32, %v2595_v28  ;;  %v10352_v32 = vld [vmem:[%s8695_s14 + $0x88] sm:$0xff] }
 0x26d   : > { %v2318_v4 = vsel %vm7236_vm13, 0, %v7235_v14  ;;  %vm2613_vm0 = vc.u32 %v10327_v19, %v10332_v63  ;;  %v2614_v40 = vadd.s32 1, %v10333_v52  ;;  %v2453_v5 = vand.u32 2147483647, %v10305_v6 }
 0x26e   : > { %v2319_v45 = vsub.s32 32, %v2318_v4  ;;  %v2320_v23 = vshll.u32 %v10293_v43, %v2318_v4  ;;  %v2323_v22 = vsub.s32 4294967266, %v2318_v4  ;;  %v7241_v36 = vadd.s32 4294967169, %v2457_v42 }
 0x26f   : > { %v8359_v44 = vpop.eup %8358  ;;  %v2334_v46 = vsel %vm2249_vm8, %v2333_v8, %v10274_v20  ;;  %vm4742_vm1 = vcmp.eq.s32.totalorder %v9188_v21, %v4682_v34  ;;  %v2615_v29 = vsel %vm2613_vm0, %v2614_v40, %v10333_v52  ;;  %v10355_v49 = vmul.f32 0.28559932, %v10352_v32 }
 0x270   : > { %v2321_v51 = vshrl.u32 %v2303_v26, %v2319_v45  ;;  %v2324_v12 = vadd.s32 127, %v2323_v22  ;;  %v8361_v43 = vpop.eup %8360  ;;  %v2449_v37 = vxor.u32 2147483648, %v8359_v44  ;;  %v2463_v2 = vadd.s32 1, %v7241_v36 }
 0x271   : > { %v2446_v53 = vxor.u32 2147483648, %v8361_v43  ;;  %v2616_v48 = vadd.s32 %v2615_v29, %v2611_v18  ;;  %v2336_v20 = vsel %vm10322_vm9, 0, %v2334_v46  ;;  %v2460_v11 = vand.u32 8388607, %v2453_v5 }
 0x272   : > { %v2322_v16 = vor.u32 %v2321_v51, %v2320_v23  ;;  %v2325_v24 = vshll.u32 %v2324_v12, 23  ;;  %v2450_v50 = vsel %vm2448_vm15, %v2449_v37, %v8361_v43  ;;  %vm2464_vm2 = vcmp.gt.s32.totalorder %v2463_v2, 0 }
 0x273   : > { %v2447_v60 = vsel %vm2445_vm14, %v8359_v44, %v2446_v53  ;;  %v2617_v7 = vadd.s32 536870912, %v2616_v48  ;;  %v2465_v10 = vsel %vm2464_vm2, %v2463_v2, 0  ;;  %v2765_v14 = vand.u32 2139095040, %v10355_v49 }
 0x274   : > { %v2326_v41 = vor.u32 4788187, %v2325_v24  ;;  %v2329_v0 = vcvt.s32.f32 %v2322_v16  ;;  %v2451_v3 = vsel %vm2444_vm12, %v2447_v60, %v2450_v50  ;;  %vm4352_vm3 = vcmp.lt.f32.partialorder %v10000_v35, 5.5 }
 0x275   : > { %v2452_v1 = vsel %vm2442_vm10, nan, %v2451_v3  ;;  %v10371_v52 = vshrl.u32 %v2617_v7, 30  ;;  %v10373_v26 = vand.u32 3, %v2336_v20  ;;  %v10378_v8 = vsel %vm4742_vm1, 1.0, %v8593_v17 }
 0x276   : > { %v2327_v28 = vand.u32 2147483647, %v2326_v41  ;;  %v4320_v38 = vmul.f32 %v2452_v1, %v2452_v1  ;;  %v2467_v31 = vand.u32 31, %v2465_v10  ;;  %v10381_v42 = vadd.s32 %v10332_v63, %v10327_v19 }
 0x277   : > { %v2619_v54 = vshll.u32 %v10371_v52, 30  ;;  %v2461_v45 = vor.u32 8388608, %v2460_v11  ;;  %v2762_v22 = vand.u32 2147483647, %v10355_v49  ;;  %v2766_v18 = vshrl.u32 %v2765_v14, 23 }
 0x278   : > { %v2330_v4 = vmul.f32 %v2329_v0, %v2327_v28  ;;  %v4384_v35 = vsel %vm4352_vm3, %v4320_v38, 0.0  ;;  %v2468_v23 = vsub.s32 32, %v2467_v31  ;;  %v2470_v34 = vshll.u32 %v13423_v15, %v2467_v31 }
 0x279   : > { %4470 = vperm.xlu1 %8209, %v4384_v35   ;;  %v10385_v36 = vsub.s32 %v2616_v48, %v2619_v54  ;;  %v2473_v44 = vshll.u32 %v13424_v9, %v2467_v31  ;;  %v2466_v51 = vshrl.u32 %v2465_v10, 5  ;;  %v2476_v12 = vshll.u32 %v13425_v59, %v2467_v31 }
 0x27a   : > { %v2331_v40 = vxor.u32 2147483648, %v2330_v4  ;;  %v2471_v19 = vshrl.u32 %v13424_v9, %v2468_v23  ;;  %v2474_v63 = vshrl.u32 %v13425_v59, %v2468_v23  ;;  %v2477_v37 = vshrl.u32 %v13426_v47, %v2468_v23 }
 0x27b   : > { %v2622_v43 = vsub.s32 0, %v10385_v36  ;;  %v10396_v29 = vshll.u32 %v2461_v45, 8  ;;  %v2469_v53 = vshrl.u32 %v13423_v15, %v2468_v23  ;;  %v2479_v16 = vshll.u32 %v13426_v47, %v2467_v31 }
 0x27c   : > { %v2332_v46 = vsel %vm2249_vm8, %v2331_v40, %v2330_v4  ;;  %v7253_v24 = vadd.s32 4294967169, %v2766_v18  ;;  %v2472_v50 = vor.u32 %v2471_v19, %v2470_v34  ;;  %v2475_v20 = vor.u32 %v2474_v63, %v2473_v44 }
 0x27d   : > { %v2335_v2 = vsel %vm10322_vm9, %v10128_v39, %v2332_v46  ;;  %v7246_v48 = vmin.u32 %v2622_v43, %v10385_v36  ;;  %v2478_v11 = vor.u32 %v2477_v37, %v2476_v12  ;;  %v2480_v60 = vshrl.u32 %v8591_v58, %v2468_v23  ;;  %v4679_v43 = vpop.permute.xlu0 %4678 }
 0x27e   : > { %8362 = vcosq.f32 %v2335_v2  ;;  %vm2485_vm4 = vcmp.lt.s32.totalorder %v2466_v51, 1  ;;  %v2482_v0 = vshll.u32 %v8591_v58, %v2467_v31  ;;  %v2483_v57 = vshrl.u32 %v13440_v13, %v2468_v23 }
 0x27f   : > { %8364 = vsinq.f32 %v2335_v2  ;;  %v2624_v41 = vclz %v7246_v48  ;;  %vm2486_vm5 = vcmp.lt.s32.totalorder %v2466_v51, 2  ;;  %v2481_v7 = vor.u32 %v2480_v60, %v2479_v16 }
 0x280   : > { %vm2487_vm6 = vcmp.lt.s32.totalorder %v2466_v51, 3  ;;  %vm2488_vm7 = vcmp.lt.s32.totalorder %v2466_v51, 4  ;;  %v2489_v3 = vsel %vm2485_vm4, %v2469_v53, %v2472_v50  ;;  %v2484_v14 = vor.u32 %v2483_v57, %v2482_v0 }
 0x281   : > { %v7247_v10 = vadd.s32 4294967294, %v2624_v41  ;;  %v2490_v1 = vsel %vm2488_vm7, %v2478_v11, 2102212464  ;;  %v2493_v28 = vsel %vm2485_vm4, %v2472_v50, %v2475_v20  ;;  %v2494_v4 = vsel %vm2488_vm7, %v2481_v7, 920167782 }
 0x282   : > { %v2491_v38 = vsel %vm2487_vm6, %v2475_v20, %v2490_v1  ;;  %v2497_v54 = vsel %vm2485_vm4, %v2475_v20, %v2478_v11  ;;  %v10410_v45 = vand.u32 8388607, %v2762_v22  ;;  %vm2558_vm8 = vcmp.lt.s32.totalorder %v10168_v30, 0 }
 0x283   : > { %vm7248_vm9 = vcmp.lt.s32.totalorder %v7247_v10, 0  ;;  %v2495_v31 = vsel %vm2487_vm6, %v2478_v11, %v2494_v4  ;;  %v2498_v35 = vsel %vm2488_vm7, %v2484_v14, 1326507024  ;;  %v2772_v23 = vadd.s32 1, %v7253_v24 }
 0x284   : > { %vm2341_vm10 = vcmp.lt.s32.totalorder %v10373_v26, 2  ;;  %v2627_v18 = vsel %vm7248_vm9, 0, %v7247_v10  ;;  %v2492_v40 = vsel %vm2486_vm5, %v2489_v3, %v2491_v38  ;;  %v2496_v34 = vsel %vm2486_vm5, %v2493_v28, %v2495_v31 }
 0x285   : > { %v2499_v44 = vsel %vm2487_vm6, %v2481_v7, %v2498_v35  ;;  %vm2339_vm12 = vweird.f32 %v10128_v39  ;;  %v2628_v19 = vsub.s32 32, %v2627_v18  ;;  %v2629_v63 = vshll.u32 %v10385_v36, %v2627_v18 }
 0x286   : > { %v2632_v12 = vsub.s32 4294967266, %v2627_v18  ;;  %v2500_v46 = vsel %vm2486_vm5, %v2497_v54, %v2499_v44  ;;  %v10426_v53 = vmul.u32.u64.low %v10396_v29, %v2496_v34  ;;  %v10427_v16 = vmul.u32.u64.high %v10396_v29, %v2496_v34, %v10426_v53 }
 0x287   : > { %v10422_v37 = vmul.u32.u64.low %v10396_v29, %v2500_v46  ;;  %v10423_v2 = vmul.u32.u64.high %v10396_v29, %v2500_v46, %v10422_v37  ;;  %vm2342_vm13 = vcmp.eq.s32.totalorder %v10373_v26, 0  ;;  %v2630_v24 = vshrl.u32 %v10381_v42, %v2628_v19 }
 0x288   : > { %v2633_v48 = vadd.s32 127, %v2632_v12  ;;  %vm2773_vm14 = vcmp.gt.s32.totalorder %v2772_v23, 0  ;;  %vm2345_vm15 = vcmp.eq.s32.totalorder %v10373_v26, 2  ;;  %vm4351_vm0 = vcmp.lt.f32.partialorder %v10125_v61, 5.5 }
 0x289   : > { %v2642_v36 = vsub.s32 4, %v10371_v52  ;;  %v2774_v51 = vsel %vm2773_vm14, %v2772_v23, 0  ;;  %vm4741_vm1 = vcmp.eq.s32.totalorder %v9188_v21, %v4679_v43  ;;  %vm10438_vm2 = vcmp.le.f32.partialorder %v2556_v25, 0.7853982 }
 0x28a   : > { %v2631_v20 = vor.u32 %v2630_v24, %v2629_v63  ;;  %v2634_v11 = vshll.u32 %v2633_v48, 23  ;;  %v2508_v42 = vmul.u32 %v10396_v29, %v2492_v40  ;;  %v2776_v60 = vand.u32 31, %v2774_v51 }
 0x28b   : > { %v8363_v41 = vpop.eup %8362  ;;  %vm2510_vm3 = vc.u32 %v10423_v2, %v10426_v53  ;;  %v2511_v0 = vadd.s32 1, %v10427_v16  ;;  %v2770_v57 = vor.u32 8388608, %v10410_v45  ;;  %v7329_v7 = vsel %vm4741_vm1, 1.0, %v8593_v17 }
 0x28c   : > { %v8365_v3 = vpop.eup %8364  ;;  %v2346_v25 = vxor.u32 2147483648, %v8363_v41  ;;  %v2635_v10 = vor.u32 4788187, %v2634_v11  ;;  %v2638_v14 = vcvt.s32.f32 %v2631_v20  ;;  %v2777_v1 = vsub.s32 32, %v2776_v60  ;;  %7796 = vmatprep.mubr.msk.f32.mxu0 %vm4821_vm11, %v7329_v7 }
 0x28d   : > { %v2343_v28 = vxor.u32 2147483648, %v8365_v3  ;;  %v2643_v29 = vsel %vm2558_vm8, %v2642_v36, %v10371_v52  ;;  %v2512_v38 = vsel %vm2510_vm3, %v2511_v0, %v10427_v16  ;;  %v2779_v4 = vshll.u32 %v13423_v15, %v2776_v60  ;;  %7797 = vmatmul.mubr.msk.f32.gmra.mxu0 %vm4821_vm11, %v10378_v8 }
 0x28e   : > { %v2347_v54 = vsel %vm2345_vm15, %v2346_v25, %v8365_v3  ;;  %v2636_v45 = vand.u32 2147483647, %v2635_v10  ;;  %v2513_v31 = vadd.s32 %v2512_v38, %v2508_v42  ;;  %v2782_v35 = vshll.u32 %v13424_v9, %v2776_v60 }
 0x28f   : > { %v2344_v23 = vsel %vm2342_vm13, %v8363_v41, %v2343_v28  ;;  %v2780_v18 = vshrl.u32 %v13424_v9, %v2777_v1  ;;  %v2783_v52 = vshrl.u32 %v13425_v59, %v2777_v1  ;;  %v2785_v40 = vshll.u32 %v13425_v59, %v2776_v60 }
 0x290   : > { %v2348_v34 = vsel %vm2341_vm10, %v2344_v23, %v2347_v54  ;;  %v2639_v8 = vmul.f32 %v2638_v14, %v2636_v45  ;;  %v2514_v44 = vadd.s32 536870912, %v2513_v31  ;;  %v2786_v19 = vshrl.u32 %v13426_v47, %v2777_v1 }
 0x291   : > { %v2349_v63 = vsel %vm2339_vm12, nan, %v2348_v34  ;;  %v2775_v12 = vshrl.u32 %v2774_v51, 5  ;;  %v2778_v46 = vshrl.u32 %v13423_v15, %v2777_v1  ;;  %v2788_v43 = vshll.u32 %v13426_v47, %v2776_v60 }
 0x292   : > { %v4319_v37 = vmul.f32 %v2349_v63, %v2349_v63  ;;  %v2640_v16 = vxor.u32 2147483648, %v2639_v8  ;;  %v10471_v24 = vshrl.u32 %v2514_v44, 30  ;;  %v2781_v48 = vor.u32 %v2780_v18, %v2779_v4  ;;  %v10497_v63 = vld [vmem:[%s8695_s14 + $0x80] sm:$0xff] }
 0x293   : > { %v2784_v36 = vor.u32 %v2783_v52, %v2782_v35  ;;  %v2789_v26 = vshrl.u32 %v8591_v58, %v2777_v1  ;;  %v2791_v20 = vshll.u32 %v8591_v58, %v2776_v60  ;;  %v2792_v11 = vshrl.u32 %v13440_v13, %v2777_v1 }
 0x294   : > { %v4383_v39 = vsel %vm4351_vm0, %v4319_v37, 0.0  ;;  %v2641_v51 = vsel %vm2558_vm8, %v2640_v16, %v2639_v8  ;;  %v2516_v42 = vshll.u32 %v10471_v24, 30  ;;  %v2787_v41 = vor.u32 %v2786_v19, %v2785_v40 }
 0x295   : > { %4465 = vperm.xlu0 %8210, %v4383_v39   ;;  %v2644_v0 = vsel %vm10438_vm2, %v10168_v30, %v2641_v51  ;;  %v2790_v7 = vor.u32 %v2789_v26, %v2788_v43  ;;  %v2793_v3 = vor.u32 %v2792_v11, %v2791_v20  ;;  %vm2794_vm4 = vcmp.lt.s32.totalorder %v2775_v12, 1 }
 0x296   : > { %v2645_v60 = vsel %vm10438_vm2, 0, %v2643_v29  ;;  %8366 = vcosq.f32 %v2644_v0  ;;  %v2517_v61 = vsub.s32 %v2513_v31, %v2516_v42  ;;  %v2810_v25 = vshll.u32 %v2770_v57, 8 }
 0x297   : > { %8368 = vsinq.f32 %v2644_v0  ;;  %vm2795_vm5 = vcmp.lt.s32.totalorder %v2775_v12, 2  ;;  %vm2796_vm6 = vcmp.lt.s32.totalorder %v2775_v12, 3  ;;  %vm2797_vm7 = vcmp.lt.s32.totalorder %v2775_v12, 4 }
 0x298   : > { %v2519_v10 = vsub.s32 0, %v2517_v61  ;;  %v2798_v14 = vsel %vm2794_vm4, %v2778_v46, %v2781_v48  ;;  %v2799_v1 = vsel %vm2797_vm7, %v2787_v41, 2102212464  ;;  %v2802_v28 = vsel %vm2794_vm4, %v2781_v48, %v2784_v36 }
 0x299   : > { %v2800_v38 = vsel %vm2796_vm6, %v2784_v36, %v2799_v1  ;;  %v2803_v4 = vsel %vm2797_vm7, %v2790_v7, 920167782  ;;  %v2806_v54 = vsel %vm2794_vm4, %v2784_v36, %v2787_v41  ;;  %v2807_v45 = vsel %vm2797_vm7, %v2793_v3, 1326507024 }
 0x29a   : > { %v7242_v35 = vmin.u32 %v2519_v10, %v2517_v61  ;;  %v2649_v23 = vand.u32 3, %v2645_v60  ;;  %v2804_v50 = vsel %vm2796_vm6, %v2787_v41, %v2803_v4  ;;  %v2808_v29 = vsel %vm2796_vm6, %v2790_v7, %v2807_v45  ;;  %v10515_v10 = vld [vmem:[%s8695_s14 + $0x98] sm:$0xff] }
 0x29b   : > { %v2801_v57 = vsel %vm2795_vm5, %v2798_v14, %v2800_v38  ;;  %v2805_v31 = vsel %vm2795_vm5, %v2802_v28, %v2804_v50  ;;  %v2809_v52 = vsel %vm2795_vm5, %v2806_v54, %v2808_v29  ;;  %v10500_v46 = vmul.f32 0.28559932, %v10497_v63 }
 0x29c   : > { %v2521_v18 = vclz %v7242_v35  ;;  %v10489_v40 = vmul.u32.u64.low %v2810_v25, %v2809_v52  ;;  %v10490_v34 = vmul.u32.u64.high %v2810_v25, %v2809_v52, %v10489_v40  ;;  %vm2648_vm8 = vweird.f32 %v10168_v30 }
 0x29d   : > { %v10492_v8 = vmul.u32.u64.low %v2810_v25, %v2805_v31  ;;  %v10493_v44 = vmul.u32.u64.high %v2810_v25, %v2805_v31, %v10492_v8  ;;  %vm2455_vm9 = vcmp.lt.s32.totalorder %v10305_v6, 0  ;;  %v2509_v12 = vadd.s32 %v10426_v53, %v10423_v2 }
 0x29e   : > { %v7243_v19 = vadd.s32 4294967294, %v2521_v18  ;;  %v2817_v43 = vmul.u32 %v2810_v25, %v2801_v57  ;;  %v2662_v37 = vand.u32 2139095040, %v10500_v46  ;;  %vm2651_vm12 = vcmp.eq.s32.totalorder %v2649_v23, 0 }
 0x29f   : > { %vm4354_vm13 = vcmp.lt.f32.partialorder %v10165_v56, 5.5  ;;  %vm2819_vm14 = vc.u32 %v10490_v34, %v10492_v8  ;;  %v2820_v48 = vadd.s32 1, %v10493_v44  ;;  %vm2654_vm15 = vcmp.eq.s32.totalorder %v2649_v23, 2 }
 0x2a0   : > { %vm7244_vm10 = vcmp.lt.s32.totalorder %v7243_v19, 0  ;;  %v2539_v2 = vsub.s32 4, %v10471_v24  ;;  %v2659_v39 = vand.u32 2147483647, %v10500_v46  ;;  %v2663_v51 = vshrl.u32 %v2662_v37, 23 }
 0x2a1   : > { %v2524_v16 = vsel %vm7244_vm10, 0, %v7243_v19  ;;  %v2821_v53 = vsel %vm2819_vm14, %v2820_v48, %v10493_v44  ;;  %vm2650_vm0 = vcmp.lt.s32.totalorder %v2649_v23, 2  ;;  %vm10533_vm1 = vcmp.le.f32.partialorder %v2453_v5, 0.7853982 }
 0x2a2   : > { %v2525_v36 = vsub.s32 32, %v2524_v16  ;;  %v2526_v26 = vshll.u32 %v2517_v61, %v2524_v16  ;;  %v2529_v20 = vsub.s32 4294967266, %v2524_v16  ;;  %v2822_v3 = vadd.s32 %v2821_v53, %v2817_v43 }
 0x2a3   : > { %v8367_v11 = vpop.eup %8366  ;;  %v7249_v25 = vadd.s32 4294967169, %v2663_v51  ;;  %v10518_v61 = vmul.f32 0.28559932, %v10515_v10  ;;  %v2540_v54 = vsel %vm2455_vm9, %v2539_v2, %v10471_v24  ;;  %v2666_v45 = vand.u32 8388607, %v2659_v39 }
 0x2a4   : > { %v8369_v42 = vpop.eup %8368  ;;  %v2655_v41 = vxor.u32 2147483648, %v8367_v11  ;;  %v2527_v0 = vshrl.u32 %v2509_v12, %v2525_v36  ;;  %v2530_v7 = vadd.s32 127, %v2529_v20  ;;  %v2823_v38 = vadd.s32 536870912, %v2822_v3 }
 0x2a5   : > { %v2652_v60 = vxor.u32 2147483648, %v8369_v42  ;;  %v2669_v35 = vadd.s32 1, %v7249_v25  ;;  %v2971_v24 = vand.u32 2139095040, %v10518_v61  ;;  %v2542_v44 = vsel %vm10533_vm1, 0, %v2540_v54 }
 0x2a6   : > { %v2656_v14 = vsel %vm2654_vm15, %v2655_v41, %v8369_v42  ;;  %v2528_v1 = vor.u32 %v2527_v0, %v2526_v26  ;;  %v2531_v28 = vshll.u32 %v2530_v7, 23  ;;  %v10527_v57 = vshrl.u32 %v2823_v38, 30 }
 0x2a7   : > { %v2653_v4 = vsel %vm2651_vm12, %v8367_v11, %v2652_v60  ;;  %vm2670_vm2 = vcmp.gt.s32.totalorder %v2669_v35, 0  ;;  %v2667_v12 = vor.u32 8388608, %v2666_v45  ;;  %v10545_v16 = vand.u32 3, %v2542_v44  ;;  %v10566_v60 = vpop.permute.xlu1 %4687 }
 0x2a8   : > { %v2657_v50 = vsel %vm2650_vm0, %v2653_v4, %v2656_v14  ;;  %v2532_v29 = vor.u32 4788187, %v2531_v28  ;;  %v2535_v18 = vcvt.s32.f32 %v2528_v1  ;;  %v2825_v19 = vshll.u32 %v10527_v57, 30 }
 0x2a9   : > { %v2658_v31 = vsel %vm2648_vm8, nan, %v2657_v50  ;;  %v2671_v43 = vsel %vm2670_vm2, %v2669_v35, 0  ;;  %v2972_v36 = vshrl.u32 %v2971_v24, 23  ;;  %v2818_v20 = vadd.s32 %v10492_v8, %v10490_v34  ;;  %v10561_v8 = vpop.permute.xlu0 %4684 }
 0x2aa   : > { %v4322_v52 = vmul.f32 %v2658_v31, %v2658_v31  ;;  %v2533_v40 = vand.u32 2147483647, %v2532_v29  ;;  %v10543_v5 = vsub.s32 %v2822_v3, %v2825_v19  ;;  %v2673_v48 = vand.u32 31, %v2671_v43 }
 0x2ab   : > { %v2968_v2 = vand.u32 2147483647, %v10518_v61  ;;  %v2848_v53 = vsub.s32 4, %v10527_v57  ;;  %v10552_v56 = vshrl.u32 %v2671_v43, 5  ;;  %v10554_v42 = vshll.u32 %v2667_v12, 8 }
 0x2ac   : > { %v4386_v30 = vsel %vm4354_vm13, %v4322_v52, 0.0  ;;  %v2536_v37 = vmul.f32 %v2535_v18, %v2533_v40  ;;  %v2828_v11 = vsub.s32 0, %v10543_v5  ;;  %v2674_v51 = vsub.s32 32, %v2673_v48 }
 0x2ad   : > { %4480 = vperm.xlu1 %8209, %v4386_v30   ;;  %v2676_v7 = vshll.u32 %v13423_v15, %v2673_v48  ;;  %v2679_v34 = vshll.u32 %v13424_v9, %v2673_v48  ;;  %v2682_v14 = vshll.u32 %v13425_v59, %v2673_v48  ;;  %v7261_v1 = vadd.s32 4294967169, %v2972_v36 }
 0x2ae   : > { %v2537_v26 = vxor.u32 2147483648, %v2536_v37  ;;  %v7254_v0 = vmin.u32 %v2828_v11, %v10543_v5  ;;  %v2677_v25 = vshrl.u32 %v13424_v9, %v2674_v51  ;;  %v2680_v38 = vshrl.u32 %v13425_v59, %v2674_v51 }
 0x2af   : > { %v2683_v4 = vshrl.u32 %v13426_v47, %v2674_v51  ;;  %v2675_v54 = vshrl.u32 %v13423_v15, %v2674_v51  ;;  %v2685_v45 = vshll.u32 %v13426_v47, %v2673_v48  ;;  %v2686_v35 = vshrl.u32 %v8591_v58, %v2674_v51 }
 0x2b0   : > { %v2538_v41 = vsel %vm2455_vm9, %v2537_v26, %v2536_v37  ;;  %v2830_v28 = vclz %v7254_v0  ;;  %vm4743_vm3 = vcmp.eq.s32.totalorder %v9188_v21, %v10561_v8  ;;  %vm4744_vm4 = vcmp.eq.s32.totalorder %v9188_v21, %v10566_v60 }
 0x2b1   : > { %v2541_v3 = vsel %vm10533_vm1, %v10305_v6, %v2538_v41  ;;  %v2678_v29 = vor.u32 %v2677_v25, %v2676_v7  ;;  %v2681_v18 = vor.u32 %v2680_v38, %v2679_v34  ;;  %v2688_v31 = vshll.u32 %v8591_v58, %v2673_v48 }
 0x2b2   : > { %8370 = vcosq.f32 %v2541_v3  ;;  %v7255_v50 = vadd.s32 4294967294, %v2830_v28  ;;  %v2684_v23 = vor.u32 %v2683_v4, %v2682_v14  ;;  %v2687_v24 = vor.u32 %v2686_v35, %v2685_v45 }
 0x2b3   : > { %8372 = vsinq.f32 %v2541_v3  ;;  %v2689_v52 = vshrl.u32 %v13440_v13, %v2674_v51  ;;  %vm2691_vm5 = vcmp.lt.s32.totalorder %v10552_v56, 1  ;;  %vm2764_vm6 = vcmp.lt.s32.totalorder %v10355_v49, 0 }
 0x2b4   : > { %vm7256_vm7 = vcmp.lt.s32.totalorder %v7255_v50, 0  ;;  %vm2692_vm8 = vcmp.lt.s32.totalorder %v10552_v56, 2  ;;  %vm2693_vm9 = vcmp.lt.s32.totalorder %v10552_v56, 3  ;;  %vm2694_vm10 = vcmp.lt.s32.totalorder %v10552_v56, 4 }
 0x2b5   : > { %v2833_v40 = vsel %vm7256_vm7, 0, %v7255_v50  ;;  %v2690_v44 = vor.u32 %v2689_v52, %v2688_v31  ;;  %v2695_v19 = vsel %vm2691_vm5, %v2675_v54, %v2678_v29  ;;  %v2696_v12 = vsel %vm2694_vm10, %v2684_v23, 2102212464 }
 0x2b6   : > { %vm2548_vm12 = vcmp.eq.s32.totalorder %v10545_v16, 0  ;;  %v2834_v43 = vsub.s32 32, %v2833_v40  ;;  %v2835_v30 = vshll.u32 %v10543_v5, %v2833_v40  ;;  %v2838_v37 = vsub.s32 4294967266, %v2833_v40 }
 0x2b7   : > { %v2699_v48 = vsel %vm2691_vm5, %v2678_v29, %v2681_v18  ;;  %vm2547_vm13 = vcmp.lt.s32.totalorder %v10545_v16, 2  ;;  %v2697_v36 = vsel %vm2693_vm9, %v2681_v18, %v2696_v12  ;;  %v2700_v26 = vsel %vm2694_vm10, %v2687_v24, 920167782 }
 0x2b8   : > { %v2703_v11 = vsel %vm2691_vm5, %v2681_v18, %v2684_v23  ;;  %v2704_v51 = vsel %vm2694_vm10, %v2690_v44, 1326507024  ;;  %vm2545_vm14 = vweird.f32 %v10305_v6  ;;  %v2836_v41 = vshrl.u32 %v2818_v20, %v2834_v43 }
 0x2b9   : > { %v2839_v0 = vadd.s32 127, %v2838_v37  ;;  %v2701_v5 = vsel %vm2693_vm9, %v2684_v23, %v2700_v26  ;;  %v2705_v7 = vsel %vm2693_vm9, %v2687_v24, %v2704_v51  ;;  %v10608_v25 = vand.u32 8388607, %v2968_v2 }
 0x2ba   : > { %v2702_v34 = vsel %vm2692_vm8, %v2699_v48, %v2701_v5  ;;  %v2706_v3 = vsel %vm2692_vm8, %v2703_v11, %v2705_v7  ;;  %v2978_v14 = vadd.s32 1, %v7261_v1  ;;  %vm10612_vm15 = vcmp.le.f32.partialorder %v2762_v22, 0.7853982 }
 0x2bb   : > { %v2837_v28 = vor.u32 %v2836_v41, %v2835_v30  ;;  %v2840_v38 = vshll.u32 %v2839_v0, 23  ;;  %v10617_v4 = vmul.u32.u64.low %v10554_v42, %v2706_v3  ;;  %v10618_v54 = vmul.u32.u64.high %v10554_v42, %v2706_v3, %v10617_v4 }
 0x2bc   : > { %vm4353_vm0 = vcmp.lt.f32.partialorder %v10302_v33, 5.5  ;;  %v2698_v45 = vsel %vm2692_vm8, %v2695_v19, %v2697_v36  ;;  %v10624_v35 = vmul.u32.u64.low %v10554_v42, %v2702_v34  ;;  %v10625_v1 = vmul.u32.u64.high %v10554_v42, %v2702_v34, %v10624_v35 }
 0x2bd   : > { %vm2979_vm1 = vcmp.gt.s32.totalorder %v2978_v14, 0  ;;  %v2841_v22 = vor.u32 4788187, %v2840_v38  ;;  %v2844_v50 = vcvt.s32.f32 %v2837_v28  ;;  %v7331_v18 = vsel %vm4743_vm3, 1.0, %v8593_v17 }
 0x2be   : > { %v2980_v29 = vsel %vm2979_vm1, %v2978_v14, 0  ;;  %vm2551_vm2 = vcmp.eq.s32.totalorder %v10545_v16, 2  ;;  %v10638_v56 = vsel %vm2764_vm6, %v2848_v53, %v10527_v57  ;;  %v7332_v23 = vsel %vm4744_vm4, 1.0, %v8593_v17  ;;  %7799 = vmatprep.mubr.msk.f32.mxu0 %vm4821_vm11, %v7331_v18 }
 0x2bf   : > { %v8371_v31 = vpop.eup %8370  ;;  %v2982_v24 = vand.u32 31, %v2980_v29  ;;  %v2842_v40 = vand.u32 2147483647, %v2841_v22  ;;  %v2714_v44 = vmul.u32 %v10554_v42, %v2698_v45  ;;  %vm2716_vm3 = vc.u32 %v10618_v54, %v10624_v35  ;;  %7800 = vmatmul.mubr.msk.f32.gmra.mxu0 %vm4821_vm11, %v7332_v23 }
 0x2c0   : > { %v8373_v8 = vpop.eup %8372  ;;  %v2552_v52 = vxor.u32 2147483648, %v8371_v31  ;;  %v2717_v53 = vadd.s32 1, %v10625_v1  ;;  %v2976_v19 = vor.u32 8388608, %v10608_v25  ;;  %v2981_v30 = vshrl.u32 %v2980_v29, 5 }
 0x2c1   : > { %v2549_v57 = vxor.u32 2147483648, %v8373_v8  ;;  %v2983_v60 = vsub.s32 32, %v2982_v24  ;;  %v2845_v43 = vmul.f32 %v2844_v50, %v2842_v40  ;;  %v2985_v37 = vshll.u32 %v13423_v15, %v2982_v24 }
 0x2c2   : > { %v2553_v12 = vsel %vm2551_vm2, %v2552_v52, %v8373_v8  ;;  %v2718_v48 = vsel %vm2716_vm3, %v2717_v53, %v10625_v1  ;;  %v2988_v26 = vshll.u32 %v13424_v9, %v2982_v24  ;;  %v2991_v7 = vshll.u32 %v13425_v59, %v2982_v24 }
 0x2c3   : > { %v2550_v42 = vsel %vm2548_vm12, %v8371_v31, %v2549_v57  ;;  %v2986_v36 = vshrl.u32 %v13424_v9, %v2983_v60  ;;  %v2846_v51 = vxor.u32 2147483648, %v2845_v43  ;;  %v2719_v41 = vadd.s32 %v2718_v48, %v2714_v44 }
 0x2c4   : > { %v2554_v11 = vsel %vm2547_vm13, %v2550_v42, %v2553_v12  ;;  %v2989_v0 = vshrl.u32 %v13425_v59, %v2983_v60  ;;  %v2992_v34 = vshrl.u32 %v13426_v47, %v2983_v60  ;;  %v2994_v3 = vshll.u32 %v13426_v47, %v2982_v24 }
 0x2c5   : > { %v2555_v5 = vsel %vm2545_vm14, nan, %v2554_v11  ;;  %v2847_v14 = vsel %vm2764_vm6, %v2846_v51, %v2845_v43  ;;  %v2720_v28 = vadd.s32 536870912, %v2719_v41  ;;  %v2987_v16 = vor.u32 %v2986_v36, %v2985_v37  ;;  %v10689_v43 = vld [vmem:[%s8695_s14 + $0x90] sm:$0xff] }
 0x2c6   : > { %v4321_v25 = vmul.f32 %v2555_v5, %v2555_v5  ;;  %v2850_v38 = vsel %vm10612_vm15, %v10355_v49, %v2847_v14  ;;  %v2990_v4 = vor.u32 %v2989_v0, %v2988_v26  ;;  %v2995_v6 = vshrl.u32 %v8591_v58, %v2983_v60 }
 0x2c7   : > { %v2997_v45 = vshll.u32 %v8591_v58, %v2982_v24  ;;  %8374 = vcosq.f32 %v2850_v38  ;;  %v10676_v22 = vshrl.u32 %v2720_v28, 30  ;;  %v2998_v50 = vshrl.u32 %v13440_v13, %v2983_v60 }
 0x2c8   : > { %v4385_v1 = vsel %vm4353_vm0, %v4321_v25, 0.0  ;;  %8376 = vsinq.f32 %v2850_v38  ;;  %v2993_v29 = vor.u32 %v2992_v34, %v2991_v7  ;;  %v2996_v18 = vor.u32 %v2995_v6, %v2994_v3 }
 0x2c9   : > { %4475 = vperm.xlu0 %8210, %v4385_v1   ;;  %vm3000_vm4 = vcmp.lt.s32.totalorder %v2981_v30, 1  ;;  %v2722_v31 = vshll.u32 %v10676_v22, 30  ;;  %v2984_v23 = vshrl.u32 %v13423_v15, %v2983_v60  ;;  %v2999_v8 = vor.u32 %v2998_v50, %v2997_v45 }
 0x2ca   : > { %vm3002_vm5 = vcmp.lt.s32.totalorder %v2981_v30, 3  ;;  %vm3001_vm6 = vcmp.lt.s32.totalorder %v2981_v30, 2  ;;  %vm3003_vm7 = vcmp.lt.s32.totalorder %v2981_v30, 4  ;;  %v3008_v33 = vsel %vm3000_vm4, %v2987_v16, %v2990_v4 }
 0x2cb   : > { %v3016_v24 = vshll.u32 %v2976_v19, 8  ;;  %v10682_v52 = vsub.s32 %v2719_v41, %v2722_v31  ;;  %v3005_v40 = vsel %vm3003_vm7, %v2993_v29, 2102212464  ;;  %v3009_v44 = vsel %vm3003_vm7, %v2996_v18, 920167782 }
 0x2cc   : > { %v2851_v57 = vsel %vm10612_vm15, 0, %v10638_v56  ;;  %v3010_v53 = vsel %vm3002_vm5, %v2993_v29, %v3009_v44  ;;  %v3013_v12 = vsel %vm3003_vm7, %v2999_v8, 1326507024  ;;  %v10692_v60 = vmul.f32 0.28559932, %v10689_v43 }
 0x2cd   : > { %v2725_v37 = vsub.s32 0, %v10682_v52  ;;  %v3004_v19 = vsel %vm3000_vm4, %v2984_v23, %v2987_v16  ;;  %v3011_v42 = vsel %vm3001_vm6, %v3008_v33, %v3010_v53  ;;  %v3012_v48 = vsel %vm3000_vm4, %v2990_v4, %v2993_v29 }
 0x2ce   : > { %v3006_v36 = vsel %vm3002_vm5, %v2990_v4, %v3005_v40  ;;  %v3014_v20 = vsel %vm3002_vm5, %v2996_v18, %v3013_v12  ;;  %v10700_v56 = vmul.u32.u64.low %v3016_v24, %v3011_v42  ;;  %v10701_v26 = vmul.u32.u64.high %v3016_v24, %v3011_v42, %v10700_v56 }
 0x2cf   : > { %v2855_v11 = vand.u32 3, %v2851_v57  ;;  %v7250_v51 = vmin.u32 %v2725_v37, %v10682_v52  ;;  %v3015_v41 = vsel %vm3001_vm6, %v3012_v48, %v3014_v20  ;;  %v2868_v0 = vand.u32 2139095040, %v10692_v60 }
 0x2d0   : > { %v3007_v7 = vsel %vm3001_vm6, %v3004_v19, %v3006_v36  ;;  %v10708_v34 = vmul.u32.u64.low %v3016_v24, %v3015_v41  ;;  %v10709_v3 = vmul.u32.u64.high %v3016_v24, %v3015_v41, %v10708_v34  ;;  %vm2854_vm8 = vweird.f32 %v10355_v49 }
 0x2d1   : > { %v2727_v5 = vclz %v7250_v51  ;;  %v3026_v25 = vadd.s32 1, %v10701_v26  ;;  %v2869_v14 = vshrl.u32 %v2868_v0, 23  ;;  %vm2856_vm9 = vcmp.lt.s32.totalorder %v2855_v11, 2 }
 0x2d2   : > { %vm2857_vm10 = vcmp.eq.s32.totalorder %v2855_v11, 0  ;;  %vm2860_vm12 = vcmp.eq.s32.totalorder %v2855_v11, 2  ;;  %v2715_v38 = vadd.s32 %v10624_v35, %v10618_v54  ;;  %v3023_v4 = vmul.u32 %v3016_v24, %v3007_v7 }
 0x2d3   : > { %v7251_v28 = vadd.s32 4294967294, %v2727_v5  ;;  %v2865_v30 = vand.u32 2147483647, %v10692_v60  ;;  %v7257_v6 = vadd.s32 4294967169, %v2869_v14  ;;  %v2745_v50 = vsub.s32 4, %v10676_v22 }
 0x2d4   : > { %v8375_v16 = vpop.eup %8374  ;;  %vm3025_vm14 = vc.u32 %v10709_v3, %v10700_v56  ;;  %vm4356_vm0 = vcmp.lt.f32.partialorder %v10352_v32, 5.5  ;;  %vm2661_vm1 = vcmp.lt.s32.totalorder %v10500_v46, 0  ;;  %vm10732_vm2 = vcmp.le.f32.partialorder %v2659_v39, 0.7853982 }
 0x2d5   : > { %v8377_v45 = vpop.eup %8376  ;;  %v2861_v1 = vxor.u32 2147483648, %v8375_v16  ;;  %vm7252_vm13 = vcmp.lt.s32.totalorder %v7251_v28, 0  ;;  %v3027_v31 = vsel %vm3025_vm14, %v3026_v25, %v10701_v26  ;;  %v2875_v23 = vadd.s32 1, %v7257_v6 }
 0x2d6   : > { %v2858_v29 = vxor.u32 2147483648, %v8377_v45  ;;  %v2730_v18 = vsel %vm7252_vm13, 0, %v7251_v28  ;;  %v3028_v40 = vadd.s32 %v3027_v31, %v3023_v4  ;;  %v2872_v44 = vand.u32 8388607, %v2865_v30  ;;  %v4694_v28 = vpop.permute.xlu1 %4693 }
 0x2d7   : > { %v2862_v8 = vsel %vm2860_vm12, %v2861_v1, %v8377_v45  ;;  %v2731_v54 = vsub.s32 32, %v2730_v18  ;;  %v2732_v35 = vshll.u32 %v10682_v52, %v2730_v18  ;;  %v2735_v33 = vsub.s32 4294967266, %v2730_v18  ;;  %v10758_v18 = vld [vmem:[%s8695_s14 + $0xa8] sm:$0xff] }
 0x2d8   : > { %v2859_v24 = vsel %vm2857_vm10, %v8375_v16, %v2858_v29  ;;  %vm2876_vm15 = vcmp.gt.s32.totalorder %v2875_v23, 0  ;;  %v3029_v42 = vadd.s32 536870912, %v3028_v40  ;;  %v10739_v49 = vsel %vm2661_vm1, %v2745_v50, %v10676_v22 }
 0x2d9   : > { %v2863_v57 = vsel %vm2856_vm9, %v2859_v24, %v2862_v8  ;;  %v2733_v53 = vshrl.u32 %v2715_v38, %v2731_v54  ;;  %v2736_v12 = vadd.s32 127, %v2735_v33  ;;  %v2877_v37 = vsel %vm2876_vm15, %v2875_v23, 0 }
 0x2da   : > { %v2864_v19 = vsel %vm2854_vm8, nan, %v2863_v57  ;;  %v2879_v52 = vand.u32 31, %v2877_v37  ;;  %v10741_v11 = vshrl.u32 %v3029_v42, 30  ;;  %v2873_v5 = vor.u32 8388608, %v2872_v44 }
 0x2db   : > { %v4324_v48 = vmul.f32 %v2864_v19, %v2864_v19  ;;  %v2734_v36 = vor.u32 %v2733_v53, %v2732_v35  ;;  %v2737_v20 = vshll.u32 %v2736_v12, 23  ;;  %v2878_v39 = vshrl.u32 %v2877_v37, 5 }
 0x2dc   : > { %v2880_v32 = vsub.s32 32, %v2879_v52  ;;  %v3031_v7 = vshll.u32 %v10741_v11, 30  ;;  %v2882_v34 = vshll.u32 %v13423_v15, %v2879_v52  ;;  %v2885_v22 = vshll.u32 %v13424_v9, %v2879_v52 }
 0x2dd   : > { %v4388_v51 = vsel %vm4356_vm0, %v4324_v48, 0.0  ;;  %v2738_v41 = vor.u32 4788187, %v2737_v20  ;;  %v2741_v0 = vcvt.s32.f32 %v2734_v36  ;;  %v2891_v38 = vshll.u32 %v13426_v47, %v2879_v52 }
 0x2de   : > { %4490 = vperm.xlu1 %8209, %v4388_v51   ;;  %v2883_v25 = vshrl.u32 %v13424_v9, %v2880_v32  ;;  %v2886_v16 = vshrl.u32 %v13425_v59, %v2880_v32  ;;  %v10749_v4 = vsub.s32 %v3028_v40, %v3031_v7  ;;  %v2888_v6 = vshll.u32 %v13425_v59, %v2879_v52 }
 0x2df   : > { %v2739_v14 = vand.u32 2147483647, %v2738_v41  ;;  %v2889_v45 = vshrl.u32 %v13426_v47, %v2880_v32  ;;  %v2892_v1 = vshrl.u32 %v8591_v58, %v2880_v32  ;;  %v2748_v29 = vsel %vm10732_vm2, 0, %v10739_v49 }
 0x2e0   : > { %v10761_v31 = vmul.f32 0.28559932, %v10758_v18  ;;  %v3034_v23 = vsub.s32 0, %v10749_v4  ;;  %vm4746_vm3 = vcmp.eq.s32.totalorder %v9188_v21, %v4694_v28  ;;  %v2881_v8 = vshrl.u32 %v13423_v15, %v2880_v32 }
 0x2e1   : > { %v2742_v50 = vmul.f32 %v2741_v0, %v2739_v14  ;;  %v2884_v54 = vor.u32 %v2883_v25, %v2882_v34  ;;  %v2894_v35 = vshll.u32 %v8591_v58, %v2879_v52  ;;  %v2887_v24 = vor.u32 %v2886_v16, %v2885_v22  ;;  %v4691_v0 = vpop.permute.xlu0 %4690 }
 0x2e2   : > { %v2893_v40 = vor.u32 %v2892_v1, %v2891_v38  ;;  %v2895_v44 = vshrl.u32 %v13440_v13, %v2880_v32  ;;  %v7262_v57 = vmin.u32 %v3034_v23, %v10749_v4  ;;  %v2890_v53 = vor.u32 %v2889_v45, %v2888_v6 }
 0x2e3   : > { %v2743_v33 = vxor.u32 2147483648, %v2742_v50  ;;  %vm2897_vm4 = vcmp.lt.s32.totalorder %v2878_v39, 1  ;;  %v10769_v12 = vshll.u32 %v2873_v5, 8  ;;  %vm2899_vm5 = vcmp.lt.s32.totalorder %v2878_v39, 3 }
 0x2e4   : > { %v2896_v19 = vor.u32 %v2895_v44, %v2894_v35  ;;  %vm2900_vm6 = vcmp.lt.s32.totalorder %v2878_v39, 4  ;;  %v3036_v52 = vclz %v7262_v57  ;;  %vm2898_vm7 = vcmp.lt.s32.totalorder %v2878_v39, 2 }
 0x2e5   : > { %v2744_v37 = vsel %vm2661_vm1, %v2743_v33, %v2742_v50  ;;  %v2902_v48 = vsel %vm2900_vm6, %v2890_v53, 2102212464  ;;  %v2901_v36 = vsel %vm2897_vm4, %v2881_v8, %v2884_v54  ;;  %v2905_v20 = vsel %vm2897_vm4, %v2884_v54, %v2887_v24 }
 0x2e6   : > { %v2747_v42 = vsel %vm10732_vm2, %v10500_v46, %v2744_v37  ;;  %v2906_v49 = vsel %vm2900_vm6, %v2893_v40, 920167782  ;;  %v7263_v32 = vadd.s32 4294967294, %v3036_v52  ;;  %v2903_v51 = vsel %vm2899_vm5, %v2887_v24, %v2902_v48 }
 0x2e7   : > { %8378 = vcosq.f32 %v2747_v42  ;;  %v2907_v41 = vsel %vm2899_vm5, %v2890_v53, %v2906_v49  ;;  %v3024_v26 = vadd.s32 %v10700_v56, %v10709_v3  ;;  %v2909_v7 = vsel %vm2897_vm4, %v2887_v24, %v2890_v53 }
 0x2e8   : > { %8380 = vsinq.f32 %v2747_v42  ;;  %v2908_v5 = vsel %vm2898_vm7, %v2905_v20, %v2907_v41  ;;  %v2910_v34 = vsel %vm2900_vm6, %v2896_v19, 1326507024  ;;  %vm7264_vm8 = vcmp.lt.s32.totalorder %v7263_v32, 0 }
 0x2e9   : > { %v2911_v25 = vsel %vm2899_vm5, %v2893_v40, %v2910_v34  ;;  %v10789_v14 = vmul.u32.u64.low %v10769_v12, %v2908_v5  ;;  %v10790_v22 = vmul.u32.u64.high %v10769_v12, %v2908_v5, %v10789_v14  ;;  %v3039_v16 = vsel %vm7264_vm8, 0, %v7263_v32 }
 0x2ea   : > { %v2904_v38 = vsel %vm2898_vm7, %v2901_v36, %v2903_v51  ;;  %v2912_v6 = vsel %vm2898_vm7, %v2909_v7, %v2911_v25  ;;  %vm4745_vm9 = vcmp.eq.s32.totalorder %v9188_v21, %v4691_v0  ;;  %v3040_v56 = vsub.s32 32, %v3039_v16 }
 0x2eb   : > { %v3041_v3 = vshll.u32 %v10749_v4, %v3039_v16  ;;  %v3044_v45 = vsub.s32 4294967266, %v3039_v16  ;;  %v3177_v1 = vand.u32 2139095040, %v10761_v31  ;;  %v7334_v50 = vsel %vm4746_vm3, 1.0, %v8593_v17 }
 0x2ec   : > { %v10802_v23 = vmul.u32.u64.low %v10769_v12, %v2912_v6  ;;  %v10803_v8 = vmul.u32.u64.high %v10769_v12, %v2912_v6, %v10802_v23  ;;  %v3042_v54 = vshrl.u32 %v3024_v26, %v3040_v56  ;;  %v2923_v35 = vadd.s32 1, %v10790_v22 }
 0x2ed   : > { %v3045_v39 = vadd.s32 127, %v3044_v45  ;;  %v3178_v33 = vshrl.u32 %v3177_v1, 23  ;;  %v2752_v24 = vand.u32 3, %v2748_v29  ;;  %v3054_v4 = vsub.s32 4, %v10741_v11  ;;  %v10823_v29 = vld [vmem:[%s8695_s14 + $0xa0] sm:$0xff] }
 0x2ee   : > { %v2920_v40 = vmul.u32 %v10769_v12, %v2904_v38  ;;  %v7333_v28 = vsel %vm4745_vm9, 1.0, %v8593_v17  ;;  %v3043_v44 = vor.u32 %v3042_v54, %v3041_v3  ;;  %v3174_v53 = vand.u32 2147483647, %v10761_v31 }
 0x2ef   : > { %v3046_v57 = vshll.u32 %v3045_v39, 23  ;;  %v7269_v37 = vadd.s32 4294967169, %v3178_v33  ;;  %7802 = vmatprep.mubr.msk.f32.mxu0 %vm4821_vm11, %v7333_v28  ;;  %vm10815_vm10 = vcmp.le.f32.partialorder %v2968_v2, 0.7853982  ;;  %vm2970_vm12 = vcmp.lt.s32.totalorder %v10518_v61, 0 }
 0x2f0   : > { %vm2922_vm13 = vc.u32 %v10803_v8, %v10789_v14  ;;  %v10826_v12 = vmul.f32 0.28559932, %v10823_v29  ;;  %7803 = vmatmul.mubr.msk.f32.gmra.mxu0 %vm4821_vm11, %v7334_v50  ;;  %v3050_v52 = vcvt.s32.f32 %v3043_v44  ;;  %vm2753_vm14 = vcmp.lt.s32.totalorder %v2752_v24, 2 }
 0x2f1   : > { %v3047_v42 = vor.u32 4788187, %v3046_v57  ;;  %v2924_v48 = vsel %vm2922_vm13, %v2923_v35, %v10790_v22  ;;  %v3184_v2 = vadd.s32 1, %v7269_v37  ;;  %vm2754_vm15 = vcmp.eq.s32.totalorder %v2752_v24, 0 }
 0x2f2   : > { %v3055_v36 = vsel %vm2970_vm12, %v3054_v4, %v10741_v11  ;;  %v2925_v20 = vadd.s32 %v2924_v48, %v2920_v40  ;;  %vm2757_vm0 = vcmp.eq.s32.totalorder %v2752_v24, 2  ;;  %v3181_v51 = vand.u32 8388607, %v3174_v53 }
 0x2f3   : > { %v3048_v32 = vand.u32 2147483647, %v3047_v42  ;;  %vm3185_vm1 = vcmp.gt.s32.totalorder %v3184_v2, 0  ;;  %v3074_v7 = vand.u32 2139095040, %v10826_v12  ;;  %v3057_v22 = vsel %vm10815_vm10, 0, %v3055_v36 }
 0x2f4   : > { %v8379_v49 = vpop.eup %8378  ;;  %v2926_v26 = vadd.s32 536870912, %v2925_v20  ;;  %v3186_v5 = vsel %vm3185_vm1, %v3184_v2, 0  ;;  %vm2751_vm2 = vweird.f32 %v10500_v46  ;;  %vm4355_vm3 = vcmp.lt.f32.partialorder %v10497_v63, 5.5 }
 0x2f5   : > { %v8381_v41 = vpop.eup %8380  ;;  %v2758_v0 = vxor.u32 2147483648, %v8379_v49  ;;  %v3051_v25 = vmul.f32 %v3050_v52, %v3048_v32  ;;  %v3188_v11 = vand.u32 31, %v3186_v5  ;;  %v3182_v3 = vor.u32 8388608, %v3181_v51 }
 0x2f6   : > { %v2755_v34 = vxor.u32 2147483648, %v8381_v41  ;;  %v10840_v38 = vshrl.u32 %v2926_v26, 30  ;;  %v10844_v50 = vand.u32 3, %v3057_v22  ;;  %v3075_v54 = vshrl.u32 %v3074_v7, 23 }
 0x2f7   : > { %v2759_v16 = vsel %vm2757_vm0, %v2758_v0, %v8381_v41  ;;  %v3052_v56 = vxor.u32 2147483648, %v3051_v25  ;;  %v3189_v45 = vsub.s32 32, %v3188_v11  ;;  %v3191_v35 = vshll.u32 %v13423_v15, %v3188_v11 }
 0x2f8   : > { %v2756_v6 = vsel %vm2754_vm15, %v8379_v49, %v2755_v34  ;;  %v2928_v23 = vshll.u32 %v10840_v38, 30  ;;  %v3194_v33 = vshll.u32 %v13424_v9, %v3188_v11  ;;  %v10858_v57 = vshll.u32 %v3182_v3, 8 }
 0x2f9   : > { %v2760_v1 = vsel %vm2753_vm14, %v2756_v6, %v2759_v16  ;;  %v3053_v46 = vsel %vm2970_vm12, %v3052_v56, %v3051_v25  ;;  %v3192_v28 = vshrl.u32 %v13424_v9, %v3189_v45  ;;  %v3195_v44 = vshrl.u32 %v13425_v59, %v3189_v45 }
 0x2fa   : > { %v2761_v39 = vsel %vm2751_vm2, nan, %v2760_v1  ;;  %v3056_v40 = vsel %vm10815_vm10, %v10518_v61, %v3053_v46  ;;  %v10854_v24 = vsub.s32 %v2925_v20, %v2928_v23  ;;  %v3071_v37 = vand.u32 2147483647, %v10826_v12 }
 0x2fb   : > { %v4323_v4 = vmul.f32 %v2761_v39, %v2761_v39  ;;  %8382 = vcosq.f32 %v3056_v40  ;;  %v3187_v48 = vshrl.u32 %v3186_v5, 5  ;;  %v3190_v19 = vshrl.u32 %v13423_v15, %v3189_v45 }
 0x2fc   : > { %8384 = vsinq.f32 %v3056_v40  ;;  %v2931_v52 = vsub.s32 0, %v10854_v24  ;;  %v3197_v2 = vshll.u32 %v13425_v59, %v3188_v11  ;;  %v3198_v36 = vshrl.u32 %v13426_v47, %v3189_v45 }
 0x2fd   : > { %v4387_v42 = vsel %vm4355_vm3, %v4323_v4, 0.0  ;;  %v3200_v20 = vshll.u32 %v13426_v47, %v3188_v11  ;;  %v3193_v32 = vor.u32 %v3192_v28, %v3191_v35  ;;  %v3196_v51 = vor.u32 %v3195_v44, %v3194_v33 }
 0x2fe   : > { %4485 = vperm.xlu0 %8210, %v4387_v42   ;;  %v7258_v49 = vmin.u32 %v2931_v52, %v10854_v24  ;;  %v7265_v41 = vadd.s32 4294967169, %v3075_v54  ;;  %v3199_v63 = vor.u32 %v3198_v36, %v3197_v2  ;;  %v3201_v0 = vshrl.u32 %v8591_v58, %v3189_v45 }
 0x2ff   : > { %v3203_v26 = vshll.u32 %v8591_v58, %v3188_v11  ;;  %v3204_v5 = vshrl.u32 %v13440_v13, %v3189_v45  ;;  %vm3206_vm4 = vcmp.lt.s32.totalorder %v3187_v48, 1  ;;  %vm3207_vm5 = vcmp.lt.s32.totalorder %v3187_v48, 2 }
 0x300   : > { %v2933_v7 = vclz %v7258_v49  ;;  %vm3208_vm6 = vcmp.lt.s32.totalorder %v3187_v48, 3  ;;  %vm3063_vm7 = vcmp.eq.s32.totalorder %v10844_v50, 0  ;;  %v3202_v34 = vor.u32 %v3201_v0, %v3200_v20 }
 0x301   : > { %v3205_v25 = vor.u32 %v3204_v5, %v3203_v26  ;;  %vm3209_vm8 = vcmp.lt.s32.totalorder %v3187_v48, 4  ;;  %v3210_v22 = vsel %vm3206_vm4, %v3190_v19, %v3193_v32  ;;  %vm3062_vm9 = vcmp.lt.s32.totalorder %v10844_v50, 2 }
 0x302   : > { %v7259_v16 = vadd.s32 4294967294, %v2933_v7  ;;  %v3211_v6 = vsel %vm3209_vm8, %v3199_v63, 2102212464  ;;  %v3214_v56 = vsel %vm3206_vm4, %v3193_v32, %v3196_v51  ;;  %v3218_v3 = vsel %vm3206_vm4, %v3196_v51, %v3199_v63 }
 0x303   : > { %vm3060_vm10 = vweird.f32 %v10518_v61  ;;  %v3212_v11 = vsel %vm3208_vm6, %v3196_v51, %v3211_v6  ;;  %v3215_v45 = vsel %vm3209_vm8, %v3202_v34, 920167782  ;;  %v3219_v1 = vsel %vm3209_vm8, %v3205_v25, 1326507024  ;;  %v10912_v25 = vld [vmem:[%s8695_s14 + $0xb8] sm:$0xff] }
 0x304   : > { %v3081_v23 = vadd.s32 1, %v7265_v41  ;;  %vm2867_vm12 = vcmp.lt.s32.totalorder %v10692_v60, 0  ;;  %v2921_v54 = vadd.s32 %v10789_v14, %v10803_v8  ;;  %vm7260_vm13 = vcmp.lt.s32.totalorder %v7259_v16, 0 }
 0x305   : > { %v3216_v39 = vsel %vm3208_vm6, %v3199_v63, %v3215_v45  ;;  %v3220_v46 = vsel %vm3208_vm6, %v3202_v34, %v3219_v1  ;;  %v2936_v35 = vsel %vm7260_vm13, 0, %v7259_v16  ;;  %v3213_v33 = vsel %vm3207_vm5, %v3210_v22, %v3212_v11 }
 0x306   : > { %v3217_v4 = vsel %vm3207_vm5, %v3214_v56, %v3216_v39  ;;  %v3221_v40 = vsel %vm3207_vm5, %v3218_v3, %v3220_v46  ;;  %vm4358_vm14 = vcmp.lt.f32.partialorder %v10515_v10, 5.5  ;;  %v2937_v28 = vsub.s32 32, %v2936_v35 }
 0x307   : > { %v2938_v44 = vshll.u32 %v10854_v24, %v2936_v35  ;;  %v2941_v42 = vsub.s32 4294967266, %v2936_v35  ;;  %vm3082_vm15 = vcmp.gt.s32.totalorder %v3081_v23, 0  ;;  %vm3066_vm0 = vcmp.eq.s32.totalorder %v10844_v50, 2 }
 0x308   : > { %v10887_v14 = vmul.u32.u64.low %v10858_v57, %v3221_v40  ;;  %v10888_v8 = vmul.u32.u64.high %v10858_v57, %v3221_v40, %v10887_v14  ;;  %v10891_v52 = vmul.u32.u64.low %v10858_v57, %v3217_v4  ;;  %v10892_v19 = vmul.u32.u64.high %v10858_v57, %v3217_v4, %v10891_v52  ;;  %v8383_v2 = vpop.eup %8382 }
 0x309   : > { %v2939_v48 = vshrl.u32 %v2921_v54, %v2937_v28  ;;  %v2942_v36 = vadd.s32 127, %v2941_v42  ;;  %v3083_v20 = vsel %vm3082_vm15, %v3081_v23, 0  ;;  %v8385_v49 = vpop.eup %8384  ;;  %v3067_v24 = vxor.u32 2147483648, %v8383_v2 }
 0x30a   : > { %vm10898_vm1 = vcmp.le.f32.partialorder %v2865_v30, 0.7853982  ;;  %v2951_v51 = vsub.s32 4, %v10840_v38  ;;  %v3078_v41 = vand.u32 8388607, %v3071_v37  ;;  %v3085_v63 = vand.u32 31, %v3083_v20 }
 0x30b   : > { %v3064_v0 = vxor.u32 2147483648, %v8385_v49  ;;  %v2940_v26 = vor.u32 %v2939_v48, %v2938_v44  ;;  %v2943_v5 = vshll.u32 %v2942_v36, 23  ;;  %v3229_v7 = vmul.u32 %v10858_v57, %v3213_v33 }
 0x30c   : > { %v3068_v34 = vsel %vm3066_vm0, %v3067_v24, %v8385_v49  ;;  %vm3231_vm2 = vc.u32 %v10888_v8, %v10891_v52  ;;  %v3232_v30 = vadd.s32 1, %v10892_v19  ;;  %v10915_v22 = vmul.f32 0.28559932, %v10912_v25 }
 0x30d   : > { %v3065_v16 = vsel %vm3063_vm7, %v8383_v2, %v3064_v0  ;;  %v2944_v6 = vor.u32 4788187, %v2943_v5  ;;  %v2947_v56 = vcvt.s32.f32 %v2940_v26  ;;  %v3086_v3 = vsub.s32 32, %v3085_v63 }
 0x30e   : > { %v3069_v57 = vsel %vm3062_vm9, %v3065_v16, %v3068_v34  ;;  %v2952_v11 = vsel %vm2867_vm12, %v2951_v51, %v10840_v38  ;;  %v3233_v45 = vsel %vm3231_vm2, %v3232_v30, %v10892_v19  ;;  %v3088_v1 = vshll.u32 %v13423_v15, %v3085_v63  ;;  %v4700_v16 = vpop.permute.xlu1 %4699 }
 0x30f   : > { %v3070_v23 = vsel %vm3060_vm10, nan, %v3069_v57  ;;  %v2945_v54 = vand.u32 2147483647, %v2944_v6  ;;  %v3234_v39 = vadd.s32 %v3233_v45, %v3229_v7  ;;  %v3091_v46 = vshll.u32 %v13424_v9, %v3085_v63 }
 0x310   : > { %v4326_v35 = vmul.f32 %v3070_v23, %v3070_v23  ;;  %v3089_v33 = vshrl.u32 %v13424_v9, %v3086_v3  ;;  %v3092_v50 = vshrl.u32 %v13425_v59, %v3086_v3  ;;  %v3094_v4 = vshll.u32 %v13425_v59, %v3085_v63 }
 0x311   : > { %v2948_v40 = vmul.f32 %v2947_v56, %v2945_v54  ;;  %v3235_v38 = vadd.s32 536870912, %v3234_v39  ;;  %v3095_v28 = vshrl.u32 %v13426_v47, %v3086_v3  ;;  %v3097_v44 = vshll.u32 %v13426_v47, %v3085_v63 }
 0x312   : > { %v4390_v61 = vsel %vm4358_vm14, %v4326_v35, 0.0  ;;  %v3079_v42 = vor.u32 8388608, %v3078_v41  ;;  %v3084_v14 = vshrl.u32 %v3083_v20, 5  ;;  %v3098_v19 = vshrl.u32 %v8591_v58, %v3086_v3 }
 0x313   : > { %4500 = vperm.xlu1 %8209, %v4390_v61   ;;  %v2949_v2 = vxor.u32 2147483648, %v2948_v40  ;;  %v2954_v48 = vsel %vm10898_vm1, 0, %v2952_v11  ;;  %v10939_v36 = vshrl.u32 %v3235_v38, 30  ;;  %v3100_v49 = vshll.u32 %v8591_v58, %v3085_v63 }
 0x314   : > { %v3087_v24 = vshrl.u32 %v13423_v15, %v3086_v3  ;;  %v3090_v51 = vor.u32 %v3089_v33, %v3088_v1  ;;  %v3093_v0 = vor.u32 %v3092_v50, %v3091_v46  ;;  %v3101_v10 = vshrl.u32 %v13440_v13, %v3086_v3 }
 0x315   : > { %v2950_v20 = vsel %vm2867_vm12, %v2949_v2, %v2948_v40  ;;  %v3237_v41 = vshll.u32 %v10939_v36, 30  ;;  %v3096_v26 = vor.u32 %v3095_v28, %v3094_v4  ;;  %v3099_v5 = vor.u32 %v3098_v19, %v3097_v44  ;;  %v4697_v4 = vpop.permute.xlu0 %4696 }
 0x316   : > { %v2953_v7 = vsel %vm10898_vm1, %v10692_v60, %v2950_v20  ;;  %v3102_v34 = vor.u32 %v3101_v10, %v3100_v49  ;;  %vm3103_vm3 = vcmp.lt.s32.totalorder %v3084_v14, 1  ;;  %vm3106_vm4 = vcmp.lt.s32.totalorder %v3084_v14, 4 }
 0x317   : > { %8386 = vcosq.f32 %v2953_v7  ;;  %v10950_v63 = vsub.s32 %v3234_v39, %v3237_v41  ;;  %vm3105_vm5 = vcmp.lt.s32.totalorder %v3084_v14, 3  ;;  %v3108_v30 = vsel %vm3106_vm4, %v3096_v26, 2102212464 }
 0x318   : > { %8388 = vsinq.f32 %v2953_v7  ;;  %vm3104_vm6 = vcmp.lt.s32.totalorder %v3084_v14, 2  ;;  %v3107_v6 = vsel %vm3103_vm3, %v3087_v24, %v3090_v51  ;;  %v3119_v56 = vshll.u32 %v3079_v42, 8 }
 0x319   : > { %v3240_v3 = vsub.s32 0, %v10950_v63  ;;  %v3109_v32 = vsel %vm3105_vm5, %v3093_v0, %v3108_v30  ;;  %v3111_v57 = vsel %vm3103_vm3, %v3090_v51, %v3093_v0  ;;  %v3112_v11 = vsel %vm3106_vm4, %v3099_v5, 920167782 }
 0x31a   : > { %v3113_v45 = vsel %vm3105_vm5, %v3096_v26, %v3112_v11  ;;  %v3115_v1 = vsel %vm3103_vm3, %v3093_v0, %v3096_v26  ;;  %v3116_v23 = vsel %vm3106_vm4, %v3102_v34, 1326507024  ;;  %v2958_v54 = vand.u32 3, %v2954_v48 }
 0x31b   : > { %v7270_v39 = vmin.u32 %v3240_v3, %v10950_v63  ;;  %vm4748_vm7 = vcmp.eq.s32.totalorder %v9188_v21, %v4700_v16  ;;  %v3110_v46 = vsel %vm3104_vm6, %v3107_v6, %v3109_v32  ;;  %v3114_v35 = vsel %vm3104_vm6, %v3111_v57, %v3113_v45 }
 0x31c   : > { %v3117_v33 = vsel %vm3105_vm5, %v3099_v5, %v3116_v23  ;;  %v3383_v50 = vand.u32 2139095040, %v10915_v22  ;;  %v10968_v28 = vmul.u32.u64.low %v3119_v56, %v3114_v35  ;;  %v10969_v44 = vmul.u32.u64.high %v3119_v56, %v3114_v35, %v10968_v28 }
 0x31d   : > { %v3242_v40 = vclz %v7270_v39  ;;  %v3118_v38 = vsel %vm3104_vm6, %v3115_v1, %v3117_v33  ;;  %vm2957_vm8 = vweird.f32 %v10692_v60  ;;  %vm4747_vm9 = vcmp.eq.s32.totalorder %v9188_v21, %v4697_v4 }
 0x31e   : > { %v10972_v61 = vmul.u32.u64.low %v3119_v56, %v3118_v38  ;;  %v10973_v42 = vmul.u32.u64.high %v3119_v56, %v3118_v38, %v10972_v61  ;;  %v3384_v19 = vshrl.u32 %v3383_v50, 23  ;;  %v7336_v48 = vsel %vm4748_vm7, 1.0, %v8593_v17 }
 0x31f   : > { %v7271_v2 = vadd.s32 4294967294, %v3242_v40  ;;  %v3126_v49 = vmul.u32 %v3119_v56, %v3110_v46  ;;  %v7335_v14 = vsel %vm4747_vm9, 1.0, %v8593_v17  ;;  %vm2959_vm10 = vcmp.lt.s32.totalorder %v2958_v54, 2 }
 0x320   : > { %v7277_v24 = vadd.s32 4294967169, %v3384_v19  ;;  %v3230_v51 = vadd.s32 %v10891_v52, %v10888_v8  ;;  %v3129_v0 = vadd.s32 1, %v10969_v44  ;;  %7805 = vmatprep.mubr.msk.f32.mxu0 %vm4821_vm11, %v7335_v14  ;;  %vm4357_vm13 = vcmp.lt.f32.partialorder %v10689_v43, 5.5 }
 0x321   : > { %vm7272_vm12 = vcmp.lt.s32.totalorder %v7271_v2, 0  ;;  %vm3128_vm14 = vc.u32 %v10973_v42, %v10968_v28  ;;  %v3380_v20 = vand.u32 2147483647, %v10915_v22  ;;  %7806 = vmatmul.mubr.msk.f32.gmra.mxu0 %vm4821_vm11, %v7336_v48  ;;  %vm2960_vm15 = vcmp.eq.s32.totalorder %v2958_v54, 0 }
 0x322   : > { %v3245_v10 = vsel %vm7272_vm12, 0, %v7271_v2  ;;  %v3390_v41 = vadd.s32 1, %v7277_v24  ;;  %v3130_v52 = vsel %vm3128_vm14, %v3129_v0, %v10969_v44  ;;  %vm2963_vm0 = vcmp.eq.s32.totalorder %v2958_v54, 2 }
 0x323   : > { %v3246_v26 = vsub.s32 32, %v3245_v10  ;;  %v3247_v5 = vshll.u32 %v10950_v63, %v3245_v10  ;;  %v3250_v8 = vsub.s32 4294967266, %v3245_v10  ;;  %v3131_v34 = vadd.s32 %v3130_v52, %v3126_v49 }
 0x324   : > { %v8387_v7 = vpop.eup %8386  ;;  %vm3391_vm1 = vcmp.gt.s32.totalorder %v3390_v41, 0  ;;  %v3387_v11 = vand.u32 8388607, %v3380_v20  ;;  %vm10994_vm2 = vcmp.le.f32.partialorder %v3174_v53, 0.7853982  ;;  %vm3176_vm3 = vcmp.lt.s32.totalorder %v10761_v31, 0 }
 0x325   : > { %v8389_v30 = vpop.eup %8388  ;;  %v2964_v16 = vxor.u32 2147483648, %v8387_v7  ;;  %v3248_v6 = vshrl.u32 %v3230_v51, %v3246_v26  ;;  %v3251_v56 = vadd.s32 127, %v3250_v8  ;;  %v3392_v3 = vsel %vm3391_vm1, %v3390_v41, 0 }
 0x326   : > { %v2961_v32 = vxor.u32 2147483648, %v8389_v30  ;;  %v3132_v57 = vadd.s32 536870912, %v3131_v34  ;;  %v3394_v45 = vand.u32 31, %v3392_v3  ;;  %v3260_v38 = vsub.s32 4, %v10939_v36 }
 0x327   : > { %v2965_v63 = vsel %vm2963_vm0, %v2964_v16, %v8389_v30  ;;  %v3249_v23 = vor.u32 %v3248_v6, %v3247_v5  ;;  %v3252_v39 = vshll.u32 %v3251_v56, 23  ;;  %v3388_v61 = vor.u32 8388608, %v3387_v11 }
 0x328   : > { %v2962_v46 = vsel %vm2960_vm15, %v8387_v7, %v2961_v32  ;;  %v11000_v35 = vshrl.u32 %v3132_v57, 30  ;;  %v3395_v33 = vsub.s32 32, %v3394_v45  ;;  %v3397_v19 = vshll.u32 %v13423_v15, %v3394_v45  ;;  %v11025_v7 = vld [vmem:[%s8695_s14 + $0xb0] sm:$0xff] }
 0x329   : > { %v2966_v50 = vsel %vm2959_vm10, %v2962_v46, %v2965_v63  ;;  %v3253_v4 = vor.u32 4788187, %v3252_v39  ;;  %v3256_v40 = vcvt.s32.f32 %v3249_v23  ;;  %v3400_v54 = vshll.u32 %v13424_v9, %v3394_v45 }
 0x32a   : > { %v2967_v53 = vsel %vm2957_vm8, nan, %v2966_v50  ;;  %v3134_v44 = vshll.u32 %v11000_v35, 30  ;;  %v3398_v49 = vshrl.u32 %v13424_v9, %v3395_v33  ;;  %v3401_v14 = vshrl.u32 %v13425_v59, %v3395_v33 }
 0x32b   : > { %v4325_v2 = vmul.f32 %v2967_v53, %v2967_v53  ;;  %v3254_v48 = vand.u32 2147483647, %v3253_v4  ;;  %v3403_v51 = vshll.u32 %v13425_v59, %v3394_v45  ;;  %v3404_v60 = vshrl.u32 %v13426_v47, %v3395_v33 }
 0x32c   : > { %v11010_v24 = vsub.s32 %v3131_v34, %v3134_v44  ;;  %v3261_v41 = vsel %vm3176_vm3, %v3260_v38, %v10939_v36  ;;  %v3393_v26 = vshrl.u32 %v3392_v3, 5  ;;  %v3396_v8 = vshrl.u32 %v13423_v15, %v3395_v33 }
 0x32d   : > { %v4389_v0 = vsel %vm4357_vm13, %v4325_v2, 0.0  ;;  %v3257_v10 = vmul.f32 %v3256_v40, %v3254_v48  ;;  %v11022_v52 = vshll.u32 %v3388_v61, 8  ;;  %v11028_v34 = vmul.f32 0.28559932, %v11025_v7 }
 0x32e   : > { %4495 = vperm.xlu0 %8210, %v4389_v0   ;;  %v3137_v5 = vsub.s32 0, %v11010_v24  ;;  %v3406_v30 = vshll.u32 %v13426_v47, %v3394_v45  ;;  %v3407_v16 = vshrl.u32 %v8591_v58, %v3395_v33  ;;  %v3409_v36 = vshll.u32 %v8591_v58, %v3394_v45 }
 0x32f   : > { %v3258_v43 = vxor.u32 2147483648, %v3257_v10  ;;  %v3399_v56 = vor.u32 %v3398_v49, %v3397_v19  ;;  %v3402_v3 = vor.u32 %v3401_v14, %v3400_v54  ;;  %v3405_v32 = vor.u32 %v3404_v60, %v3403_v51 }
 0x330   : > { %v7266_v6 = vmin.u32 %v3137_v5, %v11010_v24  ;;  %v3408_v11 = vor.u32 %v3407_v16, %v3406_v30  ;;  %v3410_v63 = vshrl.u32 %v13440_v13, %v3395_v33  ;;  %vm3412_vm4 = vcmp.lt.s32.totalorder %v3393_v26, 1 }
 0x331   : > { %v3259_v57 = vsel %vm3176_vm3, %v3258_v43, %v3257_v10  ;;  %vm3413_vm5 = vcmp.lt.s32.totalorder %v3393_v26, 2  ;;  %vm3414_vm6 = vcmp.lt.s32.totalorder %v3393_v26, 3  ;;  %vm3415_vm7 = vcmp.lt.s32.totalorder %v3393_v26, 4 }
 0x332   : > { %v3262_v23 = vsel %vm10994_vm2, %v10761_v31, %v3259_v57  ;;  %v3139_v39 = vclz %v7266_v6  ;;  %v3411_v45 = vor.u32 %v3410_v63, %v3409_v36  ;;  %v3416_v46 = vsel %vm3412_vm4, %v3396_v8, %v3399_v56 }
 0x333   : > { %8390 = vcosq.f32 %v3262_v23  ;;  %v3417_v4 = vsel %vm3415_vm7, %v3405_v32, 2102212464  ;;  %v3420_v40 = vsel %vm3412_vm4, %v3399_v56, %v3402_v3  ;;  %v3421_v53 = vsel %vm3415_vm7, %v3408_v11, 920167782  ;;  %v11064_v56 = vld [vmem:[%s8695_s14 + $0xc8] sm:$0xff] }
 0x334   : > { %8392 = vsinq.f32 %v3262_v23  ;;  %v7267_v50 = vadd.s32 4294967294, %v3139_v39  ;;  %v3418_v38 = vsel %vm3414_vm6, %v3402_v3, %v3417_v4  ;;  %v3424_v33 = vsel %vm3412_vm4, %v3402_v3, %v3405_v32  ;;  %v4706_v39 = vpop.permute.xlu1 %4705 }
 0x335   : > { %v3425_v44 = vsel %vm3415_vm7, %v3411_v45, 1326507024  ;;  %v3127_v61 = vadd.s32 %v10968_v28, %v10973_v42  ;;  %v3422_v19 = vsel %vm3414_vm6, %v3405_v32, %v3421_v53  ;;  %v3263_v48 = vsel %vm10994_vm2, 0, %v3261_v41 }
 0x336   : > { %vm7268_vm8 = vcmp.lt.s32.totalorder %v7267_v50, 0  ;;  %v3426_v2 = vsel %vm3414_vm6, %v3408_v11, %v3425_v44  ;;  %v3423_v54 = vsel %vm3413_vm5, %v3420_v40, %v3422_v19  ;;  %v3419_v28 = vsel %vm3413_vm5, %v3416_v46, %v3418_v38 }
 0x337   : > { %v3142_v49 = vsel %vm7268_vm8, 0, %v7267_v50  ;;  %v3427_v14 = vsel %vm3413_vm5, %v3424_v33, %v3426_v2  ;;  %v11056_v5 = vmul.u32.u64.low %v11022_v52, %v3423_v54  ;;  %v11057_v1 = vmul.u32.u64.high %v11022_v52, %v3423_v54, %v11056_v5 }
 0x338   : > { %v3143_v51 = vsub.s32 32, %v3142_v49  ;;  %v3144_v60 = vshll.u32 %v11010_v24, %v3142_v49  ;;  %v3147_v0 = vsub.s32 4294967266, %v3142_v49  ;;  %v3157_v43 = vsub.s32 4, %v11000_v35 }
 0x339   : > { %v11052_v42 = vmul.u32.u64.low %v11022_v52, %v3427_v14  ;;  %v11053_v10 = vmul.u32.u64.high %v11022_v52, %v3427_v14, %v11052_v42  ;;  %v3280_v30 = vand.u32 2139095040, %v11028_v34  ;;  %v3267_v16 = vand.u32 3, %v3263_v48 }
 0x33a   : > { %v3145_v41 = vshrl.u32 %v3127_v61, %v3143_v51  ;;  %v3148_v8 = vadd.s32 127, %v3147_v0  ;;  %vm3073_vm9 = vcmp.lt.s32.totalorder %v10826_v12, 0  ;;  %v3435_v24 = vmul.u32 %v11022_v52, %v3419_v28 }
 0x33b   : > { %v3281_v6 = vshrl.u32 %v3280_v30, 23  ;;  %v11067_v3 = vmul.f32 0.28559932, %v11064_v56  ;;  %vm11071_vm10 = vcmp.le.f32.partialorder %v3071_v37, 0.7853982  ;;  %vm3437_vm12 = vc.u32 %v11053_v10, %v11056_v5 }
 0x33c   : > { %v3146_v26 = vor.u32 %v3145_v41, %v3144_v60  ;;  %v3149_v36 = vshll.u32 %v3148_v8, 23  ;;  %v3438_v57 = vadd.s32 1, %v11057_v1  ;;  %v3277_v52 = vand.u32 2147483647, %v11028_v34 }
 0x33d   : > { %v3158_v23 = vsel %vm3073_vm9, %v3157_v43, %v11000_v35  ;;  %v7273_v45 = vadd.s32 4294967169, %v3281_v6  ;;  %vm3268_vm13 = vcmp.lt.s32.totalorder %v3267_v16, 2  ;;  %vm3269_vm14 = vcmp.eq.s32.totalorder %v3267_v16, 0 }
 0x33e   : > { %v3150_v11 = vor.u32 4788187, %v3149_v36  ;;  %v3153_v63 = vcvt.s32.f32 %v3146_v26  ;;  %vm3272_vm15 = vcmp.eq.s32.totalorder %v3267_v16, 2  ;;  %v3439_v37 = vsel %vm3437_vm12, %v3438_v57, %v11057_v1 }
 0x33f   : > { %v3440_v4 = vadd.s32 %v3439_v37, %v3435_v24  ;;  %v3287_v40 = vadd.s32 1, %v7273_v45  ;;  %v3589_v38 = vand.u32 2139095040, %v11067_v3  ;;  %v3160_v44 = vsel %vm11071_vm10, 0, %v3158_v23 }
 0x340   : > { %v8391_v46 = vpop.eup %8390  ;;  %v3151_v50 = vand.u32 2147483647, %v3150_v11  ;;  %vm4750_vm0 = vcmp.eq.s32.totalorder %v9188_v21, %v4706_v39  ;;  %v3284_v35 = vand.u32 8388607, %v3277_v52  ;;  %vm3266_vm2 = vweird.f32 %v10761_v31 }
 0x341   : > { %v8393_v53 = vpop.eup %8392  ;;  %v3273_v33 = vxor.u32 2147483648, %v8391_v46  ;;  %v3441_v2 = vadd.s32 536870912, %v3440_v4  ;;  %vm3288_vm1 = vcmp.gt.s32.totalorder %v3287_v40, 0  ;;  %vm4360_vm3 = vcmp.lt.f32.partialorder %v10758_v18, 5.5 }
 0x342   : > { %v3270_v61 = vxor.u32 2147483648, %v8393_v53  ;;  %v3154_v19 = vmul.f32 %v3153_v63, %v3151_v50  ;;  %v3289_v49 = vsel %vm3288_vm1, %v3287_v40, 0  ;;  %v3590_v60 = vshrl.u32 %v3589_v38, 23 }
 0x343   : > { %v3274_v48 = vsel %vm3272_vm15, %v3273_v33, %v8393_v53  ;;  %v11092_v51 = vshrl.u32 %v3441_v2, 30  ;;  %v11095_v28 = vand.u32 3, %v3160_v44  ;;  %v11100_v42 = vsel %vm4750_vm0, 1.0, %v8593_v17 }
 0x344   : > { %v3271_v54 = vsel %vm3269_vm14, %v8391_v46, %v3270_v61  ;;  %v3155_v14 = vxor.u32 2147483648, %v3154_v19  ;;  %v3291_v31 = vand.u32 31, %v3289_v49  ;;  %v3285_v43 = vor.u32 8388608, %v3284_v35 }
 0x345   : > { %v3275_v0 = vsel %vm3268_vm13, %v3271_v54, %v3274_v48  ;;  %v3443_v8 = vshll.u32 %v11092_v51, 30  ;;  %v11109_v24 = vadd.s32 %v11056_v5, %v11053_v10  ;;  %v3290_v6 = vshrl.u32 %v3289_v49, 5  ;;  %v4703_v48 = vpop.permute.xlu0 %4702 }
 0x346   : > { %v3276_v1 = vsel %vm3266_vm2, nan, %v3275_v0  ;;  %v3156_v41 = vsel %vm3073_vm9, %v3155_v14, %v3154_v19  ;;  %v3292_v26 = vsub.s32 32, %v3291_v31  ;;  %v7285_v57 = vadd.s32 4294967169, %v3590_v60 }
 0x347   : > { %v4328_v30 = vmul.f32 %v3276_v1, %v3276_v1  ;;  %v3159_v16 = vsel %vm11071_vm10, %v10826_v12, %v3156_v41  ;;  %v11111_v36 = vsub.s32 %v3440_v4, %v3443_v8  ;;  %v3294_v63 = vshll.u32 %v13423_v15, %v3291_v31 }
 0x348   : > { %8394 = vcosq.f32 %v3159_v16  ;;  %v3297_v23 = vshll.u32 %v13424_v9, %v3291_v31  ;;  %v3293_v10 = vshrl.u32 %v13423_v15, %v3292_v26  ;;  %v3295_v5 = vshrl.u32 %v13424_v9, %v3292_v26 }
 0x349   : > { %v4392_v11 = vsel %vm4360_vm3, %v4328_v30, 0.0  ;;  %8396 = vsinq.f32 %v3159_v16  ;;  %v3446_v32 = vsub.s32 0, %v11111_v36  ;;  %v3298_v39 = vshrl.u32 %v13425_v59, %v3292_v26 }
 0x34a   : > { %4510 = vperm.xlu1 %8209, %v4392_v11   ;;  %v3300_v45 = vshll.u32 %v13425_v59, %v3291_v31  ;;  %v3301_v37 = vshrl.u32 %v13426_v47, %v3292_v26  ;;  %v3303_v18 = vshll.u32 %v13426_v47, %v3291_v31  ;;  %v3304_v46 = vshrl.u32 %v8591_v58, %v3292_v26 }
 0x34b   : > { %v7278_v50 = vmin.u32 %v3446_v32, %v11111_v36  ;;  %v11126_v4 = vshll.u32 %v3285_v43, 8  ;;  %v3586_v40 = vand.u32 2147483647, %v11067_v3  ;;  %v3596_v38 = vadd.s32 1, %v7285_v57 }
 0x34c   : > { %vm3169_vm4 = vcmp.eq.s32.totalorder %v11095_v28, 2  ;;  %v3296_v53 = vor.u32 %v3295_v5, %v3294_v63  ;;  %v3299_v33 = vor.u32 %v3298_v39, %v3297_v23  ;;  %v3302_v44 = vor.u32 %v3301_v37, %v3300_v45 }
 0x34d   : > { %v3305_v35 = vor.u32 %v3304_v46, %v3303_v18  ;;  %vm3166_vm5 = vcmp.eq.s32.totalorder %v11095_v28, 0  ;;  %v3448_v61 = vclz %v7278_v50  ;;  %v3306_v19 = vshll.u32 %v8591_v58, %v3291_v31 }
 0x34e   : > { %v3307_v2 = vshrl.u32 %v13440_v13, %v3292_v26  ;;  %vm3309_vm6 = vcmp.lt.s32.totalorder %v3290_v6, 1  ;;  %vm3165_vm7 = vcmp.lt.s32.totalorder %v11095_v28, 2  ;;  %vm3310_vm8 = vcmp.lt.s32.totalorder %v3290_v6, 2 }
 0x34f   : > { %vm3311_vm9 = vcmp.lt.s32.totalorder %v3290_v6, 3  ;;  %vm3312_vm10 = vcmp.lt.s32.totalorder %v3290_v6, 4  ;;  %v3313_v49 = vsel %vm3309_vm6, %v3293_v10, %v3296_v53  ;;  %vm3163_vm12 = vweird.f32 %v10826_v12 }
 0x350   : > { %v7279_v54 = vadd.s32 4294967294, %v3448_v61  ;;  %v3308_v14 = vor.u32 %v3307_v2, %v3306_v19  ;;  %v3314_v60 = vsel %vm3312_vm10, %v3302_v44, 2102212464  ;;  %v3317_v0 = vsel %vm3309_vm6, %v3296_v53, %v3299_v33 }
 0x351   : > { %v3315_v1 = vsel %vm3311_vm9, %v3299_v33, %v3314_v60  ;;  %v3318_v41 = vsel %vm3312_vm10, %v3305_v35, 920167782  ;;  %v3321_v31 = vsel %vm3309_vm6, %v3299_v33, %v3302_v44  ;;  %vm4749_vm13 = vcmp.eq.s32.totalorder %v9188_v21, %v4703_v48 }
 0x352   : > { %vm7280_vm14 = vcmp.lt.s32.totalorder %v7279_v54, 0  ;;  %v3319_v8 = vsel %vm3311_vm9, %v3302_v44, %v3318_v41  ;;  %v3322_v43 = vsel %vm3312_vm10, %v3308_v14, 1326507024  ;;  %vm3597_vm15 = vcmp.gt.s32.totalorder %v3596_v38, 0 }
 0x353   : > { %vm4359_vm0 = vcmp.lt.f32.partialorder %v10823_v29, 5.5  ;;  %v3451_v30 = vsel %vm7280_vm14, 0, %v7279_v54  ;;  %v3316_v16 = vsel %vm3310_vm8, %v3313_v49, %v3315_v1  ;;  %v3320_v26 = vsel %vm3310_vm8, %v3317_v0, %v3319_v8 }
 0x354   : > { %v3323_v57 = vsel %vm3311_vm9, %v3305_v35, %v3322_v43  ;;  %v3452_v11 = vsub.s32 32, %v3451_v30  ;;  %v3453_v63 = vshll.u32 %v11111_v36, %v3451_v30  ;;  %v3456_v23 = vsub.s32 4294967266, %v3451_v30 }
 0x355   : > { %v3324_v32 = vsel %vm3310_vm8, %v3321_v31, %v3323_v57  ;;  %v8395_v10 = vpop.eup %8394  ;;  %v11149_v45 = vmul.u32.u64.low %v11126_v4, %v3320_v26  ;;  %v11150_v37 = vmul.u32.u64.high %v11126_v4, %v3320_v26, %v11149_v45  ;;  %v3598_v36 = vsel %vm3597_vm15, %v3596_v38, 0 }
 0x356   : > { %v11145_v5 = vmul.u32.u64.low %v11126_v4, %v3324_v32  ;;  %v11146_v39 = vmul.u32.u64.high %v11126_v4, %v3324_v32, %v11145_v5  ;;  %v8397_v18 = vpop.eup %8396  ;;  %v3170_v46 = vxor.u32 2147483648, %v8395_v10  ;;  %v3454_v50 = vshrl.u32 %v11109_v24, %v3452_v11 }
 0x357   : > { %v3457_v53 = vadd.s32 127, %v3456_v23  ;;  %v3167_v33 = vxor.u32 2147483648, %v8397_v18  ;;  %vm3382_vm1 = vcmp.lt.s32.totalorder %v10915_v22, 0  ;;  %v3593_v6 = vand.u32 8388607, %v3586_v40 }
 0x358   : > { %v3600_v44 = vand.u32 31, %v3598_v36  ;;  %v7337_v35 = vsel %vm4749_vm13, 1.0, %v8593_v17  ;;  %v3171_v61 = vsel %vm3169_vm4, %v3170_v46, %v8397_v18  ;;  %vm11165_vm2 = vcmp.le.f32.partialorder %v3380_v20, 0.7853982 }
 0x359   : > { %v3455_v38 = vor.u32 %v3454_v50, %v3453_v63  ;;  %v3458_v19 = vshll.u32 %v3457_v53, 23  ;;  %v3332_v2 = vmul.u32 %v11126_v4, %v3316_v16  ;;  %7808 = vmatprep.mubr.msk.f32.mxu0 %vm4821_vm11, %v7337_v35  ;;  %v3168_v49 = vsel %vm3166_vm5, %v8395_v10, %v3167_v33 }
 0x35a   : > { %v3466_v48 = vsub.s32 4, %v11092_v51  ;;  %vm3334_vm3 = vc.u32 %v11146_v39, %v11149_v45  ;;  %v3335_v54 = vadd.s32 1, %v11150_v37  ;;  %7809 = vmatmul.mubr.msk.f32.gmra.mxu0 %vm4821_vm11, %v11100_v42  ;;  %v3172_v20 = vsel %vm3165_vm7, %v3168_v49, %v3171_v61 }
 0x35b   : > { %v3459_v14 = vor.u32 4788187, %v3458_v19  ;;  %v3462_v4 = vcvt.s32.f32 %v3455_v38  ;;  %v3601_v60 = vsub.s32 32, %v3600_v44  ;;  %v3173_v0 = vsel %vm3163_vm12, nan, %v3172_v20 }
 0x35c   : > { %v3336_v1 = vsel %vm3334_vm3, %v3335_v54, %v11150_v37  ;;  %v3603_v41 = vshll.u32 %v13423_v15, %v3600_v44  ;;  %v3606_v31 = vshll.u32 %v13424_v9, %v3600_v44  ;;  %v4327_v8 = vmul.f32 %v3173_v0, %v3173_v0 }
 0x35d   : > { %v3460_v43 = vand.u32 2147483647, %v3459_v14  ;;  %v3337_v30 = vadd.s32 %v3336_v1, %v3332_v2  ;;  %v3599_v16 = vshrl.u32 %v3598_v36, 5  ;;  %v3604_v42 = vshrl.u32 %v13424_v9, %v3601_v60 }
 0x35e   : > { %v3607_v28 = vshrl.u32 %v13425_v59, %v3601_v60  ;;  %v3609_v26 = vshll.u32 %v13425_v59, %v3600_v44  ;;  %v3610_v57 = vshrl.u32 %v13426_v47, %v3601_v60  ;;  %v4391_v12 = vsel %vm4359_vm0, %v4327_v8, 0.0 }
 0x35f   : > { %v3463_v11 = vmul.f32 %v3462_v4, %v3460_v43  ;;  %v3338_v63 = vadd.s32 536870912, %v3337_v30  ;;  %v3612_v23 = vshll.u32 %v13426_v47, %v3600_v44  ;;  %4505 = vperm.xlu0 %8210, %v4391_v12   ;;  %v3594_v32 = vor.u32 8388608, %v3593_v6 }
 0x360   : > { %v3605_v10 = vor.u32 %v3604_v42, %v3603_v41  ;;  %v3608_v5 = vor.u32 %v3607_v28, %v3606_v31  ;;  %v3613_v37 = vshrl.u32 %v8591_v58, %v3601_v60  ;;  %v3615_v50 = vshll.u32 %v8591_v58, %v3600_v44 }
 0x361   : > { %v3464_v18 = vxor.u32 2147483648, %v3463_v11  ;;  %v11194_v46 = vshrl.u32 %v3338_v63, 30  ;;  %v3616_v53 = vshrl.u32 %v13440_v13, %v3601_v60  ;;  %v3467_v29 = vsel %vm3382_vm1, %v3466_v48, %v11092_v51 }
 0x362   : > { %v3602_v36 = vshrl.u32 %v13423_v15, %v3601_v60  ;;  %v3614_v33 = vor.u32 %v3613_v37, %v3612_v23  ;;  %vm3618_vm4 = vcmp.lt.s32.totalorder %v3599_v16, 1  ;;  %v3611_v61 = vor.u32 %v3610_v57, %v3609_v26  ;;  %v11228_v57 = vld [vmem:[%s8695_s14 + $0xc0] sm:$0xff] }
 0x363   : > { %v3465_v6 = vsel %vm3382_vm1, %v3464_v18, %v3463_v11  ;;  %v3340_v35 = vshll.u32 %v11194_v46, 30  ;;  %vm3619_vm5 = vcmp.lt.s32.totalorder %v3599_v16, 2  ;;  %v3617_v38 = vor.u32 %v3616_v53, %v3615_v50 }
 0x364   : > { %v3468_v44 = vsel %vm11165_vm2, %v10915_v22, %v3465_v6  ;;  %vm3620_vm6 = vcmp.lt.s32.totalorder %v3599_v16, 3  ;;  %vm3621_vm7 = vcmp.lt.s32.totalorder %v3599_v16, 4  ;;  %v3626_v2 = vsel %vm3618_vm4, %v3605_v10, %v3608_v5 }
 0x365   : > { %8398 = vcosq.f32 %v3468_v44  ;;  %v11208_v51 = vsub.s32 %v3337_v30, %v3340_v35  ;;  %v3623_v19 = vsel %vm3621_vm7, %v3611_v61, 2102212464  ;;  %v3627_v49 = vsel %vm3621_vm7, %v3614_v33, 920167782 }
 0x366   : > { %8400 = vsinq.f32 %v3468_v44  ;;  %v3634_v48 = vshll.u32 %v3594_v32, 8  ;;  %v3469_v54 = vsel %vm11165_vm2, 0, %v3467_v29  ;;  %v3622_v14 = vsel %vm3618_vm4, %v3602_v36, %v3605_v10  ;;  %v11253_v29 = vld [vmem:[%s8695_s14 + $0xd8] sm:$0xff] }
 0x367   : > { %v3343_v20 = vsub.s32 0, %v11208_v51  ;;  %v3628_v4 = vsel %vm3620_vm6, %v3611_v61, %v3627_v49  ;;  %v3624_v60 = vsel %vm3620_vm6, %v3608_v5, %v3623_v19  ;;  %v3630_v1 = vsel %vm3618_vm4, %v3608_v5, %v3611_v61 }
 0x368   : > { %v3629_v0 = vsel %vm3619_vm5, %v3626_v2, %v3628_v4  ;;  %v3631_v41 = vsel %vm3621_vm7, %v3617_v38, 1326507024  ;;  %v3473_v8 = vand.u32 3, %v3469_v54  ;;  %v3625_v28 = vsel %vm3619_vm5, %v3622_v14, %v3624_v60 }
 0x369   : > { %v7274_v31 = vmin.u32 %v3343_v20, %v11208_v51  ;;  %v3632_v24 = vsel %vm3620_vm6, %v3614_v33, %v3631_v41  ;;  %v11221_v43 = vmul.u32.u64.low %v3634_v48, %v3629_v0  ;;  %v11222_v30 = vmul.u32.u64.high %v3634_v48, %v3629_v0, %v11221_v43 }
 0x36a   : > { %v3633_v26 = vsel %vm3619_vm5, %v3630_v1, %v3632_v24  ;;  %v11231_v12 = vmul.f32 0.28559932, %v11228_v57  ;;  %vm3472_vm8 = vweird.f32 %v10915_v22  ;;  %vm11239_vm9 = vcmp.le.f32.partialorder %v3277_v52, 0.7853982 }
 0x36b   : > { %v3345_v42 = vclz %v7274_v31  ;;  %v11233_v11 = vmul.u32.u64.low %v3634_v48, %v3633_v26  ;;  %v11234_v63 = vmul.u32.u64.high %v3634_v48, %v3633_v26, %v11233_v11  ;;  %vm3474_vm10 = vcmp.lt.s32.totalorder %v3473_v8, 2 }
 0x36c   : > { %v3486_v16 = vand.u32 2139095040, %v11231_v12  ;;  %vm3279_vm12 = vcmp.lt.s32.totalorder %v11028_v34, 0  ;;  %v3641_v10 = vmul.u32 %v3634_v48, %v3625_v28  ;;  %v3644_v5 = vadd.s32 1, %v11222_v30 }
 0x36d   : > { %v7275_v32 = vadd.s32 4294967294, %v3345_v42  ;;  %v3333_v37 = vadd.s32 %v11149_v45, %v11146_v39  ;;  %v3363_v18 = vsub.s32 4, %v11194_v46  ;;  %vm3643_vm14 = vc.u32 %v11234_v63, %v11221_v43 }
 0x36e   : > { %v3487_v50 = vshrl.u32 %v3486_v16, 23  ;;  %v3483_v53 = vand.u32 2147483647, %v11231_v12  ;;  %v11256_v36 = vmul.f32 0.28559932, %v11253_v29  ;;  %v3645_v39 = vsel %vm3643_vm14, %v3644_v5, %v11222_v30 }
 0x36f   : > { %vm7276_vm13 = vcmp.lt.s32.totalorder %v7275_v32, 0  ;;  %vm3475_vm15 = vcmp.eq.s32.totalorder %v3473_v8, 0  ;;  %vm3478_vm0 = vcmp.eq.s32.totalorder %v3473_v8, 2  ;;  %v3646_v61 = vadd.s32 %v3645_v39, %v3641_v10 }
 0x370   : > { %v3348_v52 = vsel %vm7276_vm13, 0, %v7275_v32  ;;  %v7281_v44 = vadd.s32 4294967169, %v3487_v50  ;;  %v3364_v48 = vsel %vm3279_vm12, %v3363_v18, %v11194_v46  ;;  %v3795_v1 = vand.u32 2139095040, %v11256_v36 }
 0x371   : > { %v3349_v33 = vsub.s32 32, %v3348_v52  ;;  %v3350_v6 = vshll.u32 %v11208_v51, %v3348_v52  ;;  %v3353_v35 = vsub.s32 4294967266, %v3348_v52  ;;  %v3647_v20 = vadd.s32 536870912, %v3646_v61 }
 0x372   : > { %v8399_v45 = vpop.eup %8398  ;;  %v3490_v51 = vand.u32 8388607, %v3483_v53  ;;  %v3493_v14 = vadd.s32 1, %v7281_v44  ;;  %v3366_v31 = vsel %vm11239_vm9, 0, %v3364_v48  ;;  %vm4362_vm2 = vcmp.lt.f32.partialorder %v10912_v25, 5.5 }
 0x373   : > { %v8401_v38 = vpop.eup %8400  ;;  %v3479_v19 = vxor.u32 2147483648, %v8399_v45  ;;  %v3351_v2 = vshrl.u32 %v3333_v37, %v3349_v33  ;;  %v3354_v49 = vadd.s32 127, %v3353_v35  ;;  %v11269_v24 = vshrl.u32 %v3647_v20, 30 }
 0x374   : > { %v3476_v54 = vxor.u32 2147483648, %v8401_v38  ;;  %vm3494_vm1 = vcmp.gt.s32.totalorder %v3493_v14, 0  ;;  %v3491_v32 = vor.u32 8388608, %v3490_v51  ;;  %v3796_v37 = vshrl.u32 %v3795_v1, 23 }
 0x375   : > { %v3480_v4 = vsel %vm3478_vm0, %v3479_v19, %v8401_v38  ;;  %v3352_v60 = vor.u32 %v3351_v2, %v3350_v6  ;;  %v3355_v0 = vshll.u32 %v3354_v49, 23  ;;  %v3495_v28 = vsel %vm3494_vm1, %v3493_v14, 0  ;;  %v4712_v38 = vpop.permute.xlu1 %4711 }
 0x376   : > { %v3477_v41 = vsel %vm3475_vm15, %v8399_v45, %v3476_v54  ;;  %v3649_v11 = vshll.u32 %v11269_v24, 30  ;;  %v3497_v5 = vand.u32 31, %v3495_v28  ;;  %v11276_v18 = vand.u32 3, %v3366_v31 }
 0x377   : > { %v3481_v46 = vsel %vm3474_vm10, %v3477_v41, %v3480_v4  ;;  %v3356_v30 = vor.u32 4788187, %v3355_v0  ;;  %v3359_v42 = vcvt.s32.f32 %v3352_v60  ;;  %v11280_v8 = vshrl.u32 %v3495_v28, 5 }
 0x378   : > { %v3482_v26 = vsel %vm3472_vm8, nan, %v3481_v46  ;;  %v11278_v50 = vsub.s32 %v3646_v61, %v3649_v11  ;;  %v3792_v52 = vand.u32 2147483647, %v11256_v36  ;;  %v3642_v25 = vadd.s32 %v11221_v43, %v11234_v63 }
 0x379   : > { %v4330_v16 = vmul.f32 %v3482_v26, %v3482_v26  ;;  %v3357_v10 = vand.u32 2147483647, %v3356_v30  ;;  %v3498_v6 = vsub.s32 32, %v3497_v5  ;;  %v3500_v39 = vshll.u32 %v13423_v15, %v3497_v5 }
 0x37a   : > { %v3652_v35 = vsub.s32 0, %v11278_v50  ;;  %v3503_v45 = vshll.u32 %v13424_v9, %v3497_v5  ;;  %v11288_v44 = vshll.u32 %v3491_v32, 8  ;;  %v7293_v49 = vadd.s32 4294967169, %v3796_v37 }
 0x37b   : > { %v4394_v33 = vsel %vm4362_vm2, %v4330_v16, 0.0  ;;  %v3360_v22 = vmul.f32 %v3359_v42, %v3357_v10  ;;  %v3501_v19 = vshrl.u32 %v13424_v9, %v3498_v6  ;;  %v3504_v2 = vshrl.u32 %v13425_v59, %v3498_v6 }
 0x37c   : > { %4520 = vperm.xlu1 %8209, %v4394_v33   ;;  %v7286_v48 = vmin.u32 %v3652_v35, %v11278_v50  ;;  %v3499_v43 = vshrl.u32 %v13423_v15, %v3498_v6  ;;  %vm3515_vm3 = vcmp.lt.s32.totalorder %v11280_v8, 1  ;;  %vm3516_vm4 = vcmp.lt.s32.totalorder %v11280_v8, 2 }
 0x37d   : > { %v3361_v61 = vxor.u32 2147483648, %v3360_v22  ;;  %v3502_v54 = vor.u32 %v3501_v19, %v3500_v39  ;;  %v3505_v20 = vor.u32 %v3504_v2, %v3503_v45  ;;  %v3506_v51 = vshll.u32 %v13425_v59, %v3497_v5 }
 0x37e   : > { %v3654_v4 = vclz %v7286_v48  ;;  %vm4752_vm5 = vcmp.eq.s32.totalorder %v9188_v21, %v4712_v38  ;;  %v3507_v60 = vshrl.u32 %v13426_v47, %v3498_v6  ;;  %v3509_v0 = vshll.u32 %v13426_v47, %v3497_v5 }
 0x37f   : > { %v3362_v63 = vsel %vm3279_vm12, %v3361_v61, %v3360_v22  ;;  %v3510_v1 = vshrl.u32 %v8591_v58, %v3498_v6  ;;  %v3512_v41 = vshll.u32 %v8591_v58, %v3497_v5  ;;  %v3513_v31 = vshrl.u32 %v13440_v13, %v3498_v6 }
 0x380   : > { %v3365_v14 = vsel %vm11239_vm9, %v11028_v34, %v3362_v63  ;;  %v7287_v46 = vadd.s32 4294967294, %v3654_v4  ;;  %v3508_v30 = vor.u32 %v3507_v60, %v3506_v51  ;;  %vm3517_vm6 = vcmp.lt.s32.totalorder %v11280_v8, 3  ;;  %v4709_v63 = vpop.permute.xlu0 %4708 }
 0x381   : > { %8402 = vcosq.f32 %v3365_v14  ;;  %v3511_v23 = vor.u32 %v3510_v1, %v3509_v0  ;;  %v3514_v42 = vor.u32 %v3513_v31, %v3512_v41  ;;  %vm3518_vm7 = vcmp.lt.s32.totalorder %v11280_v8, 4 }
 0x382   : > { %8404 = vsinq.f32 %v3365_v14  ;;  %v3519_v28 = vsel %vm3515_vm3, %v3499_v43, %v3502_v54  ;;  %vm7288_vm8 = vcmp.lt.s32.totalorder %v7287_v46, 0  ;;  %v3520_v26 = vsel %vm3518_vm7, %v3508_v30, 2102212464 }
 0x383   : > { %v3523_v11 = vsel %vm3515_vm3, %v3502_v54, %v3505_v20  ;;  %v3527_v32 = vsel %vm3515_vm3, %v3505_v20, %v3508_v30  ;;  %v3657_v16 = vsel %vm7288_vm8, 0, %v7287_v46  ;;  %v3521_v10 = vsel %vm3517_vm6, %v3505_v20, %v3520_v26 }
 0x384   : > { %v3524_v5 = vsel %vm3518_vm7, %v3511_v23, 920167782  ;;  %v3528_v37 = vsel %vm3518_vm7, %v3514_v42, 1326507024  ;;  %v3658_v33 = vsub.s32 32, %v3657_v16  ;;  %v3659_v22 = vshll.u32 %v11278_v50, %v3657_v16 }
 0x385   : > { %v3662_v6 = vsub.s32 4294967266, %v3657_v16  ;;  %v11321_v35 = vand.u32 8388607, %v3792_v52  ;;  %v3522_v39 = vsel %vm3516_vm4, %v3519_v28, %v3521_v10  ;;  %v3525_v45 = vsel %vm3517_vm6, %v3508_v30, %v3524_v5 }
 0x386   : > { %v3529_v61 = vsel %vm3517_vm6, %v3511_v23, %v3528_v37  ;;  %v3802_v19 = vadd.s32 1, %v7293_v49  ;;  %vm3371_vm9 = vcmp.lt.s32.totalorder %v11276_v18, 2  ;;  %v3660_v2 = vshrl.u32 %v3642_v25, %v3658_v33 }
 0x387   : > { %v3663_v48 = vadd.s32 127, %v3662_v6  ;;  %v3526_v50 = vsel %vm3516_vm4, %v3523_v11, %v3525_v45  ;;  %v3530_v43 = vsel %vm3516_vm4, %v3527_v32, %v3529_v61  ;;  %vm3369_vm10 = vweird.f32 %v11028_v34 }
 0x388   : > { %vm3588_vm12 = vcmp.lt.s32.totalorder %v11067_v3, 0  ;;  %v11337_v54 = vmul.u32.u64.low %v11288_v44, %v3530_v43  ;;  %v11338_v20 = vmul.u32.u64.high %v11288_v44, %v3530_v43, %v11337_v54  ;;  %vm3372_vm13 = vcmp.eq.s32.totalorder %v11276_v18, 0 }
 0x389   : > { %v11341_v49 = vmul.u32.u64.low %v11288_v44, %v3526_v50  ;;  %v11342_v51 = vmul.u32.u64.high %v11288_v44, %v3526_v50, %v11341_v49  ;;  %vm11348_vm14 = vcmp.le.f32.partialorder %v3586_v40, 0.7853982  ;;  %v3661_v25 = vor.u32 %v3660_v2, %v3659_v22 }
 0x38a   : > { %v3664_v14 = vshll.u32 %v3663_v48, 23  ;;  %vm3803_vm15 = vcmp.gt.s32.totalorder %v3802_v19, 0  ;;  %vm3375_vm0 = vcmp.eq.s32.totalorder %v11276_v18, 2  ;;  %v7340_v4 = vsel %vm4752_vm5, 1.0, %v8593_v17 }
 0x38b   : > { %v3804_v60 = vsel %vm3803_vm15, %v3802_v19, 0  ;;  %vm4751_vm1 = vcmp.eq.s32.totalorder %v9188_v21, %v4709_v63  ;;  %vm4361_vm2 = vcmp.lt.f32.partialorder %v11025_v7, 5.5  ;;  %v3668_v1 = vcvt.s32.f32 %v3661_v25 }
 0x38c   : > { %v3665_v0 = vor.u32 4788187, %v3664_v14  ;;  %v3538_v40 = vmul.u32 %v11288_v44, %v3522_v39  ;;  %v3806_v41 = vand.u32 31, %v3804_v60  ;;  %vm3540_vm3 = vc.u32 %v11338_v20, %v11341_v49 }
 0x38d   : > { %v3541_v31 = vadd.s32 1, %v11342_v51  ;;  %v3800_v46 = vor.u32 8388608, %v11321_v35  ;;  %v7339_v38 = vsel %vm4751_vm1, 1.0, %v8593_v17  ;;  %v3672_v42 = vsub.s32 4, %v11269_v24 }
 0x38e   : > { %v8403_v30 = vpop.eup %8402  ;;  %v3666_v23 = vand.u32 2147483647, %v3665_v0  ;;  %v3807_v28 = vsub.s32 32, %v3806_v41  ;;  %v3809_v26 = vshll.u32 %v13423_v15, %v3806_v41  ;;  %7811 = vmatprep.mubr.msk.f32.mxu0 %vm4821_vm11, %v7339_v38  ;;  %v3812_v16 = vshll.u32 %v13424_v9, %v3806_v41 }
 0x38f   : > { %v8405_v44 = vpop.eup %8404  ;;  %v3376_v11 = vxor.u32 2147483648, %v8403_v30  ;;  %v3542_v32 = vsel %vm3540_vm3, %v3541_v31, %v11342_v51  ;;  %v3815_v10 = vshll.u32 %v13425_v59, %v3806_v41  ;;  %7812 = vmatmul.mubr.msk.f32.gmra.mxu0 %vm4821_vm11, %v7340_v4  ;;  %v3818_v22 = vshll.u32 %v13426_v47, %v3806_v41 }
 0x390   : > { %v3373_v5 = vxor.u32 2147483648, %v8405_v44  ;;  %v3669_v37 = vmul.f32 %v3668_v1, %v3666_v23  ;;  %v3543_v33 = vadd.s32 %v3542_v32, %v3538_v40  ;;  %v3810_v35 = vshrl.u32 %v13424_v9, %v3807_v28 }
 0x391   : > { %v3377_v6 = vsel %vm3375_vm0, %v3376_v11, %v8405_v44  ;;  %v3813_v39 = vshrl.u32 %v13425_v59, %v3807_v28  ;;  %v3816_v45 = vshrl.u32 %v13426_v47, %v3807_v28  ;;  %v3819_v48 = vshrl.u32 %v8591_v58, %v3807_v28 }
 0x392   : > { %v3374_v61 = vsel %vm3372_vm13, %v8403_v30, %v3373_v5  ;;  %v3670_v19 = vxor.u32 2147483648, %v3669_v37  ;;  %v3544_v2 = vadd.s32 536870912, %v3543_v33  ;;  %v3673_v43 = vsel %vm3588_vm12, %v3672_v42, %v11269_v24 }
 0x393   : > { %v3378_v50 = vsel %vm3371_vm9, %v3374_v61, %v3377_v6  ;;  %v3805_v63 = vshrl.u32 %v3804_v60, 5  ;;  %v3811_v54 = vor.u32 %v3810_v35, %v3809_v26  ;;  %v3814_v4 = vor.u32 %v3813_v39, %v3812_v16 }
 0x394   : > { %v3379_v51 = vsel %vm3369_vm10, nan, %v3378_v50  ;;  %v3671_v25 = vsel %vm3588_vm12, %v3670_v19, %v3669_v37  ;;  %v11389_v14 = vshrl.u32 %v3544_v2, 30  ;;  %v3821_v1 = vshll.u32 %v8591_v58, %v3806_v41  ;;  %v11420_v2 = vld [vmem:[%s8695_s14 + $0xd0] sm:$0xff] }
 0x395   : > { %v4329_v0 = vmul.f32 %v3379_v51, %v3379_v51  ;;  %v3674_v18 = vsel %vm11348_vm14, %v11067_v3, %v3671_v25  ;;  %v3822_v24 = vshrl.u32 %v13440_v13, %v3807_v28  ;;  %v3817_v34 = vor.u32 %v3816_v45, %v3815_v10 }
 0x396   : > { %8406 = vcosq.f32 %v3674_v18  ;;  %v3546_v60 = vshll.u32 %v11389_v14, 30  ;;  %v3820_v40 = vor.u32 %v3819_v48, %v3818_v22  ;;  %vm3824_vm4 = vcmp.lt.s32.totalorder %v3805_v63, 1 }
 0x397   : > { %v4393_v31 = vsel %vm4361_vm2, %v4329_v0, 0.0  ;;  %8408 = vsinq.f32 %v3674_v18  ;;  %v3823_v38 = vor.u32 %v3822_v24, %v3821_v1  ;;  %v3808_v23 = vshrl.u32 %v13423_v15, %v3807_v28 }
 0x398   : > { %4515 = vperm.xlu0 %8210, %v4393_v31   ;;  %v11399_v30 = vsub.s32 %v3543_v33, %v3546_v60  ;;  %vm3826_vm5 = vcmp.lt.s32.totalorder %v3805_v63, 3  ;;  %vm3827_vm6 = vcmp.lt.s32.totalorder %v3805_v63, 4  ;;  %v3675_v41 = vsel %vm11348_vm14, 0, %v3673_v43 }
 0x399   : > { %v3829_v42 = vsel %vm3827_vm6, %v3817_v34, 2102212464  ;;  %v3840_v26 = vshll.u32 %v3800_v46, 8  ;;  %vm3825_vm7 = vcmp.lt.s32.totalorder %v3805_v63, 2  ;;  %v3832_v7 = vsel %vm3824_vm4, %v3811_v54, %v3814_v4 }
 0x39a   : > { %v3549_v44 = vsub.s32 0, %v11399_v30  ;;  %v3833_v11 = vsel %vm3827_vm6, %v3820_v40, 920167782  ;;  %v3836_v16 = vsel %vm3824_vm4, %v3814_v4, %v3817_v34  ;;  %v3837_v10 = vsel %vm3827_vm6, %v3823_v38, 1326507024  ;;  %v11445_v38 = vld [vmem:[%s8695_s14 + $0xe8] sm:$0xff] }
 0x39b   : > { %v3834_v32 = vsel %vm3826_vm5, %v3817_v34, %v3833_v11  ;;  %v3828_v5 = vsel %vm3824_vm4, %v3808_v23, %v3811_v54  ;;  %v3830_v8 = vsel %vm3826_vm5, %v3814_v4, %v3829_v42  ;;  %v3679_v37 = vand.u32 3, %v3675_v41 }
 0x39c   : > { %v7282_v28 = vmin.u32 %v3549_v44, %v11399_v30  ;;  %v3835_v46 = vsel %vm3825_vm7, %v3832_v7, %v3834_v32  ;;  %v3838_v33 = vsel %vm3826_vm5, %v3820_v40, %v3837_v10  ;;  %v3831_v45 = vsel %vm3825_vm7, %v3828_v5, %v3830_v8  ;;  %v4715_v7 = vpop.permute.xlu0 %4714 }
 0x39d   : > { %v3839_v6 = vsel %vm3825_vm7, %v3836_v16, %v3838_v33  ;;  %v11412_v35 = vmul.u32.u64.low %v3840_v26, %v3835_v46  ;;  %v11413_v39 = vmul.u32.u64.high %v3840_v26, %v3835_v46, %v11412_v35  ;;  %v11423_v48 = vmul.f32 0.28559932, %v11420_v2  ;;  %v4718_v46 = vpop.permute.xlu1 %4717 }
 0x39e   : > { %v3551_v22 = vclz %v7282_v28  ;;  %v11416_v61 = vmul.u32.u64.low %v3840_v26, %v3839_v6  ;;  %v11417_v19 = vmul.u32.u64.high %v3840_v26, %v3839_v6, %v11416_v61  ;;  %vm3678_vm8 = vweird.f32 %v11067_v3 }
 0x39f   : > { %vm3485_vm9 = vcmp.lt.s32.totalorder %v11231_v12, 0  ;;  %vm3680_vm10 = vcmp.lt.s32.totalorder %v3679_v37, 2  ;;  %vm3681_vm12 = vcmp.eq.s32.totalorder %v3679_v37, 0  ;;  %vm3684_vm13 = vcmp.eq.s32.totalorder %v3679_v37, 2 }
 0x3a0   : > { %v7283_v50 = vadd.s32 4294967294, %v3551_v22  ;;  %vm4364_vm14 = vcmp.lt.f32.partialorder %v11064_v56, 5.5  ;;  %v3692_v43 = vand.u32 2139095040, %v11423_v48  ;;  %vm11431_vm15 = vcmp.le.f32.partialorder %v3483_v53, 0.7853982 }
 0x3a1   : > { %v3539_v54 = vadd.s32 %v11341_v49, %v11338_v20  ;;  %v3847_v51 = vmul.u32 %v3840_v26, %v3831_v45  ;;  %v3850_v25 = vadd.s32 1, %v11413_v39  ;;  %v3569_v18 = vsub.s32 4, %v11389_v14 }
 0x3a2   : > { %vm7284_vm0 = vcmp.lt.s32.totalorder %v7283_v50, 0  ;;  %vm3849_vm1 = vc.u32 %v11417_v19, %v11412_v35  ;;  %v3689_v53 = vand.u32 2147483647, %v11423_v48  ;;  %v3693_v31 = vshrl.u32 %v3692_v43, 23 }
 0x3a3   : > { %v8407_v4 = vpop.eup %8406  ;;  %v3554_v0 = vsel %vm7284_vm0, 0, %v7283_v50  ;;  %v3851_v40 = vsel %vm3849_vm1, %v3850_v25, %v11413_v39  ;;  %v11448_v23 = vmul.f32 0.28559932, %v11445_v38  ;;  %vm4753_vm2 = vcmp.eq.s32.totalorder %v9188_v21, %v4715_v7 }
 0x3a4   : > { %v8409_v1 = vpop.eup %8408  ;;  %v3685_v24 = vxor.u32 2147483648, %v8407_v4  ;;  %v3555_v60 = vsub.s32 32, %v3554_v0  ;;  %v3556_v34 = vshll.u32 %v11399_v30, %v3554_v0  ;;  %v3559_v20 = vsub.s32 4294967266, %v3554_v0 }
 0x3a5   : > { %v3682_v49 = vxor.u32 2147483648, %v8409_v1  ;;  %v3852_v44 = vadd.s32 %v3851_v40, %v3847_v51  ;;  %v3570_v30 = vsel %vm3485_vm9, %v3569_v18, %v11389_v14  ;;  %v7289_v32 = vadd.s32 4294967169, %v3693_v31 }
 0x3a6   : > { %v3686_v41 = vsel %vm3684_vm13, %v3685_v24, %v8409_v1  ;;  %v3557_v42 = vshrl.u32 %v3539_v54, %v3555_v60  ;;  %v3560_v26 = vadd.s32 127, %v3559_v20  ;;  %v3696_v16 = vand.u32 8388607, %v3689_v53 }
 0x3a7   : > { %v3683_v11 = vsel %vm3681_vm12, %v8407_v4, %v3682_v49  ;;  %v3853_v8 = vadd.s32 536870912, %v3852_v44  ;;  %v3699_v22 = vadd.s32 1, %v7289_v32  ;;  %v4001_v6 = vand.u32 2139095040, %v11448_v23 }
 0x3a8   : > { %v3687_v10 = vsel %vm3680_vm10, %v3683_v11, %v3686_v41  ;;  %v3558_v28 = vor.u32 %v3557_v42, %v3556_v34  ;;  %v3561_v5 = vshll.u32 %v3560_v26, 23  ;;  %v3572_v37 = vsel %vm11431_vm15, 0, %v3570_v30 }
 0x3a9   : > { %v3688_v33 = vsel %vm3678_vm8, nan, %v3687_v10  ;;  %v11462_v61 = vshrl.u32 %v3853_v8, 30  ;;  %vm4754_vm3 = vcmp.eq.s32.totalorder %v9188_v21, %v4718_v46  ;;  %vm3700_vm4 = vcmp.gt.s32.totalorder %v3699_v22, 0 }
 0x3aa   : > { %v4332_v39 = vmul.f32 %v3688_v33, %v3688_v33  ;;  %v3562_v14 = vor.u32 4788187, %v3561_v5  ;;  %v3565_v45 = vcvt.s32.f32 %v3558_v28  ;;  %v3998_v50 = vand.u32 2147483647, %v11448_v23 }
 0x3ab   : > { %v3855_v54 = vshll.u32 %v11462_v61, 30  ;;  %v3697_v51 = vor.u32 8388608, %v3696_v16  ;;  %v3701_v25 = vsel %vm3700_vm4, %v3699_v22, 0  ;;  %v4002_v4 = vshrl.u32 %v4001_v6, 23 }
 0x3ac   : > { %v4396_v3 = vsel %vm4364_vm14, %v4332_v39, 0.0  ;;  %v3563_v43 = vand.u32 2147483647, %v3562_v14  ;;  %v7341_v0 = vsel %vm4753_vm2, 1.0, %v8593_v17  ;;  %v7342_v24 = vsel %vm4754_vm3, 1.0, %v8593_v17 }
 0x3ad   : > { %4530 = vperm.xlu1 %8209, %v4396_v3   ;;  %v11474_v1 = vsub.s32 %v3852_v44, %v3855_v54  ;;  %7814 = vmatprep.mubr.msk.f32.mxu0 %vm4821_vm11, %v7341_v0  ;;  %v11478_v56 = vand.u32 3, %v3572_v37  ;;  %v3848_v60 = vadd.s32 %v11412_v35, %v11417_v19  ;;  %v3702_v34 = vshrl.u32 %v3701_v25, 5 }
 0x3ae   : > { %v3566_v18 = vmul.f32 %v3565_v45, %v3563_v43  ;;  %v3703_v20 = vand.u32 31, %v3701_v25  ;;  %7815 = vmatmul.mubr.msk.f32.gmra.mxu0 %vm4821_vm11, %v7342_v24  ;;  %v11484_v31 = vshll.u32 %v3697_v51, 8  ;;  %v11488_v41 = vand.u32 8388607, %v3998_v50 }
 0x3af   : > { %v3858_v40 = vsub.s32 0, %v11474_v1  ;;  %v3878_v42 = vsub.s32 4, %v11462_v61  ;;  %v7301_v7 = vadd.s32 4294967169, %v4002_v4  ;;  %vm3721_vm5 = vcmp.lt.s32.totalorder %v3702_v34, 1 }
 0x3b0   : > { %v3567_v49 = vxor.u32 2147483648, %v3566_v18  ;;  %v3704_v26 = vsub.s32 32, %v3703_v20  ;;  %v3706_v44 = vshll.u32 %v13423_v15, %v3703_v20  ;;  %v3709_v11 = vshll.u32 %v13424_v9, %v3703_v20 }
 0x3b1   : > { %v7294_v19 = vmin.u32 %v3858_v40, %v11474_v1  ;;  %v3712_v30 = vshll.u32 %v13425_v59, %v3703_v20  ;;  %v3715_v33 = vshll.u32 %v13426_v47, %v3703_v20  ;;  %vm3794_vm6 = vcmp.lt.s32.totalorder %v11256_v36, 0 }
 0x3b2   : > { %v3568_v35 = vsel %vm3485_vm9, %v3567_v49, %v3566_v18  ;;  %v3705_v16 = vshrl.u32 %v13423_v15, %v3704_v26  ;;  %v3707_v10 = vshrl.u32 %v13424_v9, %v3704_v26  ;;  %v3710_v5 = vshrl.u32 %v13425_v59, %v3704_v26 }
 0x3b3   : > { %v3571_v32 = vsel %vm11431_vm15, %v11231_v12, %v3568_v35  ;;  %v3860_v28 = vclz %v7294_v19  ;;  %v3713_v8 = vshrl.u32 %v13426_v47, %v3704_v26  ;;  %v3716_v22 = vshrl.u32 %v8591_v58, %v3704_v26 }
 0x3b4   : > { %8410 = vcosq.f32 %v3571_v32  ;;  %v3708_v46 = vor.u32 %v3707_v10, %v3706_v44  ;;  %v3711_v6 = vor.u32 %v3710_v5, %v3709_v11  ;;  %v3718_v14 = vshll.u32 %v8591_v58, %v3703_v20 }
 0x3b5   : > { %8412 = vsinq.f32 %v3571_v32  ;;  %v7295_v63 = vadd.s32 4294967294, %v3860_v28  ;;  %v3714_v39 = vor.u32 %v3713_v8, %v3712_v30  ;;  %v3717_v45 = vor.u32 %v3716_v22, %v3715_v33 }
 0x3b6   : > { %v3719_v37 = vshrl.u32 %v13440_v13, %v3704_v26  ;;  %vm3722_vm7 = vcmp.lt.s32.totalorder %v3702_v34, 2  ;;  %vm3723_vm8 = vcmp.lt.s32.totalorder %v3702_v34, 3  ;;  %vm3724_vm10 = vcmp.lt.s32.totalorder %v3702_v34, 4 }
 0x3b7   : > { %vm7296_vm9 = vcmp.lt.s32.totalorder %v7295_v63, 0  ;;  %v3725_v3 = vsel %vm3721_vm5, %v3705_v16, %v3708_v46  ;;  %v3729_v43 = vsel %vm3721_vm5, %v3708_v46, %v3711_v6  ;;  %vm11513_vm12 = vcmp.le.f32.partialorder %v3792_v52, 0.7853982 }
 0x3b8   : > { %v3863_v51 = vsel %vm7296_vm9, 0, %v7295_v63  ;;  %v3720_v25 = vor.u32 %v3719_v37, %v3718_v14  ;;  %v3726_v4 = vsel %vm3724_vm10, %v3714_v39, 2102212464  ;;  %v3730_v0 = vsel %vm3724_vm10, %v3717_v45, 920167782 }
 0x3b9   : > { %v3864_v18 = vsub.s32 32, %v3863_v51  ;;  %v3865_v24 = vshll.u32 %v11474_v1, %v3863_v51  ;;  %v3868_v20 = vsub.s32 4294967266, %v3863_v51  ;;  %v3727_v49 = vsel %vm3723_vm8, %v3711_v6, %v3726_v4 }
 0x3ba   : > { %v3731_v40 = vsel %vm3723_vm8, %v3714_v39, %v3730_v0  ;;  %v3733_v26 = vsel %vm3721_vm5, %v3711_v6, %v3714_v39  ;;  %v3734_v44 = vsel %vm3724_vm10, %v3720_v25, 1326507024  ;;  %v4008_v35 = vadd.s32 1, %v7301_v7 }
 0x3bb   : > { %vm3575_vm13 = vweird.f32 %v11231_v12  ;;  %v3866_v52 = vshrl.u32 %v3848_v60, %v3864_v18  ;;  %v3869_v19 = vadd.s32 127, %v3868_v20  ;;  %v3732_v11 = vsel %vm3722_vm7, %v3729_v43, %v3731_v40 }
 0x3bc   : > { %v3735_v30 = vsel %vm3723_vm8, %v3717_v45, %v3734_v44  ;;  %v3728_v32 = vsel %vm3722_vm7, %v3725_v3, %v3727_v49  ;;  %v11527_v16 = vmul.u32.u64.low %v11484_v31, %v3732_v11  ;;  %v11528_v10 = vmul.u32.u64.high %v11484_v31, %v3732_v11, %v11527_v16 }
 0x3bd   : > { %v3736_v1 = vsel %vm3722_vm7, %v3733_v26, %v3735_v30  ;;  %v3867_v28 = vor.u32 %v3866_v52, %v3865_v24  ;;  %v3870_v5 = vshll.u32 %v3869_v19, 23  ;;  %vm3577_vm14 = vcmp.lt.s32.totalorder %v11478_v56, 2 }
 0x3be   : > { %v11532_v7 = vmul.u32.u64.low %v11484_v31, %v3736_v1  ;;  %v11533_v8 = vmul.u32.u64.high %v11484_v31, %v3736_v1, %v11532_v7  ;;  %vm3578_vm15 = vcmp.eq.s32.totalorder %v11478_v56, 0  ;;  %vm4363_vm0 = vcmp.lt.f32.partialorder %v11228_v57, 5.5 }
 0x3bf   : > { %v3879_v60 = vsel %vm3794_vm6, %v3878_v42, %v11462_v61  ;;  %vm4009_vm1 = vcmp.gt.s32.totalorder %v4008_v35, 0  ;;  %v3871_v34 = vor.u32 4788187, %v3870_v5  ;;  %v3874_v46 = vcvt.s32.f32 %v3867_v28 }
 0x3c0   : > { %v3744_v33 = vmul.u32 %v11484_v31, %v3728_v32  ;;  %v4010_v22 = vsel %vm4009_vm1, %v4008_v35, 0  ;;  %vm3581_vm2 = vcmp.eq.s32.totalorder %v11478_v56, 2  ;;  %v3747_v6 = vadd.s32 1, %v11528_v10 }
 0x3c1   : > { %v8411_v63 = vpop.eup %8410  ;;  %v4006_v39 = vor.u32 8388608, %v11488_v41  ;;  %v4012_v14 = vand.u32 31, %v4010_v22  ;;  %v3872_v3 = vand.u32 2147483647, %v3871_v34  ;;  %v3881_v61 = vsel %vm11513_vm12, 0, %v3879_v60 }
 0x3c2   : > { %v8413_v45 = vpop.eup %8412  ;;  %v3582_v37 = vxor.u32 2147483648, %v8411_v63  ;;  %vm3746_vm3 = vc.u32 %v11533_v8, %v11527_v16  ;;  %v4011_v41 = vshrl.u32 %v4010_v22, 5  ;;  %v11577_v54 = vand.u32 3, %v3881_v61 }
 0x3c3   : > { %v3579_v42 = vxor.u32 2147483648, %v8413_v45  ;;  %v3748_v31 = vsel %vm3746_vm3, %v3747_v6, %v11528_v10  ;;  %v4013_v43 = vsub.s32 32, %v4012_v14  ;;  %v4015_v51 = vshll.u32 %v13423_v15, %v4012_v14 }
 0x3c4   : > { %v3583_v25 = vsel %vm3581_vm2, %v3582_v37, %v8413_v45  ;;  %v3875_v4 = vmul.f32 %v3874_v46, %v3872_v3  ;;  %v3749_v0 = vadd.s32 %v3748_v31, %v3744_v33  ;;  %v4018_v20 = vshll.u32 %v13424_v9, %v4012_v14 }
 0x3c5   : > { %v3580_v18 = vsel %vm3578_vm15, %v8411_v63, %v3579_v42  ;;  %v4016_v24 = vshrl.u32 %v13424_v9, %v4013_v43  ;;  %v4019_v49 = vshrl.u32 %v13425_v59, %v4013_v43  ;;  %v4021_v35 = vshll.u32 %v13425_v59, %v4012_v14  ;;  %v4724_v42 = vpop.permute.xlu1 %4723 }
 0x3c6   : > { %v3584_v40 = vsel %vm3577_vm14, %v3580_v18, %v3583_v25  ;;  %v3876_v26 = vxor.u32 2147483648, %v3875_v4  ;;  %v3750_v44 = vadd.s32 536870912, %v3749_v0  ;;  %v4014_v19 = vshrl.u32 %v13423_v15, %v4013_v43 }
 0x3c7   : > { %v3585_v52 = vsel %vm3575_vm13, nan, %v3584_v40  ;;  %v4017_v11 = vor.u32 %v4016_v24, %v4015_v51  ;;  %v4022_v30 = vshrl.u32 %v13426_v47, %v4013_v43  ;;  %v4024_v56 = vshll.u32 %v13426_v47, %v4012_v14 }
 0x3c8   : > { %v4331_v32 = vmul.f32 %v3585_v52, %v3585_v52  ;;  %v3877_v1 = vsel %vm3794_vm6, %v3876_v26, %v3875_v4  ;;  %v11565_v10 = vshrl.u32 %v3750_v44, 30  ;;  %v4020_v5 = vor.u32 %v4019_v49, %v4018_v20  ;;  %v11587_v4 = vld [vmem:[%s8695_s14 + $0xe0] sm:$0xff]  ;;  %v4721_v26 = vpop.permute.xlu0 %4720 }
 0x3c9   : > { %v3880_v28 = vsel %vm11513_vm12, %v11256_v36, %v3877_v1  ;;  %v4025_v12 = vshrl.u32 %v8591_v58, %v4013_v43  ;;  %v4027_v7 = vshll.u32 %v8591_v58, %v4012_v14  ;;  %v4023_v46 = vor.u32 %v4022_v30, %v4021_v35 }
 0x3ca   : > { %v4395_v60 = vsel %vm4363_vm0, %v4331_v32, 0.0  ;;  %8414 = vcosq.f32 %v3880_v28  ;;  %v3752_v34 = vshll.u32 %v11565_v10, 30  ;;  %v4028_v22 = vshrl.u32 %v13440_v13, %v4013_v43 }
 0x3cb   : > { %4525 = vperm.xlu0 %8210, %v4395_v60   ;;  %8416 = vsinq.f32 %v3880_v28  ;;  %v4026_v33 = vor.u32 %v4025_v12, %v4024_v56  ;;  %vm4030_vm4 = vcmp.lt.s32.totalorder %v4011_v41, 1  ;;  %v11581_v6 = vshll.u32 %v4006_v39, 8 }
 0x3cc   : > { %v11579_v63 = vsub.s32 %v3749_v0, %v3752_v34  ;;  %v4029_v14 = vor.u32 %v4028_v22, %v4027_v7  ;;  %vm4031_vm5 = vcmp.lt.s32.totalorder %v4011_v41, 2  ;;  %vm4032_vm6 = vcmp.lt.s32.totalorder %v4011_v41, 3 }
 0x3cd   : > { %vm4033_vm7 = vcmp.lt.s32.totalorder %v4011_v41, 4  ;;  %v4034_v45 = vsel %vm4030_vm4, %v4014_v19, %v4017_v11  ;;  %v4038_v3 = vsel %vm4030_vm4, %v4017_v11, %v4020_v5  ;;  %v4042_v61 = vsel %vm4030_vm4, %v4020_v5, %v4023_v46 }
 0x3ce   : > { %v3755_v57 = vsub.s32 0, %v11579_v63  ;;  %v4035_v37 = vsel %vm4033_vm7, %v4023_v46, 2102212464  ;;  %v4039_v43 = vsel %vm4033_vm7, %v4026_v33, 920167782  ;;  %vm3886_vm8 = vcmp.lt.s32.totalorder %v11577_v54, 2 }
 0x3cf   : > { %v4036_v31 = vsel %vm4032_vm6, %v4020_v5, %v4035_v37  ;;  %v4043_v51 = vsel %vm4033_vm7, %v4029_v14, 1326507024  ;;  %v11590_v39 = vmul.f32 0.28559932, %v11587_v4  ;;  %v4040_v0 = vsel %vm4032_vm6, %v4023_v46, %v4039_v43  ;;  %v11631_v14 = vld [vmem:[%s8695_s14 + $0xf8] sm:$0xff] }
 0x3d0   : > { %v7290_v25 = vmin.u32 %v3755_v57, %v11579_v63  ;;  %v4044_v18 = vsel %vm4032_vm6, %v4026_v33, %v4043_v51  ;;  %vm4756_vm9 = vcmp.eq.s32.totalorder %v9188_v21, %v4724_v42  ;;  %vm3884_vm10 = vweird.f32 %v11256_v36 }
 0x3d1   : > { %vm3691_vm12 = vcmp.lt.s32.totalorder %v11423_v48, 0  ;;  %v4037_v20 = vsel %vm4031_vm5, %v4034_v45, %v4036_v31  ;;  %v4041_v49 = vsel %vm4031_vm5, %v4038_v3, %v4040_v0  ;;  %v4045_v40 = vsel %vm4031_vm5, %v4042_v61, %v4044_v18 }
 0x3d2   : > { %v3757_v24 = vclz %v7290_v25  ;;  %v11602_v44 = vmul.u32.u64.low %v11581_v6, %v4045_v40  ;;  %v11603_v35 = vmul.u32.u64.high %v11581_v6, %v4045_v40, %v11602_v44  ;;  %vm3887_vm13 = vcmp.eq.s32.totalorder %v11577_v54, 0 }
 0x3d3   : > { %v11606_v52 = vmul.u32.u64.low %v11581_v6, %v4041_v49  ;;  %v11607_v19 = vmul.u32.u64.high %v11581_v6, %v4041_v49, %v11606_v52  ;;  %vm3890_vm14 = vcmp.eq.s32.totalorder %v11577_v54, 2  ;;  %v3898_v30 = vand.u32 2139095040, %v11590_v39 }
 0x3d4   : > { %v7291_v11 = vadd.s32 4294967294, %v3757_v24  ;;  %v3745_v41 = vadd.s32 %v11527_v16, %v11533_v8  ;;  %v7344_v32 = vsel %vm4756_vm9, 1.0, %v8593_v17  ;;  %v3895_v1 = vand.u32 2147483647, %v11590_v39 }
 0x3d5   : > { %vm4755_vm15 = vcmp.eq.s32.totalorder %v9188_v21, %v4721_v26  ;;  %v4053_v56 = vmul.u32 %v11581_v6, %v4037_v20  ;;  %v3899_v28 = vshrl.u32 %v3898_v30, 23  ;;  %v3775_v60 = vsub.s32 4, %v11565_v10 }
 0x3d6   : > { %vm7292_vm0 = vcmp.lt.s32.totalorder %v7291_v11, 0  ;;  %v7343_v5 = vsel %vm4755_vm15, 1.0, %v8593_v17  ;;  %vm4055_vm1 = vc.u32 %v11603_v35, %v11606_v52  ;;  %v4056_v16 = vadd.s32 1, %v11607_v19 }
 0x3d7   : > { %v8415_v12 = vpop.eup %8414  ;;  %v3760_v7 = vsel %vm7292_vm0, 0, %v7291_v11  ;;  %7817 = vmatprep.mubr.msk.f32.mxu0 %vm4821_vm11, %v7343_v5  ;;  %v7297_v6 = vadd.s32 4294967169, %v3899_v28  ;;  %v11634_v57 = vmul.f32 0.28559932, %v11631_v14  ;;  %v3776_v31 = vsel %vm3691_vm12, %v3775_v60, %v11565_v10 }
 0x3d8   : > { %v8417_v8 = vpop.eup %8416  ;;  %v3891_v21 = vxor.u32 2147483648, %v8415_v12  ;;  %v3761_v34 = vsub.s32 32, %v3760_v7  ;;  %v3762_v46 = vshll.u32 %v11579_v63, %v3760_v7  ;;  %v3765_v33 = vsub.s32 4294967266, %v3760_v7  ;;  %7818 = vmatmul.mubr.msk.f32.gmra.mxu0 %vm4821_vm11, %v7344_v32 }
 0x3d9   : > { %v3888_v17 = vxor.u32 2147483648, %v8417_v8  ;;  %v4057_v22 = vsel %vm4055_vm1, %v4056_v16, %v11607_v19  ;;  %vm4366_vm11 = vcmp.lt.f32.partialorder %v11253_v29, 5.5  ;;  %v3905_v43 = vadd.s32 1, %v7297_v6 }
 0x3da   : > { %v3892_v45 = vsel %vm3890_vm14, %v3891_v21, %v8417_v8  ;;  %v3763_v37 = vshrl.u32 %v3745_v41, %v3761_v34  ;;  %v3766_v3 = vadd.s32 127, %v3765_v33  ;;  %v4058_v42 = vadd.s32 %v4057_v22, %v4053_v56  ;;  %v11664_v56 = vpop.permute.xlu1 %638 }
 0x3db   : > { %v3889_v63 = vsel %vm3887_vm13, %v8415_v12, %v3888_v17  ;;  %v3902_v24 = vand.u32 8388607, %v3895_v1  ;;  %vm3906_vm2 = vcmp.gt.s32.totalorder %v3905_v43, 0  ;;  %v4207_v20 = vand.u32 2139095040, %v11634_v57 }
 0x3dc   : > { %v3893_v61 = vsel %vm3886_vm8, %v3889_v63, %v3892_v45  ;;  %v3764_v51 = vor.u32 %v3763_v37, %v3762_v46  ;;  %v3767_v25 = vshll.u32 %v3766_v3, 23  ;;  %v4059_v0 = vadd.s32 536870912, %v4058_v42 }
 0x3dd   : > { %v3894_v18 = vsel %vm3884_vm10, nan, %v3893_v61  ;;  %vm11655_vm3 = vcmp.le.f32.partialorder %v3689_v53, 0.7853982  ;;  %v3907_v44 = vsel %vm3906_vm2, %v3905_v43, 0  ;;  %v3903_v41 = vor.u32 8388608, %v3902_v24 }
 0x3de   : > { %v4334_v49 = vmul.f32 %v3894_v18, %v3894_v18  ;;  %v3768_v40 = vor.u32 4788187, %v3767_v25  ;;  %v3771_v26 = vcvt.s32.f32 %v3764_v51  ;;  %v11651_v10 = vshrl.u32 %v4059_v0, 30 }
 0x3df   : > { %v3778_v11 = vsel %vm11655_vm3, 0, %v3776_v31  ;;  %v3909_v32 = vand.u32 31, %v3907_v44  ;;  %v4208_v5 = vshrl.u32 %v4207_v20, 23  ;;  %v4054_v8 = vadd.s32 %v11606_v52, %v11603_v35  ;;  %v11688_v31 = vpop.permute.xlu1 %648 }
 0x3e0   : > { %v4398_v36 = vsel %vm4366_vm11, %v4334_v49, 0.0  ;;  %v3769_v19 = vand.u32 2147483647, %v3768_v40  ;;  %v4061_v30 = vshll.u32 %v11651_v10, 30  ;;  %v11668_v12 = vand.u32 3, %v3778_v11 }
 0x3e1   : > { %4540 = vperm.xlu1 %8209, %v4398_v36   ;;  %v3910_v7 = vsub.s32 32, %v3909_v32  ;;  %v3912_v29 = vshll.u32 %v13423_v15, %v3909_v32  ;;  %v3915_v60 = vshll.u32 %v13424_v9, %v3909_v32  ;;  %v3918_v34 = vshll.u32 %v13425_v59, %v3909_v32 }
 0x3e2   : > { %v3772_v28 = vmul.f32 %v3771_v26, %v3769_v19  ;;  %v11666_v53 = vsub.s32 %v4058_v42, %v4061_v30  ;;  %v11679_v22 = vshll.u32 %v3903_v41, 8  ;;  %v3908_v37 = vshrl.u32 %v3907_v44, 5 }
 0x3e3   : > { %v3913_v46 = vshrl.u32 %v13424_v9, %v3910_v7  ;;  %v3916_v33 = vshrl.u32 %v13425_v59, %v3910_v7  ;;  %v3919_v17 = vshrl.u32 %v13426_v47, %v3910_v7  ;;  %v7309_v3 = vadd.s32 4294967169, %v4208_v5  ;;  %v11695_v41 = vpop.permute.xlu1 %658 }
 0x3e4   : > { %v3773_v16 = vxor.u32 2147483648, %v3772_v28  ;;  %v4064_v21 = vsub.s32 0, %v11666_v53  ;;  %v3911_v52 = vshrl.u32 %v13423_v15, %v3910_v7  ;;  %v3921_v51 = vshll.u32 %v13426_v47, %v3909_v32 }
 0x3e5   : > { %v3914_v42 = vor.u32 %v3913_v46, %v3912_v29  ;;  %v3917_v63 = vor.u32 %v3916_v33, %v3915_v60  ;;  %v3920_v61 = vor.u32 %v3919_v17, %v3918_v34  ;;  %v3922_v25 = vshrl.u32 %v8591_v58, %v3910_v7 }
 0x3e6   : > { %v3774_v6 = vsel %vm3691_vm12, %v3773_v16, %v3772_v28  ;;  %v7302_v45 = vmin.u32 %v4064_v21, %v11666_v53  ;;  %v3924_v0 = vshll.u32 %v8591_v58, %v3909_v32  ;;  %v3925_v18 = vshrl.u32 %v13440_v13, %v3910_v7 }
 0x3e7   : > { %v3777_v35 = vsel %vm11655_vm3, %v11423_v48, %v3774_v6  ;;  %vm3927_vm4 = vcmp.lt.s32.totalorder %v3908_v37, 1  ;;  %vm3928_vm5 = vcmp.lt.s32.totalorder %v3908_v37, 2  ;;  %vm3929_vm6 = vcmp.lt.s32.totalorder %v3908_v37, 3  ;;  %v11706_v6 = vpop.permute.xlu0 %633 }
 0x3e8   : > { %8418 = vcosq.f32 %v3777_v35  ;;  %v4066_v43 = vclz %v7302_v45  ;;  %v3923_v20 = vor.u32 %v3922_v25, %v3921_v51  ;;  %v3926_v49 = vor.u32 %v3925_v18, %v3924_v0 }
 0x3e9   : > { %8420 = vsinq.f32 %v3777_v35  ;;  %vm3930_vm7 = vcmp.lt.s32.totalorder %v3908_v37, 4  ;;  %v3931_v40 = vsel %vm3927_vm4, %v3911_v52, %v3914_v42  ;;  %v3935_v54 = vsel %vm3927_vm4, %v3914_v42, %v3917_v63 }
 0x3ea   : > { %v7303_v24 = vadd.s32 4294967294, %v4066_v43  ;;  %v3932_v26 = vsel %vm3930_vm7, %v3920_v61, 2102212464  ;;  %v3939_v44 = vsel %vm3927_vm4, %v3917_v63, %v3920_v61  ;;  %v3936_v11 = vsel %vm3930_vm7, %v3923_v20, 920167782 }
 0x3eb   : > { %v3933_v19 = vsel %vm3929_vm6, %v3917_v63, %v3932_v26  ;;  %v3940_v30 = vsel %vm3930_vm7, %v3926_v49, 1326507024  ;;  %vm4000_vm9 = vcmp.lt.s32.totalorder %v11448_v23, 0  ;;  %v4204_v7 = vand.u32 2147483647, %v11634_v57 }
 0x3ec   : > { %vm7304_vm8 = vcmp.lt.s32.totalorder %v7303_v24, 0  ;;  %v3934_v29 = vsel %vm3928_vm5, %v3931_v40, %v3933_v19  ;;  %v3937_v60 = vsel %vm3929_vm6, %v3920_v61, %v3936_v11  ;;  %v3941_v16 = vsel %vm3929_vm6, %v3923_v20, %v3940_v30  ;;  %v11730_v61 = vpop.permute.xlu1 %668 }
 0x3ed   : > { %v4069_v36 = vsel %vm7304_vm8, 0, %v7303_v24  ;;  %v4214_v21 = vadd.s32 1, %v7309_v3  ;;  %vm3781_vm10 = vweird.f32 %v11423_v48  ;;  %v3938_v33 = vsel %vm3928_vm5, %v3935_v54, %v3937_v60 }
 0x3ee   : > { %v4070_v32 = vsub.s32 32, %v4069_v36  ;;  %v4071_v28 = vshll.u32 %v11666_v53, %v4069_v36  ;;  %v4074_v5 = vsub.s32 4294967266, %v4069_v36  ;;  %v3942_v17 = vsel %vm3928_vm5, %v3939_v44, %v3941_v16  ;;  %v11739_v44 = vpop.permute.xlu0 %643 }
 0x3ef   : > { %v11709_v53 = vmul.u32.u64.low %v11679_v22, %v3942_v17  ;;  %v11710_v45 = vmul.u32.u64.high %v11679_v22, %v3942_v17, %v11709_v53  ;;  %v11713_v35 = vmul.u32.u64.low %v11679_v22, %v3938_v33  ;;  %v11714_v52 = vmul.u32.u64.high %v11679_v22, %v3938_v33, %v11713_v35 }
 0x3f0   : > { %v4072_v34 = vshrl.u32 %v4054_v8, %v4070_v32  ;;  %v4075_v46 = vadd.s32 127, %v4074_v5  ;;  %v11719_v8 = vand.u32 8388607, %v4204_v7  ;;  %vm4215_vm12 = vcmp.gt.s32.totalorder %v4214_v21, 0 }
 0x3f1   : > { %vm3783_vm13 = vcmp.lt.s32.totalorder %v11668_v12, 2  ;;  %vm4365_vm14 = vcmp.lt.f32.partialorder %v11420_v2, 5.5  ;;  %vm11725_vm15 = vcmp.le.f32.partialorder %v3998_v50, 0.7853982  ;;  %v4084_v63 = vsub.s32 4, %v11651_v10 }
 0x3f2   : > { %v4073_v3 = vor.u32 %v4072_v34, %v4071_v28  ;;  %v4076_v42 = vshll.u32 %v4075_v46, 23  ;;  %v4216_v43 = vsel %vm4215_vm12, %v4214_v21, 0  ;;  %v3950_v0 = vmul.u32 %v11679_v22, %v3934_v29  ;;  %v11752_v34 = vpop.permute.xlu1 %678 }
 0x3f3   : > { %v4218_v18 = vand.u32 31, %v4216_v43  ;;  %vm3784_vm0 = vcmp.eq.s32.totalorder %v11668_v12, 0  ;;  %vm3787_vm1 = vcmp.eq.s32.totalorder %v11668_v12, 2  ;;  %vm3952_vm11 = vc.u32 %v11710_v45, %v11713_v35 }
 0x3f4   : > { %v4077_v51 = vor.u32 4788187, %v4076_v42  ;;  %v4080_v25 = vcvt.s32.f32 %v4073_v3  ;;  %v3953_v50 = vadd.s32 1, %v11714_v52  ;;  %v4212_v26 = vor.u32 8388608, %v11719_v8 }
 0x3f5   : > { %v8419_v24 = vpop.eup %8418  ;;  %v4219_v54 = vsub.s32 32, %v4218_v18  ;;  %v4085_v36 = vsel %vm4000_vm9, %v4084_v63, %v11651_v10  ;;  %v4221_v11 = vshll.u32 %v13423_v15, %v4218_v18  ;;  %v4224_v5 = vshll.u32 %v13424_v9, %v4218_v18 }
 0x3f6   : > { %v8421_v20 = vpop.eup %8420  ;;  %v3788_v49 = vxor.u32 2147483648, %v8419_v24  ;;  %v4078_v40 = vand.u32 2147483647, %v4077_v51  ;;  %v3954_v19 = vsel %vm3952_vm11, %v3953_v50, %v11714_v52  ;;  %v4227_v21 = vshll.u32 %v13425_v59, %v4218_v18 }
 0x3f7   : > { %v3785_v22 = vxor.u32 2147483648, %v8421_v20  ;;  %v3955_v28 = vadd.s32 %v3954_v19, %v3950_v0  ;;  %v4222_v60 = vshrl.u32 %v13424_v9, %v4219_v54  ;;  %v4225_v16 = vshrl.u32 %v13425_v59, %v4219_v54  ;;  %v11775_v19 = vpop.permute.xlu1 %688 }
 0x3f8   : > { %v3789_v30 = vsel %vm3787_vm1, %v3788_v49, %v8421_v20  ;;  %v4081_v32 = vmul.f32 %v4080_v25, %v4078_v40  ;;  %v4228_v17 = vshrl.u32 %v13426_v47, %v4219_v54  ;;  %v4217_v52 = vshrl.u32 %v4216_v43, 5  ;;  %v11765_v25 = vpop.permute.xlu0 %653 }
 0x3f9   : > { %v3786_v29 = vsel %vm3784_vm0, %v8419_v24, %v3785_v22  ;;  %v3956_v33 = vadd.s32 536870912, %v3955_v28  ;;  %v4223_v3 = vor.u32 %v4222_v60, %v4221_v11  ;;  %v4230_v42 = vshll.u32 %v13426_v47, %v4218_v18 }
 0x3fa   : > { %v3790_v10 = vsel %vm3783_vm13, %v3786_v29, %v3789_v30  ;;  %v4082_v46 = vxor.u32 2147483648, %v4081_v32  ;;  %v4231_v12 = vshrl.u32 %v8591_v58, %v4219_v54  ;;  %v4226_v48 = vor.u32 %v4225_v16, %v4224_v5 }
 0x3fb   : > { %v3791_v53 = vsel %vm3781_vm10, nan, %v3790_v10  ;;  %v11762_v51 = vshrl.u32 %v3956_v33, 30  ;;  %v4233_v43 = vshll.u32 %v8591_v58, %v4218_v18  ;;  %v4234_v24 = vshrl.u32 %v13440_v13, %v4219_v54 }
 0x3fc   : > { %v4333_v8 = vmul.f32 %v3791_v53, %v3791_v53  ;;  %v4083_v63 = vsel %vm4000_vm9, %v4082_v46, %v4081_v32  ;;  %v4229_v49 = vor.u32 %v4228_v17, %v4227_v21  ;;  %v4232_v40 = vor.u32 %v4231_v12, %v4230_v42  ;;  %v11784_v16 = vpop.permute.xlu0 %663  ;;  %v11799_v42 = vpop.permute.xlu1 %698 }
 0x3fd   : > { %v4086_v0 = vsel %vm11725_vm15, %v11448_v23, %v4083_v63  ;;  %v3958_v20 = vshll.u32 %v11762_v51, 30  ;;  %v4235_v22 = vor.u32 %v4234_v24, %v4233_v43  ;;  %vm4236_vm2 = vcmp.lt.s32.totalorder %v4217_v52, 1 }
 0x3fe   : > { %v4397_v50 = vsel %vm4365_vm14, %v4333_v8, 0.0  ;;  %8422 = vcosq.f32 %v4086_v0  ;;  %v4220_v18 = vshrl.u32 %v13423_v15, %v4219_v54  ;;  %vm4238_vm3 = vcmp.lt.s32.totalorder %v4217_v52, 3 }
 0x3ff   : > { %4535 = vperm.xlu0 %8210, %v4397_v50   ;;  %8424 = vsinq.f32 %v4086_v0  ;;  %v11777_v11 = vsub.s32 %v3955_v28, %v3958_v20  ;;  %vm4239_vm4 = vcmp.lt.s32.totalorder %v4217_v52, 4  ;;  %v4087_v2 = vsel %vm11725_vm15, 0, %v4085_v36 }
 0x400   : > { %v4241_v30 = vsel %vm4239_vm4, %v4229_v49, 2102212464  ;;  %v4252_v32 = vshll.u32 %v4212_v26, 8  ;;  %vm4237_vm5 = vcmp.lt.s32.totalorder %v4217_v52, 2  ;;  %v4244_v29 = vsel %vm4236_vm2, %v4223_v3, %v4226_v48  ;;  %v11792_v26 = vld [vmem:[%s8695_s14 + $0xf0] sm:$0xff]  ;;  %v11811_v20 = vpop.permute.xlu0 %673 }
 0x401   : > { %v3961_v5 = vsub.s32 0, %v11777_v11  ;;  %v4245_v60 = vsel %vm4239_vm4, %v4232_v40, 920167782  ;;  %v4248_v54 = vsel %vm4236_vm2, %v4226_v48, %v4229_v49  ;;  %v4249_v21 = vsel %vm4239_vm4, %v4235_v22, 1326507024 }
 0x402   : > { %v4246_v28 = vsel %vm4238_vm3, %v4229_v49, %v4245_v60  ;;  %v4240_v37 = vsel %vm4236_vm2, %v4220_v18, %v4223_v3  ;;  %v4242_v36 = vsel %vm4238_vm3, %v4226_v48, %v4241_v30  ;;  %v11795_v46 = vmul.f32 0.28559932, %v11792_v26  ;;  %v11819_v30 = vpop.permute.xlu1 %708 }
 0x403   : > { %v7298_v10 = vmin.u32 %v3961_v5, %v11777_v11  ;;  %v4091_v33 = vand.u32 3, %v4087_v2  ;;  %v4247_v17 = vsel %vm4237_vm5, %v4244_v29, %v4246_v28  ;;  %v4250_v53 = vsel %vm4238_vm3, %v4232_v40, %v4249_v21 }
 0x404   : > { %v4251_v63 = vsel %vm4237_vm5, %v4248_v54, %v4250_v53  ;;  %v11802_v12 = vmul.u32.u64.low %v4252_v32, %v4247_v17  ;;  %v11803_v0 = vmul.u32.u64.high %v4252_v32, %v4247_v17, %v11802_v12  ;;  %v4243_v3 = vsel %vm4237_vm5, %v4240_v37, %v4242_v36  ;;  %v11824_v53 = vpop.permute.xlu0 %683 }
 0x405   : > { %v3963_v8 = vclz %v7298_v10  ;;  %v11807_v48 = vmul.u32.u64.low %v4252_v32, %v4251_v63  ;;  %v11808_v43 = vmul.u32.u64.high %v4252_v32, %v4251_v63, %v11807_v48  ;;  %v4104_v50 = vand.u32 2139095040, %v11795_v46 }
 0x406   : > { %vm4090_vm6 = vweird.f32 %v11448_v23  ;;  %vm4092_vm7 = vcmp.lt.s32.totalorder %v4091_v33, 2  ;;  %v3951_v49 = vadd.s32 %v11713_v35, %v11710_v45  ;;  %v4259_v40 = vmul.u32 %v4252_v32, %v4243_v3 }
 0x407   : > { %v7299_v24 = vadd.s32 4294967294, %v3963_v8  ;;  %v4262_v22 = vadd.s32 1, %v11803_v0  ;;  %v4105_v52 = vshrl.u32 %v4104_v50, 23  ;;  %vm4093_vm9 = vcmp.eq.s32.totalorder %v4091_v33, 0 }
 0x408   : > { %vm4096_vm10 = vcmp.eq.s32.totalorder %v4091_v33, 2  ;;  %vm4261_vm12 = vc.u32 %v11808_v43, %v11802_v12  ;;  %v13379_v54 = vand.u32 2147483647, %v11795_v46  ;;  %vm4368_vm13 = vcmp.lt.f32.partialorder %v11445_v38, 5.5 }
 0x409   : > { %vm7300_vm8 = vcmp.lt.s32.totalorder %v7299_v24, 0  ;;  %v4263_v32 = vsel %vm4261_vm12, %v4262_v22, %v11803_v0  ;;  %v7305_v21 = vadd.s32 4294967169, %v4105_v52  ;;  %v3981_v50 = vsub.s32 4, %v11762_v51 }
 0x40a   : > { %v3966_v2 = vsel %vm7300_vm8, 0, %v7299_v24  ;;  %v4264_v17 = vadd.s32 %v4263_v32, %v4259_v40  ;;  %v11834_v40 = vpop.permute.xlu1 %718  ;;  %vm3897_vm15 = vcmp.lt.s32.totalorder %v11590_v39, 0  ;;  %vm11851_vm0 = vcmp.le.f32.partialorder %v3895_v1, 0.7853982 }
 0x40b   : > { %v8423_v18 = vpop.eup %8422  ;;  %v3967_v60 = vsub.s32 32, %v3966_v2  ;;  %v3968_v28 = vshll.u32 %v11777_v11, %v3966_v2  ;;  %v3971_v45 = vsub.s32 4294967266, %v3966_v2  ;;  %v4111_v63 = vadd.s32 1, %v7305_v21 }
 0x40c   : > { %v8425_v5 = vpop.eup %8424  ;;  %v4097_v29 = vxor.u32 2147483648, %v8423_v18  ;;  %v4265_v24 = vadd.s32 536870912, %v4264_v17  ;;  %v4260_v1 = vadd.s32 %v11802_v12, %v11808_v43  ;;  %vm11920_vm12 = vcmp.le.f32.partialorder %v4204_v7, 0.7853982 }
 0x40d   : > { %v4094_v35 = vxor.u32 2147483648, %v8425_v5  ;;  %v3969_v37 = vshrl.u32 %v3951_v49, %v3967_v60  ;;  %v3972_v36 = vadd.s32 127, %v3971_v45  ;;  %v4108_v49 = vand.u32 8388607, %v13379_v54  ;;  %v11842_v60 = vpop.permute.xlu0 %693 }
 0x40e   : > { %v4098_v10 = vsel %vm4096_vm10, %v4097_v29, %v8425_v5  ;;  %vm4112_vm14 = vcmp.gt.s32.totalorder %v4111_v63, 0  ;;  %v11836_v2 = vshrl.u32 %v4265_v24, 30  ;;  %vm4206_vm10 = vcmp.lt.s32.totalorder %v11634_v57, 0 }
 0x40f   : > { %v4095_v8 = vsel %vm4093_vm9, %v8423_v18, %v4094_v35  ;;  %v3970_v3 = vor.u32 %v3969_v37, %v3968_v28  ;;  %v3973_v48 = vshll.u32 %v3972_v36, 23  ;;  %v4113_v33 = vsel %vm4112_vm14, %v4111_v63, 0 }
 0x410   : > { %v4099_v11 = vsel %vm4092_vm7, %v4095_v8, %v4098_v10  ;;  %v4267_v29 = vshll.u32 %v11836_v2, 30  ;;  %v3982_v28 = vsel %vm3897_vm15, %v3981_v50, %v11762_v51  ;;  %v4115_v45 = vand.u32 31, %v4113_v33  ;;  %v11857_v8 = vpop.permute.xlu1 %728 }
 0x411   : > { %v4100_v0 = vsel %vm4090_vm6, nan, %v4099_v11  ;;  %v3974_v52 = vor.u32 4788187, %v3973_v48  ;;  %v3977_v18 = vcvt.s32.f32 %v3970_v3  ;;  %v4109_v21 = vor.u32 8388608, %v4108_v49 }
 0x412   : > { %v4336_v22 = vmul.f32 %v4100_v0, %v4100_v0  ;;  %v11847_v32 = vsub.s32 %v4264_v17, %v4267_v29  ;;  %v4116_v10 = vsub.s32 32, %v4115_v45  ;;  %v4118_v37 = vshll.u32 %v13423_v15, %v4115_v45 }
 0x413   : > { %v3975_v23 = vand.u32 2147483647, %v3974_v52  ;;  %v4121_v36 = vshll.u32 %v13424_v9, %v4115_v45  ;;  %v3984_v51 = vsel %vm11851_vm0, 0, %v3982_v28  ;;  %v4124_v11 = vshll.u32 %v13425_v59, %v4115_v45  ;;  %v11873_v52 = vpop.permute.xlu0 %703 }
 0x414   : > { %v4400_v5 = vsel %vm4368_vm13, %v4336_v22, 0.0  ;;  %v4270_v17 = vsub.s32 0, %v11847_v32  ;;  %v4119_v3 = vshrl.u32 %v13424_v9, %v4116_v10  ;;  %v4122_v48 = vshrl.u32 %v13425_v59, %v4116_v10 }
 0x415   : > { %4550 = vperm.xlu1 %8209, %v4400_v5   ;;  %v3978_v35 = vmul.f32 %v3977_v18, %v3975_v23  ;;  %v4125_v24 = vshrl.u32 %v13426_v47, %v4116_v10  ;;  %v4114_v49 = vshrl.u32 %v4113_v33, 5  ;;  %v11871_v22 = vshll.u32 %v4109_v21, 8 }
 0x416   : > { %v7310_v50 = vmin.u32 %v4270_v17, %v11847_v32  ;;  %v4117_v9 = vshrl.u32 %v13423_v15, %v4116_v10  ;;  %v4120_v43 = vor.u32 %v4119_v3, %v4118_v37  ;;  %v4123_v59 = vor.u32 %v4122_v48, %v4121_v36 }
 0x417   : > { %v3979_v63 = vxor.u32 2147483648, %v3978_v35  ;;  %v4126_v5 = vor.u32 %v4125_v24, %v4124_v11  ;;  %v4127_v23 = vshll.u32 %v13426_v47, %v4115_v45  ;;  %v4128_v33 = vshrl.u32 %v8591_v58, %v4116_v10  ;;  %v11885_v17 = vpop.permute.xlu0 %713 }
 0x418   : > { %v4272_v18 = vclz %v7310_v50  ;;  %v4130_v29 = vshll.u32 %v8591_v58, %v4115_v45  ;;  %v4131_v28 = vshrl.u32 %v13440_v13, %v4116_v10  ;;  %vm4133_vm1 = vcmp.lt.s32.totalorder %v4114_v49, 1 }
 0x419   : > { %v3980_v0 = vsel %vm3897_vm15, %v3979_v63, %v3978_v35  ;;  %v11883_v35 = vpop.permute.xlu1 %738  ;;  %vm4134_vm11 = vcmp.lt.s32.totalorder %v4114_v49, 2  ;;  %vm4135_vm2 = vcmp.lt.s32.totalorder %v4114_v49, 3  ;;  %v4129_v15 = vor.u32 %v4128_v33, %v4127_v23 }
 0x41a   : > { %v3983_v12 = vsel %vm11851_vm0, %v11590_v39, %v3980_v0  ;;  %v7311_v21 = vadd.s32 4294967294, %v4272_v18  ;;  %v4132_v38 = vor.u32 %v4131_v28, %v4130_v29  ;;  %vm4136_vm3 = vcmp.lt.s32.totalorder %v4114_v49, 4 }
 0x41b   : > { %8426 = vcosq.f32 %v3983_v12  ;;  %v4137_v37 = vsel %vm4133_vm1, %v4117_v9, %v4120_v43  ;;  %v4138_v36 = vsel %vm4136_vm3, %v4126_v5, 2102212464  ;;  %v4141_v47 = vsel %vm4133_vm1, %v4120_v43, %v4123_v59 }
 0x41c   : > { %8428 = vsinq.f32 %v3983_v12  ;;  %vm7312_vm4 = vcmp.lt.s32.totalorder %v7311_v21, 0  ;;  %v4145_v63 = vsel %vm4133_vm1, %v4123_v59, %v4126_v5  ;;  %v4139_v58 = vsel %vm4135_vm2, %v4123_v59, %v4138_v36 }
 0x41d   : > { %v4275_v11 = vsel %vm7312_vm4, 0, %v7311_v21  ;;  %v4142_v13 = vsel %vm4136_vm3, %v4129_v15, 920167782  ;;  %v4146_v45 = vsel %vm4136_vm3, %v4132_v38, 1326507024  ;;  %v3988_v24 = vand.u32 3, %v3984_v51  ;;  %v11892_v9 = vpop.permute.xlu1 %748  ;;  %v11905_v21 = vpop.permute.xlu0 %723 }
 0x41e   : > { %v4276_v10 = vsub.s32 32, %v4275_v11  ;;  %v4277_v3 = vshll.u32 %v11847_v32, %v4275_v11  ;;  %v4280_v48 = vsub.s32 4294967266, %v4275_v11  ;;  %v4140_v0 = vsel %vm4134_vm11, %v4137_v37, %v4139_v58 }
 0x41f   : > { %v4143_v50 = vsel %vm4135_vm2, %v4126_v5, %v4142_v13  ;;  %v4147_v12 = vsel %vm4135_vm2, %v4129_v15, %v4146_v45  ;;  %v4156_v38 = vmul.u32 %v11871_v22, %v4140_v0  ;;  %vm3993_vm5 = vcmp.eq.s32.totalorder %v3988_v24, 2 }
 0x420   : > { %v4278_v43 = vshrl.u32 %v4260_v1, %v4276_v10  ;;  %v4281_v18 = vadd.s32 127, %v4280_v48  ;;  %v4144_v23 = vsel %vm4134_vm11, %v4141_v47, %v4143_v50  ;;  %v4148_v59 = vsel %vm4134_vm11, %v4145_v63, %v4147_v12 }
 0x421   : > { %v11897_v33 = vmul.u32.u64.low %v11871_v22, %v4148_v59  ;;  %v11898_v29 = vmul.u32.u64.high %v11871_v22, %v4148_v59, %v11897_v33  ;;  %v11901_v32 = vmul.u32.u64.low %v11871_v22, %v4144_v23  ;;  %v11902_v51 = vmul.u32.u64.high %v11871_v22, %v4144_v23, %v11901_v32  ;;  %v11911_v36 = vpop.permute.xlu1 %758 }
 0x422   : > { %v4279_v5 = vor.u32 %v4278_v43, %v4277_v3  ;;  %v4282_v28 = vshll.u32 %v4281_v18, 23  ;;  %vm3990_vm7 = vcmp.eq.s32.totalorder %v3988_v24, 0  ;;  %vm3989_vm8 = vcmp.lt.s32.totalorder %v3988_v24, 2  ;;  %v11915_v3 = vpop.permute.xlu0 %733 }
 0x423   : > { %vm4158_vm6 = vc.u32 %v11898_v29, %v11901_v32  ;;  %v4159_v49 = vadd.s32 1, %v11902_v51  ;;  %vm3987_vm9 = vweird.f32 %v11590_v39  ;;  %vm4367_vm13 = vcmp.lt.f32.partialorder %v11587_v4, 5.5 }
 0x424   : > { %v4283_v15 = vor.u32 4788187, %v4282_v28  ;;  %v4286_v1 = vcvt.s32.f32 %v4279_v5  ;;  %v4290_v33 = vsub.s32 4, %v11836_v2  ;;  %vm4296_vm11 = vweird.f32 %v11634_v57 }
 0x425   : > { %v4160_v13 = vsel %vm4158_vm6, %v4159_v49, %v11902_v51  ;;  %v11925_v39 = vpop.permute.xlu1 %768  ;;  %vm4370_vm2 = vcmp.lt.f32.partialorder %v11631_v14, 5.5  ;;  %vm4103_vm3 = vcmp.lt.s32.totalorder %v11795_v46, 0  ;;  %v13500_v14 = vand.u32 2147483647, %v11795_v46 }
 0x426   : > { %v4284_v11 = vand.u32 2147483647, %v4283_v15  ;;  %v4161_v10 = vadd.s32 %v4160_v13, %v4156_v38  ;;  %v11936_v28 = vpop.permute.xlu0 %743  ;;  %v11941_v15 = vld [vmem:[%s13360_s4] ss:$0 sm:$0xff]  ;;  %vm4369_vm6 = vcmp.lt.f32.partialorder %v11792_v26, 5.5 }
 0x427   : > { %vm11992_vm4 = vcmp.le.f32.partialorder %v13500_v14, 0.7853982 }
 0x428   : > { %v8427_v37 = vpop.eup %8426  ;;  %v4287_v45 = vmul.f32 %v4286_v1, %v4284_v11  ;;  %v4162_v12 = vadd.s32 536870912, %v4161_v10  ;;  %v4291_v1 = vsel %vm4206_vm10, %v4290_v33, %v11836_v2  ;;  %v792_v2 = vsub.f32 %v11688_v31, %v11941_v15 }
 0x429   : > { %v8429_v47 = vpop.eup %8428  ;;  %v3994_v63 = vxor.u32 2147483648, %v8427_v37  ;;  %v11946_v38 = vpop.permute.xlu1 %778 }
 0x42a   : > { %v3991_v58 = vxor.u32 2147483648, %v8429_v47  ;;  %v4288_v24 = vxor.u32 2147483648, %v4287_v45  ;;  %v11929_v59 = vshrl.u32 %v4162_v12, 30  ;;  %v11952_v11 = vpop.permute.xlu0 %753 }
 0x42b   : > { %v3995_v22 = vsel %vm3993_vm5, %v3994_v63, %v8429_v47  ;;  %v4293_v47 = vsel %vm11920_vm12, 0, %v4291_v1  ;;  %v794_v1 = vsub.f32 %v11695_v41, %v11941_v15  ;;  %vm4193_vm5 = vweird.f32 %v11795_v46 }
 0x42c   : > { %v3992_v48 = vsel %vm3990_vm7, %v8427_v37, %v3991_v58  ;;  %v4289_v23 = vsel %vm4206_vm10, %v4288_v24, %v4287_v45  ;;  %v4164_v5 = vshll.u32 %v11929_v59, 30  ;;  %v788_v37 = vsub.f32 %v9718_v27, %v11941_v15 }
 0x42d   : > { %v3996_v0 = vsel %vm3989_vm8, %v3992_v48, %v3995_v22  ;;  %v4292_v7 = vsel %vm11920_vm12, %v11634_v57, %v4289_v23  ;;  %v790_v58 = vsub.f32 %v11664_v56, %v11941_v15  ;;  %v4297_v45 = vand.u32 3, %v4293_v47 }
 0x42e   : > { %v3997_v43 = vsel %vm3987_vm9, nan, %v3996_v0  ;;  %8430 = vcosq.f32 %v4292_v7  ;;  %v4165_v4 = vsub.s32 %v4161_v10, %v4164_v5  ;;  %v820_v13 = vmul.f32 4.0963855, %v788_v37  ;;  %v11958_v10 = vpop.permute.xlu1 %4410  ;;  %v11964_v12 = vpop.permute.xlu0 %763 }
 0x42f   : > { %v4335_v18 = vmul.f32 %v3997_v43, %v3997_v43  ;;  %8432 = vsinq.f32 %v4292_v7  ;;  %v822_v27 = vmul.f32 4.0963855, %v790_v58  ;;  %v787_v0 = vsub.f32 %v9694_v62, %v11941_v15 }
 0x430   : > { %v4167_v49 = vsub.s32 0, %v4165_v4  ;;  %v852_v50 = vmul.f32 -0.5, %v820_v13  ;;  %v4157_v24 = vadd.s32 %v11901_v32, %v11898_v29  ;;  %vm4299_vm15 = vcmp.eq.s32.totalorder %v4297_v45, 0 }
 0x431   : > { %v4399_v51 = vsel %vm4367_vm13, %v4335_v18, 0.0  ;;  %vm4302_vm0 = vcmp.eq.s32.totalorder %v4297_v45, 2  ;;  %v824_v18 = vmul.f32 4.0963855, %v792_v2  ;;  %vm4298_vm1 = vcmp.lt.s32.totalorder %v4297_v45, 2 }
 0x432   : > { %4545 = vperm.xlu0 %8210, %v4399_v51   ;;  %v7306_v63 = vmin.u32 %v4167_v49, %v4165_v4  ;;  %v854_v62 = vmul.f32 -0.5, %v822_v27  ;;  %v11968_v29 = vpop.permute.xlu1 %4420  ;;  %v884_v47 = vmul.f32 %v852_v50, %v820_v13  ;;  %v11975_v41 = vpop.permute.xlu0 %773  ;;  %v826_v57 = vmul.f32 4.0963855, %v794_v1 }
 0x433   : > { %vm5145_vm10 = vcmask 130048  }
 0x434   : > { %v4169_v22 = vclz %v7306_v63  ;;  %v886_v54 = vmul.f32 %v854_v62, %v822_v27  ;;  %v858_v62 = vmul.f32 -0.5, %v826_v57 }
 0x436   : > { %v7307_v48 = vadd.s32 4294967294, %v4169_v22 }
 0x438   : > { %vm7308_vm14 = vcmp.lt.s32.totalorder %v7307_v48, 0 }
 0x439   : > { %v4172_v43 = vsel %vm7308_vm14, 0, %v7307_v48  ;;  %v789_v48 = vsub.f32 %v11706_v6, %v11941_v15 }
 0x43a   : > { %v4173_v33 = vsub.s32 32, %v4172_v43  ;;  %v4174_v7 = vshll.u32 %v4165_v4, %v4172_v43  ;;  %v4177_v51 = vsub.s32 4294967266, %v4172_v43  ;;  %v856_v4 = vmul.f32 -0.5, %v824_v18 }
 0x43b   : > { %v8431_v56 = vpop.eup %8430  ;;  %v821_v27 = vmul.f32 4.0963855, %v789_v48  ;;  %v800_v48 = vsub.f32 %v11775_v19, %v11941_v15 }
 0x43c   : > { %v8433_v31 = vpop.eup %8432  ;;  %v4303_v23 = vxor.u32 2147483648, %v8431_v56  ;;  %v4175_v37 = vshrl.u32 %v4157_v24, %v4173_v33  ;;  %v4178_v49 = vadd.s32 127, %v4177_v51  ;;  %v796_v24 = vsub.f32 %v11730_v61, %v11941_v15 }
 0x43d   : > { %v4300_v5 = vxor.u32 2147483648, %v8433_v31  ;;  %v791_v33 = vsub.f32 %v11739_v44, %v11941_v15 }
 0x43e   : > { %v4304_v32 = vsel %vm4302_vm0, %v4303_v23, %v8433_v31  ;;  %v4176_v22 = vor.u32 %v4175_v37, %v4174_v7  ;;  %v4179_v2 = vshll.u32 %v4178_v49, 23  ;;  %v917_v31 = vmul.f32 1.442695, %v884_v47  ;;  %v11981_v7 = vpop.permute.xlu1 %4430 }
 0x43f   : > { %v4301_v63 = vsel %vm4299_vm15, %v8431_v56, %v4300_v5  ;;  %v819_v56 = vmul.f32 4.0963855, %v787_v0  ;;  %v888_v23 = vmul.f32 %v856_v4, %v824_v18  ;;  %v921_v5 = vmul.f32 1.442695, %v886_v54 }
 0x440   : > { %v4305_v58 = vsel %vm4298_vm1, %v4301_v63, %v4304_v32  ;;  %v4180_v45 = vor.u32 4788187, %v4179_v2  ;;  %v4183_v50 = vcvt.s32.f32 %v4176_v22  ;;  %v828_v61 = vmul.f32 4.0963855, %v796_v24  ;;  %v11987_v32 = vpop.permute.xlu0 %4405 }
 0x441   : > { %v4306_v43 = vsel %vm4296_vm11, nan, %v4305_v58  ;;  %v798_v0 = vsub.f32 %v11752_v34, %v11941_v15  ;;  %v851_v18 = vmul.f32 -0.5, %v819_v56  ;;  %v925_v44 = vmul.f32 1.442695, %v888_v23 }
 0x442   : > { %v4338_v13 = vmul.f32 %v4306_v43, %v4306_v43  ;;  %v4181_v51 = vand.u32 2147483647, %v4180_v45  ;;  %v823_v37 = vmul.f32 4.0963855, %v791_v33  ;;  %8434 = vpow2.f32 %v917_v31  ;;  %v11996_v34 = vpop.permute.xlu1 %4440 }
 0x443   : > { %v853_v47 = vmul.f32 -0.5, %v821_v27  ;;  %8436 = vpow2.f32 %v921_v5  ;;  %v890_v63 = vmul.f32 %v858_v62, %v826_v57  ;;  %v860_v4 = vmul.f32 -0.5, %v828_v61 }
 0x444   : > { %v4402_v6 = vsel %vm4370_vm2, %v4338_v13, 0.0  ;;  %v4184_v1 = vmul.f32 %v4183_v50, %v4181_v51  ;;  %v4187_v22 = vsub.s32 4, %v11929_v59  ;;  %v830_v2 = vmul.f32 4.0963855, %v798_v0  ;;  %v12010_v31 = vpop.permute.xlu0 %4415 }
 0x445   : > { %4560 = vperm.xlu1 %8209, %v4402_v6   ;;  %v883_v43 = vmul.f32 %v851_v18, %v819_v56  ;;  %8438 = vpow2.f32 %v925_v44  ;;  %v855_v13 = vmul.f32 -0.5, %v823_v37  ;;  %v885_v57 = vmul.f32 %v853_v47, %v821_v27 }
 0x446   : > { %v4185_v54 = vxor.u32 2147483648, %v4184_v1  ;;  %v793_v45 = vsub.f32 %v11765_v25, %v11941_v15  ;;  %v795_v50 = vsub.f32 %v11784_v16, %v11941_v15  ;;  %v929_v23 = vmul.f32 1.442695, %v890_v63  ;;  %v12017_v25 = vpop.permute.xlu1 %4450 }
 0x447   : > { %v892_v19 = vmul.f32 %v860_v4, %v828_v61  ;;  %v4188_v56 = vsel %vm4103_vm3, %v4187_v22, %v11929_v59  ;;  %v862_v33 = vmul.f32 -0.5, %v830_v2  ;;  %v832_v6 = vmul.f32 4.0963855, %v800_v48 }
 0x448   : > { %v4186_v58 = vsel %vm4103_vm3, %v4185_v54, %v4184_v1  ;;  %v802_v51 = vsub.f32 %v11799_v42, %v11941_v15  ;;  %v915_v27 = vmul.f32 1.442695, %v883_v43  ;;  %v887_v5 = vmul.f32 %v855_v13, %v823_v37  ;;  %v12023_v54 = vpop.permute.xlu0 %4425 }
 0x449   : > { %v4189_v24 = vsel %vm11992_vm4, %v11795_v46, %v4186_v58  ;;  %v919_v62 = vmul.f32 1.442695, %v885_v57  ;;  %v825_v16 = vmul.f32 4.0963855, %v793_v45  ;;  %v827_v1 = vmul.f32 4.0963855, %v795_v50 }
 0x44a   : > { %8440 = vcosq.f32 %v4189_v24  ;;  %v4190_v0 = vsel %vm11992_vm4, 0, %v4188_v56  ;;  %v933_v61 = vmul.f32 1.442695, %v892_v19  ;;  %v804_v18 = vsub.f32 %v11819_v30, %v11941_v15  ;;  %v12029_v22 = vpop.permute.xlu1 %4460 }
 0x44b   : > { %8442 = vsinq.f32 %v4189_v24  ;;  %v894_v59 = vmul.f32 %v862_v33, %v830_v2  ;;  %v864_v44 = vmul.f32 -0.5, %v832_v6  ;;  %v834_v14 = vmul.f32 4.0963855, %v802_v51 }
 0x44c   : > { %8444 = vpow2.f32 %v929_v23  ;;  %v923_v42 = vmul.f32 1.442695, %v887_v5  ;;  %v797_v37 = vsub.f32 %v11811_v20, %v11941_v15  ;;  %v4194_v47 = vand.u32 3, %v4190_v0 }
 0x44d   : > { %8446 = vpow2.f32 %v915_v27  ;;  %v857_v63 = vmul.f32 -0.5, %v825_v16  ;;  %v859_v49 = vmul.f32 -0.5, %v827_v1  ;;  %v836_v58 = vmul.f32 4.0963855, %v804_v18 }
 0x44e   : > { %8448 = vpow2.f32 %v919_v62  ;;  %v806_v30 = vsub.f32 %v11834_v40, %v11941_v15  ;;  %v937_v48 = vmul.f32 1.442695, %v894_v59  ;;  %v896_v43 = vmul.f32 %v864_v44, %v832_v6 }
 0x44f   : > { %v8435_v4 = vpop.eup %8434  ;;  %8450 = vpow2.f32 %v933_v61  ;;  %v866_v24 = vmul.f32 -0.5, %v834_v14  ;;  %v829_v20 = vmul.f32 4.0963855, %v797_v37  ;;  %v799_v57 = vsub.f32 %v11824_v53, %v11941_v15 }
 0x450   : > { %v8437_v2 = vpop.eup %8436  ;;  %v12032_v13 = vmul.f32 %v8435_v4, %v11958_v10  ;;  %8452 = vpow2.f32 %v923_v42  ;;  %vm4196_vm7 = vcmp.eq.s32.totalorder %v4194_v47, 0  ;;  %v889_v40 = vmul.f32 %v857_v63, %v825_v16  ;;  %v12042_v10 = vpop.permute.xlu0 %4435 }
 0x451   : > { %v891_v50 = vmul.f32 %v859_v49, %v827_v1  ;;  %v12040_v23 = vmul.f32 %v8437_v2, %v11968_v29  ;;  %vm4199_vm8 = vcmp.eq.s32.totalorder %v4194_v47, 2  ;;  %v868_v56 = vmul.f32 -0.5, %v836_v58  ;;  %v12046_v29 = vpop.permute.xlu1 %4470 }
 0x452   : > { %13503 = vst [vmem:[#allocation5_spill] sm:$0xff] %v12032_v13  ;;  %v8439_v45 = vpop.eup %8438  ;;  %5474 = vperm.xlu1 %8209, %v12032_v13   ;;  %v838_v33 = vmul.f32 4.0963855, %v806_v30  ;;  %v808_v6 = vsub.f32 %v11857_v8, %v11941_v15  ;;  %8454 = vpow2.f32 %v937_v48  ;;  %v941_v27 = vmul.f32 1.442695, %v896_v43 }
 0x453   : > { %13504 = vst [vmem:[#allocation6_spill] sm:$0xff] %v12040_v23  ;;  %v898_v5 = vmul.f32 %v866_v24, %v834_v14  ;;  %vm4195_vm9 = vcmp.lt.s32.totalorder %v4194_v47, 2  ;;  %v861_v16 = vmul.f32 -0.5, %v829_v20  ;;  %v831_v1 = vmul.f32 4.0963855, %v799_v57 }
 0x454   : > { %v927_v61 = vmul.f32 1.442695, %v889_v40  ;;  %v801_v18 = vsub.f32 %v11842_v60, %v11941_v15  ;;  %v12052_v8 = vmul.f32 %v8439_v45, %v11981_v7  ;;  %v900_v44 = vmul.f32 %v868_v56, %v836_v58  ;;  %v12057_v4 = vpop.permute.xlu0 %4445 }
 0x455   : > { %v870_v14 = vmul.f32 -0.5, %v838_v33  ;;  %v840_v42 = vmul.f32 4.0963855, %v808_v6  ;;  %8456 = vpow2.f32 %v941_v27  ;;  %v945_v63 = vmul.f32 1.442695, %v898_v5 }
 0x456   : > { %5484 = vperm.xlu1 %8209, %v12040_v23   ;;  %13505 = vst [vmem:[#allocation7_spill] sm:$0xff] %v12052_v8  ;;  %v810_v49 = vsub.f32 %v11883_v35, %v11941_v15  ;;  %v931_v2 = vmul.f32 1.442695, %v891_v50  ;;  %v893_v7 = vmul.f32 %v861_v16, %v829_v20  ;;  %v863_v48 = vmul.f32 -0.5, %v831_v1 }
 0x457   : > { %v8441_v19 = vpop.eup %8440  ;;  %v833_v58 = vmul.f32 4.0963855, %v801_v18  ;;  %v803_v24 = vsub.f32 %v11873_v52, %v11941_v15  ;;  %8458 = vpow2.f32 %v927_v61  ;;  %v949_v45 = vmul.f32 1.442695, %v900_v44  ;;  %v5143_v18 = vld [vmem:[%s13361_s5] sm:$0xff] }
 0x458   : > { %v8443_v51 = vpop.eup %8442  ;;  %v4200_v53 = vxor.u32 2147483648, %v8441_v19  ;;  %v902_v40 = vmul.f32 %v870_v14, %v838_v33  ;;  %v872_v46 = vmul.f32 -0.5, %v840_v42  ;;  %8460 = vpow2.f32 %v945_v63  ;;  %v12080_v5 = vpop.permute.xlu0 %4455 }
 0x459   : > { %v4197_v62 = vxor.u32 2147483648, %v8443_v51  ;;  %v8445_v30 = vpop.eup %8444  ;;  %v842_v56 = vmul.f32 4.0963855, %v810_v49  ;;  %v812_v52 = vsub.f32 %v11892_v9, %v11941_v15  ;;  %8462 = vpow2.f32 %v931_v2 }
 0x45a   : > { %v4201_v0 = vsel %vm4199_vm8, %v4200_v53, %v8443_v51  ;;  %v8447_v47 = vpop.eup %8446  ;;  %5494 = vperm.xlu1 %8209, %v12052_v8   ;;  %v12065_v57 = vmul.f32 %v8445_v30, %v11996_v34  ;;  %v935_v34 = vmul.f32 1.442695, %v893_v7  ;;  %v895_v33 = vmul.f32 %v863_v48, %v831_v1 }
 0x45b   : > { %v4198_v59 = vsel %vm4196_vm7, %v8441_v19, %v4197_v62  ;;  %v8449_v35 = vpop.eup %8448  ;;  %v12067_v19 = vpop.permute.xlu1 %4480  ;;  %v12074_v6 = vmul.f32 %v8447_v47, %v11987_v32  ;;  %v865_v53 = vmul.f32 -0.5, %v833_v58  ;;  %v835_v27 = vmul.f32 4.0963855, %v803_v24  ;;  %v5144_v32 = vld [vmem:[%s13361_s5 + $0x8] sm:$0xff] }
 0x45c   : > { %v4202_v37 = vsel %vm4195_vm9, %v4198_v59, %v4201_v0  ;;  %v8451_v20 = vpop.eup %8450  ;;  %8464 = vpow2.f32 %v949_v45  ;;  %v953_v62 = vmul.f32 1.442695, %v902_v40  ;;  %v805_v9 = vsub.f32 %v11885_v17, %v11941_v15  ;;  %v12084_v0 = vpop.f32.mrf.mxu0  ;;  %7820 = vmatprep.subr.mxu0 %v5144_v32  ;;  %8032 = vmatprep.subr.mxu1 %v5144_v32 }
 0x45d   : > { %v4203_v60 = vsel %vm4193_vm5, nan, %v4202_v37  ;;  %v8453_v51 = vpop.eup %8452  ;;  %v12078_v26 = vmul.f32 %v8451_v20, %v12017_v25  ;;  %v904_v16 = vmul.f32 %v872_v46, %v840_v42  ;;  %v874_v1 = vmul.f32 -0.5, %v842_v56  ;;  %7821 = vmatpush3.msra.mxu0 %v5144_v32  ;;  %v12112_v48 = vpop.permute.xlu0 %4465  ;;  %8034 = vmatpush3.msra.mxu1 %v5144_v32 }
 0x45e   : > { %v4337_v43 = vmul.f32 %v4203_v60, %v4203_v60  ;;  %5504 = vperm.xlu1 %8209, %v12065_v57   ;;  %v844_v61 = vmul.f32 4.0963855, %v812_v52  ;;  %v814_v25 = vsub.f32 %v11911_v36, %v11941_v15  ;;  %v12096_v59 = vmul.f32 %v8449_v35, %v12010_v31  ;;  %v12100_v14 = vpop.f32.mrf.mxu0  ;;  %7822 = vmatprep.subr.mxu0 %v5143_v18 }
 0x45f   : > { %v8455_v17 = vpop.eup %8454  ;;  %v12098_v44 = vpop.permute.xlu1 %4490  ;;  %8466 = vpow2.f32 %v935_v34  ;;  %v867_v36 = vmul.f32 -0.5, %v835_v27  ;;  %v807_v42 = vsub.f32 %v11905_v21, %v11941_v15  ;;  %v939_v63 = vmul.f32 1.442695, %v895_v33  ;;  %7823 = vmatpush3.msra.mxu0 %v5143_v18  ;;  %7824 = vmatprep.mubr.msk.f32.mxu0 %vm5145_vm10, %v12100_v14 }
 0x460   : > { %v4401_v50 = vsel %vm4369_vm6, %v4337_v43, 0.0  ;;  %v12106_v37 = vmul.f32 %v8455_v17, %v12029_v22  ;;  %v897_v49 = vmul.f32 %v865_v53, %v833_v58  ;;  %8468 = vpow2.f32 %v953_v62  ;;  %v12110_v30 = vpop.f32.mrf.mxu0  ;;  %7825 = vmatmul.mubr.msk.f32.vlgmr.msra.gmra.mxu0 %vm5145_vm10, %v12084_v0  ;;  %8033 = vmatprep.subr.mxu1 %v5143_v18 }
 0x461   : > { %4555 = vperm.xlu0 %8210, %v4401_v50   ;;  %v837_v31 = vmul.f32 4.0963855, %v805_v9  ;;  %v957_v60 = vmul.f32 1.442695, %v904_v16  ;;  %v906_v2 = vmul.f32 %v874_v1, %v842_v56  ;;  %v876_v7 = vmul.f32 -0.5, %v844_v61  ;;  %8035 = vmatpush3.msra.mxu1 %v5143_v18  ;;  %v12146_v16 = vpop.permute.xlu0 %4475 }
 0x462   : > { %5514 = vperm.xlu1 %8209, %v12078_v26   ;;  %v846_v21 = vmul.f32 4.0963855, %v814_v25  ;;  %v8457_v22 = vpop.eup %8456  ;;  %v816_v47 = vsub.f32 %v11925_v39, %v11941_v15  ;;  %v12120_v43 = vmul.f32 %v8453_v51, %v12023_v54  ;;  %v12122_v58 = vpop.f32.mrf.mxu0  ;;  %v899_v24 = vmul.f32 %v867_v36, %v835_v27 }
 0x463   : > { %v839_v35 = vmul.f32 4.0963855, %v807_v42  ;;  %v12126_v45 = vmul.f32 %v8457_v22, %v12046_v29  ;;  %7827 = vmatprep.mubr.msk.f32.mxu0 %vm5145_vm10, %v12122_v58  ;;  %8470 = vpow2.f32 %v939_v63  ;;  %v943_v39 = vmul.f32 1.442695, %v897_v49  ;;  %v4501_v46 = vpop.permute.xlu1 %4500 }
 0x464   : > { %13506 = vst [vmem:[#allocation8_spill] sm:$0xff] %v12120_v43  ;;  %v869_v40 = vmul.f32 -0.5, %v837_v31  ;;  %v809_v54 = vsub.f32 %v11915_v3, %v11941_v15  ;;  %v12132_v20 = vpop.f32.mrf.mxu0  ;;  %v8459_v50 = vpop.eup %8458  ;;  %8472 = vpow2.f32 %v957_v60  ;;  %v961_v56 = vmul.f32 1.442695, %v906_v2  ;;  %7828 = vmatmul.mubr.msk.f32.gmra.mxu0 %vm5145_vm10, %v12110_v30 }
 0x465   : > { %5469 = vperm.xlu0 %8210, %v12074_v6   ;;  %v908_v52 = vmul.f32 %v876_v7, %v844_v61  ;;  %v878_v34 = vmul.f32 -0.5, %v846_v21  ;;  %v8461_v29 = vpop.eup %8460  ;;  %v848_v51 = vmul.f32 4.0963855, %v816_v47  ;;  %v12138_v33 = vmul.f32 %v8459_v50, %v12042_v10  ;;  %v4486_v47 = vpop.permute.xlu0 %4485 }
 0x466   : > { %5524 = vperm.xlu1 %8209, %v12106_v37   ;;  %v12140_v3 = vpop.f32.mrf.mxu0  ;;  %v8463_v53 = vpop.eup %8462  ;;  %v947_v27 = vmul.f32 1.442695, %v899_v24  ;;  %v871_v62 = vmul.f32 -0.5, %v839_v35  ;;  %v12144_v9 = vmul.f32 %v8461_v29, %v12067_v19  ;;  %8474 = vpow2.f32 %v943_v39 }
 0x467   : > { %7830 = vmatprep.mubr.msk.f32.mxu0 %vm5145_vm10, %v12140_v3  ;;  %v901_v32 = vmul.f32 %v869_v40, %v837_v31  ;;  %v841_v1 = vmul.f32 4.0963855, %v809_v54  ;;  %v811_v10 = vsub.f32 %v11936_v28, %v11941_v15  ;;  %8476 = vpow2.f32 %v961_v56  ;;  %v4511_v42 = vpop.permute.xlu1 %4510 }
 0x468   : > { %v12152_v61 = vpop.f32.mrf.mxu0  ;;  %v965_v18 = vmul.f32 1.442695, %v908_v52  ;;  %v910_v17 = vmul.f32 %v878_v34, %v846_v21  ;;  %7831 = vmatmul.mubr.msk.f32.gmra.mxu0 %vm5145_vm10, %v12132_v20  ;;  %v880_v19 = vmul.f32 -0.5, %v848_v51  ;;  %v12158_v36 = vmul.f32 %v8463_v53, %v12057_v4 }
 0x469   : > { %5479 = vperm.xlu0 %8210, %v12096_v59   ;;  %v8465_v25 = vpop.eup %8464  ;;  %8478 = vpow2.f32 %v947_v27  ;;  %v903_v28 = vmul.f32 %v871_v62, %v839_v35  ;;  %v951_v60 = vmul.f32 1.442695, %v901_v32  ;;  %v873_v2 = vmul.f32 -0.5, %v841_v1  ;;  %v4496_v53 = vpop.permute.xlu0 %4495 }
 0x46a   : > { %5534 = vperm.xlu1 %8209, %v12126_v45   ;;  %v12160_v63 = vpop.f32.mrf.mxu0  ;;  %v12164_v49 = vmul.f32 %v8465_v25, %v12098_v44  ;;  %v843_v7 = vmul.f32 4.0963855, %v811_v10  ;;  %v813_v4 = vsub.f32 %v11952_v11, %v11941_v15  ;;  %8480 = vpow2.f32 %v965_v18 }
 0x46b   : > { %7833 = vmatprep.mubr.msk.f32.mxu0 %vm5145_vm10, %v12160_v63  ;;  %v969_v22 = vmul.f32 1.442695, %v910_v17  ;;  %v912_v24 = vmul.f32 %v880_v19, %v848_v51  ;;  %v955_v39 = vmul.f32 1.442695, %v903_v28  ;;  %8482 = vpow2.f32 %v951_v60  ;;  %v4521_v56 = vpop.permute.xlu1 %4520 }
 0x46c   : > { %v8467_v31 = vpop.eup %8466  ;;  %7834 = vmatmul.mubr.msk.f32.gmra.mxu0 %vm5145_vm10, %v12152_v61  ;;  %v12176_v35 = vpop.f32.mrf.mxu0  ;;  %v905_v11 = vmul.f32 %v873_v2, %v841_v1  ;;  %v875_v54 = vmul.f32 -0.5, %v843_v7  ;;  %v845_v50 = vmul.f32 4.0963855, %v813_v4 }
 0x46d   : > { %5489 = vperm.xlu0 %8210, %v12120_v43   ;;  %v8469_v21 = vpop.eup %8468  ;;  %v12174_v44 = vmul.f32 %v8467_v31, %v12080_v5  ;;  %8484 = vpow2.f32 %v969_v22  ;;  %v973_v29 = vmul.f32 1.442695, %v912_v24 }
 0x46e   : > { %5544 = vperm.xlu1 %8209, %v12144_v9   ;;  %v12179_v40 = vmul.f32 %v8469_v21, %v4501_v46  ;;  %v12185_v51 = vpop.f32.mrf.mxu0  ;;  %v7444_v46 = vld [vmem:[%s13361_s5 + $0x28] sm:$0xff]  ;;  %8486 = vpow2.f32 %v955_v39  ;;  %v959_v62 = vmul.f32 1.442695, %v905_v11  ;;  %v907_v32 = vmul.f32 %v875_v54, %v843_v7  ;;  %v4506_v7 = vpop.permute.xlu0 %4505 }
 0x46f   : > { %7836 = vmatprep.mubr.msk.f32.mxu0 %vm5145_vm10, %v12185_v51  ;;  %v877_v1 = vmul.f32 -0.5, %v845_v50  ;;  %7924 = vmatprep.subr.mxu0 %v7444_v46  ;;  %8488 = vpow2.f32 %v973_v29  ;;  %v4531_v17 = vpop.permute.xlu1 %4530 }
 0x470   : > { %13507 = vst [vmem:[#allocation9_spill] sm:$0xff] %v12179_v40  ;;  %v8471_v52 = vpop.eup %8470  ;;  %7837 = vmatmul.mubr.msk.f32.gmra.mxu0 %vm5145_vm10, %v12176_v35  ;;  %8490 = vpow2.f32 %v959_v62  ;;  %v963_v60 = vmul.f32 1.442695, %v907_v32 }
 0x471   : > { %5499 = vperm.xlu0 %8210, %v12138_v33   ;;  %v8473_v34 = vpop.eup %8472  ;;  %v12183_v5 = vmul.f32 %v8471_v52, %v12112_v48  ;;  %v12195_v48 = vpop.f32.mrf.mxu0  ;;  %7925 = vmatpush3.msra.mxu0 %v7444_v46  ;;  %v909_v2 = vmul.f32 %v877_v1, %v845_v50  ;;  %v815_v46 = vsub.f32 %v11964_v12, %v11941_v15 }
 0x472   : > { %5554 = vperm.xlu1 %8209, %v12164_v49   ;;  %v12191_v27 = vmul.f32 %v8473_v34, %v4511_v42  ;;  %7928 = vmatprep.mubr.msk.f32.mxu0 %vm5145_vm10, %v12100_v14  ;;  %v7443_v42 = vld [vmem:[%s13361_s5 + $0x20] sm:$0xff]  ;;  %8492 = vpow2.f32 %v963_v60  ;;  %v4516_v34 = vpop.permute.xlu0 %4515 }
 0x473   : > { %v8475_v10 = vpop.eup %8474  ;;  %v12205_v19 = vpop.f32.mrf.mxu0  ;;  %7926 = vmatprep.subr.mxu0 %v7443_v42  ;;  %v967_v39 = vmul.f32 1.442695, %v909_v2 }
 0x474   : > { %13508 = vst [vmem:[#allocation10_spill] sm:$0xff] %v12191_v27  ;;  %v8477_v25 = vpop.eup %8476  ;;  %v12203_v18 = vmul.f32 %v8475_v10, %v12146_v16  ;;  %7839 = vmatprep.mubr.msk.f32.mxu1 %vm5145_vm10, %v12205_v19  ;;  %7927 = vmatpush3.msra.mxu0 %v7443_v42  ;;  %v4541_v11 = vpop.permute.xlu1 %4540 }
 0x475   : > { %5509 = vperm.xlu0 %8210, %v12158_v36   ;;  %v12211_v28 = vmul.f32 %v8477_v25, %v4521_v56  ;;  %v12215_v16 = vpop.f32.mrf.mxu0  ;;  %7840 = vmatmul.mubr.msk.f32.vlgmr.msra.gmra.mxu1 %vm5145_vm10, %v12195_v48  ;;  %8494 = vpow2.f32 %v967_v39  ;;  %v847_v25 = vmul.f32 4.0963855, %v815_v46 }
 0x476   : > { %5564 = vperm.xlu1 %8209, %v12179_v40   ;;  %v8479_v31 = vpop.eup %8478  ;;  %7929 = vmatmul.mubr.msk.f32.vlgmr.msra.gmra.mxu0 %vm5145_vm10, %v12084_v0  ;;  %v4526_v60 = vpop.permute.xlu0 %4525 }
 0x477   : > { %13509 = vst [vmem:[#allocation11_spill] sm:$0xff] %v12211_v28  ;;  %v8481_v4 = vpop.eup %8480  ;;  %v12222_v21 = vmul.f32 %v8479_v31, %v4486_v47  ;;  %7931 = vmatprep.mubr.msk.f32.mxu0 %vm5145_vm10, %v12122_v58  ;;  %v12226_v22 = vpop.f32.mrf.mxu0 }
 0x478   : > { %v12229_v24 = vmul.f32 %v8481_v4, %v4531_v17  ;;  %7842 = vmatprep.mubr.msk.f32.mxu1 %vm5145_vm10, %v12226_v22  ;;  %v8483_v50 = vpop.eup %8482  ;;  %v879_v4 = vmul.f32 -0.5, %v847_v25 }
 0x479   : > { %5519 = vperm.xlu0 %8210, %v12174_v44   ;;  %13510 = vst [vmem:[#allocation12_spill] sm:$0xff] %v12222_v21  ;;  %v12233_v54 = vpop.f32.mrf.mxu0  ;;  %7843 = vmatmul.mubr.msk.f32.gmra.mxu1 %vm5145_vm10, %v12215_v16  ;;  %v12240_v56 = vmul.f32 %v8483_v50, %v4496_v53 }
 0x47a   : > { %5574 = vperm.xlu1 %8209, %v12191_v27   ;;  %13511 = vst [vmem:[#allocation13_spill] sm:$0xff] %v12229_v24  ;;  %7932 = vmatmul.mubr.msk.f32.gmra.mxu0 %vm5145_vm10, %v12110_v30  ;;  %v8485_v47 = vpop.eup %8484  ;;  %v911_v46 = vmul.f32 %v879_v4, %v847_v25 }
 0x47b   : > { %13512 = vst [vmem:[#allocation14_spill] sm:$0xff] %v12240_v56  ;;  %7934 = vmatprep.mubr.msk.f32.mxu0 %vm5145_vm10, %v12140_v3  ;;  %v12244_v52 = vpop.f32.mrf.mxu0  ;;  %v12247_v29 = vmul.f32 %v8485_v47, %v4541_v11  ;;  %v8487_v53 = vpop.eup %8486 }
 0x47c   : > { %7845 = vmatprep.mubr.msk.f32.mxu1 %vm5145_vm10, %v12244_v52  ;;  %v12260_v32 = vmul.f32 %v8487_v53, %v4506_v7  ;;  %v8489_v10 = vpop.eup %8488  ;;  %v971_v25 = vmul.f32 1.442695, %v911_v46 }
 0x47d   : > { %5529 = vperm.xlu0 %8210, %v12183_v5   ;;  %v12253_v62 = vpop.f32.mrf.mxu0  ;;  %7846 = vmatmul.mubr.msk.f32.gmra.mxu1 %vm5145_vm10, %v12233_v54  ;;  %v8491_v31 = vpop.eup %8490 }
 0x47e   : > { %5584 = vperm.xlu1 %8209, %v12211_v28   ;;  %7935 = vmatmul.mubr.msk.f32.gmra.mxu0 %vm5145_vm10, %v12132_v20  ;;  %13513 = vst [vmem:[#allocation15_spill] sm:$0xff] %v12260_v32  ;;  %v12278_v2 = vmul.f32 %v8491_v31, %v4516_v34  ;;  %v4536_v34 = vpop.permute.xlu0 %4535  ;;  %8496 = vpow2.f32 %v971_v25 }
 0x47f   : > { %7937 = vmatprep.mubr.msk.f32.mxu0 %vm5145_vm10, %v12160_v63  ;;  %v12264_v1 = vpop.f32.mrf.mxu0  ;;  %v8493_v11 = vpop.eup %8492 }
 0x480   : > { %7848 = vmatprep.mubr.msk.f32.mxu1 %vm5145_vm10, %v12264_v1  ;;  %v12294_v50 = vmul.f32 %v8493_v11, %v4526_v60 }
 0x481   : > { %5539 = vperm.xlu0 %8210, %v12203_v18   ;;  %v12271_v42 = vpop.f32.mrf.mxu0  ;;  %7849 = vmatmul.mubr.msk.f32.gmra.mxu1 %vm5145_vm10, %v12253_v62 }
 0x482   : > { %5594 = vperm.xlu1 %8209, %v12229_v24   ;;  %7938 = vmatmul.mubr.msk.f32.gmra.mxu0 %vm5145_vm10, %v12152_v61 }
 0x483   : > { %7940 = vmatprep.mubr.msk.f32.mxu0 %vm5145_vm10, %v12185_v51  ;;  %v12282_v7 = vpop.f32.mrf.mxu0 }
 0x484   : > { %7851 = vmatprep.mubr.msk.f32.mxu1 %vm5145_vm10, %v12282_v7 }
 0x485   : > { %5549 = vperm.xlu0 %8210, %v12222_v21   ;;  %v12287_v39 = vpop.f32.mrf.mxu0  ;;  %7852 = vmatmul.mubr.msk.f32.gmra.mxu1 %vm5145_vm10, %v12271_v42 }
 0x486   : > { %5604 = vperm.xlu1 %8209, %v12247_v29   ;;  %7941 = vmatmul.mubr.msk.f32.gmra.mxu0 %vm5145_vm10, %v12176_v35 }
 0x487   : > { %7943 = vmatprep.mubr.msk.f32.mxu0 %vm5145_vm10, %v12205_v19  ;;  %v12298_v47 = vpop.f32.mrf.mxu0 }
 0x488   : > { %7854 = vmatprep.mubr.msk.f32.mxu1 %vm5145_vm10, %v12298_v47 }
 0x489   : > { %5559 = vperm.xlu0 %8210, %v12240_v56   ;;  %v12302_v53 = vpop.f32.mrf.mxu0  ;;  %7855 = vmatmul.mubr.msk.f32.gmra.mxu1 %vm5145_vm10, %v12287_v39 }
 0x48a   : > { %7944 = vmatmul.mubr.msk.f32.gmra.mxu0 %vm5145_vm10, %v12195_v48 }
 0x48b   : > { %7946 = vmatprep.mubr.msk.f32.mxu0 %vm5145_vm10, %v12226_v22  ;;  %v12313_v31 = vpop.f32.mrf.mxu0 }
 0x48c   : > { %7857 = vmatprep.mubr.msk.f32.mxu1 %vm5145_vm10, %v12313_v31 }
 0x48d   : > { %5569 = vperm.xlu0 %8210, %v12260_v32   ;;  %v12317_v60 = vpop.f32.mrf.mxu0  ;;  %7858 = vmatmul.mubr.msk.f32.gmra.mxu1 %vm5145_vm10, %v12302_v53  ;;  %v7409_v32 = vld [vmem:[%s13361_s5 + $0x10] sm:$0xff] }
 0x48e   : > { %7947 = vmatmul.mubr.msk.f32.gmra.mxu0 %vm5145_vm10, %v12215_v16 }
 0x48f   : > { %7949 = vmatprep.mubr.msk.f32.mxu0 %vm5145_vm10, %v12244_v52  ;;  %v12326_v4 = vpop.f32.mrf.mxu0 }
 0x490   : > { %v4551_v12 = vpop.permute.xlu1 %4550  ;;  %7860 = vmatprep.mubr.msk.f32.mxu1 %vm5145_vm10, %v12326_v4 }
 0x491   : > { %v12269_v17 = vmul.f32 %v8489_v10, %v4551_v12  ;;  %5579 = vperm.xlu0 %8210, %v12278_v2   ;;  %v8495_v10 = vpop.eup %8494  ;;  %v12330_v11 = vpop.f32.mrf.mxu0  ;;  %7861 = vmatmul.mubr.msk.f32.gmra.mxu1 %vm5145_vm10, %v12317_v60 }
 0x492   : > { %v12309_v12 = vmul.f32 %v8495_v10, %v4536_v34  ;;  %7950 = vmatmul.mubr.msk.f32.gmra.mxu0 %vm5145_vm10, %v12233_v54  ;;  %v818_v34 = vsub.f32 %v11946_v38, %v11941_v15  ;;  %v7410_v10 = vld [vmem:[%s13361_s5 + $0x18] sm:$0xff]  ;;  %v8497_v27 = vpop.eup %8496 }
 0x493   : > { %5614 = vperm.xlu1 %8209, %v12269_v17   ;;  %7952 = vmatprep.mubr.msk.f32.mxu0 %vm5145_vm10, %v12264_v1  ;;  %v12340_v46 = vpop.f32.mrf.mxu0 }
 0x494   : > { %7863 = vmatprep.mubr.msk.f32.mxu1 %vm5145_vm10, %v12340_v46  ;;  %7872 = vmatprep.subr.mxu1 %v7410_v10  ;;  %v850_v38 = vmul.f32 4.0963855, %v818_v34 }
 0x495   : > { %5589 = vperm.xlu0 %8210, %v12294_v50   ;;  %v12347_v25 = vpop.f32.mrf.mxu0  ;;  %7873 = vmatpush3.msra.mxu1 %v7410_v10 }
 0x496   : > { %7864 = vmatmul.mubr.msk.f32.gmra.mxu1 %vm5145_vm10, %v12330_v11  ;;  %7953 = vmatmul.mubr.msk.f32.gmra.mxu0 %vm5145_vm10, %v12253_v62  ;;  %v882_v10 = vmul.f32 -0.5, %v850_v38 }
 0x497   : > { %7955 = vmatprep.mubr.msk.f32.mxu0 %vm5145_vm10, %v12282_v7  ;;  %v12355_v55 = vpop.f32.mrf.mxu0  ;;  %7874 = vmatprep.subr.mxu1 %v7409_v32 }
 0x498   : > { %7866 = vmatprep.mubr.msk.f32.mxu1 %vm5145_vm10, %v12355_v55  ;;  %v914_v24 = vmul.f32 %v882_v10, %v850_v38  ;;  %7875 = vmatpush3.msra.mxu1 %v7409_v32 }
 0x499   : > { %5599 = vperm.xlu0 %8210, %v12309_v12   ;;  %v12359_v40 = vpop.f32.mrf.mxu0 }
 0x49a   : > { %7867 = vmatmul.mubr.msk.f32.gmra.mxu1 %vm5145_vm10, %v12347_v25  ;;  %7956 = vmatmul.mubr.msk.f32.gmra.mxu0 %vm5145_vm10, %v12271_v42 }
 0x49b   : > { %7958 = vmatprep.mubr.msk.f32.mxu0 %vm5145_vm10, %v12298_v47  ;;  %v12367_v34 = vpop.f32.mrf.mxu0 }
 0x49c   : > { %7869 = vmatprep.mubr.msk.f32.mxu1 %vm5145_vm10, %v12367_v34 }
 0x49e   : > { %7870 = vmatmul.mubr.msk.f32.gmra.mxu1 %vm5145_vm10, %v12359_v40  ;;  %7959 = vmatmul.mubr.msk.f32.gmra.mxu0 %vm5145_vm10, %v12287_v39 }
 0x49f   : > { %7876 = vmatprep.mubr.msk.f32.mxu1 %vm5145_vm10, %v12100_v14  ;;  %7961 = vmatprep.mubr.msk.f32.mxu0 %vm5145_vm10, %v12313_v31 }
 0x4a2   : > { %7877 = vmatmul.mubr.msk.f32.vlgmr.msra.gmra.mxu1 %vm5145_vm10, %v12084_v0  ;;  %7962 = vmatmul.mubr.msk.f32.gmra.mxu0 %vm5145_vm10, %v12302_v53 }
 0x4a3   : > { %7879 = vmatprep.mubr.msk.f32.mxu1 %vm5145_vm10, %v12122_v58  ;;  %7964 = vmatprep.mubr.msk.f32.mxu0 %vm5145_vm10, %v12326_v4 }
 0x4a6   : > { %7880 = vmatmul.mubr.msk.f32.gmra.mxu1 %vm5145_vm10, %v12110_v30  ;;  %7965 = vmatmul.mubr.msk.f32.gmra.mxu0 %vm5145_vm10, %v12317_v60 }
 0x4a7   : > { %7882 = vmatprep.mubr.msk.f32.mxu1 %vm5145_vm10, %v12140_v3  ;;  %7967 = vmatprep.mubr.msk.f32.mxu0 %vm5145_vm10, %v12340_v46 }
 0x4aa   : > { %7883 = vmatmul.mubr.msk.f32.gmra.mxu1 %vm5145_vm10, %v12132_v20  ;;  %7968 = vmatmul.mubr.msk.f32.gmra.mxu0 %vm5145_vm10, %v12330_v11 }
 0x4ab   : > { %7885 = vmatprep.mubr.msk.f32.mxu1 %vm5145_vm10, %v12160_v63  ;;  %7970 = vmatprep.mubr.msk.f32.mxu0 %vm5145_vm10, %v12355_v55 }
 0x4ad   : > { %v4546_v28 = vpop.permute.xlu0 %4545 }
 0x4ae   : > { %v12375_v56 = vmul.f32 %v8497_v27, %v4546_v28  ;;  %v977_v27 = vmul.f32 1.442695, %v914_v24  ;;  %7886 = vmatmul.mubr.msk.f32.gmra.mxu1 %vm5145_vm10, %v12152_v61  ;;  %7971 = vmatmul.mubr.msk.f32.gmra.mxu0 %vm5145_vm10, %v12347_v25  ;;  %v817_v28 = vsub.f32 %v11975_v41, %v11941_v15  ;;  %v13394_v41 = vmov 1  }
 0x4af   : > { %7888 = vmatprep.mubr.msk.f32.mxu1 %vm5145_vm10, %v12185_v51  ;;  %7973 = vmatprep.mubr.msk.f32.mxu0 %vm5145_vm10, %v12367_v34 }
 0x4b0   : > { %5609 = vperm.xlu0 %8210, %v12375_v56   ;;  %8498 = vpow2.f32 %v977_v27  ;;  %v849_v38 = vmul.f32 4.0963855, %v817_v28  ;;  %v7478_v28 = vld [vmem:[%s13361_s5 + $0x38] sm:$0xff] }
 0x4b1   : > { %7976 = vmatprep.subr.mxu1 %v7478_v28 }
 0x4b2   : > { %7889 = vmatmul.mubr.msk.f32.gmra.mxu1 %vm5145_vm10, %v12176_v35  ;;  %7974 = vmatmul.mubr.msk.f32.gmra.mxu0 %vm5145_vm10, %v12359_v40  ;;  %v881_v15 = vmul.f32 -0.5, %v849_v38 }
 0x4b3   : > { %7891 = vmatprep.mubr.msk.f32.mxu1 %vm5145_vm10, %v12205_v19  ;;  %7977 = vmatpush3.msra.mxu1 %v7478_v28  ;;  %v13392_v28 = vmov 3  }
 0x4b4   : > { %v913_v27 = vmul.f32 %v881_v15, %v849_v38 }
 0x4b6   : > { %7892 = vmatmul.mubr.msk.f32.gmra.mxu1 %vm5145_vm10, %v12195_v48 }
 0x4b7   : > { %7894 = vmatprep.mubr.msk.f32.mxu1 %vm5145_vm10, %v12226_v22 }
 0x4ba   : > { %7895 = vmatmul.mubr.msk.f32.gmra.mxu1 %vm5145_vm10, %v12215_v16 }
 0x4bb   : > { %7897 = vmatprep.mubr.msk.f32.mxu1 %vm5145_vm10, %v12244_v52 }
 0x4bd   : > { %v8499_v24 = vpop.eup %8498 }
 0x4be   : > { %7898 = vmatmul.mubr.msk.f32.gmra.mxu1 %vm5145_vm10, %v12233_v54 }
 0x4bf   : > { %7900 = vmatprep.mubr.msk.f32.mxu1 %vm5145_vm10, %v12264_v1 }
 0x4c0   : > { %v4561_v32 = vpop.permute.xlu1 %4560 }
 0x4c1   : > { %v4594_v10 = vmul.f32 %v8499_v24, %v4561_v32  ;;  %v975_v24 = vmul.f32 1.442695, %v913_v27 }
 0x4c2   : > { %7901 = vmatmul.mubr.msk.f32.gmra.mxu1 %vm5145_vm10, %v12253_v62 }
 0x4c3   : > { %5624 = vperm.xlu1 %8209, %v4594_v10   ;;  %7903 = vmatprep.mubr.msk.f32.mxu1 %vm5145_vm10, %v12282_v7  ;;  %8500 = vpow2.f32 %v975_v24 }
 0x4c6   : > { %7904 = vmatmul.mubr.msk.f32.gmra.mxu1 %vm5145_vm10, %v12271_v42 }
 0x4c7   : > { %8211 = vset.pattern.permute.xlu1 %v13394_v41  ;;  %7906 = vmatprep.mubr.msk.f32.mxu1 %vm5145_vm10, %v12298_v47 }
 0x4c8   : > { %5924 = vperm.xlu1 %8211, %v12032_v13  }
 0x4ca   : > { %7907 = vmatmul.mubr.msk.f32.gmra.mxu1 %vm5145_vm10, %v12287_v39 }
 0x4cb   : > { %7909 = vmatprep.mubr.msk.f32.mxu1 %vm5145_vm10, %v12313_v31 }
 0x4cc   : > { %5928 = vperm.xlu1 %8211, %v12096_v59  }
 0x4cd   : > { %v12476_v27 = vpop.permute.xlu1 %5474 }
 0x4ce   : > { %7910 = vmatmul.mubr.msk.f32.gmra.mxu1 %vm5145_vm10, %v12302_v53 }
 0x4cf   : > { %7912 = vmatprep.mubr.msk.f32.mxu1 %vm5145_vm10, %v12326_v4 }
 0x4d0   : > { %5936 = vperm.xlu1 %8211, %v12120_v43   ;;  %v8501_v32 = vpop.eup %8500 }
 0x4d1   : > { %v12485_v24 = vpop.permute.xlu1 %5484 }
 0x4d2   : > { %7913 = vmatmul.mubr.msk.f32.gmra.mxu1 %vm5145_vm10, %v12317_v60 }
 0x4d3   : > { %7915 = vmatprep.mubr.msk.f32.mxu1 %vm5145_vm10, %v12340_v46 }
 0x4d4   : > { %5944 = vperm.xlu1 %8211, %v12138_v33  }
 0x4d6   : > { %7916 = vmatmul.mubr.msk.f32.gmra.mxu1 %vm5145_vm10, %v12330_v11 }
 0x4d7   : > { %7918 = vmatprep.mubr.msk.f32.mxu1 %vm5145_vm10, %v12355_v55 }
 0x4d8   : > { %5952 = vperm.xlu1 %8211, %v12158_v36  }
 0x4da   : > { %7919 = vmatmul.mubr.msk.f32.gmra.mxu1 %vm5145_vm10, %v12347_v25 }
 0x4db   : > { %7921 = vmatprep.mubr.msk.f32.mxu1 %vm5145_vm10, %v12367_v34 }
 0x4dc   : > { %5960 = vperm.xlu1 %8211, %v12174_v44   ;;  %v4556_v38 = vpop.permute.xlu0 %4555 }
 0x4dd   : > { %v12465_v15 = vmul.f32 %v8501_v32, %v4556_v38  ;;  %v7477_v32 = vld [vmem:[%s13361_s5 + $0x30] sm:$0xff]  ;;  %v13396_v38 = vmov 2  }
 0x4de   : > { %7922 = vmatmul.mubr.msk.f32.gmra.mxu1 %vm5145_vm10, %v12359_v40  ;;  %7978 = vmatprep.subr.mxu1 %v7477_v32 }
 0x4df   : > { %5619 = vperm.xlu0 %8210, %v12465_v15   ;;  %7980 = vmatprep.mubr.msk.f32.mxu1 %vm5145_vm10, %v12100_v14 }
 0x4e0   : > { %5968 = vperm.xlu1 %8211, %v12183_v5   ;;  %7979 = vmatpush3.msra.mxu1 %v7477_v32 }
 0x4e2   : > { %7981 = vmatmul.mubr.msk.f32.vlgmr.msra.gmra.mxu1 %vm5145_vm10, %v12084_v0 }
 0x4e3   : > { %8215 = vset.pattern.permute.xlu0 %v13392_v28  ;;  %7983 = vmatprep.mubr.msk.f32.mxu1 %vm5145_vm10, %v12122_v58  ;;  %v12501_v28 = vpop.permute.xlu1 %5494 }
 0x4e4   : > { %5976 = vperm.xlu1 %8211, %v12203_v18   ;;  %6884 = vperm.xlu0 %8215, %v4594_v10  }
 0x4e6   : > { %7984 = vmatmul.mubr.msk.f32.gmra.mxu1 %vm5145_vm10, %v12110_v30  ;;  %v12532_v30 = vpop.permute.xlu0 %5469 }
 0x4e7   : > { %7986 = vmatprep.mubr.msk.f32.mxu1 %vm5145_vm10, %v12140_v3  ;;  %v12510_v0 = vpop.permute.xlu1 %5504 }
 0x4e8   : > { %5984 = vperm.xlu1 %8211, %v12222_v21   ;;  %8216 = vset.pattern.permute.xlu0 %v13394_v41 }
 0x4e9   : > { %5920 = vperm.xlu0 %8216, %v12074_v6  }
 0x4ea   : > { %7987 = vmatmul.mubr.msk.f32.gmra.mxu1 %vm5145_vm10, %v12132_v20  ;;  %v13514_v20 = vmov 3   ;;  %v12546_v3 = vpop.permute.xlu0 %5479 }
 0x4eb   : > { %7989 = vmatprep.mubr.msk.f32.mxu1 %vm5145_vm10, %v12160_v63  ;;  %v12522_v14 = vpop.permute.xlu1 %5514 }
 0x4ec   : > { %6044 = vperm.xlu1 %8211, %v4594_v10  }
 0x4ed   : > { %5932 = vperm.xlu0 %8216, %v12040_v23  }
 0x4ee   : > { %7990 = vmatmul.mubr.msk.f32.gmra.mxu1 %vm5145_vm10, %v12152_v61  ;;  %v12560_v63 = vpop.permute.xlu0 %5489 }
 0x4ef   : > { %7992 = vmatprep.mubr.msk.f32.mxu1 %vm5145_vm10, %v12185_v51  ;;  %v12534_v58 = vpop.permute.xlu1 %5524 }
 0x4f0   : > { %8212 = vset.pattern.permute.xlu1 %v13396_v38 }
 0x4f1   : > { %6464 = vperm.xlu1 %8212, %v4594_v10   ;;  %5940 = vperm.xlu0 %8216, %v12052_v8  }
 0x4f2   : > { %7993 = vmatmul.mubr.msk.f32.gmra.mxu1 %vm5145_vm10, %v12176_v35  ;;  %v12574_v51 = vpop.permute.xlu0 %5499 }
 0x4f3   : > { %7995 = vmatprep.mubr.msk.f32.mxu1 %vm5145_vm10, %v12205_v19  ;;  %v12551_v61 = vpop.permute.xlu1 %5534 }
 0x4f5   : > { %8213 = vset.pattern.permute.xlu1 %v13394_v41  ;;  %5948 = vperm.xlu0 %8216, %v12065_v57  }
 0x4f6   : > { %6036 = vperm.xlu1 %8213, %v12269_v17   ;;  %7996 = vmatmul.mubr.msk.f32.gmra.mxu1 %vm5145_vm10, %v12195_v48 }
 0x4f7   : > { %7998 = vmatprep.mubr.msk.f32.mxu1 %vm5145_vm10, %v12226_v22  ;;  %v12563_v35 = vpop.permute.xlu1 %5544 }
 0x4f9   : > { %5956 = vperm.xlu0 %8216, %v12078_v26  }
 0x4fa   : > { %8214 = vset.pattern.permute.xlu1 %v13396_v38  ;;  %7999 = vmatmul.mubr.msk.f32.gmra.mxu1 %vm5145_vm10, %v12215_v16 }
 0x4fb   : > { %6460 = vperm.xlu1 %8214, %v12465_v15   ;;  %8001 = vmatprep.mubr.msk.f32.mxu1 %vm5145_vm10, %v12244_v52  ;;  %v12578_v48 = vpop.permute.xlu1 %5554 }
 0x4fc   : > { %13515 = vst [vmem:[#allocation16_spill] sm:$0xff] %v12578_v48 }
 0x4fd   : > { %5964 = vperm.xlu0 %8216, %v12106_v37  }
 0x4fe   : > { %8002 = vmatmul.mubr.msk.f32.gmra.mxu1 %vm5145_vm10, %v12233_v54  ;;  %v13518_v54 = vld [vmem:[#allocation15_spill] sm:$0xff] }
 0x4ff   : > { %6396 = vperm.xlu1 %8214, %v12203_v18   ;;  %8004 = vmatprep.mubr.msk.f32.mxu1 %vm5145_vm10, %v12264_v1  ;;  %v12589_v19 = vpop.permute.xlu1 %5564  ;;  %v13520_v1 = vld [vmem:[#allocation14_spill] sm:$0xff] }
 0x500   : > { %13516 = vst [vmem:[#allocation17_spill] sm:$0xff] %v12589_v19 }
 0x501   : > { %5972 = vperm.xlu0 %8216, %v12126_v45  }
 0x502   : > { %8005 = vmatmul.mubr.msk.f32.gmra.mxu1 %vm5145_vm10, %v12253_v62 }
 0x503   : > { %8217 = vset.pattern.permute.xlu1 %v13514_v20  ;;  %8007 = vmatprep.mubr.msk.f32.mxu1 %vm5145_vm10, %v12282_v7  ;;  %v12606_v22 = vpop.permute.xlu1 %5574 }
 0x504   : > { %6820 = vperm.xlu1 %8217, %v12144_v9   ;;  %13517 = vst [vmem:[#allocation18_spill] sm:$0xff] %v12606_v22 }
 0x505   : > { %5980 = vperm.xlu0 %8216, %v12144_v9  }
 0x506   : > { %8008 = vmatmul.mubr.msk.f32.gmra.mxu1 %vm5145_vm10, %v12271_v42 }
 0x507   : > { %8010 = vmatprep.mubr.msk.f32.mxu1 %vm5145_vm10, %v12298_v47  ;;  %v12617_v62 = vpop.permute.xlu1 %5584 }
 0x508   : > { %8218 = vset.pattern.permute.xlu1 %v13396_v38  ;;  %13519 = vst [vmem:[#allocation19_spill] sm:$0xff] %v12617_v62 }
 0x509   : > { %6456 = vperm.xlu1 %8218, %v12269_v17   ;;  %5988 = vperm.xlu0 %8216, %v12164_v49  }
 0x50a   : > { %8011 = vmatmul.mubr.msk.f32.gmra.mxu1 %vm5145_vm10, %v12287_v39 }
 0x50b   : > { %8013 = vmatprep.mubr.msk.f32.mxu1 %vm5145_vm10, %v12313_v31  ;;  %v12634_v42 = vpop.permute.xlu1 %5594 }
 0x50c   : > { %13522 = vst [vmem:[#allocation21_spill] sm:$0xff] %v12634_v42 }
 0x50d   : > { %8219 = vset.pattern.permute.xlu1 %v13514_v20  ;;  %6040 = vperm.xlu0 %8216, %v12465_v15  }
 0x50e   : > { %6880 = vperm.xlu1 %8219, %v12465_v15   ;;  %8014 = vmatmul.mubr.msk.f32.gmra.mxu1 %vm5145_vm10, %v12302_v53 }
 0x50f   : > { %8016 = vmatprep.mubr.msk.f32.mxu1 %vm5145_vm10, %v12326_v4 }
 0x511   : > { %6032 = vperm.xlu0 %8216, %v12375_v56  }
 0x512   : > { %6816 = vperm.xlu1 %8219, %v12203_v18   ;;  %v12587_v18 = vpop.permute.xlu0 %5509  ;;  %8017 = vmatmul.mubr.msk.f32.gmra.mxu1 %vm5145_vm10, %v12317_v60 }
 0x513   : > { %8019 = vmatprep.mubr.msk.f32.mxu1 %vm5145_vm10, %v12340_v46 }
 0x515   : > { %6024 = vperm.xlu0 %8216, %v12309_v12  }
 0x516   : > { %8220 = vset.pattern.permute.xlu1 %v13394_v41  ;;  %v12601_v16 = vpop.permute.xlu0 %5519  ;;  %8020 = vmatmul.mubr.msk.f32.gmra.mxu1 %vm5145_vm10, %v12330_v11 }
 0x517   : > { %6028 = vperm.xlu1 %8220, %v12247_v29   ;;  %8022 = vmatprep.mubr.msk.f32.mxu1 %vm5145_vm10, %v12355_v55 }
 0x519   : > { %6016 = vperm.xlu0 %8216, %v12294_v50  }
 0x51a   : > { %v12614_v52 = vpop.permute.xlu0 %5529  ;;  %8023 = vmatmul.mubr.msk.f32.gmra.mxu1 %vm5145_vm10, %v12347_v25 }
 0x51b   : > { %8221 = vset.pattern.permute.xlu1 %v13514_v20  ;;  %8025 = vmatprep.mubr.msk.f32.mxu1 %vm5145_vm10, %v12367_v34 }
 0x51c   : > { %6876 = vperm.xlu1 %8221, %v12269_v17  }
 0x51d   : > { %6008 = vperm.xlu0 %8216, %v12278_v2  }
 0x51e   : > { %8026 = vmatmul.mubr.msk.f32.gmra.mxu1 %vm5145_vm10, %v12359_v40  ;;  %v12631_v17 = vpop.permute.xlu0 %5539  ;;  %v12647_v40 = vpop.permute.xlu1 %5604 }
 0x51f   : > { %13521 = vst [vmem:[#allocation20_spill] sm:$0xff] %v12631_v17  ;;  %13524 = vst [vmem:[#allocation23_spill] sm:$0xff] %v12647_v40 }
 0x520   : > { %6812 = vperm.xlu1 %8221, %v12126_v45   ;;  %v12626_v55 = vpop.f32.mrf.mxu0 }
 0x521   : > { %6000 = vperm.xlu0 %8216, %v13518_v54  }
 0x522   : > { %v12636_v7 = vpop.f32.mrf.mxu0  ;;  %v12644_v53 = vpop.permute.xlu0 %5549 }
 0x523   : > { %13523 = vst [vmem:[#allocation22_spill] sm:$0xff] %v12644_v53  ;;  %v12662_v11 = vpop.permute.xlu1 %5614 }
 0x524   : > { %8222 = vset.pattern.permute.xlu1 %v13396_v38  ;;  %v12639_v39 = vpop.f32.mrf.mxu0  ;;  %13527 = vst [vmem:[#allocation24_spill] sm:$0xff] %v12662_v11 }
 0x525   : > { %6448 = vperm.xlu1 %8222, %v12247_v29   ;;  %5992 = vperm.xlu0 %8216, %v13520_v1  }
 0x526   : > { %v12642_v47 = vpop.f32.mrf.mxu0  ;;  %v12655_v4 = vpop.permute.xlu0 %5559 }
 0x528   : > { %v12649_v31 = vpop.f32.mrf.mxu0 }
 0x529   : > { %8223 = vset.pattern.permute.xlu1 %v13514_v20  ;;  %8238 = vset.pattern.permute.xlu0 %v13396_v38 }
 0x52a   : > { %6872 = vperm.xlu1 %8223, %v12375_v56   ;;  %6400 = vperm.xlu0 %8238, %v12144_v9   ;;  %v13525_v9 = vld [vmem:[#allocation13_spill] sm:$0xff]  ;;  %v12653_v60 = vpop.f32.mrf.mxu0 }
 0x52b   : > { %13526 = vst [vmem:[#allocation13_spill] sm:$0xff] %v12655_v4  ;;  %v13542_v4 = vld [vmem:[#allocation11_spill] sm:$0xff] }
 0x52e   : > { %6808 = vperm.xlu1 %8223, %v12183_v5   ;;  %6392 = vperm.xlu0 %8238, %v12126_v45   ;;  %v12658_v45 = vpop.f32.mrf.mxu0 }
 0x530   : > { %v12664_v46 = vpop.f32.mrf.mxu0 }
 0x532   : > { %8224 = vset.pattern.permute.xlu1 %v13394_v41  ;;  %6452 = vperm.xlu0 %8238, %v12375_v56   ;;  %v12668_v56 = vpop.permute.xlu0 %5569  ;;  %v12670_v25 = vpop.f32.mrf.mxu0 }
 0x533   : > { %6020 = vperm.xlu1 %8224, %v13525_v9   ;;  %13528 = vst [vmem:[#allocation25_spill] sm:$0xff] %v12668_v56 }
 0x534   : > { %v12674_v10 = vpop.f32.mrf.mxu0 }
 0x536   : > { %6388 = vperm.xlu0 %8238, %v12183_v5   ;;  %v12679_v5 = vpop.f32.mrf.mxu1  ;;  %v12683_v15 = vpop.permute.xlu0 %5579 }
 0x537   : > { %8225 = vset.pattern.permute.xlu1 %v13514_v20  ;;  %13531 = vst [vmem:[#allocation28_spill] sm:$0xff] %v12683_v15 }
 0x538   : > { %6868 = vperm.xlu1 %8225, %v12247_v29   ;;  %v12681_v29 = vpop.f32.mrf.mxu0  ;;  %v12688_v32 = vpop.f32.mrf.mxu1 }
 0x539   : > { %13530 = vst [vmem:[#allocation27_spill] sm:$0xff] %v12681_v29 }
 0x53a   : > { %6384 = vperm.xlu0 %8238, %v12106_v37   ;;  %v12690_v41 = vpop.f32.mrf.mxu0  ;;  %v12705_v21 = vpop.permute.xlu0 %5589 }
 0x53b   : > { %13532 = vst [vmem:[#allocation29_spill] sm:$0xff] %v12690_v41  ;;  %13535 = vst [vmem:[#allocation32_spill] sm:$0xff] %v12705_v21 }
 0x53c   : > { %6804 = vperm.xlu1 %8225, %v12106_v37   ;;  %v12696_v19 = vpop.f32.mrf.mxu0 }
 0x53d   : > { %13533 = vst [vmem:[#allocation30_spill] sm:$0xff] %v12696_v19 }
 0x53e   : > { %v12672_v34 = vpop.permute.xlu1 %5624  ;;  %6444 = vperm.xlu0 %8238, %v12309_v12   ;;  %v12703_v62 = vpop.f32.mrf.mxu0 }
 0x53f   : > { %13529 = vst [vmem:[#allocation26_spill] sm:$0xff] %v12672_v34  ;;  %13534 = vst [vmem:[#allocation31_spill] sm:$0xff] %v12703_v62  ;;  %v13539_v34 = vmov 1   ;;  %v5600_v40 = vpop.permute.xlu0 %5599 }
 0x540   : > { %8226 = vset.pattern.permute.xlu1 %v13396_v38  ;;  %v12694_v38 = vpop.f32.mrf.mxu1  ;;  %v12710_v13 = vpop.f32.mrf.mxu0 }
 0x541   : > { %6440 = vperm.xlu1 %8226, %v13525_v9   ;;  %13536 = vst [vmem:[#allocation33_spill] sm:$0xff] %v12710_v13 }
 0x542   : > { %6380 = vperm.xlu0 %8238, %v12174_v44   ;;  %v12701_v29 = vpop.f32.mrf.mxu1  ;;  %v12717_v42 = vpop.f32.mrf.mxu0 }
 0x543   : > { %v12685_v37 = vpop.permute.xlu1 %5924  ;;  %13538 = vst [vmem:[#allocation35_spill] sm:$0xff] %v12717_v42  ;;  %v5610_v53 = vpop.permute.xlu0 %5609 }
 0x544   : > { %v12708_v41 = vpop.f32.mrf.mxu1  ;;  %v12722_v62 = vpop.f32.mrf.mxu0 }
 0x545   : > { %8227 = vset.pattern.permute.xlu1 %v13514_v20  ;;  %13541 = vst [vmem:[#allocation37_spill] sm:$0xff] %v12722_v62 }
 0x546   : > { %6864 = vperm.xlu1 %8227, %v12309_v12   ;;  %6376 = vperm.xlu0 %8238, %v12078_v26   ;;  %v12715_v19 = vpop.f32.mrf.mxu1  ;;  %v12730_v1 = vpop.f32.mrf.mxu0 }
 0x547   : > { %v12698_v22 = vpop.permute.xlu1 %5928  ;;  %13537 = vst [vmem:[#allocation34_spill] sm:$0xff] %v12715_v19  ;;  %13544 = vst [vmem:[#allocation38_spill] sm:$0xff] %v12730_v1 }
 0x548   : > { %v12720_v11 = vpop.f32.mrf.mxu1  ;;  %v12734_v42 = vpop.f32.mrf.mxu0 }
 0x549   : > { %13540 = vst [vmem:[#allocation36_spill] sm:$0xff] %v12720_v11  ;;  %13546 = vst [vmem:[#allocation40_spill] sm:$0xff] %v12734_v42 }
 0x54a   : > { %6800 = vperm.xlu1 %8227, %v12174_v44   ;;  %6436 = vperm.xlu0 %8238, %v12294_v50   ;;  %v12728_v13 = vpop.f32.mrf.mxu1  ;;  %v12743_v15 = vpop.f32.mrf.mxu0 }
 0x54b   : > { %v12712_v12 = vpop.permute.xlu1 %5936  ;;  %13543 = vst [vmem:[#allocation11_spill] sm:$0xff] %v12728_v13  ;;  %13548 = vst [vmem:[#allocation42_spill] sm:$0xff] %v12743_v15 }
 0x54c   : > { %v12732_v21 = vpop.f32.mrf.mxu1 }
 0x54d   : > { %13545 = vst [vmem:[#allocation39_spill] sm:$0xff] %v12732_v21  ;;  %v12749_v21 = vpop.f32.mrf.mxu0 }
 0x54e   : > { %8228 = vset.pattern.permute.xlu1 %v13539_v34  ;;  %6372 = vperm.xlu0 %8238, %v12158_v36   ;;  %v12741_v62 = vpop.f32.mrf.mxu1  ;;  %13550 = vst [vmem:[#allocation44_spill] sm:$0xff] %v12749_v21 }
 0x54f   : > { %v12724_v44 = vpop.permute.xlu1 %5944  ;;  %6012 = vperm.xlu1 %8228, %v13542_v4   ;;  %13547 = vst [vmem:[#allocation41_spill] sm:$0xff] %v12741_v62  ;;  %v12759_v62 = vpop.f32.mrf.mxu0 }
 0x550   : > { %v12745_v13 = vpop.f32.mrf.mxu1  ;;  %13553 = vst [vmem:[#allocation47_spill] sm:$0xff] %v12759_v62 }
 0x551   : > { %13549 = vst [vmem:[#allocation43_spill] sm:$0xff] %v12745_v13  ;;  %v13554_v13 = vmov 2  }
 0x552   : > { %6368 = vperm.xlu0 %8238, %v12065_v57   ;;  %v12753_v42 = vpop.f32.mrf.mxu1 }
 0x553   : > { %v12736_v56 = vpop.permute.xlu1 %5952  ;;  %8229 = vset.pattern.permute.xlu1 %v13514_v20  ;;  %13551 = vst [vmem:[#allocation45_spill] sm:$0xff] %v12753_v42  ;;  %v12770_v42 = vpop.f32.mrf.mxu0 }
 0x554   : > { %6860 = vperm.xlu1 %8229, %v13525_v9   ;;  %v12755_v11 = vpop.f32.mrf.mxu1  ;;  %13558 = vst [vmem:[#allocation51_spill] sm:$0xff] %v12770_v42 }
 0x555   : > { %13552 = vst [vmem:[#allocation46_spill] sm:$0xff] %v12755_v11  ;;  %v12783_v19 = vpop.f32.mrf.mxu0 }
 0x556   : > { %6428 = vperm.xlu0 %8238, %v12278_v2   ;;  %v12763_v48 = vpop.f32.mrf.mxu1  ;;  %13562 = vst [vmem:[#allocation55_spill] sm:$0xff] %v12783_v19 }
 0x557   : > { %v12747_v1 = vpop.permute.xlu1 %5960  ;;  %13555 = vst [vmem:[#allocation48_spill] sm:$0xff] %v12763_v48 }
 0x558   : > { %6796 = vperm.xlu1 %8229, %v12078_v26   ;;  %v12766_v21 = vpop.f32.mrf.mxu1 }
 0x559   : > { %13556 = vst [vmem:[#allocation49_spill] sm:$0xff] %v12766_v21 }
 0x55a   : > { %6364 = vperm.xlu0 %8238, %v12138_v33   ;;  %v5620_v15 = vpop.permute.xlu0 %5619  ;;  %v12773_v11 = vpop.f32.mrf.mxu1 }
 0x55b   : > { %v12757_v9 = vpop.permute.xlu1 %5968  ;;  %13559 = vst [vmem:[#allocation52_spill] sm:$0xff] %v12773_v11 }
 0x55c   : > { %8230 = vset.pattern.permute.xlu1 %v13554_v13  ;;  %v12779_v17 = vpop.f32.mrf.mxu1 }
 0x55d   : > { %6432 = vperm.xlu1 %8230, %v13542_v4   ;;  %13561 = vst [vmem:[#allocation54_spill] sm:$0xff] %v12779_v17 }
 0x55e   : > { %6360 = vperm.xlu0 %8238, %v12052_v8   ;;  %v5438_v21 = vpop.f32.mrf.mxu1 }
 0x55f   : > { %v12768_v26 = vpop.permute.xlu1 %5976  ;;  %v12775_v62 = vpop.permute.xlu0 %6884  ;;  %v12786_v42 = vmul.f32 %v5600_v40, %v5438_v21  ;;  %v13569_v21 = vld [vmem:[#allocation10_spill] sm:$0xff] }
 0x560   : > { %13557 = vst [vmem:[#allocation50_spill] sm:$0xff] %v12768_v26  ;;  %13560 = vst [vmem:[#allocation53_spill] sm:$0xff] %v12775_v62  ;;  %v12789_v11 = vpop.f32.mrf.mxu1  ;;  %v12793_v26 = vpop.f32.mrf.mxu0 }
 0x561   : > { %8231 = vset.pattern.permute.xlu1 %v13514_v20  ;;  %13563 = vst [vmem:[#allocation56_spill] sm:$0xff] %v12786_v42  ;;  %13564 = vst [vmem:[#allocation57_spill] sm:$0xff] %v12789_v11 }
 0x562   : > { %6856 = vperm.xlu1 %8231, %v12294_v50   ;;  %6420 = vperm.xlu0 %8238, %v13518_v54   ;;  %13566 = vst [vmem:[#allocation59_spill] sm:$0xff] %v12793_v26  ;;  %v5448_v50 = vpop.f32.mrf.mxu1  ;;  %v12802_v40 = vpop.f32.mrf.mxu0 }
 0x563   : > { %v12781_v48 = vpop.permute.xlu1 %5984  ;;  %v12796_v17 = vmul.f32 %v5610_v53, %v5448_v50  ;;  %v5628_v53 = vmul.f32 %v12626_v55, %v12476_v27  ;;  %v5630_v27 = vmul.f32 %v12639_v39, %v12485_v24  ;;  %v13579_v39 = vld [vmem:[#allocation9_spill] sm:$0xff] }
 0x564   : > { %v5921_v8 = vpop.permute.xlu0 %5920  ;;  %v12799_v54 = vpop.f32.mrf.mxu1 }
 0x565   : > { %13567 = vst [vmem:[#allocation60_spill] sm:$0xff] %v12796_v17  ;;  %13568 = vst [vmem:[#allocation61_spill] sm:$0xff] %v12799_v54  ;;  %v12815_v17 = vpop.f32.mrf.mxu0 }
 0x566   : > { %6792 = vperm.xlu1 %8231, %v12158_v36   ;;  %6356 = vperm.xlu0 %8238, %v12120_v43   ;;  %13572 = vst [vmem:[#allocation63_spill] sm:$0xff] %v12815_v17 }
 0x567   : > { %v12791_v62 = vpop.permute.xlu1 %6044 }
 0x568   : > { %13565 = vst [vmem:[#allocation58_spill] sm:$0xff] %v12791_v62  ;;  %v5933_v19 = vpop.permute.xlu0 %5932  ;;  %v5458_v62 = vpop.f32.mrf.mxu1 }
 0x569   : > { %v12807_v26 = vmul.f32 %v5620_v15, %v5458_v62  ;;  %v5627_v62 = vmul.f32 %v12532_v30, %v12636_v7  ;;  %v5629_v30 = vmul.f32 %v12546_v3, %v12642_v47 }
 0x56a   : > { %8232 = vset.pattern.permute.xlu1 %v13539_v34  ;;  %6352 = vperm.xlu0 %8238, %v12040_v23   ;;  %v7878_v11 = vpop.f32.mrf.mxu1 }
 0x56b   : > { %6004 = vperm.xlu1 %8232, %v13569_v21   ;;  %13571 = vst [vmem:[#allocation62_spill] sm:$0xff] %v12807_v26  ;;  %v6048_v50 = vmul.f32 %v7878_v11, %v12685_v37 }
 0x56c   : > { %v12805_v36 = vpop.permute.xlu1 %6464  ;;  %v5941_v42 = vpop.permute.xlu0 %5940 }
 0x56d   : > { %13570 = vst [vmem:[#allocation10_spill] sm:$0xff] %v12805_v36  ;;  %v5760_v54 = vpop.f32.mrf.mxu1  ;;  %v12821_v15 = vadd.f32 %v6048_v50, %v5628_v53  ;;  %v5631_v50 = vmul.f32 %v12560_v63, %v12653_v60  ;;  %v5633_v63 = vmul.f32 %v12574_v51, %v12664_v46  ;;  %v5635_v51 = vmul.f32 %v12587_v18, %v12674_v10 }
 0x56e   : > { %6408 = vperm.xlu0 %8238, %v12164_v49   ;;  %v6047_v26 = vmul.f32 %v5921_v8, %v5760_v54  ;;  %v5637_v18 = vmul.f32 %v12601_v16, %v12688_v32  ;;  %v5639_v16 = vmul.f32 %v12614_v52, %v12701_v29 }
 0x56f   : > { %8233 = vset.pattern.permute.xlu1 %v13514_v20  ;;  %13573 = vst [vmem:[#allocation64_spill] sm:$0xff] %v12821_v15  ;;  %v7881_v43 = vpop.f32.mrf.mxu1 }
 0x570   : > { %6852 = vperm.xlu1 %8233, %v13542_v4   ;;  %v5949_v23 = vpop.permute.xlu0 %5948  ;;  %v12825_v55 = vadd.f32 %v6047_v26, %v5627_v62  ;;  %v6050_v11 = vmul.f32 %v7881_v43, %v5933_v19  ;;  %v12829_v4 = vpop.f32.mrf.mxu0 }
 0x571   : > { %v12817_v36 = vpop.permute.xlu1 %6036  ;;  %13575 = vst [vmem:[#allocation66_spill] sm:$0xff] %v12829_v4  ;;  %v5770_v37 = vpop.f32.mrf.mxu1 }
 0x572   : > { %13574 = vst [vmem:[#allocation65_spill] sm:$0xff] %v12825_v55  ;;  %6340 = vperm.xlu0 %8238, %v12074_v6   ;;  %v12833_v7 = vadd.f32 %v6050_v11, %v5630_v27  ;;  %v6049_v8 = vmul.f32 %v12698_v22, %v5770_v37  ;;  %v12844_v19 = vpop.f32.mrf.mxu0 }
 0x573   : > { %v7884_v43 = vpop.f32.mrf.mxu1  ;;  %13578 = vst [vmem:[#allocation69_spill] sm:$0xff] %v12844_v19 }
 0x574   : > { %6788 = vperm.xlu1 %8233, %v12065_v57   ;;  %13576 = vst [vmem:[#allocation67_spill] sm:$0xff] %v12833_v7  ;;  %v5957_v54 = vpop.permute.xlu0 %5956  ;;  %v12838_v24 = vadd.f32 %v6049_v8, %v5629_v30  ;;  %v5632_v57 = vmul.f32 %v12649_v31, %v12501_v28  ;;  %v6052_v3 = vmul.f32 %v7884_v43, %v5941_v42  ;;  %v12857_v42 = vpop.f32.mrf.mxu0  ;;  %v13610_v7 = vld [vmem:[#allocation32_spill] sm:$0xff] }
 0x575   : > { %v5780_v22 = vpop.f32.mrf.mxu1  ;;  %v5634_v28 = vmul.f32 %v12658_v45, %v12510_v0  ;;  %13581 = vst [vmem:[#allocation70_spill] sm:$0xff] %v12857_v42 }
 0x576   : > { %v12836_v53 = vpop.permute.xlu1 %6460  ;;  %13577 = vst [vmem:[#allocation68_spill] sm:$0xff] %v12838_v24  ;;  %8245 = vset.pattern.permute.xlu0 %v13514_v20  ;;  %v12852_v62 = vadd.f32 %v6052_v3, %v5632_v57  ;;  %v6051_v27 = vmul.f32 %v12712_v12, %v5780_v22  ;;  %v12873_v43 = vpop.f32.mrf.mxu0 }
 0x577   : > { %6836 = vperm.xlu0 %8245, %v13579_v39   ;;  %v7887_v11 = vpop.f32.mrf.mxu1  ;;  %13583 = vst [vmem:[#allocation72_spill] sm:$0xff] %v12873_v43 }
 0x578   : > { %8234 = vset.pattern.permute.xlu1 %v13554_v13  ;;  %v5965_v47 = vpop.permute.xlu0 %5964  ;;  %13580 = vst [vmem:[#allocation9_spill] sm:$0xff] %v12852_v62  ;;  %v12859_v31 = vadd.f32 %v6051_v27, %v5631_v50  ;;  %v6054_v37 = vmul.f32 %v7887_v11, %v5949_v23  ;;  %v5636_v23 = vmul.f32 %v12670_v25, %v12522_v14 }
 0x579   : > { %6424 = vperm.xlu1 %8234, %v13569_v21   ;;  %v5790_v30 = vpop.f32.mrf.mxu1  ;;  %v5638_v25 = vmul.f32 %v12679_v5, %v12534_v58  ;;  %v5640_v58 = vmul.f32 %v12694_v38, %v12551_v61  ;;  %v5642_v61 = vmul.f32 %v12708_v41, %v12563_v35  ;;  %v13593_v41 = vld [vmem:[#allocation16_spill] sm:$0xff] }
 0x57a   : > { %v12848_v26 = vpop.permute.xlu1 %6396  ;;  %13582 = vst [vmem:[#allocation71_spill] sm:$0xff] %v12859_v31  ;;  %v12866_v60 = vadd.f32 %v6054_v37, %v5634_v28  ;;  %v6053_v0 = vmul.f32 %v12724_v44, %v5790_v30  ;;  %v13594_v35 = vld [vmem:[#allocation36_spill] sm:$0xff] }
 0x57b   : > { %6768 = vperm.xlu0 %8245, %v12096_v59   ;;  %v7890_v12 = vpop.f32.mrf.mxu1 }
 0x57c   : > { %v5973_v8 = vpop.permute.xlu0 %5972  ;;  %v12875_v57 = vadd.f32 %v6053_v0, %v5633_v63  ;;  %v6056_v3 = vmul.f32 %v7890_v12, %v5957_v54  ;;  %v12888_v54 = vpop.f32.mrf.mxu0 }
 0x57d   : > { %8235 = vset.pattern.permute.xlu1 %v13514_v20  ;;  %13585 = vst [vmem:[#allocation74_spill] sm:$0xff] %v12888_v54 }
 0x57e   : > { %6848 = vperm.xlu1 %8235, %v12278_v2   ;;  %v5800_v2 = vpop.f32.mrf.mxu1  ;;  %v12881_v46 = vadd.f32 %v6056_v3, %v5636_v23  ;;  %v12901_v5 = vpop.f32.mrf.mxu0  ;;  %v13589_v3 = vld [vmem:[#allocation34_spill] sm:$0xff] }
 0x57f   : > { %v12869_v45 = vpop.permute.xlu1 %6820  ;;  %6760 = vperm.xlu0 %8245, %v12074_v6   ;;  %v6055_v44 = vmul.f32 %v12736_v56, %v5800_v2  ;;  %13587 = vst [vmem:[#allocation76_spill] sm:$0xff] %v12901_v5 }
 0x580   : > { %v5981_v22 = vpop.permute.xlu0 %5980  ;;  %13584 = vst [vmem:[#allocation73_spill] sm:$0xff] %v12881_v46  ;;  %v7893_v50 = vpop.f32.mrf.mxu1 }
 0x581   : > { %v12890_v6 = vadd.f32 %v6055_v44, %v5635_v51  ;;  %v6058_v27 = vmul.f32 %v7893_v50, %v5965_v47  ;;  %v13591_v44 = vld [vmem:[#allocation50_spill] sm:$0xff] }
 0x582   : > { %6784 = vperm.xlu1 %8235, %v12138_v33   ;;  %v5810_v11 = vpop.f32.mrf.mxu1 }
 0x583   : > { %13586 = vst [vmem:[#allocation75_spill] sm:$0xff] %v12890_v6  ;;  %v12895_v10 = vadd.f32 %v6058_v27, %v5638_v25  ;;  %v6057_v56 = vmul.f32 %v12747_v1, %v5810_v11  ;;  %v13592_v25 = vld [vmem:[#allocation7_spill] sm:$0xff]  ;;  %v5644_v27 = vmul.f32 %v13594_v35, %v13593_v41 }
 0x584   : > { %v12884_v14 = vpop.permute.xlu1 %6456  ;;  %v5989_v33 = vpop.permute.xlu0 %5988 }
 0x585   : > { %v7896_v28 = vpop.f32.mrf.mxu1  ;;  %v12903_v47 = vadd.f32 %v6057_v56, %v5637_v18 }
 0x586   : > { %8236 = vset.pattern.permute.xlu1 %v13539_v34  ;;  %v6060_v37 = vmul.f32 %v7896_v28, %v5973_v8  ;;  %v12918_v8 = vpop.f32.mrf.mxu0 }
 0x587   : > { %5996 = vperm.xlu1 %8236, %v13579_v39   ;;  %v5820_v34 = vpop.f32.mrf.mxu1  ;;  %13588 = vst [vmem:[#allocation77_spill] sm:$0xff] %v12918_v8 }
 0x588   : > { %v12907_v63 = vpop.permute.xlu0 %6040  ;;  %v12911_v1 = vadd.f32 %v6060_v37, %v5640_v58  ;;  %v6059_v32 = vmul.f32 %v12757_v9, %v5820_v34  ;;  %v13590_v9 = vld [vmem:[#allocation20_spill] sm:$0xff]  ;;  %v12936_v11 = vpop.f32.mrf.mxu0  ;;  %v13595_v34 = vld [vmem:[#allocation11_spill] sm:$0xff] }
 0x589   : > { %v12905_v30 = vpop.permute.xlu1 %6880  ;;  %v7899_v38 = vpop.f32.mrf.mxu1  ;;  %v5641_v2 = vmul.f32 %v13590_v9, %v13589_v3 }
 0x58a   : > { %v12920_v0 = vadd.f32 %v6059_v32, %v5639_v16  ;;  %v6062_v12 = vmul.f32 %v7899_v38, %v5981_v22  ;;  %v6481_v22 = vmul.f32 %v12848_v26, %v12802_v40  ;;  %v13596_v16 = vld [vmem:[#allocation22_spill] sm:$0xff]  ;;  %v12948_v40 = vpop.f32.mrf.mxu0 }
 0x58b   : > { %8237 = vset.pattern.permute.xlu1 %v13514_v20  ;;  %v5830_v52 = vpop.f32.mrf.mxu1  ;;  %v5643_v32 = vmul.f32 %v13596_v16, %v13595_v34  ;;  %v13605_v16 = vld [vmem:[#allocation45_spill] sm:$0xff] }
 0x58c   : > { %6844 = vperm.xlu1 %8237, %v13569_v21   ;;  %v12924_v29 = vpop.permute.xlu0 %6032  ;;  %v12928_v51 = vadd.f32 %v6062_v12, %v5642_v61  ;;  %v6061_v21 = vmul.f32 %v13591_v44, %v5830_v52  ;;  %v7969_v44 = vpop.f32.mrf.mxu0 }
 0x58d   : > { %v12922_v23 = vpop.permute.xlu1 %6816  ;;  %v7902_v50 = vpop.f32.mrf.mxu1 }
 0x58e   : > { %v6093_v18 = vadd.f32 %v6061_v21, %v5641_v2  ;;  %v6064_v56 = vmul.f32 %v7902_v50, %v5989_v33  ;;  %v13601_v50 = vld [vmem:[#allocation15_spill] sm:$0xff]  ;;  %v12963_v35 = vpop.f32.mrf.mxu0 }
 0x58f   : > { %v5840_v28 = vpop.f32.mrf.mxu1 }
 0x590   : > { %6780 = vperm.xlu1 %8237, %v13592_v25   ;;  %v6025_v58 = vpop.permute.xlu0 %6024  ;;  %v12940_v38 = vadd.f32 %v6064_v56, %v5644_v27  ;;  %v6063_v61 = vmul.f32 %v12781_v48, %v5840_v28  ;;  %v12943_v12 = vadd.f32 %v6481_v22, %v6093_v18  ;;  %v13602_v22 = vld [vmem:[#allocation8_spill] sm:$0xff]  ;;  %v7972_v4 = vpop.f32.mrf.mxu0 }
 0x591   : > { %v12945_v52 = vpop.f32.mrf.mxu1  ;;  %v13603_v18 = vld [vmem:[#allocation48_spill] sm:$0xff] }
 0x592   : > { %v6029_v37 = vpop.permute.xlu1 %6028  ;;  %13597 = vst [vmem:[#allocation34_spill] sm:$0xff] %v12940_v38  ;;  %13598 = vst [vmem:[#allocation20_spill] sm:$0xff] %v12945_v52  ;;  %v12950_v26 = vadd.f32 %v6063_v61, %v5643_v32  ;;  %v13604_v56 = vld [vmem:[#allocation28_spill] sm:$0xff]  ;;  %v13606_v32 = vld [vmem:[#allocation25_spill] sm:$0xff] }
 0x593   : > { %v5850_v33 = vpop.f32.mrf.mxu1  ;;  %v5649_v28 = vmul.f32 %v13604_v56, %v13603_v18  ;;  %v5647_v61 = vmul.f32 %v13606_v32, %v13605_v16  ;;  %v13613_v56 = vld [vmem:[#allocation13_spill] sm:$0xff]  ;;  %v13614_v32 = vld [vmem:[#allocation23_spill] sm:$0xff] }
 0x594   : > { %8239 = vset.pattern.permute.xlu1 %v13554_v13  ;;  %13599 = vst [vmem:[#allocation50_spill] sm:$0xff] %v12950_v26  ;;  %v6017_v3 = vpop.permute.xlu0 %6016  ;;  %v6956_v52 = vld [vmem:[%s370_s22] sm:$0x3]  ;;  %s7095_s22 = sshll.u32 %s8598_s10, 4  ;;  %s7096_s22 = int_to_ptr.vmem [resolvable:$true] %s7095_s22 }
 0x595   : > { %6416 = vperm.xlu1 %8239, %v13579_v39   ;;  %v12955_v2 = vpop.f32.mrf.mxu1  ;;  %s8534_s25 = scalar_lea.vmem %s7096_s22, 512  ;;  %p8541_p11 = scmp.lt.s32.totalorder %s7096_s22, %s7096_s22 }
 0x596   : > { %13600 = vst [vmem:[#allocation7_spill] sm:$0xff] %v12955_v2  ;;  %p8535_p8 = scmp.ne.s32.totalorder %s7096_s22, %s8534_s25  ;;  %p8542_p12 = scmp.lt.s32.totalorder %s8534_s25, %s8534_s25 }
 0x597   : > { %v12953_v9 = vpop.permute.xlu1 %6876  ;;  %v5860_v48 = vpop.f32.mrf.mxu1 }
 0x598   : > { %v6009_v21 = vpop.permute.xlu0 %6008  ;;  %p8536_p9 = pnand %p8535_p8, %p13332_p7  ;;  %p8543_p13 = por %p8542_p12, %p8541_p11 }
 0x599   : > { %8240 = vset.pattern.permute.xlu1 %v13514_v20  ;;  %v12961_v41 = vpop.f32.mrf.mxu1 }
 0x59a   : > { %6840 = vperm.xlu1 %8240, %v13601_v50   ;;  %p8537_p10 = pneg %p8536_p9 }
 0x59b   : > { %v12959_v25 = vpop.permute.xlu1 %6812  ;;  %v5870_v39 = vpop.f32.mrf.mxu1 }
 0x59c   : > { %v6001_v27 = vpop.permute.xlu0 %6000  ;;  %v6069_v34 = vmul.f32 %v6009_v21, %v5870_v39  ;;  %v13611_v21 = vld [vmem:[#allocation14_spill] sm:$0xff]  ;;  %v13612_v39 = vld [vmem:[#allocation41_spill] sm:$0xff]  ;;  %p8544_p0 = pnand %p8543_p13, %p8537_p10 }
 0x59d   : > { %v6067_v55 = vmul.f32 %v6001_v27, %v5860_v48  ;;  %v7914_v26 = vpop.f32.mrf.mxu1  ;;  %v5645_v48 = vmul.f32 %v13613_v56, %v13612_v39  ;;  %v13619_v39 = vld [vmem:[#allocation57_spill] sm:$0xff] }
 0x59e   : > { %6776 = vperm.xlu1 %8240, %v13602_v22   ;;  %v12970_v15 = vadd.f32 %v6069_v34, %v5649_v28  ;;  %v13609_v22 = vld [vmem:[#allocation52_spill] sm:$0xff]  ;;  %v13615_v28 = vld [vmem:[#allocation54_spill] sm:$0xff] }
 0x59f   : > { %v12972_v38 = vadd.f32 %v6067_v55, %v5647_v61  ;;  %v5880_v17 = vpop.f32.mrf.mxu1  ;;  %v5651_v42 = vmul.f32 %v13610_v7, %v13609_v22  ;;  %v5654_v34 = vmul.f32 %v13615_v28, %v13614_v32  ;;  %v12982_v55 = vpop.f32.mrf.mxu0  ;;  %v13621_v28 = vld [vmem:[#allocation6_spill] sm:$0xff] }
 0x5a0   : > { %v6449_v50 = vpop.permute.xlu1 %6448  ;;  %13607 = vst [vmem:[#allocation16_spill] sm:$0xff] %v12970_v15  ;;  %v5993_v24 = vpop.permute.xlu0 %5992  ;;  %v6071_v18 = vmul.f32 %v6017_v3, %v5880_v17 }
 0x5a1   : > { %13608 = vst [vmem:[#allocation36_spill] sm:$0xff] %v12972_v38  ;;  %v6065_v27 = vmul.f32 %v5993_v24, %v5850_v33  ;;  %v7917_v16 = vpop.f32.mrf.mxu1  ;;  %v6494_v7 = vmul.f32 %v7969_v44, %v6449_v50  ;;  %v13618_v33 = vld [vmem:[#allocation24_spill] sm:$0xff]  ;;  %v7975_v32 = vpop.f32.mrf.mxu0 }
 0x5a2   : > { %8241 = vset.pattern.permute.xlu1 %v13554_v13  ;;  %v12984_v61 = vadd.f32 %v6071_v18, %v5651_v42  ;;  %v6074_v31 = vmul.f32 %v7917_v16, %v6029_v37  ;;  %v5656_v56 = vmul.f32 %v13619_v39, %v13618_v33  ;;  %v13620_v42 = vld [vmem:[#allocation56_spill] sm:$0xff] }
 0x5a3   : > { %6412 = vperm.xlu1 %8241, %v13611_v21   ;;  %v12988_v54 = vadd.f32 %v6065_v27, %v5645_v48  ;;  %v5890_v17 = vpop.f32.mrf.mxu1 }
 0x5a4   : > { %13616 = vst [vmem:[#allocation11_spill] sm:$0xff] %v12984_v61  ;;  %v6106_v3 = vadd.f32 %v6074_v31, %v5654_v34  ;;  %v6073_v22 = vmul.f32 %v6025_v58, %v5890_v17  ;;  %v6496_v58 = vmul.f32 %v7972_v4, %v12884_v14  ;;  %v13622_v34 = vld [vmem:[#allocation26_spill] sm:$0xff]  ;;  %v13623_v17 = vld [vmem:[#allocation61_spill] sm:$0xff]  ;;  %v6330_v4 = vpop.f32.mrf.mxu0 }
 0x5a5   : > { %v12986_v38 = vpop.permute.xlu1 %6872  ;;  %13617 = vst [vmem:[#allocation22_spill] sm:$0xff] %v12988_v54  ;;  %v12990_v19 = vpop.permute.xlu0 %6400  ;;  %v13628_v54 = vld [vmem:[#allocation49_spill] sm:$0xff] }
 0x5a6   : > { %v7920_v24 = vpop.f32.mrf.mxu1  ;;  %v12996_v18 = vadd.f32 %v6073_v22, %v13620_v42  ;;  %v12999_v48 = vadd.f32 %v6494_v7, %v6106_v3  ;;  %v5658_v22 = vmul.f32 %v13623_v17, %v13622_v34  ;;  %v13625_v3 = vld [vmem:[#allocation58_spill] sm:$0xff] }
 0x5a7   : > { %6348 = vperm.xlu1 %8241, %v12096_v59   ;;  %v6076_v37 = vmul.f32 %v7920_v24, %v12817_v36  ;;  %v13624_v36 = vld [vmem:[#allocation60_spill] sm:$0xff] }
 0x5a8   : > { %v5900_v31 = vpop.f32.mrf.mxu1 }
 0x5a9   : > { %v13001_v27 = vpop.permute.xlu1 %6808  ;;  %v6108_v44 = vadd.f32 %v6076_v37, %v5656_v56  ;;  %v6075_v59 = vmul.f32 %v12924_v29, %v5900_v31  ;;  %v6393_v50 = vpop.permute.xlu0 %6392  ;;  %v13626_v29 = vld [vmem:[#allocation10_spill] sm:$0xff] }
 0x5aa   : > { %v7923_v16 = vpop.f32.mrf.mxu1  ;;  %v6498_v56 = vmul.f32 %v7975_v32, %v13626_v29 }
 0x5ab   : > { %8242 = vset.pattern.permute.xlu1 %v13514_v20  ;;  %v13010_v7 = vadd.f32 %v6075_v59, %v13624_v36  ;;  %v6078_v24 = vmul.f32 %v7923_v16, %v13625_v3  ;;  %v13013_v33 = vadd.f32 %v6496_v58, %v6108_v44  ;;  %v6497_v58 = vmul.f32 %v12836_v53, %v6330_v4  ;;  %v13630_v44 = vld [vmem:[#allocation62_spill] sm:$0xff] }
 0x5ac   : > { %6772 = vperm.xlu1 %8242, %v13621_v28   ;;  %v5910_v14 = vpop.f32.mrf.mxu1  ;;  %v13627_v28 = vld [vmem:[#allocation21_spill] sm:$0xff] }
 0x5ad   : > { %v6110_v42 = vadd.f32 %v6078_v24, %v5658_v22  ;;  %v6077_v37 = vmul.f32 %v12907_v63, %v5910_v14  ;;  %v13017_v31 = vpop.permute.xlu0 %6452  ;;  %v5652_v34 = vmul.f32 %v13628_v54, %v13627_v28 }
 0x5ae   : > { %v6021_v39 = vpop.permute.xlu1 %6020  ;;  %v13021_v59 = vpop.f32.mrf.mxu1 }
 0x5af   : > { %v6072_v17 = vmul.f32 %v7914_v26, %v6021_v39  ;;  %13629 = vst [vmem:[#allocation15_spill] sm:$0xff] %v13021_v59  ;;  %v6109_v16 = vadd.f32 %v6077_v37, %v13630_v44  ;;  %v13026_v36 = vadd.f32 %v6498_v56, %v6110_v42  ;;  %v13636_v39 = vld [vmem:[#allocation12_spill] sm:$0xff]  ;;  %v13640_v59 = vld [vmem:[#allocation51_spill] sm:$0xff] }
 0x5b0   : > { %6832 = vperm.xlu1 %8242, %v13611_v21   ;;  %v13030_v22 = vpop.f32.mrf.mxu1  ;;  %v13633_v21 = vld [vmem:[#allocation5_spill] sm:$0xff] }
 0x5b1   : > { %v13028_v32 = vadd.f32 %v6072_v17, %v5652_v34  ;;  %13631 = vst [vmem:[#allocation8_spill] sm:$0xff] %v13030_v22  ;;  %v13032_v63 = vadd.f32 %v6497_v58, %v6109_v16  ;;  %v13034_v3 = vpop.permute.xlu0 %6388 }
 0x5b2   : > { %v13039_v26 = vpop.f32.mrf.mxu1 }
 0x5b3   : > { %v13036_v54 = vpop.permute.xlu1 %6868  ;;  %13632 = vst [vmem:[#allocation48_spill] sm:$0xff] %v13039_v26  ;;  %v13641_v26 = vlaneseq }
 0x5b4   : > { %8243 = vset.pattern.permute.xlu1 %v13554_v13  ;;  %v13042_v53 = vpop.f32.mrf.mxu1 }
 0x5b5   : > { %6344 = vperm.xlu1 %8243, %v13633_v21   ;;  %13634 = vst [vmem:[#allocation28_spill] sm:$0xff] %v13042_v53  ;;  %v13044_v24 = vpop.permute.xlu0 %6384  ;;  %v6480_v53 = vmul.f32 %v13640_v59, %v6393_v50 }
 0x5b6   : > { %v13048_v14 = vpop.f32.mrf.mxu1 }
 0x5b7   : > { %v13046_v4 = vpop.permute.xlu1 %6804  ;;  %13635 = vst [vmem:[#allocation45_spill] sm:$0xff] %v13048_v14  ;;  %v6512_v14 = vadd.f32 %v6480_v53, %v12911_v1 }
 0x5b8   : > { %v13051_v29 = vpop.f32.mrf.mxu1 }
 0x5b9   : > { %6404 = vperm.xlu1 %8243, %v13636_v39   ;;  %13637 = vst [vmem:[#allocation25_spill] sm:$0xff] %v13051_v29  ;;  %v13053_v56 = vpop.permute.xlu0 %6444  ;;  %v13085_v29 = vshrl.u32 %v13641_v26, 7  ;;  %v13645_v26 = vld [vmem:[#allocation19_spill] sm:$0xff] }
 0x5ba   : > { %v13057_v13 = vpop.f32.mrf.mxu1 }
 0x5bb   : > { %13642 = vst [vmem:[#allocation14_spill] sm:$0xff] %v13085_v29  ;;  %v6963_v43 = vsub.s32 1, %v13085_v29  ;;  %v13099_v50 = vadd.s32 8, %v13085_v29  ;;  %v13113_v61 = vadd.s32 16, %v13085_v29 }
 0x5bc   : > { %v13055_v42 = vpop.permute.xlu1 %6440  ;;  %v13061_v37 = vpop.f32.mrf.mxu1 }
 0x5bd   : > { %8244 = vset.pattern.permute.xlu1 %v13514_v20  ;;  %13638 = vst [vmem:[#allocation52_spill] sm:$0xff] %v13061_v37  ;;  %v13063_v28 = vpop.permute.xlu0 %6380  ;;  %13643 = vst [vmem:[#allocation41_spill] sm:$0xff] %v13099_v50  ;;  %v13646_v37 = vld [vmem:[#allocation46_spill] sm:$0xff] }
 0x5be   : > { %6828 = vperm.xlu1 %8244, %v12164_v49   ;;  %v13065_v34 = vpop.f32.mrf.mxu1  ;;  %v5650_v8 = vmul.f32 %v13646_v37, %v13645_v26  ;;  %13649 = vst [vmem:[#allocation24_spill] sm:$0xff] %v13113_v61 }
 0x5c0   : > { %v13070_v58 = vpop.f32.mrf.mxu1 }
 0x5c1   : > { %v13067_v17 = vpop.permute.xlu1 %6864  ;;  %13639 = vst [vmem:[#allocation32_spill] sm:$0xff] %v13070_v58  ;;  %v13072_v44 = vpop.permute.xlu0 %6376 }
 0x5c2   : > { %6764 = vperm.xlu1 %8244, %v13633_v21   ;;  %v13074_v16 = vpop.f32.mrf.mxu1 }
 0x5c4   : > { %v13079_v49 = vpop.f32.mrf.mxu1 }
 0x5c5   : > { %v13076_v20 = vpop.permute.xlu1 %6800  ;;  %v13081_v22 = vpop.permute.xlu0 %6436 }
 0x5c6   : > { %6824 = vperm.xlu1 %8244, %v13636_v39   ;;  %v8000_v21 = vpop.f32.mrf.mxu1  ;;  %v6959_v39 = vsub.s32 0, %v13085_v29 }
 0x5c7   : > { %v6900_v62 = vmul.f32 %v8000_v21, %v12959_v25  ;;  %v13110_v21 = vrot.slane %v6956_v52, %v6963_v43 }
 0x5c8   : > { %v13096_v15 = vpop.f32.mrf.mxu1  ;;  %v13108_v25 = vrot.slane %v6956_v52, %v6959_v39 }
 0x5c9   : > { %v13101_v59 = vpop.permute.xlu0 %6372  ;;  %v13106_v1 = vadd.f32 %v6900_v62, %v6512_v14  ;;  %13648 = vst [vmem:[#allocation54_spill] sm:$0xff] %v13110_v21  ;;  %vm6966_vm13 = vcmp.eq.s32.totalorder %v13085_v29, %v13110_v21  ;;  %vm6968_vm14 = vcmp.eq.s32.totalorder %v13099_v50, %v13110_v21  ;;  %vm6970_vm0 = vcmp.eq.s32.totalorder %v13113_v61, %v13110_v21 }
 0x5ca   : > { %v6013_v2 = vpop.permute.xlu1 %6012  ;;  %13644 = vst [vmem:[#allocation13_spill] sm:$0xff] %v13101_v59  ;;  %13647 = vst [vmem:[#allocation23_spill] sm:$0xff] %v13108_v25  ;;  %v8003_v53 = vpop.f32.mrf.mxu1  ;;  %vm6965_vm12 = vcmp.eq.s32.totalorder %v13085_v29, %v13108_v25  ;;  %vm6967_vm15 = vcmp.eq.s32.totalorder %v13099_v50, %v13108_v25  ;;  %vm6969_vm1 = vcmp.eq.s32.totalorder %v13113_v61, %v13108_v25  ;;  %v13137_v14 = vadd.s32 24, %v13085_v29 }
 0x5cb   : > { %v6070_v6 = vmul.f32 %v12961_v41, %v6013_v2 }
 0x5cc   : > { %v6670_v58 = vpop.f32.mrf.mxu1  ;;  %13653 = vst [vmem:[#allocation6_spill] sm:$0xff] %v13137_v14  ;;  %vm6972_vm11 = vcmp.eq.s32.totalorder %v13137_v14, %v13110_v21  ;;  %vm6971_vm2 = vcmp.eq.s32.totalorder %v13137_v14, %v13108_v25 }
 0x5cd   : > { %v13115_v5 = vadd.f32 %v6070_v6, %v5650_v8  ;;  %v6369_v62 = vpop.permute.xlu0 %6368  ;;  %v6901_v52 = vmul.f32 %v12922_v23, %v6670_v58  ;;  %v13406_v6 = vmov 1.0   ;;  %v13651_v8 = vld [vmem:[#allocation37_spill] sm:$0xff] }
 0x5ce   : > { %7519 = vmatprep.mubr.msk.f32.mxu0 %vm6966_vm13, %v13406_v6  ;;  %v6474_v2 = vmul.f32 %v13651_v8, %v6369_v62  ;;  %v13134_v41 = vpop.f32.mrf.mxu1 }
 0x5cf   : > { %13650 = vst [vmem:[#allocation57_spill] sm:$0xff] %v13115_v5  ;;  %v13125_v43 = vpop.permute.xlu1 %6860  ;;  %13652 = vst [vmem:[#allocation56_spill] sm:$0xff] %v13134_v41  ;;  %v6933_v37 = vadd.f32 %v6901_v52, %v12943_v12  ;;  %v13658_v12 = vld [vmem:[#allocation38_spill] sm:$0xff]  ;;  %v6902_v5 = vmul.f32 %v8003_v53, %v12869_v45 }
 0x5d0   : > { %v6506_v23 = vadd.f32 %v6474_v2, %v12866_v60  ;;  %v13141_v58 = vpop.f32.mrf.mxu1 }
 0x5d1   : > { %13654 = vst [vmem:[#allocation26_spill] sm:$0xff] %v13141_v58  ;;  %v13147_v39 = vpop.permute.xlu0 %6428 }
 0x5d2   : > { %13655 = vst [vmem:[#allocation61_spill] sm:$0xff] %v13147_v39  ;;  %v13151_v62 = vpop.f32.mrf.mxu1  ;;  %v13671_v39 = vld [vmem:[#allocation53_spill] sm:$0xff] }
 0x5d3   : > { %v13149_v26 = vpop.permute.xlu1 %6796  ;;  %13656 = vst [vmem:[#allocation60_spill] sm:$0xff] %v13151_v62 }
 0x5d4   : > { %v13153_v8 = vpop.f32.mrf.mxu1 }
 0x5d5   : > { %13657 = vst [vmem:[#allocation58_spill] sm:$0xff] %v13153_v8  ;;  %v6365_v6 = vpop.permute.xlu0 %6364 }
 0x5d6   : > { %v6473_v52 = vmul.f32 %v6365_v6, %v13658_v12  ;;  %v13158_v2 = vpop.f32.mrf.mxu1 }
 0x5d7   : > { %13660 = vst [vmem:[#allocation21_spill] sm:$0xff] %v13158_v2 }
 0x5d8   : > { %v13156_v60 = vpop.permute.xlu1 %6432  ;;  %v13161_v61 = vadd.f32 %v6473_v52, %v12875_v57  ;;  %v13163_v21 = vpop.f32.mrf.mxu1 }
 0x5d9   : > { %13659 = vst [vmem:[#allocation10_spill] sm:$0xff] %v13156_v60  ;;  %13662 = vst [vmem:[#allocation62_spill] sm:$0xff] %v13163_v21  ;;  %v13177_v52 = vpop.permute.xlu0 %6360  ;;  %v13670_v21 = vld [vmem:[#allocation59_spill] sm:$0xff] }
 0x5da   : > { %13661 = vst [vmem:[#allocation49_spill] sm:$0xff] %v13161_v61  ;;  %v13165_v14 = vpop.f32.mrf.mxu1  ;;  %13669 = vst [vmem:[#allocation38_spill] sm:$0xff] %v13177_v52  ;;  %v6482_v61 = vmul.f32 %v13670_v21, %v12990_v19  ;;  %v6495_v19 = vmul.f32 %v13017_v31, %v12982_v55  ;;  %v13673_v55 = vld [vmem:[#allocation44_spill] sm:$0xff] }
 0x5db   : > { %13663 = vst [vmem:[#allocation5_spill] sm:$0xff] %v13165_v14  ;;  %v6478_v31 = vmul.f32 %v13673_v55, %v13044_v24 }
 0x5dc   : > { %v13169_v25 = vpop.f32.mrf.mxu1  ;;  %v6514_v60 = vadd.f32 %v6482_v61, %v12928_v51  ;;  %v13672_v51 = vld [vmem:[#allocation55_spill] sm:$0xff] }
 0x5dd   : > { %v13167_v50 = vpop.permute.xlu1 %6856  ;;  %13665 = vst [vmem:[#allocation51_spill] sm:$0xff] %v13169_v25  ;;  %v6479_v61 = vmul.f32 %v13034_v3, %v13672_v51  ;;  %v13194_v53 = vpop.permute.xlu0 %6420  ;;  %v6510_v24 = vadd.f32 %v6478_v31, %v12895_v10 }
 0x5de   : > { %13664 = vst [vmem:[#allocation12_spill] sm:$0xff] %v13167_v50  ;;  %v8018_v29 = vpop.f32.mrf.mxu1  ;;  %v6934_v50 = vadd.f32 %v6902_v5, %v6514_v60 }
 0x5df   : > { %v6511_v3 = vadd.f32 %v6479_v61, %v12920_v0  ;;  %v6492_v0 = vmul.f32 %v12936_v11, %v13055_v42  ;;  %v6491_v11 = vmul.f32 %v13081_v22, %v12948_v40 }
 0x5e0   : > { %v6720_v41 = vpop.f32.mrf.mxu1 }
 0x5e1   : > { %v13171_v58 = vpop.permute.xlu1 %6792  ;;  %v13226_v10 = vpop.permute.xlu0 %6356 }
 0x5e2   : > { %13666 = vst [vmem:[#allocation19_spill] sm:$0xff] %v13171_v58  ;;  %v8021_v6 = vpop.f32.mrf.mxu1 }
 0x5e4   : > { %v6730_v8 = vpop.f32.mrf.mxu1  ;;  %v13691_v51 = vld [vmem:[#allocation51_spill] sm:$0xff] }
 0x5e6   : > { %v13173_v12 = vpop.permute.xlu1 %6004  ;;  %v8024_v62 = vpop.f32.mrf.mxu1 }
 0x5e7   : > { %13667 = vst [vmem:[#allocation46_spill] sm:$0xff] %v13173_v12  ;;  %v6916_v12 = vmul.f32 %v8024_v62, %v12953_v9 }
 0x5e8   : > { %v6740_v2 = vpop.f32.mrf.mxu1 }
 0x5e9   : > { %v6915_v45 = vmul.f32 %v12986_v38, %v6740_v2  ;;  %v6948_v5 = vadd.f32 %v6916_v12, %v13013_v33  ;;  %v6527_v38 = vadd.f32 %v6495_v19, %v13010_v7  ;;  %v13674_v7 = vld [vmem:[#allocation47_spill] sm:$0xff]  ;;  %v13688_v12 = vld [vmem:[#allocation77_spill] sm:$0xff] }
 0x5ea   : > { %v8027_v25 = vpop.f32.mrf.mxu1  ;;  %v13687_v2 = vld [vmem:[#allocation75_spill] sm:$0xff] }
 0x5eb   : > { %v13175_v57 = vpop.permute.xlu1 %6852  ;;  %v6918_v14 = vmul.f32 %v8027_v25, %v13671_v39  ;;  %v6947_v33 = vadd.f32 %v6915_v45, %v6527_v38  ;;  %v13683_v39 = vld [vmem:[#allocation76_spill] sm:$0xff]  ;;  %v13690_v45 = vld [vmem:[#allocation57_spill] sm:$0xff] }
 0x5ec   : > { %13668 = vst [vmem:[#allocation37_spill] sm:$0xff] %v13175_v57  ;;  %v6750_v58 = vpop.f32.mrf.mxu1 }
 0x5ed   : > { %v6950_v59 = vadd.f32 %v6918_v14, %v13026_v36  ;;  %v6917_v57 = vmul.f32 %v12905_v30, %v6750_v58  ;;  %v6899_v30 = vmul.f32 %v13001_v27, %v13096_v15  ;;  %v6493_v15 = vmul.f32 %v13053_v56, %v12963_v35  ;;  %v13682_v58 = vld [vmem:[#allocation10_spill] sm:$0xff] }
 0x5ee   : > { %v6913_v27 = vmul.f32 %v13067_v17, %v6730_v8  ;;  %v6912_v35 = vmul.f32 %v8018_v29, %v13125_v43  ;;  %v13679_v43 = vld [vmem:[#allocation73_spill] sm:$0xff]  ;;  %v6490_v40 = vmul.f32 %v13683_v39, %v13682_v58 }
 0x5ef   : > { %v6789_v46 = vpop.permute.xlu1 %6788  ;;  %v6949_v25 = vadd.f32 %v6917_v57, %v13032_v63  ;;  %7710 = vmatprep.subr.mxu0 %v6950_v59  ;;  %v6898_v63 = vmul.f32 %v13074_v16, %v13046_v4  ;;  %v6525_v56 = vadd.f32 %v6493_v15, %v12996_v18  ;;  %v6896_v16 = vmul.f32 %v13065_v34, %v13149_v26  ;;  %v13676_v18 = vld [vmem:[#allocation12_spill] sm:$0xff]  ;;  %v13685_v26 = vld [vmem:[#allocation5_spill] sm:$0xff]  ;;  %v13694_v15 = vld [vmem:[#allocation46_spill] sm:$0xff] }
 0x5f0   : > { %v6894_v52 = vmul.f32 %v13057_v13, %v6789_v46  ;;  %7711 = vmatpush3.msra.mxu0 %v6934_v50  ;;  %v6914_v46 = vmul.f32 %v8021_v6, %v13036_v54  ;;  %v6477_v54 = vmul.f32 %v13063_v28, %v13674_v7  ;;  %v6897_v13 = vmul.f32 %v13076_v20, %v13079_v49  ;;  %v13675_v28 = vld [vmem:[#allocation40_spill] sm:$0xff]  ;;  %v13689_v57 = vld [vmem:[#allocation61_spill] sm:$0xff] }
 0x5f1   : > { %7712 = vmatprep.subr.mxu0 %v6949_v25  ;;  %v6931_v50 = vadd.f32 %v6899_v30, %v6511_v3  ;;  %v6476_v17 = vmul.f32 %v13675_v28, %v13072_v44  ;;  %v6930_v20 = vadd.f32 %v6898_v63, %v6510_v24  ;;  %v6911_v42 = vmul.f32 %v13676_v18, %v6720_v41  ;;  %v13677_v44 = vld [vmem:[#allocation42_spill] sm:$0xff]  ;;  %v13680_v34 = vld [vmem:[#allocation32_spill] sm:$0xff]  ;;  %v13686_v41 = vld [vmem:[#allocation11_spill] sm:$0xff] }
 0x5f2   : > { %v13196_v9 = vadd.f32 %v6894_v52, %v6506_v23  ;;  %7713 = vmatpush3.msra.mxu0 %v6933_v37  ;;  %v6946_v4 = vadd.f32 %v6914_v46, %v12999_v48  ;;  %v6509_v49 = vadd.f32 %v6477_v54, %v12903_v47  ;;  %v6524_v48 = vadd.f32 %v6492_v0, %v13028_v32  ;;  %v13681_v37 = vld [vmem:[#allocation19_spill] sm:$0xff]  ;;  %v6353_v46 = vpop.permute.xlu0 %6352  ;;  %v13693_v63 = vld [vmem:[#allocation16_spill] sm:$0xff]  ;;  %v13696_v7 = vld [vmem:[#allocation49_spill] sm:$0xff] }
 0x5f3   : > { %7714 = vmatprep.subr.mxu0 %v6948_v5  ;;  %v6945_v59 = vadd.f32 %v6913_v27, %v6525_v56  ;;  %v6508_v14 = vadd.f32 %v6476_v17, %v13679_v43  ;;  %v6895_v23 = vmul.f32 %v13681_v37, %v13680_v34  ;;  %v13684_v22 = vld [vmem:[#allocation37_spill] sm:$0xff]  ;;  %v6523_v8 = vadd.f32 %v6491_v11, %v13686_v41  ;;  %v13692_v5 = vld [vmem:[#allocation52_spill] sm:$0xff]  ;;  %v13695_v27 = vld [vmem:[#allocation7_spill] sm:$0xff] }
 0x5f4   : > { %v13205_v36 = vpop.permute.xlu1 %6424  ;;  %7715 = vmatpush3.msra.mxu0 %v13106_v1  ;;  %v13678_v1 = vld [vmem:[#allocation13_spill] sm:$0xff]  ;;  %v6929_v47 = vadd.f32 %v6897_v13, %v6509_v49  ;;  %v6910_v32 = vmul.f32 %v13685_v26, %v13684_v22  ;;  %v6944_v62 = vadd.f32 %v6912_v35, %v6524_v48  ;;  %v6489_v52 = vmul.f32 %v13689_v57, %v13688_v12  ;;  %v13697_v13 = vld [vmem:[#allocation18_spill] sm:$0xff]  ;;  %v13699_v28 = vld [vmem:[#allocation72_spill] sm:$0xff] }
 0x5f5   : > { %7716 = vmatprep.subr.mxu0 %v6947_v33  ;;  %v6475_v21 = vmul.f32 %v13678_v1, %v13677_v44  ;;  %v6928_v60 = vadd.f32 %v6896_v16, %v6508_v14  ;;  %v6522_v25 = vadd.f32 %v6490_v40, %v13690_v45  ;;  %v6943_v30 = vadd.f32 %v6911_v42, %v6523_v8  ;;  %v13700_v49 = vld [vmem:[#allocation21_spill] sm:$0xff]  ;;  %v13705_v14 = vld [vmem:[#allocation20_spill] sm:$0xff]  ;;  %v13710_v8 = vld [vmem:[#allocation74_spill] sm:$0xff] }
 0x5f6   : > { %7717 = vmatpush3.msra.mxu0 %v6931_v50  ;;  %v6521_v3 = vadd.f32 %v6489_v52, %v13693_v63  ;;  %v6068_v33 = vmul.f32 %v13695_v27, %v13694_v15  ;;  %v13698_v50 = vld [vmem:[#allocation43_spill] sm:$0xff]  ;;  %v6488_v17 = vmul.f32 %v13699_v28, %v13205_v36  ;;  %v13702_v48 = vld [vmem:[#allocation33_spill] sm:$0xff]  ;;  %v13711_v12 = vld [vmem:[#allocation36_spill] sm:$0xff] }
 0x5f7   : > { %7718 = vmatprep.subr.mxu0 %v6946_v4  ;;  %v6507_v6 = vadd.f32 %v6475_v21, %v13687_v2  ;;  %v6942_v31 = vadd.f32 %v6910_v32, %v6522_v25  ;;  %v5648_v0 = vmul.f32 %v13698_v50, %v13697_v13  ;;  %v6409_v4 = vpop.permute.xlu0 %6408  ;;  %v13703_v1 = vld [vmem:[#allocation9_spill] sm:$0xff]  ;;  %v13709_v32 = vld [vmem:[#allocation60_spill] sm:$0xff]  ;;  %v13712_v52 = vld [vmem:[#allocation62_spill] sm:$0xff] }
 0x5f8   : > { %7719 = vmatpush3.msra.mxu0 %v6930_v20  ;;  %v13704_v21 = vld [vmem:[#allocation45_spill] sm:$0xff]  ;;  %v13713_v45 = vld [vmem:[#allocation35_spill] sm:$0xff]  ;;  %v13720_v50 = vld [vmem:[#allocation48_spill] sm:$0xff] }
 0x5f9   : > { %v6849_v29 = vpop.permute.xlu1 %6848  ;;  %7720 = vmatprep.subr.mxu0 %v6945_v59  ;;  %v6927_v55 = vadd.f32 %v6895_v23, %v6507_v6  ;;  %v6100_v56 = vadd.f32 %v6068_v33, %v5648_v0  ;;  %v13706_v36 = vld [vmem:[#allocation17_spill] sm:$0xff]  ;;  %v13707_v23 = vld [vmem:[#allocation39_spill] sm:$0xff]  ;;  %v6471_v25 = vmul.f32 %v13226_v10, %v13713_v45  ;;  %v13735_v45 = vld [vmem:[#allocation26_spill] sm:$0xff] }
 0x5fa   : > { %7721 = vmatpush3.msra.mxu0 %v6929_v47  ;;  %v6909_v61 = vmul.f32 %v6849_v29, %v13691_v51  ;;  %v13701_v29 = vld [vmem:[#allocation38_spill] sm:$0xff]  ;;  %v5646_v47 = vmul.f32 %v13707_v23, %v13706_v36  ;;  %v13708_v22 = vld [vmem:[#allocation69_spill] sm:$0xff]  ;;  %v13717_v27 = vld [vmem:[#allocation31_spill] sm:$0xff] }
 0x5fb   : > { %7722 = vmatprep.subr.mxu0 %v6944_v62  ;;  %v6520_v20 = vadd.f32 %v6488_v17, %v6100_v56  ;;  %v6472_v18 = vmul.f32 %v13702_v48, %v13701_v29  ;;  %v13263_v42 = vpop.permute.xlu0 %6340  ;;  %v13719_v10 = vld [vmem:[#allocation67_spill] sm:$0xff]  ;;  %v13721_v56 = vld [vmem:[#allocation68_spill] sm:$0xff] }
 0x5fc   : > { %7723 = vmatpush3.msra.mxu0 %v6928_v60  ;;  %v6941_v24 = vadd.f32 %v6909_v61, %v6521_v3  ;;  %v6487_v60 = vmul.f32 %v13194_v53, %v13710_v8  ;;  %v13716_v3 = vld [vmem:[#allocation30_spill] sm:$0xff]  ;;  %v13728_v23 = vld [vmem:[#allocation56_spill] sm:$0xff] }
 0x5fd   : > { %v6785_v19 = vpop.permute.xlu1 %6784  ;;  %7724 = vmatprep.subr.mxu0 %v6943_v30  ;;  %v13714_v30 = vld [vmem:[#allocation71_spill] sm:$0xff]  ;;  %v6470_v15 = vmul.f32 %v13716_v3, %v6353_v46  ;;  %v13724_v46 = vld [vmem:[#allocation28_spill] sm:$0xff] }
 0x5fe   : > { %v6893_v38 = vmul.f32 %v6785_v19, %v13692_v5  ;;  %7725 = vmatpush3.msra.mxu0 %v6927_v55  ;;  %v6519_v57 = vadd.f32 %v6487_v60, %v13711_v12  ;;  %v6503_v5 = vadd.f32 %v6471_v25, %v13714_v30 }
 0x5ff   : > { %7726 = vmatprep.subr.mxu0 %v6942_v31  ;;  %v6837_v58 = vpop.permute.xlu0 %6836  ;;  %v6502_v13 = vadd.f32 %v6470_v15, %v13719_v10  ;;  %v6990_v10 = vld [vmem:[#allocation2 + $0x8] sm:$0xff] }
 0x600   : > { %v6925_v54 = vadd.f32 %v6893_v38, %v13696_v7  ;;  %7727 = vmatpush3.msra.mxu0 %v13196_v9  ;;  %v6504_v9 = vadd.f32 %v6472_v18, %v13703_v1  ;;  %v6906_v62 = vmul.f32 %v13709_v32, %v6837_v58  ;;  %v13715_v38 = vld [vmem:[#allocation25_spill] sm:$0xff] }
 0x601   : > { %7728 = vmatprep.subr.mxu0 %v6941_v24 }
 0x602   : > { %v5997_v35 = vpop.permute.xlu1 %5996  ;;  %7729 = vmatpush3.msra.mxu0 %v6925_v54  ;;  %v13718_v54 = vld [vmem:[#allocation70_spill] sm:$0xff] }
 0x603   : > { %v6066_v34 = vmul.f32 %v13705_v14, %v5997_v35  ;;  %v13726_v14 = vld [vmem:[#allocation27_spill] sm:$0xff] }
 0x605   : > { %v6098_v40 = vadd.f32 %v6066_v34, %v5646_v47 }
 0x607   : > { %v6845_v16 = vpop.permute.xlu1 %6844 }
 0x608   : > { %v6908_v11 = vmul.f32 %v13700_v49, %v6845_v16  ;;  %v6769_v16 = vpop.permute.xlu0 %6768 }
 0x609   : > { %v6889_v48 = vmul.f32 %v6769_v16, %v13724_v46 }
 0x60a   : > { %v6940_v59 = vadd.f32 %v6908_v11, %v6520_v20  ;;  %v13722_v20 = vld [vmem:[#allocation22_spill] sm:$0xff] }
 0x60b   : > { %v6781_v44 = vpop.permute.xlu1 %6780  ;;  %v13723_v11 = vld [vmem:[#allocation58_spill] sm:$0xff] }
 0x60c   : > { %v6892_v43 = vmul.f32 %v13704_v21, %v6781_v44  ;;  %7730 = vmatprep.subr.mxu0 %v6940_v59  ;;  %v6761_v8 = vpop.permute.xlu0 %6760 }
 0x60e   : > { %v6924_v37 = vadd.f32 %v6892_v43, %v6504_v9  ;;  %v13725_v9 = vld [vmem:[#allocation63_spill] sm:$0xff] }
 0x60f   : > { %v6484_v21 = vmul.f32 %v13725_v9, %v6409_v4 }
 0x610   : > { %v6417_v39 = vpop.permute.xlu1 %6416  ;;  %7731 = vmatpush3.msra.mxu0 %v6924_v37  ;;  %v13727_v37 = vld [vmem:[#allocation34_spill] sm:$0xff] }
 0x611   : > { %v6486_v26 = vmul.f32 %v13708_v22, %v6417_v39  ;;  %v6516_v36 = vadd.f32 %v6484_v21, %v13727_v37 }
 0x613   : > { %v6518_v41 = vadd.f32 %v6486_v26, %v6098_v40  ;;  %v13729_v40 = vld [vmem:[#allocation64_spill] sm:$0xff]  ;;  %v13730_v26 = vld [vmem:[#allocation66_spill] sm:$0xff] }
 0x615   : > { %v6841_v2 = vpop.permute.xlu1 %6840  ;;  %v6938_v6 = vadd.f32 %v6906_v62, %v6518_v41  ;;  %v13731_v62 = vld [vmem:[#allocation15_spill] sm:$0xff] }
 0x616   : > { %v6907_v19 = vmul.f32 %v6841_v2, %v13712_v52  ;;  %v13732_v2 = vld [vmem:[#allocation29_spill] sm:$0xff]  ;;  %v13734_v52 = vld [vmem:[#allocation50_spill] sm:$0xff] }
 0x617   : > { %v6467_v4 = vmul.f32 %v13263_v42, %v13732_v2 }
 0x618   : > { %v6939_v51 = vadd.f32 %v6907_v19, %v6519_v57 }
 0x619   : > { %v6777_v61 = vpop.permute.xlu1 %6776 }
 0x61a   : > { %v6891_v55 = vmul.f32 %v6777_v61, %v13715_v38  ;;  %7732 = vmatprep.subr.mxu0 %v6939_v51  ;;  %v13736_v51 = vld [vmem:[#allocation65_spill] sm:$0xff]  ;;  %v13737_v38 = vmov 1.0  }
 0x61b   : > { %v6499_v61 = vadd.f32 %v6467_v4, %v13736_v51 }
 0x61c   : > { %v6923_v31 = vadd.f32 %v6891_v55, %v6503_v5 }
 0x61e   : > { %v6413_v63 = vpop.permute.xlu1 %6412  ;;  %7733 = vmatpush3.msra.mxu0 %v6923_v31 }
 0x61f   : > { %7734 = vmatprep.subr.mxu0 %v6938_v6  ;;  %v6485_v24 = vmul.f32 %v6413_v63, %v13718_v54  ;;  %v13733_v6 = vld [vmem:[#allocation8_spill] sm:$0xff] }
 0x620   : > { %v6887_v12 = vmul.f32 %v6761_v8, %v13733_v6 }
 0x621   : > { %v6517_v49 = vadd.f32 %v6485_v24, %v13722_v20 }
 0x622   : > { %v6349_v53 = vpop.permute.xlu1 %6348  ;;  %v6919_v5 = vadd.f32 %v6887_v12, %v6499_v61 }
 0x623   : > { %v6469_v33 = vmul.f32 %v6349_v53, %v13717_v27  ;;  %v6989_v27 = vld [vmem:[#allocation2] sm:$0xff] }
 0x625   : > { %v6501_v28 = vadd.f32 %v6469_v33, %v13721_v56  ;;  %v6991_v56 = vld [vmem:[#allocation2 + $0x10] sm:$0xff] }
 0x627   : > { %v6773_v7 = vpop.permute.xlu1 %6772  ;;  %v6921_v59 = vadd.f32 %v6889_v48, %v6501_v28 }
 0x628   : > { %v6890_v0 = vmul.f32 %v13720_v50, %v6773_v7 }
 0x62a   : > { %v6922_v35 = vadd.f32 %v6890_v0, %v6502_v13 }
 0x62b   : > { %v6833_v17 = vpop.permute.xlu1 %6832 }
 0x62c   : > { %v6905_v29 = vmul.f32 %v6833_v17, %v13723_v11  ;;  %7735 = vmatpush3.msra.mxu0 %v6922_v35 }
 0x62e   : > { %v6937_v18 = vadd.f32 %v6905_v29, %v6517_v49  ;;  %v6992_v49 = vld [vmem:[#allocation2 + $0x18] sm:$0xff] }
 0x630   : > { %v6345_v44 = vpop.permute.xlu1 %6344  ;;  %7736 = vmatprep.subr.mxu0 %v6937_v18 }
 0x631   : > { %7737 = vmatpush3.msra.mxu0 %v6921_v59  ;;  %v6468_v34 = vmul.f32 %v13726_v14, %v6345_v44 }
 0x633   : > { %v6500_v22 = vadd.f32 %v6468_v34, %v13729_v40 }
 0x634   : > { %v6405_v1 = vpop.permute.xlu1 %6404 }
 0x635   : > { %v6483_v32 = vmul.f32 %v6405_v1, %v13730_v26 }
 0x637   : > { %v6515_v19 = vadd.f32 %v6483_v32, %v13734_v52 }
 0x639   : > { %v6829_v43 = vpop.permute.xlu1 %6828 }
 0x63a   : > { %v6904_v47 = vmul.f32 %v13728_v23, %v6829_v43 }
 0x63c   : > { %v6936_v58 = vadd.f32 %v6904_v47, %v6516_v36 }
 0x63d   : > { %v6765_v39 = vpop.permute.xlu1 %6764 }
 0x63e   : > { %v6888_v41 = vmul.f32 %v13731_v62, %v6765_v39  ;;  %7738 = vmatprep.subr.mxu0 %v6936_v58 }
 0x640   : > { %v6920_v60 = vadd.f32 %v6888_v41, %v6500_v22 }
 0x641   : > { %v6825_v57 = vpop.permute.xlu1 %6824 }
 0x642   : > { %v6903_v25 = vmul.f32 %v6825_v57, %v13735_v45  ;;  %7739 = vmatpush3.msra.mxu0 %v6920_v60 }
 0x644   : > { %v6935_v30 = vadd.f32 %v6903_v25, %v6515_v19 }
 0x646   : > { %7740 = vmatprep.subr.mxu0 %v6935_v30 }
 0x647   : > { %7741 = vmatpush3.msra.mxu0 %v6919_v5 }
 0x648   : > { %7520 = vmatmul.mubr.msk.f32.vlgmr.msra.gmra.mxu0 %vm6965_vm12, %v13737_v38 }
 0x649   : > { %7521 = vmatprep.mubr.msk.f32.mxu0 %vm6968_vm14, %v13737_v38 }
 0x64c   : > { %7522 = vmatmul.mubr.msk.f32.gmra.mxu0 %vm6967_vm15, %v13737_v38 }
 0x64d   : > { %7523 = vmatprep.mubr.msk.f32.mxu0 %vm6970_vm0, %v13737_v38 }
 0x650   : > { %7524 = vmatmul.mubr.msk.f32.gmra.mxu0 %vm6969_vm1, %v13737_v38 }
 0x651   : > { %7525 = vmatprep.mubr.msk.f32.mxu0 %vm6972_vm11, %v13737_v38 }
 0x654   : > { %7526 = vmatmul.mubr.msk.f32.gmra.mxu0 %vm6971_vm2, %v13737_v38 }
 0x708   : > { %v7742_v15 = vpop.f32.mrf.mxu0 }
 0x70a   : > { %v7743_v33 = vpop.f32.mrf.mxu0 }
 0x70b   : > { %v7744_v7 = vadd.f32 %v7743_v33, %v7742_v15 }
 0x70c   : > { %v7745_v54 = vpop.f32.mrf.mxu0 }
 0x70d   : > { %v7078_v24 = vadd.f32 %v7744_v7, %v6989_v27 }
 0x70e   : > { %v7746_v13 = vpop.f32.mrf.mxu0 }
 0x70f   : > { %7082 = vst [vmem:[#allocation2] sm:$0xff] %v7078_v24  ;;  %v7747_v50 = vadd.f32 %v7746_v13, %v7745_v54 }
 0x710   : > { %v7748_v0 = vpop.f32.mrf.mxu0 }
 0x711   : > { %v7079_v35 = vadd.f32 %v7747_v50, %v6990_v10 }
 0x712   : > { %v7749_v28 = vpop.f32.mrf.mxu0 }
 0x713   : > { %7083 = vst [vmem:[#allocation2 + $0x8] sm:$0xff] %v7079_v35  ;;  %v7750_v17 = vadd.f32 %v7749_v28, %v7748_v0 }
 0x714   : > { %v7751_v16 = vpop.f32.mrf.mxu0 }
 0x715   : > { %v7080_v20 = vadd.f32 %v7750_v17, %v6991_v56 }
 0x716   : > { %v7752_v11 = vpop.f32.mrf.mxu0 }
 0x717   : > { %7084 = vst [vmem:[#allocation2 + $0x10] sm:$0xff] %v7080_v20  ;;  %v7753_v29 = vadd.f32 %v7752_v11, %v7751_v16 }
 0x719   : > { %v7081_v46 = vadd.f32 %v7753_v29, %v6992_v49 }
 0x71b   : > { %7085 = vst [vmem:[#allocation2 + $0x18] sm:$0xff] %v7081_v46 }
 0x71c   : > { %8547 = shalt.err (!%p8544_p0)
}
 0x71d   : > { %s8599_s26 = smov 128   ;;  %s8600_s30 = smov 8  }
 0x71e   : > { %8165 = dma.vmem_to_hbm [thread:$0]  (%p13332_p7), %s7096_s22, 512, %s13364_s8, [#allocation3], %s8599_s26, %s8599_s26, %s8600_s30  }
 0x71f   : > { %8571 = dma.done.wait (%p13332_p7), [#allocation3], 512  }
 0x720   : > { %8573 = vsyncadd (%p13332_p7), [#allocation3], 4294966784 }
 0x721 PF: > { %s19_s29 = sadd.s32 1, %s8584_s29   ;;  %s13745_s27 = smov %s8580_s28 }
 0x722   : > { %p16_p1 = scmp.ge.s32.totalorder %s19_s29, 4   ;;  %s13746_s28 = smov %s13748_s9 }
 0x724   :  { %18 = sbr.rel (!%p16_p1) target bundleno = 2 (0x2), region = 97 }
 0x729   :  { %7111 = vsyncpa [#allocation3], 1 }
 0x72a   :  { %7113 = vsyncpa [#allocation3 + $0x1], 1 }

</bundles_post_ra>
